<compile_context>
chip_gen: v5e
topology: v5e:2x2
jax: 0.10.0
libtpu: 0.0.40
codegen_flags: <defaults>
</compile_context>

<pallas_src>
import functools

import jax
import jax.numpy as jnp
from jax.experimental import pallas as pl
from jax.experimental.pallas import tpu as pltpu


_TM = 512  # row-tile size (rows of the patch matrix per grid step)


# ----------------------------- Pallas kernels ------------------------------

def _conv_kernel(p_ref, w_ref, b_ref, o_ref):
    """relu(P @ W + b).  P:(TM,K) bf16, W:(K,Cout) bf16 (BN scale folded),
    b:(1,Cout) f32.  f32 accumulation + f32 epilogue, store in o_ref.dtype."""
    acc = jnp.dot(p_ref[...], w_ref[...], preferred_element_type=jnp.float32)
    o_ref[...] = jnp.maximum(acc + b_ref[...], 0.0).astype(o_ref.dtype)


def _dual_1x1_kernel(p_ref, w_ref, b_ref, o0_ref, o1_ref):
    """Two sibling 1x1 convs sharing one input: one matmul with the weights
    concatenated along Cout, two separate outputs (no XLA slice afterwards)."""
    y = jnp.dot(p_ref[...], w_ref[...], preferred_element_type=jnp.float32)
    y = jnp.maximum(y + b_ref[...], 0.0)
    c0 = o0_ref.shape[-1]
    o0_ref[...] = y[:, :c0].astype(o0_ref.dtype)
    o1_ref[...] = y[:, c0:].astype(o1_ref.dtype)


def _dual_conv_concat_kernel(p0_ref, w0_ref, b0_ref, p1_ref, w1_ref, b1_ref,
                             o_ref):
    """Two sibling convs (different inputs, same output geometry) fused into
    one kernel.  Each branch is stored directly into its lane slice of the
    output ref (no in-kernel concatenate)."""
    c0 = w0_ref.shape[-1]
    y0 = jnp.dot(p0_ref[...], w0_ref[...], preferred_element_type=jnp.float32)
    o_ref[:, :c0] = jnp.maximum(y0 + b0_ref[...], 0.0).astype(o_ref.dtype)
    y1 = jnp.dot(p1_ref[...], w1_ref[...], preferred_element_type=jnp.float32)
    o_ref[:, c0:] = jnp.maximum(y1 + b1_ref[...], 0.0).astype(o_ref.dtype)


def _make_conv_pool_kernel(ntaps, cin, pool_first):
    """Fused [3x3/s2 conv branch + 3x3/s2 maxpool branch] reading one shared
    bf16 im2col slab p:(TM, ntaps*cin).  Conv = ONE deep-K MXU matmul
    (K = ntaps*cin); pool = running max over per-tap slices (only one tap
    slice live at a time).  Branches are written directly into their lane
    slices of the output ref."""
    def kernel(p_ref, w_ref, b_ref, o_ref):
        cc = w_ref.shape[-1]
        acc = jnp.dot(p_ref[...], w_ref[...], preferred_element_type=jnp.float32)
        conv = jnp.maximum(acc + b_ref[...], 0.0)                 # (TM, Cc) f32
        pool = p_ref[:, :cin]                                     # (TM, Cin) bf16
        for t in range(1, ntaps):                                 # unrolled taps
            pool = jnp.maximum(pool, p_ref[:, t * cin:(t + 1) * cin])
        if pool_first:
            o_ref[:, :cin] = pool.astype(o_ref.dtype)
            o_ref[:, cin:] = conv.astype(o_ref.dtype)
        else:
            o_ref[:, :cc] = conv.astype(o_ref.dtype)
            o_ref[:, cc:] = pool.astype(o_ref.dtype)
    return kernel


def _row_call(kernel, m, args, row_tiled, out_shapes):
    """pallas_call gridded over the patch-row (M) axis.

    Row-tiled operands (patch matrices) get (TM, K) blocks walked along M;
    weights/biases are whole-array blocks resident across the grid.  Outputs
    are (M, C) arrays tiled (TM, C).  The M axis is "parallel" so v7x shards
    rows across both TensorCores; vmem_limit_bytes keeps the tiling portable
    to v7x's 64 MiB VMEM and raises v5e's 16 MiB scoped default."""
    tm = _TM if m >= _TM else m
    grid = (pl.cdiv(m, tm),)

    in_specs = []
    for a, tiled in zip(args, row_tiled):
        if tiled:
            in_specs.append(pl.BlockSpec((tm, a.shape[-1]), lambda i: (i, 0)))
        else:
            in_specs.append(
                pl.BlockSpec(a.shape, lambda i, _nd=a.ndim: (0,) * _nd))

    single = not isinstance(out_shapes, (tuple, list))
    outs = (out_shapes,) if single else tuple(out_shapes)
    out_specs = tuple(pl.BlockSpec((tm, s.shape[-1]), lambda i: (i, 0))
                      for s in outs)

    result = pl.pallas_call(
        kernel,
        grid=grid,
        in_specs=in_specs,
        out_specs=out_specs[0] if single else out_specs,
        out_shape=outs[0] if single else outs,
        compiler_params=pltpu.CompilerParams(
            dimension_semantics=("parallel",),
            vmem_limit_bytes=48 * 1024 * 1024),
    )(*args)
    return result


# ------------------------- XLA-side patch helpers ---------------------------

def _im2col(x, kh, kw, stride, padding, dtype=jnp.bfloat16):
    """(M, KH*KW*Cin) bf16 patch matrix, columns ordered (kh, kw, cin)."""
    N, H, W, C = x.shape
    sh, sw = stride
    ph, pw = padding
    if ph or pw:
        x = jnp.pad(x, ((0, 0), (ph, ph), (pw, pw), (0, 0)))
    Ho = (H + 2 * ph - kh) // sh + 1
    Wo = (W + 2 * pw - kw) // sw + 1
    M = N * Ho * Wo
    cols = [x[:, dy:dy + sh * Ho:sh, dx:dx + sw * Wo:sw, :]
            for dy in range(kh) for dx in range(kw)]
    pm = jnp.concatenate(cols, axis=-1).reshape(M, kh * kw * C).astype(dtype)
    return pm, (N, Ho, Wo)


# ------------------------------ layer wrappers -------------------------------

def conv_bn_relu(x, p, stride=(1, 1), padding=(0, 0), out_dtype=jnp.bfloat16):
    pm, (N, Ho, Wo) = _im2col(x, p["kh"], p["kw"], stride, padding)
    cout = p["w"].shape[-1]
    M = pm.shape[0]
    out = _row_call(_conv_kernel, M, [pm, p["w"], p["b"]],
                    [True, False, False],
                    jax.ShapeDtypeStruct((M, cout), out_dtype))
    return out.reshape(N, Ho, Wo, cout)


def dual_1x1_bn_relu(x, p0, p1):
    """Two 1x1 BasicConv2d sharing the same input -> one matmul, two outputs."""
    N, H, W, C = x.shape
    pm = x.reshape(N * H * W, C).astype(jnp.bfloat16)
    w = jnp.concatenate([p0["w"], p1["w"]], axis=-1)
    b = jnp.concatenate([p0["b"], p1["b"]], axis=-1)
    c0, c1 = p0["w"].shape[-1], p1["w"].shape[-1]
    M = pm.shape[0]
    o0, o1 = _row_call(_dual_1x1_kernel, M, [pm, w, b],
                       [True, False, False],
                       (jax.ShapeDtypeStruct((M, c0), jnp.bfloat16),
                        jax.ShapeDtypeStruct((M, c1), jnp.bfloat16)))
    return o0.reshape(N, H, W, c0), o1.reshape(N, H, W, c1)


def dual_conv3x3_concat(x0, p0, x1, p1, out_dtype=jnp.bfloat16):
    """Final 3x3 convs of mixed_4a's two branches -> one kernel, 192-lane out."""
    pm0, (N, Ho, Wo) = _im2col(x0, 3, 3, (1, 1), (0, 0))
    pm1, _ = _im2col(x1, 3, 3, (1, 1), (0, 0))
    c0, c1 = p0["w"].shape[-1], p1["w"].shape[-1]
    M = pm0.shape[0]
    out = _row_call(_dual_conv_concat_kernel, M,
                    [pm0, p0["w"], p0["b"], pm1, p1["w"], p1["b"]],
                    [True, False, False, True, False, False],
                    jax.ShapeDtypeStruct((M, c0 + c1), out_dtype))
    return out.reshape(N, Ho, Wo, c0 + c1)


def conv_pool_concat(x, p, pool_first, out_dtype):
    """mixed_3a / mixed_5a: BasicConv2d(3x3,s2) branch + MaxPool2d(3x3,s2)
    branch fused into one kernel reading one shared bf16 im2col slab."""
    pm, (N, Ho, Wo) = _im2col(x, 3, 3, (2, 2), (0, 0))
    cin = x.shape[-1]
    cc = p["w"].shape[-1]
    M = pm.shape[0]
    out = _row_call(_make_conv_pool_kernel(9, cin, pool_first), M,
                    [pm, p["w"], p["b"]], [True, False, False],
                    jax.ShapeDtypeStruct((M, cin + cc), out_dtype))
    return out.reshape(N, Ho, Wo, cin + cc)


# --------------------------- parameter creation -----------------------------

def make_basic_conv(key, cin, cout, kh, kw, eps=1e-3):
    """BasicConv2d params with BN (eps=1e-3, as in the module) folded to
    inference-mode affine using fresh stats (mean=0, var=1, gamma=1, beta=0).
    The BN scale is folded directly into the bf16 conv weight."""
    w = jax.random.normal(key, (kh, kw, cin, cout), jnp.float32) * 0.05
    gamma = jnp.ones((cout,), jnp.float32)
    beta = jnp.zeros((cout,), jnp.float32)
    r_mean = jnp.zeros((cout,), jnp.float32)
    r_var = jnp.ones((cout,), jnp.float32)
    scale = gamma / jnp.sqrt(r_var + eps)
    w_folded = (w * scale).reshape(kh * kw * cin, cout).astype(jnp.bfloat16)
    bias = (beta - r_mean * scale).reshape(1, cout).astype(jnp.float32)
    return {"w": w_folded, "b": bias, "kh": kh, "kw": kw}


def init_stem_params(key, in_channels):
    spec = {
        "conv2d_1a_3x3":     (in_channels, 32, 3, 3),
        "conv2d_2a_3x3":     (32, 32, 3, 3),
        "conv2d_2b_3x3":     (32, 64, 3, 3),
        "mixed_3a_branch_1": (64, 96, 3, 3),
        "mixed_4a_b0_0":     (160, 64, 1, 1),
        "mixed_4a_b0_1":     (64, 96, 3, 3),
        "mixed_4a_b1_0":     (160, 64, 1, 1),
        "mixed_4a_b1_1":     (64, 64, 1, 7),
        "mixed_4a_b1_2":     (64, 64, 7, 1),
        "mixed_4a_b1_3":     (64, 96, 3, 3),
        "mixed_5a_branch_0": (192, 192, 3, 3),
    }
    keys = jax.random.split(key, len(spec))
    return {name: make_basic_conv(k, *cfg)
            for k, (name, cfg) in zip(keys, spec.items())}


# ------------------------------- forward ------------------------------------

def inception_v4_stem(x_nchw, params):
    x = jnp.transpose(x_nchw, (0, 2, 3, 1)).astype(jnp.float32)   # -> NHWC

    out = conv_bn_relu(x, params["conv2d_1a_3x3"], (2, 2), (0, 0))
    out = conv_bn_relu(out, params["conv2d_2a_3x3"], (1, 1), (0, 0))
    out = conv_bn_relu(out, params["conv2d_2b_3x3"], (1, 1), (1, 1))

    # mixed_3a: [maxpool(64), conv3x3/s2(96)] -> 160 channels, one fused kernel.
    m3 = conv_pool_concat(out, params["mixed_3a_branch_1"], pool_first=True,
                          out_dtype=jnp.bfloat16)

    # mixed_4a
    a0, a1 = dual_1x1_bn_relu(m3, params["mixed_4a_b0_0"],
                              params["mixed_4a_b1_0"])              # 64 + 64
    a1 = conv_bn_relu(a1, params["mixed_4a_b1_1"], (1, 1), (0, 3))  # 1x7
    a1 = conv_bn_relu(a1, params["mixed_4a_b1_2"], (1, 1), (3, 0))  # 7x1
    m4 = dual_conv3x3_concat(a0, params["mixed_4a_b0_1"],
                             a1, params["mixed_4a_b1_3"])           # 96+96=192

    # mixed_5a: [conv3x3/s2(192), maxpool(192)] -> 384 channels, one fused kernel.
    m5 = conv_pool_concat(m4, params["mixed_5a_branch_0"], pool_first=False,
                          out_dtype=jnp.float32)

    return jnp.transpose(m5, (0, 3, 1, 2))                          # -> NCHW


# --------------------------------- main --------------------------------------

if __name__ == "__main__":
    key = jax.random.PRNGKey(0)
    k_params, k_x = jax.random.split(key)

    in_channels = 4
    # 29x29 spatial is the smallest "round" size that survives every
    # valid-stride-2 stage of the stem (29->14->12->12->5->5->3->1).
    x = jax.random.normal(k_x, (2, in_channels, 29, 29), jnp.float32)

    params = init_stem_params(k_params, in_channels)

    fwd = jax.jit(functools.partial(inception_v4_stem, params=params))
    out = fwd(x)
    out = jax.block_until_ready(out)

    assert out.shape == (2, 384, 1, 1), out.shape
    assert out.dtype == jnp.float32
    print("KERNEL_OK")
</pallas_src>

<mosaic_0001>
module attributes {stable_mosaic.version = 11 : i64} {
  func.func @_conv_kernel(%arg0: i32, %arg1: memref<392x36xbf16, #tpu.memory_space<vmem>>, %arg2: memref<36x32xbf16, #tpu.memory_space<vmem>>, %arg3: memref<1x32xf32, #tpu.memory_space<vmem>>, %arg4: memref<392x32xbf16, #tpu.memory_space<vmem>>) attributes {dimension_semantics = [#tpu.dimension_semantics<parallel>], iteration_bounds = array<i64: 1>, scalar_prefetch = 0 : i64, scratch_operands = 0 : i64, tpu.core_type = #tpu.core_type<tc>, window_params = [{transform_indices = @transform_0, window_bounds = array<i64: 392, 36>}, {pipeline_mode = #tpu.pipeline_mode<synchronous>, transform_indices = @transform_1, window_bounds = array<i64: 36, 32>}, {pipeline_mode = #tpu.pipeline_mode<synchronous>, transform_indices = @transform_2, window_bounds = array<i64: 1, 32>}, {transform_indices = @transform_3, window_bounds = array<i64: 392, 32>}]} {
    %c0 = arith.constant 0 : index
    %c0_0 = arith.constant 0 : index
    %0 = vector.load %arg1[%c0, %c0_0] : memref<392x36xbf16, #tpu.memory_space<vmem>>, vector<392x36xbf16>
    %c0_1 = arith.constant 0 : index
    %c0_2 = arith.constant 0 : index
    %1 = vector.load %arg2[%c0_1, %c0_2] : memref<36x32xbf16, #tpu.memory_space<vmem>>, vector<36x32xbf16>
    %cst = arith.constant dense<0.000000e+00> : vector<392x32xf32>
    %2 = tpu.matmul %0, %1, %cst {dimension_numbers = #tpu.dot_dimension_numbers<[1], [0], [0], [1], [0, 0, 1, 1], [], []>} : vector<392x36xbf16>, vector<36x32xbf16>, vector<392x32xf32> -> vector<392x32xf32>
    %c0_3 = arith.constant 0 : index
    %c0_4 = arith.constant 0 : index
    %3 = vector.load %arg3[%c0_3, %c0_4] : memref<1x32xf32, #tpu.memory_space<vmem>>, vector<1x32xf32>
    %4 = vector.broadcast %3 : vector<1x32xf32> to vector<392x32xf32>
    %5 = arith.addf %2, %4 : vector<392x32xf32>
    %cst_5 = arith.constant 0.000000e+00 : f32
    %6 = vector.broadcast %cst_5 : f32 to vector<392x32xf32>
    %7 = arith.maximumf %5, %6 : vector<392x32xf32>
    %8 = arith.truncf %7 : vector<392x32xf32> to vector<392x32xbf16>
    %c0_6 = arith.constant 0 : index
    %c0_7 = arith.constant 0 : index
    %9 = vector.load %arg4[%c0_6, %c0_7] : memref<392x32xbf16, #tpu.memory_space<vmem>>, vector<392x32xbf16>
    tpu.vector_store %arg4[%c0_6, %c0_7], %8 {strides = array<i32>} : memref<392x32xbf16, #tpu.memory_space<vmem>>, vector<392x32xbf16>,
    return
  }
  func.func @transform_0(%arg0: i32) -> (i32, i32) {
    %c0_i32 = arith.constant 0 : i32
    %c0_i32_0 = arith.constant 0 : i32
    return %arg0, %c0_i32 : i32, i32
  }
  func.func @transform_1(%arg0: i32) -> (i32, i32) {
    %c0_i32 = arith.constant 0 : i32
    %c0_i32_0 = arith.constant 0 : i32
    %c0_i32_1 = arith.constant 0 : i32
    return %c0_i32, %c0_i32_0 : i32, i32
  }
  func.func @transform_2(%arg0: i32) -> (i32, i32) {
    %c0_i32 = arith.constant 0 : i32
    %c0_i32_0 = arith.constant 0 : i32
    %c0_i32_1 = arith.constant 0 : i32
    return %c0_i32, %c0_i32_0 : i32, i32
  }
  func.func @transform_3(%arg0: i32) -> (i32, i32) {
    %c0_i32 = arith.constant 0 : i32
    %c0_i32_0 = arith.constant 0 : i32
    return %arg0, %c0_i32 : i32, i32
  }
}

module attributes {stable_mosaic.version = 11 : i64} {
  func.func @_conv_kernel(%arg0: i32, %arg1: memref<288x288xbf16, #tpu.memory_space<vmem>>, %arg2: memref<288x32xbf16, #tpu.memory_space<vmem>>, %arg3: memref<1x32xf32, #tpu.memory_space<vmem>>, %arg4: memref<288x32xbf16, #tpu.memory_space<vmem>>) attributes {dimension_semantics = [#tpu.dimension_semantics<parallel>], iteration_bounds = array<i64: 1>, scalar_prefetch = 0 : i64, scratch_operands = 0 : i64, tpu.core_type = #tpu.core_type<tc>, window_params = [{transform_indices = @transform_0, window_bounds = array<i64: 288, 288>}, {pipeline_mode = #tpu.pipeline_mode<synchronous>, transform_indices = @transform_1, window_bounds = array<i64: 288, 32>}, {pipeline_mode = #tpu.pipeline_mode<synchronous>, transform_indices = @transform_2, window_bounds = array<i64: 1, 32>}, {transform_indices = @transform_3, window_bounds = array<i64: 288, 32>}]} {
    %c0 = arith.constant 0 : index
    %c0_0 = arith.constant 0 : index
    %0 = vector.load %arg1[%c0, %c0_0] : memref<288x288xbf16, #tpu.memory_space<vmem>>, vector<288x288xbf16>
    %c0_1 = arith.constant 0 : index
    %c0_2 = arith.constant 0 : index
    %1 = vector.load %arg2[%c0_1, %c0_2] : memref<288x32xbf16, #tpu.memory_space<vmem>>, vector<288x32xbf16>
    %cst = arith.constant dense<0.000000e+00> : vector<288x32xf32>
    %2 = tpu.matmul %0, %1, %cst {dimension_numbers = #tpu.dot_dimension_numbers<[1], [0], [0], [1], [0, 0, 1, 1], [], []>} : vector<288x288xbf16>, vector<288x32xbf16>, vector<288x32xf32> -> vector<288x32xf32>
    %c0_3 = arith.constant 0 : index
    %c0_4 = arith.constant 0 : index
    %3 = vector.load %arg3[%c0_3, %c0_4] : memref<1x32xf32, #tpu.memory_space<vmem>>, vector<1x32xf32>
    %4 = vector.broadcast %3 : vector<1x32xf32> to vector<288x32xf32>
    %5 = arith.addf %2, %4 : vector<288x32xf32>
    %cst_5 = arith.constant 0.000000e+00 : f32
    %6 = vector.broadcast %cst_5 : f32 to vector<288x32xf32>
    %7 = arith.maximumf %5, %6 : vector<288x32xf32>
    %8 = arith.truncf %7 : vector<288x32xf32> to vector<288x32xbf16>
    %c0_6 = arith.constant 0 : index
    %c0_7 = arith.constant 0 : index
    %9 = vector.load %arg4[%c0_6, %c0_7] : memref<288x32xbf16, #tpu.memory_space<vmem>>, vector<288x32xbf16>
    tpu.vector_store %arg4[%c0_6, %c0_7], %8 {strides = array<i32>} : memref<288x32xbf16, #tpu.memory_space<vmem>>, vector<288x32xbf16>,
    return
  }
  func.func @transform_0(%arg0: i32) -> (i32, i32) {
    %c0_i32 = arith.constant 0 : i32
    %c0_i32_0 = arith.constant 0 : i32
    return %arg0, %c0_i32 : i32, i32
  }
  func.func @transform_1(%arg0: i32) -> (i32, i32) {
    %c0_i32 = arith.constant 0 : i32
    %c0_i32_0 = arith.constant 0 : i32
    %c0_i32_1 = arith.constant 0 : i32
    return %c0_i32, %c0_i32_0 : i32, i32
  }
  func.func @transform_2(%arg0: i32) -> (i32, i32) {
    %c0_i32 = arith.constant 0 : i32
    %c0_i32_0 = arith.constant 0 : i32
    %c0_i32_1 = arith.constant 0 : i32
    return %c0_i32, %c0_i32_0 : i32, i32
  }
  func.func @transform_3(%arg0: i32) -> (i32, i32) {
    %c0_i32 = arith.constant 0 : i32
    %c0_i32_0 = arith.constant 0 : i32
    return %arg0, %c0_i32 : i32, i32
  }
}

module attributes {stable_mosaic.version = 11 : i64} {
  func.func @_conv_kernel(%arg0: i32, %arg1: memref<288x288xbf16, #tpu.memory_space<vmem>>, %arg2: memref<288x64xbf16, #tpu.memory_space<vmem>>, %arg3: memref<1x64xf32, #tpu.memory_space<vmem>>, %arg4: memref<288x64xbf16, #tpu.memory_space<vmem>>) attributes {dimension_semantics = [#tpu.dimension_semantics<parallel>], iteration_bounds = array<i64: 1>, scalar_prefetch = 0 : i64, scratch_operands = 0 : i64, tpu.core_type = #tpu.core_type<tc>, window_params = [{transform_indices = @transform_0, window_bounds = array<i64: 288, 288>}, {pipeline_mode = #tpu.pipeline_mode<synchronous>, transform_indices = @transform_1, window_bounds = array<i64: 288, 64>}, {pipeline_mode = #tpu.pipeline_mode<synchronous>, transform_indices = @transform_2, window_bounds = array<i64: 1, 64>}, {transform_indices = @transform_3, window_bounds = array<i64: 288, 64>}]} {
    %c0 = arith.constant 0 : index
    %c0_0 = arith.constant 0 : index
    %0 = vector.load %arg1[%c0, %c0_0] : memref<288x288xbf16, #tpu.memory_space<vmem>>, vector<288x288xbf16>
    %c0_1 = arith.constant 0 : index
    %c0_2 = arith.constant 0 : index
    %1 = vector.load %arg2[%c0_1, %c0_2] : memref<288x64xbf16, #tpu.memory_space<vmem>>, vector<288x64xbf16>
    %cst = arith.constant dense<0.000000e+00> : vector<288x64xf32>
    %2 = tpu.matmul %0, %1, %cst {dimension_numbers = #tpu.dot_dimension_numbers<[1], [0], [0], [1], [0, 0, 1, 1], [], []>} : vector<288x288xbf16>, vector<288x64xbf16>, vector<288x64xf32> -> vector<288x64xf32>
    %c0_3 = arith.constant 0 : index
    %c0_4 = arith.constant 0 : index
    %3 = vector.load %arg3[%c0_3, %c0_4] : memref<1x64xf32, #tpu.memory_space<vmem>>, vector<1x64xf32>
    %4 = vector.broadcast %3 : vector<1x64xf32> to vector<288x64xf32>
    %5 = arith.addf %2, %4 : vector<288x64xf32>
    %cst_5 = arith.constant 0.000000e+00 : f32
    %6 = vector.broadcast %cst_5 : f32 to vector<288x64xf32>
    %7 = arith.maximumf %5, %6 : vector<288x64xf32>
    %8 = arith.truncf %7 : vector<288x64xf32> to vector<288x64xbf16>
    %c0_6 = arith.constant 0 : index
    %c0_7 = arith.constant 0 : index
    %9 = vector.load %arg4[%c0_6, %c0_7] : memref<288x64xbf16, #tpu.memory_space<vmem>>, vector<288x64xbf16>
    tpu.vector_store %arg4[%c0_6, %c0_7], %8 {strides = array<i32>} : memref<288x64xbf16, #tpu.memory_space<vmem>>, vector<288x64xbf16>,
    return
  }
  func.func @transform_0(%arg0: i32) -> (i32, i32) {
    %c0_i32 = arith.constant 0 : i32
    %c0_i32_0 = arith.constant 0 : i32
    return %arg0, %c0_i32 : i32, i32
  }
  func.func @transform_1(%arg0: i32) -> (i32, i32) {
    %c0_i32 = arith.constant 0 : i32
    %c0_i32_0 = arith.constant 0 : i32
    %c0_i32_1 = arith.constant 0 : i32
    return %c0_i32, %c0_i32_0 : i32, i32
  }
  func.func @transform_2(%arg0: i32) -> (i32, i32) {
    %c0_i32 = arith.constant 0 : i32
    %c0_i32_0 = arith.constant 0 : i32
    %c0_i32_1 = arith.constant 0 : i32
    return %c0_i32, %c0_i32_0 : i32, i32
  }
  func.func @transform_3(%arg0: i32) -> (i32, i32) {
    %c0_i32 = arith.constant 0 : i32
    %c0_i32_0 = arith.constant 0 : i32
    return %arg0, %c0_i32 : i32, i32
  }
}

module attributes {stable_mosaic.version = 11 : i64} {
  func.func @kernel(%arg0: i32, %arg1: memref<50x576xbf16, #tpu.memory_space<vmem>>, %arg2: memref<576x96xbf16, #tpu.memory_space<vmem>>, %arg3: memref<1x96xf32, #tpu.memory_space<vmem>>, %arg4: memref<50x160xbf16, #tpu.memory_space<vmem>>) attributes {dimension_semantics = [#tpu.dimension_semantics<parallel>], iteration_bounds = array<i64: 1>, scalar_prefetch = 0 : i64, scratch_operands = 0 : i64, tpu.core_type = #tpu.core_type<tc>, window_params = [{transform_indices = @transform_0, window_bounds = array<i64: 50, 576>}, {pipeline_mode = #tpu.pipeline_mode<synchronous>, transform_indices = @transform_1, window_bounds = array<i64: 576, 96>}, {pipeline_mode = #tpu.pipeline_mode<synchronous>, transform_indices = @transform_2, window_bounds = array<i64: 1, 96>}, {transform_indices = @transform_3, window_bounds = array<i64: 50, 160>}]} {
    %c0 = arith.constant 0 : index
    %c0_0 = arith.constant 0 : index
    %0 = vector.load %arg1[%c0, %c0_0] : memref<50x576xbf16, #tpu.memory_space<vmem>>, vector<50x576xbf16>
    %c0_1 = arith.constant 0 : index
    %c0_2 = arith.constant 0 : index
    %1 = vector.load %arg2[%c0_1, %c0_2] : memref<576x96xbf16, #tpu.memory_space<vmem>>, vector<576x96xbf16>
    %cst = arith.constant dense<0.000000e+00> : vector<50x96xf32>
    %2 = tpu.matmul %0, %1, %cst {dimension_numbers = #tpu.dot_dimension_numbers<[1], [0], [0], [1], [0, 0, 1, 1], [], []>} : vector<50x576xbf16>, vector<576x96xbf16>, vector<50x96xf32> -> vector<50x96xf32>
    %c0_3 = arith.constant 0 : index
    %c0_4 = arith.constant 0 : index
    %3 = vector.load %arg3[%c0_3, %c0_4] : memref<1x96xf32, #tpu.memory_space<vmem>>, vector<1x96xf32>
    %4 = vector.broadcast %3 : vector<1x96xf32> to vector<50x96xf32>
    %5 = arith.addf %2, %4 : vector<50x96xf32>
    %cst_5 = arith.constant 0.000000e+00 : f32
    %6 = vector.broadcast %cst_5 : f32 to vector<50x96xf32>
    %7 = arith.maximumf %5, %6 : vector<50x96xf32>
    %c0_6 = arith.constant 0 : index
    %c0_7 = arith.constant 0 : index
    %8 = vector.load %arg1[%c0_6, %c0_7] : memref<50x576xbf16, #tpu.memory_space<vmem>>, vector<50x64xbf16>
    %c0_8 = arith.constant 0 : index
    %c64 = arith.constant 64 : index
    %9 = vector.load %arg1[%c0_8, %c64] : memref<50x576xbf16, #tpu.memory_space<vmem>>, vector<50x64xbf16>
    %10 = arith.maximumf %8, %9 : vector<50x64xbf16>
    %c0_9 = arith.constant 0 : index
    %c128 = arith.constant 128 : index
    %11 = vector.load %arg1[%c0_9, %c128] : memref<50x576xbf16, #tpu.memory_space<vmem>>, vector<50x64xbf16>
    %12 = arith.maximumf %10, %11 : vector<50x64xbf16>
    %c0_10 = arith.constant 0 : index
    %c192 = arith.constant 192 : index
    %13 = vector.load %arg1[%c0_10, %c192] : memref<50x576xbf16, #tpu.memory_space<vmem>>, vector<50x64xbf16>
    %14 = arith.maximumf %12, %13 : vector<50x64xbf16>
    %c0_11 = arith.constant 0 : index
    %c256 = arith.constant 256 : index
    %15 = vector.load %arg1[%c0_11, %c256] : memref<50x576xbf16, #tpu.memory_space<vmem>>, vector<50x64xbf16>
    %16 = arith.maximumf %14, %15 : vector<50x64xbf16>
    %c0_12 = arith.constant 0 : index
    %c320 = arith.constant 320 : index
    %17 = vector.load %arg1[%c0_12, %c320] : memref<50x576xbf16, #tpu.memory_space<vmem>>, vector<50x64xbf16>
    %18 = arith.maximumf %16, %17 : vector<50x64xbf16>
    %c0_13 = arith.constant 0 : index
    %c384 = arith.constant 384 : index
    %19 = vector.load %arg1[%c0_13, %c384] : memref<50x576xbf16, #tpu.memory_space<vmem>>, vector<50x64xbf16>
    %20 = arith.maximumf %18, %19 : vector<50x64xbf16>
    %c0_14 = arith.constant 0 : index
    %c448 = arith.constant 448 : index
    %21 = vector.load %arg1[%c0_14, %c448] : memref<50x576xbf16, #tpu.memory_space<vmem>>, vector<50x64xbf16>
    %22 = arith.maximumf %20, %21 : vector<50x64xbf16>
    %c0_15 = arith.constant 0 : index
    %c512 = arith.constant 512 : index
    %23 = vector.load %arg1[%c0_15, %c512] : memref<50x576xbf16, #tpu.memory_space<vmem>>, vector<50x64xbf16>
    %24 = arith.maximumf %22, %23 : vector<50x64xbf16>
    %c0_16 = arith.constant 0 : index
    %c0_17 = arith.constant 0 : index
    %25 = vector.load %arg4[%c0_16, %c0_17] : memref<50x160xbf16, #tpu.memory_space<vmem>>, vector<50x64xbf16>
    tpu.vector_store %arg4[%c0_16, %c0_17], %24 {strides = array<i32>} : memref<50x160xbf16, #tpu.memory_space<vmem>>, vector<50x64xbf16>,
    %26 = arith.truncf %7 : vector<50x96xf32> to vector<50x96xbf16>
    %c0_18 = arith.constant 0 : index
    %c64_19 = arith.constant 64 : index
    %27 = vector.load %arg4[%c0_18, %c64_19] : memref<50x160xbf16, #tpu.memory_space<vmem>>, vector<50x96xbf16>
    tpu.vector_store %arg4[%c0_18, %c64_19], %26 {strides = array<i32>} : memref<50x160xbf16, #tpu.memory_space<vmem>>, vector<50x96xbf16>,
    return
  }
  func.func @transform_0(%arg0: i32) -> (i32, i32) {
    %c0_i32 = arith.constant 0 : i32
    %c0_i32_0 = arith.constant 0 : i32
    return %arg0, %c0_i32 : i32, i32
  }
  func.func @transform_1(%arg0: i32) -> (i32, i32) {
    %c0_i32 = arith.constant 0 : i32
    %c0_i32_0 = arith.constant 0 : i32
    %c0_i32_1 = arith.constant 0 : i32
    return %c0_i32, %c0_i32_0 : i32, i32
  }
  func.func @transform_2(%arg0: i32) -> (i32, i32) {
    %c0_i32 = arith.constant 0 : i32
    %c0_i32_0 = arith.constant 0 : i32
    %c0_i32_1 = arith.constant 0 : i32
    return %c0_i32, %c0_i32_0 : i32, i32
  }
  func.func @transform_3(%arg0: i32) -> (i32, i32) {
    %c0_i32 = arith.constant 0 : i32
    %c0_i32_0 = arith.constant 0 : i32
    return %arg0, %c0_i32 : i32, i32
  }
}

module attributes {stable_mosaic.version = 11 : i64} {
  func.func @_dual_1x1_kernel(%arg0: i32, %arg1: memref<50x160xbf16, #tpu.memory_space<vmem>>, %arg2: memref<160x128xbf16, #tpu.memory_space<vmem>>, %arg3: memref<1x128xf32, #tpu.memory_space<vmem>>, %arg4: memref<50x64xbf16, #tpu.memory_space<vmem>>, %arg5: memref<50x64xbf16, #tpu.memory_space<vmem>>) attributes {dimension_semantics = [#tpu.dimension_semantics<parallel>], iteration_bounds = array<i64: 1>, scalar_prefetch = 0 : i64, scratch_operands = 0 : i64, tpu.core_type = #tpu.core_type<tc>, window_params = [{transform_indices = @transform_0, window_bounds = array<i64: 50, 160>}, {pipeline_mode = #tpu.pipeline_mode<synchronous>, transform_indices = @transform_1, window_bounds = array<i64: 160, 128>}, {pipeline_mode = #tpu.pipeline_mode<synchronous>, transform_indices = @transform_2, window_bounds = array<i64: 1, 128>}, {transform_indices = @transform_3, window_bounds = array<i64: 50, 64>}, {transform_indices = @transform_4, window_bounds = array<i64: 50, 64>}]} {
    %c0 = arith.constant 0 : index
    %c0_0 = arith.constant 0 : index
    %0 = vector.load %arg1[%c0, %c0_0] : memref<50x160xbf16, #tpu.memory_space<vmem>>, vector<50x160xbf16>
    %c0_1 = arith.constant 0 : index
    %c0_2 = arith.constant 0 : index
    %1 = vector.load %arg2[%c0_1, %c0_2] : memref<160x128xbf16, #tpu.memory_space<vmem>>, vector<160x128xbf16>
    %cst = arith.constant dense<0.000000e+00> : vector<50x128xf32>
    %2 = tpu.matmul %0, %1, %cst {dimension_numbers = #tpu.dot_dimension_numbers<[1], [0], [0], [1], [0, 0, 1, 1], [], []>} : vector<50x160xbf16>, vector<160x128xbf16>, vector<50x128xf32> -> vector<50x128xf32>
    %c0_3 = arith.constant 0 : index
    %c0_4 = arith.constant 0 : index
    %3 = vector.load %arg3[%c0_3, %c0_4] : memref<1x128xf32, #tpu.memory_space<vmem>>, vector<1x128xf32>
    %4 = vector.broadcast %3 : vector<1x128xf32> to vector<50x128xf32>
    %5 = arith.addf %2, %4 : vector<50x128xf32>
    %cst_5 = arith.constant 0.000000e+00 : f32
    %6 = vector.broadcast %cst_5 : f32 to vector<50x128xf32>
    %7 = arith.maximumf %5, %6 : vector<50x128xf32>
    %8 = vector.extract_strided_slice %7 {offsets = [0, 0], sizes = [50, 64], strides = [1, 1]} : vector<50x128xf32> to vector<50x64xf32>
    %9 = arith.truncf %8 : vector<50x64xf32> to vector<50x64xbf16>
    %c0_6 = arith.constant 0 : index
    %c0_7 = arith.constant 0 : index
    %10 = vector.load %arg4[%c0_6, %c0_7] : memref<50x64xbf16, #tpu.memory_space<vmem>>, vector<50x64xbf16>
    tpu.vector_store %arg4[%c0_6, %c0_7], %9 {strides = array<i32>} : memref<50x64xbf16, #tpu.memory_space<vmem>>, vector<50x64xbf16>,
    %11 = vector.extract_strided_slice %7 {offsets = [0, 64], sizes = [50, 64], strides = [1, 1]} : vector<50x128xf32> to vector<50x64xf32>
    %12 = arith.truncf %11 : vector<50x64xf32> to vector<50x64xbf16>
    %c0_8 = arith.constant 0 : index
    %c0_9 = arith.constant 0 : index
    %13 = vector.load %arg5[%c0_8, %c0_9] : memref<50x64xbf16, #tpu.memory_space<vmem>>, vector<50x64xbf16>
    tpu.vector_store %arg5[%c0_8, %c0_9], %12 {strides = array<i32>} : memref<50x64xbf16, #tpu.memory_space<vmem>>, vector<50x64xbf16>,
    return
  }
  func.func @transform_0(%arg0: i32) -> (i32, i32) {
    %c0_i32 = arith.constant 0 : i32
    %c0_i32_0 = arith.constant 0 : i32
    return %arg0, %c0_i32 : i32, i32
  }
  func.func @transform_1(%arg0: i32) -> (i32, i32) {
    %c0_i32 = arith.constant 0 : i32
    %c0_i32_0 = arith.constant 0 : i32
    %c0_i32_1 = arith.constant 0 : i32
    return %c0_i32, %c0_i32_0 : i32, i32
  }
  func.func @transform_2(%arg0: i32) -> (i32, i32) {
    %c0_i32 = arith.constant 0 : i32
    %c0_i32_0 = arith.constant 0 : i32
    %c0_i32_1 = arith.constant 0 : i32
    return %c0_i32, %c0_i32_0 : i32, i32
  }
  func.func @transform_3(%arg0: i32) -> (i32, i32) {
    %c0_i32 = arith.constant 0 : i32
    %c0_i32_0 = arith.constant 0 : i32
    return %arg0, %c0_i32 : i32, i32
  }
  func.func @transform_4(%arg0: i32) -> (i32, i32) {
    %c0_i32 = arith.constant 0 : i32
    %c0_i32_0 = arith.constant 0 : i32
    return %arg0, %c0_i32 : i32, i32
  }
}

module attributes {stable_mosaic.version = 11 : i64} {
  func.func @_conv_kernel(%arg0: i32, %arg1: memref<50x448xbf16, #tpu.memory_space<vmem>>, %arg2: memref<448x64xbf16, #tpu.memory_space<vmem>>, %arg3: memref<1x64xf32, #tpu.memory_space<vmem>>, %arg4: memref<50x64xbf16, #tpu.memory_space<vmem>>) attributes {dimension_semantics = [#tpu.dimension_semantics<parallel>], iteration_bounds = array<i64: 1>, scalar_prefetch = 0 : i64, scratch_operands = 0 : i64, tpu.core_type = #tpu.core_type<tc>, window_params = [{transform_indices = @transform_0, window_bounds = array<i64: 50, 448>}, {pipeline_mode = #tpu.pipeline_mode<synchronous>, transform_indices = @transform_1, window_bounds = array<i64: 448, 64>}, {pipeline_mode = #tpu.pipeline_mode<synchronous>, transform_indices = @transform_2, window_bounds = array<i64: 1, 64>}, {transform_indices = @transform_3, window_bounds = array<i64: 50, 64>}]} {
    %c0 = arith.constant 0 : index
    %c0_0 = arith.constant 0 : index
    %0 = vector.load %arg1[%c0, %c0_0] : memref<50x448xbf16, #tpu.memory_space<vmem>>, vector<50x448xbf16>
    %c0_1 = arith.constant 0 : index
    %c0_2 = arith.constant 0 : index
    %1 = vector.load %arg2[%c0_1, %c0_2] : memref<448x64xbf16, #tpu.memory_space<vmem>>, vector<448x64xbf16>
    %cst = arith.constant dense<0.000000e+00> : vector<50x64xf32>
    %2 = tpu.matmul %0, %1, %cst {dimension_numbers = #tpu.dot_dimension_numbers<[1], [0], [0], [1], [0, 0, 1, 1], [], []>} : vector<50x448xbf16>, vector<448x64xbf16>, vector<50x64xf32> -> vector<50x64xf32>
    %c0_3 = arith.constant 0 : index
    %c0_4 = arith.constant 0 : index
    %3 = vector.load %arg3[%c0_3, %c0_4] : memref<1x64xf32, #tpu.memory_space<vmem>>, vector<1x64xf32>
    %4 = vector.broadcast %3 : vector<1x64xf32> to vector<50x64xf32>
    %5 = arith.addf %2, %4 : vector<50x64xf32>
    %cst_5 = arith.constant 0.000000e+00 : f32
    %6 = vector.broadcast %cst_5 : f32 to vector<50x64xf32>
    %7 = arith.maximumf %5, %6 : vector<50x64xf32>
    %8 = arith.truncf %7 : vector<50x64xf32> to vector<50x64xbf16>
    %c0_6 = arith.constant 0 : index
    %c0_7 = arith.constant 0 : index
    %9 = vector.load %arg4[%c0_6, %c0_7] : memref<50x64xbf16, #tpu.memory_space<vmem>>, vector<50x64xbf16>
    tpu.vector_store %arg4[%c0_6, %c0_7], %8 {strides = array<i32>} : memref<50x64xbf16, #tpu.memory_space<vmem>>, vector<50x64xbf16>,
    return
  }
  func.func @transform_0(%arg0: i32) -> (i32, i32) {
    %c0_i32 = arith.constant 0 : i32
    %c0_i32_0 = arith.constant 0 : i32
    return %arg0, %c0_i32 : i32, i32
  }
  func.func @transform_1(%arg0: i32) -> (i32, i32) {
    %c0_i32 = arith.constant 0 : i32
    %c0_i32_0 = arith.constant 0 : i32
    %c0_i32_1 = arith.constant 0 : i32
    return %c0_i32, %c0_i32_0 : i32, i32
  }
  func.func @transform_2(%arg0: i32) -> (i32, i32) {
    %c0_i32 = arith.constant 0 : i32
    %c0_i32_0 = arith.constant 0 : i32
    %c0_i32_1 = arith.constant 0 : i32
    return %c0_i32, %c0_i32_0 : i32, i32
  }
  func.func @transform_3(%arg0: i32) -> (i32, i32) {
    %c0_i32 = arith.constant 0 : i32
    %c0_i32_0 = arith.constant 0 : i32
    return %arg0, %c0_i32 : i32, i32
  }
}

module attributes {stable_mosaic.version = 11 : i64} {
  func.func @_dual_conv_concat_kernel(%arg0: i32, %arg1: memref<18x576xbf16, #tpu.memory_space<vmem>>, %arg2: memref<576x96xbf16, #tpu.memory_space<vmem>>, %arg3: memref<1x96xf32, #tpu.memory_space<vmem>>, %arg4: memref<18x576xbf16, #tpu.memory_space<vmem>>, %arg5: memref<576x96xbf16, #tpu.memory_space<vmem>>, %arg6: memref<1x96xf32, #tpu.memory_space<vmem>>, %arg7: memref<18x192xbf16, #tpu.memory_space<vmem>>) attributes {dimension_semantics = [#tpu.dimension_semantics<parallel>], iteration_bounds = array<i64: 1>, scalar_prefetch = 0 : i64, scratch_operands = 0 : i64, tpu.core_type = #tpu.core_type<tc>, window_params = [{transform_indices = @transform_0, window_bounds = array<i64: 18, 576>}, {pipeline_mode = #tpu.pipeline_mode<synchronous>, transform_indices = @transform_1, window_bounds = array<i64: 576, 96>}, {pipeline_mode = #tpu.pipeline_mode<synchronous>, transform_indices = @transform_2, window_bounds = array<i64: 1, 96>}, {transform_indices = @transform_3, window_bounds = array<i64: 18, 576>}, {pipeline_mode = #tpu.pipeline_mode<synchronous>, transform_indices = @transform_4, window_bounds = array<i64: 576, 96>}, {pipeline_mode = #tpu.pipeline_mode<synchronous>, transform_indices = @transform_5, window_bounds = array<i64: 1, 96>}, {transform_indices = @transform_6, window_bounds = array<i64: 18, 192>}]} {
    %c0 = arith.constant 0 : index
    %c0_0 = arith.constant 0 : index
    %0 = vector.load %arg1[%c0, %c0_0] : memref<18x576xbf16, #tpu.memory_space<vmem>>, vector<18x576xbf16>
    %c0_1 = arith.constant 0 : index
    %c0_2 = arith.constant 0 : index
    %1 = vector.load %arg2[%c0_1, %c0_2] : memref<576x96xbf16, #tpu.memory_space<vmem>>, vector<576x96xbf16>
    %cst = arith.constant dense<0.000000e+00> : vector<18x96xf32>
    %2 = tpu.matmul %0, %1, %cst {dimension_numbers = #tpu.dot_dimension_numbers<[1], [0], [0], [1], [0, 0, 1, 1], [], []>} : vector<18x576xbf16>, vector<576x96xbf16>, vector<18x96xf32> -> vector<18x96xf32>
    %c0_3 = arith.constant 0 : index
    %c0_4 = arith.constant 0 : index
    %3 = vector.load %arg3[%c0_3, %c0_4] : memref<1x96xf32, #tpu.memory_space<vmem>>, vector<1x96xf32>
    %4 = vector.broadcast %3 : vector<1x96xf32> to vector<18x96xf32>
    %5 = arith.addf %2, %4 : vector<18x96xf32>
    %cst_5 = arith.constant 0.000000e+00 : f32
    %6 = vector.broadcast %cst_5 : f32 to vector<18x96xf32>
    %7 = arith.maximumf %5, %6 : vector<18x96xf32>
    %8 = arith.truncf %7 : vector<18x96xf32> to vector<18x96xbf16>
    %c0_6 = arith.constant 0 : index
    %c0_7 = arith.constant 0 : index
    %9 = vector.load %arg7[%c0_6, %c0_7] : memref<18x192xbf16, #tpu.memory_space<vmem>>, vector<18x96xbf16>
    tpu.vector_store %arg7[%c0_6, %c0_7], %8 {strides = array<i32>} : memref<18x192xbf16, #tpu.memory_space<vmem>>, vector<18x96xbf16>,
    %c0_8 = arith.constant 0 : index
    %c0_9 = arith.constant 0 : index
    %10 = vector.load %arg4[%c0_8, %c0_9] : memref<18x576xbf16, #tpu.memory_space<vmem>>, vector<18x576xbf16>
    %c0_10 = arith.constant 0 : index
    %c0_11 = arith.constant 0 : index
    %11 = vector.load %arg5[%c0_10, %c0_11] : memref<576x96xbf16, #tpu.memory_space<vmem>>, vector<576x96xbf16>
    %cst_12 = arith.constant dense<0.000000e+00> : vector<18x96xf32>
    %12 = tpu.matmul %10, %11, %cst_12 {dimension_numbers = #tpu.dot_dimension_numbers<[1], [0], [0], [1], [0, 0, 1, 1], [], []>} : vector<18x576xbf16>, vector<576x96xbf16>, vector<18x96xf32> -> vector<18x96xf32>
    %c0_13 = arith.constant 0 : index
    %c0_14 = arith.constant 0 : index
    %13 = vector.load %arg6[%c0_13, %c0_14] : memref<1x96xf32, #tpu.memory_space<vmem>>, vector<1x96xf32>
    %14 = vector.broadcast %13 : vector<1x96xf32> to vector<18x96xf32>
    %15 = arith.addf %12, %14 : vector<18x96xf32>
    %cst_15 = arith.constant 0.000000e+00 : f32
    %16 = vector.broadcast %cst_15 : f32 to vector<18x96xf32>
    %17 = arith.maximumf %15, %16 : vector<18x96xf32>
    %18 = arith.truncf %17 : vector<18x96xf32> to vector<18x96xbf16>
    %c0_16 = arith.constant 0 : index
    %c96 = arith.constant 96 : index
    %19 = vector.load %arg7[%c0_16, %c96] : memref<18x192xbf16, #tpu.memory_space<vmem>>, vector<18x96xbf16>
    tpu.vector_store %arg7[%c0_16, %c96], %18 {strides = array<i32>} : memref<18x192xbf16, #tpu.memory_space<vmem>>, vector<18x96xbf16>,
    return
  }
  func.func @transform_0(%arg0: i32) -> (i32, i32) {
    %c0_i32 = arith.constant 0 : i32
    %c0_i32_0 = arith.constant 0 : i32
    return %arg0, %c0_i32 : i32, i32
  }
  func.func @transform_1(%arg0: i32) -> (i32, i32) {
    %c0_i32 = arith.constant 0 : i32
    %c0_i32_0 = arith.constant 0 : i32
    %c0_i32_1 = arith.constant 0 : i32
    return %c0_i32, %c0_i32_0 : i32, i32
  }
  func.func @transform_2(%arg0: i32) -> (i32, i32) {
    %c0_i32 = arith.constant 0 : i32
    %c0_i32_0 = arith.constant 0 : i32
    %c0_i32_1 = arith.constant 0 : i32
    return %c0_i32, %c0_i32_0 : i32, i32
  }
  func.func @transform_3(%arg0: i32) -> (i32, i32) {
    %c0_i32 = arith.constant 0 : i32
    %c0_i32_0 = arith.constant 0 : i32
    return %arg0, %c0_i32 : i32, i32
  }
  func.func @transform_4(%arg0: i32) -> (i32, i32) {
    %c0_i32 = arith.constant 0 : i32
    %c0_i32_0 = arith.constant 0 : i32
    %c0_i32_1 = arith.constant 0 : i32
    return %c0_i32, %c0_i32_0 : i32, i32
  }
  func.func @transform_5(%arg0: i32) -> (i32, i32) {
    %c0_i32 = arith.constant 0 : i32
    %c0_i32_0 = arith.constant 0 : i32
    %c0_i32_1 = arith.constant 0 : i32
    return %c0_i32, %c0_i32_0 : i32, i32
  }
  func.func @transform_6(%arg0: i32) -> (i32, i32) {
    %c0_i32 = arith.constant 0 : i32
    %c0_i32_0 = arith.constant 0 : i32
    return %arg0, %c0_i32 : i32, i32
  }
}

module attributes {stable_mosaic.version = 11 : i64} {
  func.func @kernel(%arg0: i32, %arg1: memref<2x1728xbf16, #tpu.memory_space<vmem>>, %arg2: memref<1728x192xbf16, #tpu.memory_space<vmem>>, %arg3: memref<1x192xf32, #tpu.memory_space<vmem>>, %arg4: memref<2x384xf32, #tpu.memory_space<vmem>>) attributes {dimension_semantics = [#tpu.dimension_semantics<parallel>], iteration_bounds = array<i64: 1>, scalar_prefetch = 0 : i64, scratch_operands = 0 : i64, tpu.core_type = #tpu.core_type<tc>, window_params = [{transform_indices = @transform_0, window_bounds = array<i64: 2, 1728>}, {pipeline_mode = #tpu.pipeline_mode<synchronous>, transform_indices = @transform_1, window_bounds = array<i64: 1728, 192>}, {pipeline_mode = #tpu.pipeline_mode<synchronous>, transform_indices = @transform_2, window_bounds = array<i64: 1, 192>}, {transform_indices = @transform_3, window_bounds = array<i64: 2, 384>}]} {
    %c0 = arith.constant 0 : index
    %c0_0 = arith.constant 0 : index
    %0 = vector.load %arg1[%c0, %c0_0] : memref<2x1728xbf16, #tpu.memory_space<vmem>>, vector<2x1728xbf16>
    %c0_1 = arith.constant 0 : index
    %c0_2 = arith.constant 0 : index
    %1 = vector.load %arg2[%c0_1, %c0_2] : memref<1728x192xbf16, #tpu.memory_space<vmem>>, vector<1728x192xbf16>
    %cst = arith.constant dense<0.000000e+00> : vector<2x192xf32>
    %2 = tpu.matmul %0, %1, %cst {dimension_numbers = #tpu.dot_dimension_numbers<[1], [0], [0], [1], [0, 0, 1, 1], [], []>} : vector<2x1728xbf16>, vector<1728x192xbf16>, vector<2x192xf32> -> vector<2x192xf32>
    %c0_3 = arith.constant 0 : index
    %c0_4 = arith.constant 0 : index
    %3 = vector.load %arg3[%c0_3, %c0_4] : memref<1x192xf32, #tpu.memory_space<vmem>>, vector<1x192xf32>
    %4 = vector.broadcast %3 : vector<1x192xf32> to vector<2x192xf32>
    %5 = arith.addf %2, %4 : vector<2x192xf32>
    %cst_5 = arith.constant 0.000000e+00 : f32
    %6 = vector.broadcast %cst_5 : f32 to vector<2x192xf32>
    %7 = arith.maximumf %5, %6 : vector<2x192xf32>
    %c0_6 = arith.constant 0 : index
    %c0_7 = arith.constant 0 : index
    %8 = vector.load %arg1[%c0_6, %c0_7] : memref<2x1728xbf16, #tpu.memory_space<vmem>>, vector<2x192xbf16>
    %c0_8 = arith.constant 0 : index
    %c192 = arith.constant 192 : index
    %9 = vector.load %arg1[%c0_8, %c192] : memref<2x1728xbf16, #tpu.memory_space<vmem>>, vector<2x192xbf16>
    %10 = arith.maximumf %8, %9 : vector<2x192xbf16>
    %c0_9 = arith.constant 0 : index
    %c384 = arith.constant 384 : index
    %11 = vector.load %arg1[%c0_9, %c384] : memref<2x1728xbf16, #tpu.memory_space<vmem>>, vector<2x192xbf16>
    %12 = arith.maximumf %10, %11 : vector<2x192xbf16>
    %c0_10 = arith.constant 0 : index
    %c576 = arith.constant 576 : index
    %13 = vector.load %arg1[%c0_10, %c576] : memref<2x1728xbf16, #tpu.memory_space<vmem>>, vector<2x192xbf16>
    %14 = arith.maximumf %12, %13 : vector<2x192xbf16>
    %c0_11 = arith.constant 0 : index
    %c768 = arith.constant 768 : index
    %15 = vector.load %arg1[%c0_11, %c768] : memref<2x1728xbf16, #tpu.memory_space<vmem>>, vector<2x192xbf16>
    %16 = arith.maximumf %14, %15 : vector<2x192xbf16>
    %c0_12 = arith.constant 0 : index
    %c960 = arith.constant 960 : index
    %17 = vector.load %arg1[%c0_12, %c960] : memref<2x1728xbf16, #tpu.memory_space<vmem>>, vector<2x192xbf16>
    %18 = arith.maximumf %16, %17 : vector<2x192xbf16>
    %c0_13 = arith.constant 0 : index
    %c1152 = arith.constant 1152 : index
    %19 = vector.load %arg1[%c0_13, %c1152] : memref<2x1728xbf16, #tpu.memory_space<vmem>>, vector<2x192xbf16>
    %20 = arith.maximumf %18, %19 : vector<2x192xbf16>
    %c0_14 = arith.constant 0 : index
    %c1344 = arith.constant 1344 : index
    %21 = vector.load %arg1[%c0_14, %c1344] : memref<2x1728xbf16, #tpu.memory_space<vmem>>, vector<2x192xbf16>
    %22 = arith.maximumf %20, %21 : vector<2x192xbf16>
    %c0_15 = arith.constant 0 : index
    %c1536 = arith.constant 1536 : index
    %23 = vector.load %arg1[%c0_15, %c1536] : memref<2x1728xbf16, #tpu.memory_space<vmem>>, vector<2x192xbf16>
    %24 = arith.maximumf %22, %23 : vector<2x192xbf16>
    %c0_16 = arith.constant 0 : index
    %c0_17 = arith.constant 0 : index
    %25 = vector.load %arg4[%c0_16, %c0_17] : memref<2x384xf32, #tpu.memory_space<vmem>>, vector<2x192xf32>
    tpu.vector_store %arg4[%c0_16, %c0_17], %7 {strides = array<i32>} : memref<2x384xf32, #tpu.memory_space<vmem>>, vector<2x192xf32>,
    %26 = arith.extf %24 : vector<2x192xbf16> to vector<2x192xf32>
    %c0_18 = arith.constant 0 : index
    %c192_19 = arith.constant 192 : index
    %27 = vector.load %arg4[%c0_18, %c192_19] : memref<2x384xf32, #tpu.memory_space<vmem>>, vector<2x192xf32>
    tpu.vector_store %arg4[%c0_18, %c192_19], %26 {strides = array<i32>} : memref<2x384xf32, #tpu.memory_space<vmem>>, vector<2x192xf32>,
    return
  }
  func.func @transform_0(%arg0: i32) -> (i32, i32) {
    %c0_i32 = arith.constant 0 : i32
    %c0_i32_0 = arith.constant 0 : i32
    return %arg0, %c0_i32 : i32, i32
  }
  func.func @transform_1(%arg0: i32) -> (i32, i32) {
    %c0_i32 = arith.constant 0 : i32
    %c0_i32_0 = arith.constant 0 : i32
    %c0_i32_1 = arith.constant 0 : i32
    return %c0_i32, %c0_i32_0 : i32, i32
  }
  func.func @transform_2(%arg0: i32) -> (i32, i32) {
    %c0_i32 = arith.constant 0 : i32
    %c0_i32_0 = arith.constant 0 : i32
    %c0_i32_1 = arith.constant 0 : i32
    return %c0_i32, %c0_i32_0 : i32, i32
  }
  func.func @transform_3(%arg0: i32) -> (i32, i32) {
    %c0_i32 = arith.constant 0 : i32
    %c0_i32_0 = arith.constant 0 : i32
    return %arg0, %c0_i32 : i32, i32
  }
}

</mosaic_0001>

<bundles_post_ra>
// kernel: inception_v4_stem.9
= control target key start
LH: loop header
LB: loop body
LE: loop exit
PB: predicated region body
PF: predicated region fallthrough
CT: control target
= control target key end

     0   :  { %vm287_vm0 = vcmask 1041408   ;;  %vm211_vm1 = vcmask 293888   ;;  %vm522_vm2 = vcmask 257024   ;;  %s1120_s1 = inlined_call_operand.vmem [shape: bf16[36,32], index: 1, kind: input, shape index: {}]   ;;  %s1121_s2 = inlined_call_operand.vmem [shape: f32[1,32], index: 2, kind: input, shape index: {}]   ;;  %s1122_s0 = inlined_call_operand.vmem [shape: bf16[392,36], index: 0, kind: input, shape index: {}]   ;;  %s1123_s3 = inlined_call_operand.vmem [shape: bf16[392,32], index: 3, kind: output, shape index: {}]  }
   0x1   :  { %v68_v0 = vld [vmem:[%s1120_s1 + $0x10] sm:$0x3]  ;;  %v730_v4 = vld [vmem:[%s1120_s1 + $0x8] sm:$0xff]  ;;  %v729_v5 = vld [vmem:[%s1120_s1] sm:$0xff] }
   0x2   :  { %v205_v1 = vunpack.c.l.b16 %v68_v0  ;;  %v711_v6 = vld [vmem:[%s1122_s0 + $0x30] sm:$0xff]  ;;  %v718_v7 = vld [vmem:[%s1122_s0 + $0x68] sm:$0xff]  ;;  %v705_v8 = vld [vmem:[%s1122_s0] sm:$0xff] }
   0x3   :  { %v725_v9 = vld [vmem:[%s1122_s0 + $0xa0] sm:$0xff]  ;;  %v712_v10 = vld [vmem:[%s1122_s0 + $0x38] sm:$0xff]  ;;  %v719_v11 = vld [vmem:[%s1122_s0 + $0x70] sm:$0xff] }
   0x4   :  { %v208_v2 = vpack.c.b16 %v205_v1, %v205_v1  ;;  %v706_v12 = vld [vmem:[%s1122_s0 + $0x8] sm:$0xff]  ;;  %v713_v14 = vld [vmem:[%s1122_s0 + $0x40] sm:$0xff]  ;;  %v720_v15 = vld [vmem:[%s1122_s0 + $0x78] sm:$0xff] }
   0x5   :  { %v726_v13 = vld [vmem:[%s1122_s0 + $0xa8] sm:$0xff]  ;;  %v707_v16 = vld [vmem:[%s1122_s0 + $0x10] sm:$0xff]  ;;  %v721_v19 = vld [vmem:[%s1122_s0 + $0x80] sm:$0xff] }
   0x6   :  { %v289_v3 = vsel %vm287_vm0, %v208_v2, 0  ;;  %v727_v17 = vld [vmem:[%s1122_s0 + $0xb0] sm:$0xff]  ;;  %v714_v18 = vld [vmem:[%s1122_s0 + $0x48] sm:$0xff]  ;;  %v708_v20 = vld [vmem:[%s1122_s0 + $0x18] sm:$0xff] }
   0x7   :  { %731 = vmatpush.bf16.msra.mxu1 %v289_v3  ;;  %732 = vmatpush.bf16.msra.mxu2 %v289_v3  ;;  %v728_v21 = vld [vmem:[%s1122_s0 + $0xb8] sm:$0xff]  ;;  %v63_v22 = vld [vmem:[%s1122_s0 + $0xc0] sm:$0xf]  ;;  %v715_v24 = vld [vmem:[%s1122_s0 + $0x50] sm:$0xff] }
   0x8   :  { %296 = vmatpush.bf16.msra.mxu0 %v289_v3  ;;  %733 = vmatpush.bf16.msra.mxu3 %v289_v3  ;;  %v170_v23 = vunpack.c.l.b16 %v63_v22  ;;  %v722_v25 = vld [vmem:[%s1122_s0 + $0x88] sm:$0xff]  ;;  %v709_v26 = vld [vmem:[%s1122_s0 + $0x20] sm:$0xff]  ;;  %v716_v28 = vld [vmem:[%s1122_s0 + $0x58] sm:$0xff] }
   0x9   :  { %v723_v29 = vld [vmem:[%s1122_s0 + $0x90] sm:$0xff]  ;;  %v710_v30 = vld [vmem:[%s1122_s0 + $0x28] sm:$0xff]  ;;  %v717_v31 = vld [vmem:[%s1122_s0 + $0x60] sm:$0xff] }
   0xa   :  { %v195_v27 = vpack.c.b16 %v170_v23, %v170_v23  ;;  %v724_v32 = vld [vmem:[%s1122_s0 + $0x98] sm:$0xff]  ;;  %v873_v33 = vld [vmem:[%s1121_s2] ss:$0 sm:$0xff] }
   0xb   :  { %734 = vmatpush.bf16.msra.mxu1 %v730_v4  ;;  %735 = vmatpush.bf16.msra.mxu2 %v730_v4 }
   0xc   :  { %297 = vmatpush.bf16.msra.mxu0 %v730_v4  ;;  %736 = vmatpush.bf16.msra.mxu3 %v730_v4 }
   0xf   :  { %737 = vmatpush.bf16.msra.mxu1 %v729_v5  ;;  %738 = vmatpush.bf16.msra.mxu2 %v729_v5 }
  0x10   :  { %298 = vmatpush.bf16.msra.mxu0 %v729_v5  ;;  %739 = vmatpush.bf16.msra.mxu3 %v729_v5 }
  0x12   :  { %686 = vmatmul.msk.bf16.vlgmr.msra.gmra.mxu1 %vm211_vm1, %v711_v6  ;;  %693 = vmatmul.msk.bf16.vlgmr.msra.gmra.mxu2 %vm211_vm1, %v718_v7 }
  0x13   :  { %680 = vmatmul.msk.bf16.vlgmr.msra.gmra.mxu0 %vm211_vm1, %v705_v8  ;;  %700 = vmatmul.msk.bf16.vlgmr.msra.gmra.mxu3 %vm211_vm1, %v725_v9 }
  0x22   :  { %687 = vmatmul.msk.bf16.gmra.mxu1 %vm211_vm1, %v712_v10  ;;  %694 = vmatmul.msk.bf16.gmra.mxu2 %vm211_vm1, %v719_v11 }
  0x23   :  { %681 = vmatmul.msk.bf16.gmra.mxu0 %vm211_vm1, %v706_v12  ;;  %701 = vmatmul.msk.bf16.gmra.mxu3 %vm211_vm1, %v726_v13 }
  0x32   :  { %688 = vmatmul.msk.bf16.gmra.mxu1 %vm211_vm1, %v713_v14  ;;  %695 = vmatmul.msk.bf16.gmra.mxu2 %vm211_vm1, %v720_v15 }
  0x33   :  { %682 = vmatmul.msk.bf16.gmra.mxu0 %vm211_vm1, %v707_v16  ;;  %702 = vmatmul.msk.bf16.gmra.mxu3 %vm211_vm1, %v727_v17 }
  0x42   :  { %689 = vmatmul.msk.bf16.gmra.mxu1 %vm211_vm1, %v714_v18  ;;  %696 = vmatmul.msk.bf16.gmra.mxu2 %vm211_vm1, %v721_v19 }
  0x43   :  { %683 = vmatmul.msk.bf16.gmra.mxu0 %vm211_vm1, %v708_v20  ;;  %703 = vmatmul.msk.bf16.gmra.mxu3 %vm211_vm1, %v728_v21 }
  0x52   :  { %690 = vmatmul.msk.bf16.gmra.mxu1 %vm211_vm1, %v715_v24  ;;  %697 = vmatmul.msk.bf16.gmra.mxu2 %vm211_vm1, %v722_v25 }
  0x53   :  { %684 = vmatmul.msk.bf16.gmra.mxu0 %vm211_vm1, %v709_v26  ;;  %704 = vmatmul.msk.bf16.gmra.mxu3 %vm211_vm1, %v195_v27 }
  0x62   :  { %691 = vmatmul.msk.bf16.gmra.mxu1 %vm211_vm1, %v716_v28  ;;  %698 = vmatmul.msk.bf16.gmra.mxu2 %vm211_vm1, %v723_v29 }
  0x63   :  { %685 = vmatmul.msk.bf16.gmra.mxu0 %vm211_vm1, %v710_v30 }
  0x72   :  { %692 = vmatmul.msk.bf16.gmra.mxu1 %vm211_vm1, %v717_v31  ;;  %699 = vmatmul.msk.bf16.gmra.mxu2 %vm211_vm1, %v724_v32 }
  0x8f   :  { %v330_v34 = vpop.f32.mrf.mxu1 }
  0x90   :  { %v331_v35 = vadd.f32 %v873_v33, %v330_v34  ;;  %v300_v36 = vpop.f32.mrf.mxu0 }
  0x91   :  { %v301_v37 = vadd.f32 %v873_v33, %v300_v36 }
  0x92   :  { %v436_v38 = vmax.f32 %v331_v35, 0.0 }
  0x93   :  { %v424_v39 = vmax.f32 %v301_v37, 0.0 }
  0x94   :  { %v485_v40 = vpack.c.bf16 %v436_v38, %v436_v38 }
  0x95   :  { %v365_v41 = vpop.f32.mrf.mxu2  ;;  %v473_v42 = vpack.c.bf16 %v424_v39, %v424_v39 }
  0x96   :  { %535 = vst.msk [vmem:[%s1123_s3 + $0x30] sm:$0xf] %vm522_vm2, %v485_v40  ;;  %v366_v43 = vadd.f32 %v873_v33, %v365_v41  ;;  %v400_v44 = vpop.f32.mrf.mxu3 }
  0x97   :  { %v332_v45 = vpop.f32.mrf.mxu1  ;;  %523 = vst.msk [vmem:[%s1123_s3] sm:$0xf] %vm522_vm2, %v473_v42  ;;  %v401_v46 = vadd.f32 %v873_v33, %v400_v44 }
  0x98   :  { %v450_v47 = vmax.f32 %v366_v43, 0.0  ;;  %v333_v48 = vadd.f32 %v873_v33, %v332_v45  ;;  %v302_v49 = vpop.f32.mrf.mxu0 }
  0x99   :  { %v303_v50 = vadd.f32 %v873_v33, %v302_v49  ;;  %v464_v51 = vmax.f32 %v401_v46, 0.0 }
  0x9a   :  { %v499_v52 = vpack.c.bf16 %v450_v47, %v450_v47  ;;  %v437_v53 = vmax.f32 %v333_v48, 0.0 }
  0x9b   :  { %v425_v54 = vmax.f32 %v303_v50, 0.0  ;;  %v513_v55 = vpack.c.bf16 %v464_v51, %v464_v51 }
  0x9c   :  { %549 = vst.msk [vmem:[%s1123_s3 + $0x68] sm:$0xf] %vm522_vm2, %v499_v52  ;;  %v486_v56 = vpack.c.bf16 %v437_v53, %v437_v53 }
  0x9d   :  { %v367_v57 = vpop.f32.mrf.mxu2  ;;  %v474_v58 = vpack.c.bf16 %v425_v54, %v425_v54  ;;  %563 = vst.msk [vmem:[%s1123_s3 + $0xa0] sm:$0xf] %vm522_vm2, %v513_v55 }
  0x9e   :  { %536 = vst.msk [vmem:[%s1123_s3 + $0x34] sm:$0xf] %vm522_vm2, %v486_v56  ;;  %v368_v59 = vadd.f32 %v873_v33, %v367_v57  ;;  %v402_v60 = vpop.f32.mrf.mxu3 }
  0x9f   :  { %v335_v61 = vpop.f32.mrf.mxu1  ;;  %524 = vst.msk [vmem:[%s1123_s3 + $0x4] sm:$0xf] %vm522_vm2, %v474_v58  ;;  %v403_v62 = vadd.f32 %v873_v33, %v402_v60 }
  0xa0   :  { %v451_v63 = vmax.f32 %v368_v59, 0.0  ;;  %v336_v0 = vadd.f32 %v873_v33, %v335_v61  ;;  %v305_v1 = vpop.f32.mrf.mxu0 }
  0xa1   :  { %v306_v2 = vadd.f32 %v873_v33, %v305_v1  ;;  %v465_v3 = vmax.f32 %v403_v62, 0.0 }
  0xa2   :  { %v500_v4 = vpack.c.bf16 %v451_v63, %v451_v63  ;;  %v438_v5 = vmax.f32 %v336_v0, 0.0 }
  0xa3   :  { %v426_v6 = vmax.f32 %v306_v2, 0.0  ;;  %v514_v7 = vpack.c.bf16 %v465_v3, %v465_v3 }
  0xa4   :  { %550 = vst.msk [vmem:[%s1123_s3 + $0x6c] sm:$0xf] %vm522_vm2, %v500_v4  ;;  %v487_v8 = vpack.c.bf16 %v438_v5, %v438_v5 }
  0xa5   :  { %v370_v9 = vpop.f32.mrf.mxu2  ;;  %v475_v10 = vpack.c.bf16 %v426_v6, %v426_v6  ;;  %564 = vst.msk [vmem:[%s1123_s3 + $0xa4] sm:$0xf] %vm522_vm2, %v514_v7 }
  0xa6   :  { %537 = vst.msk [vmem:[%s1123_s3 + $0x38] sm:$0xf] %vm522_vm2, %v487_v8  ;;  %v371_v11 = vadd.f32 %v873_v33, %v370_v9  ;;  %v405_v12 = vpop.f32.mrf.mxu3 }
  0xa7   :  { %v337_v13 = vpop.f32.mrf.mxu1  ;;  %525 = vst.msk [vmem:[%s1123_s3 + $0x8] sm:$0xf] %vm522_vm2, %v475_v10  ;;  %v406_v14 = vadd.f32 %v873_v33, %v405_v12 }
  0xa8   :  { %v452_v15 = vmax.f32 %v371_v11, 0.0  ;;  %v338_v16 = vadd.f32 %v873_v33, %v337_v13  ;;  %v307_v17 = vpop.f32.mrf.mxu0 }
  0xa9   :  { %v308_v18 = vadd.f32 %v873_v33, %v307_v17  ;;  %v466_v19 = vmax.f32 %v406_v14, 0.0 }
  0xaa   :  { %v501_v20 = vpack.c.bf16 %v452_v15, %v452_v15  ;;  %v439_v21 = vmax.f32 %v338_v16, 0.0 }
  0xab   :  { %v427_v22 = vmax.f32 %v308_v18, 0.0  ;;  %v515_v23 = vpack.c.bf16 %v466_v19, %v466_v19 }
  0xac   :  { %551 = vst.msk [vmem:[%s1123_s3 + $0x70] sm:$0xf] %vm522_vm2, %v501_v20  ;;  %v488_v24 = vpack.c.bf16 %v439_v21, %v439_v21 }
  0xad   :  { %v372_v25 = vpop.f32.mrf.mxu2  ;;  %v476_v26 = vpack.c.bf16 %v427_v22, %v427_v22  ;;  %565 = vst.msk [vmem:[%s1123_s3 + $0xa8] sm:$0xf] %vm522_vm2, %v515_v23 }
  0xae   :  { %538 = vst.msk [vmem:[%s1123_s3 + $0x3c] sm:$0xf] %vm522_vm2, %v488_v24  ;;  %v373_v27 = vadd.f32 %v873_v33, %v372_v25  ;;  %v407_v28 = vpop.f32.mrf.mxu3 }
  0xaf   :  { %v340_v29 = vpop.f32.mrf.mxu1  ;;  %526 = vst.msk [vmem:[%s1123_s3 + $0xc] sm:$0xf] %vm522_vm2, %v476_v26  ;;  %v408_v30 = vadd.f32 %v873_v33, %v407_v28 }
  0xb0   :  { %v453_v31 = vmax.f32 %v373_v27, 0.0  ;;  %v341_v32 = vadd.f32 %v873_v33, %v340_v29  ;;  %v310_v34 = vpop.f32.mrf.mxu0 }
  0xb1   :  { %v311_v35 = vadd.f32 %v873_v33, %v310_v34  ;;  %v467_v36 = vmax.f32 %v408_v30, 0.0 }
  0xb2   :  { %v502_v37 = vpack.c.bf16 %v453_v31, %v453_v31  ;;  %v440_v38 = vmax.f32 %v341_v32, 0.0 }
  0xb3   :  { %v428_v39 = vmax.f32 %v311_v35, 0.0  ;;  %v516_v40 = vpack.c.bf16 %v467_v36, %v467_v36 }
  0xb4   :  { %552 = vst.msk [vmem:[%s1123_s3 + $0x74] sm:$0xf] %vm522_vm2, %v502_v37  ;;  %v489_v41 = vpack.c.bf16 %v440_v38, %v440_v38 }
  0xb5   :  { %v375_v42 = vpop.f32.mrf.mxu2  ;;  %v477_v43 = vpack.c.bf16 %v428_v39, %v428_v39  ;;  %566 = vst.msk [vmem:[%s1123_s3 + $0xac] sm:$0xf] %vm522_vm2, %v516_v40 }
  0xb6   :  { %539 = vst.msk [vmem:[%s1123_s3 + $0x40] sm:$0xf] %vm522_vm2, %v489_v41  ;;  %v376_v44 = vadd.f32 %v873_v33, %v375_v42  ;;  %v410_v45 = vpop.f32.mrf.mxu3 }
  0xb7   :  { %v342_v46 = vpop.f32.mrf.mxu1  ;;  %527 = vst.msk [vmem:[%s1123_s3 + $0x10] sm:$0xf] %vm522_vm2, %v477_v43  ;;  %v411_v47 = vadd.f32 %v873_v33, %v410_v45 }
  0xb8   :  { %v454_v48 = vmax.f32 %v376_v44, 0.0  ;;  %v343_v49 = vadd.f32 %v873_v33, %v342_v46  ;;  %v312_v50 = vpop.f32.mrf.mxu0 }
  0xb9   :  { %v313_v51 = vadd.f32 %v873_v33, %v312_v50  ;;  %v468_v52 = vmax.f32 %v411_v47, 0.0 }
  0xba   :  { %v503_v53 = vpack.c.bf16 %v454_v48, %v454_v48  ;;  %v441_v54 = vmax.f32 %v343_v49, 0.0 }
  0xbb   :  { %v429_v55 = vmax.f32 %v313_v51, 0.0  ;;  %v517_v56 = vpack.c.bf16 %v468_v52, %v468_v52 }
  0xbc   :  { %553 = vst.msk [vmem:[%s1123_s3 + $0x78] sm:$0xf] %vm522_vm2, %v503_v53  ;;  %v490_v57 = vpack.c.bf16 %v441_v54, %v441_v54 }
  0xbd   :  { %v377_v58 = vpop.f32.mrf.mxu2  ;;  %v478_v59 = vpack.c.bf16 %v429_v55, %v429_v55  ;;  %567 = vst.msk [vmem:[%s1123_s3 + $0xb0] sm:$0xf] %vm522_vm2, %v517_v56 }
  0xbe   :  { %540 = vst.msk [vmem:[%s1123_s3 + $0x44] sm:$0xf] %vm522_vm2, %v490_v57  ;;  %v378_v60 = vadd.f32 %v873_v33, %v377_v58  ;;  %v412_v61 = vpop.f32.mrf.mxu3 }
  0xbf   :  { %v345_v62 = vpop.f32.mrf.mxu1  ;;  %528 = vst.msk [vmem:[%s1123_s3 + $0x14] sm:$0xf] %vm522_vm2, %v478_v59  ;;  %v413_v63 = vadd.f32 %v873_v33, %v412_v61 }
  0xc0   :  { %v455_v0 = vmax.f32 %v378_v60, 0.0  ;;  %v346_v1 = vadd.f32 %v873_v33, %v345_v62  ;;  %v315_v2 = vpop.f32.mrf.mxu0 }
  0xc1   :  { %v316_v3 = vadd.f32 %v873_v33, %v315_v2  ;;  %v469_v4 = vmax.f32 %v413_v63, 0.0 }
  0xc2   :  { %v504_v5 = vpack.c.bf16 %v455_v0, %v455_v0  ;;  %v442_v6 = vmax.f32 %v346_v1, 0.0 }
  0xc3   :  { %v430_v7 = vmax.f32 %v316_v3, 0.0  ;;  %v518_v8 = vpack.c.bf16 %v469_v4, %v469_v4 }
  0xc4   :  { %554 = vst.msk [vmem:[%s1123_s3 + $0x7c] sm:$0xf] %vm522_vm2, %v504_v5  ;;  %v491_v9 = vpack.c.bf16 %v442_v6, %v442_v6 }
  0xc5   :  { %v380_v10 = vpop.f32.mrf.mxu2  ;;  %v479_v11 = vpack.c.bf16 %v430_v7, %v430_v7  ;;  %568 = vst.msk [vmem:[%s1123_s3 + $0xb4] sm:$0xf] %vm522_vm2, %v518_v8 }
  0xc6   :  { %541 = vst.msk [vmem:[%s1123_s3 + $0x48] sm:$0xf] %vm522_vm2, %v491_v9  ;;  %v381_v12 = vadd.f32 %v873_v33, %v380_v10  ;;  %v415_v13 = vpop.f32.mrf.mxu3 }
  0xc7   :  { %v347_v14 = vpop.f32.mrf.mxu1  ;;  %529 = vst.msk [vmem:[%s1123_s3 + $0x18] sm:$0xf] %vm522_vm2, %v479_v11  ;;  %v416_v15 = vadd.f32 %v873_v33, %v415_v13 }
  0xc8   :  { %v456_v16 = vmax.f32 %v381_v12, 0.0  ;;  %v348_v17 = vadd.f32 %v873_v33, %v347_v14  ;;  %v317_v18 = vpop.f32.mrf.mxu0 }
  0xc9   :  { %v318_v19 = vadd.f32 %v873_v33, %v317_v18  ;;  %v470_v20 = vmax.f32 %v416_v15, 0.0 }
  0xca   :  { %v505_v21 = vpack.c.bf16 %v456_v16, %v456_v16  ;;  %v443_v22 = vmax.f32 %v348_v17, 0.0 }
  0xcb   :  { %v431_v23 = vmax.f32 %v318_v19, 0.0  ;;  %v519_v24 = vpack.c.bf16 %v470_v20, %v470_v20 }
  0xcc   :  { %555 = vst.msk [vmem:[%s1123_s3 + $0x80] sm:$0xf] %vm522_vm2, %v505_v21  ;;  %v492_v25 = vpack.c.bf16 %v443_v22, %v443_v22 }
  0xcd   :  { %v382_v26 = vpop.f32.mrf.mxu2  ;;  %v480_v27 = vpack.c.bf16 %v431_v23, %v431_v23  ;;  %569 = vst.msk [vmem:[%s1123_s3 + $0xb8] sm:$0xf] %vm522_vm2, %v519_v24 }
  0xce   :  { %542 = vst.msk [vmem:[%s1123_s3 + $0x4c] sm:$0xf] %vm522_vm2, %v492_v25  ;;  %v383_v28 = vadd.f32 %v873_v33, %v382_v26  ;;  %v417_v29 = vpop.f32.mrf.mxu3 }
  0xcf   :  { %v350_v30 = vpop.f32.mrf.mxu1  ;;  %530 = vst.msk [vmem:[%s1123_s3 + $0x1c] sm:$0xf] %vm522_vm2, %v480_v27  ;;  %v418_v31 = vadd.f32 %v873_v33, %v417_v29 }
  0xd0   :  { %v457_v32 = vmax.f32 %v383_v28, 0.0  ;;  %v351_v34 = vadd.f32 %v873_v33, %v350_v30  ;;  %v320_v35 = vpop.f32.mrf.mxu0 }
  0xd1   :  { %v321_v36 = vadd.f32 %v873_v33, %v320_v35  ;;  %v471_v37 = vmax.f32 %v418_v31, 0.0 }
  0xd2   :  { %v506_v38 = vpack.c.bf16 %v457_v32, %v457_v32  ;;  %v444_v39 = vmax.f32 %v351_v34, 0.0 }
  0xd3   :  { %v432_v40 = vmax.f32 %v321_v36, 0.0  ;;  %v520_v41 = vpack.c.bf16 %v471_v37, %v471_v37 }
  0xd4   :  { %556 = vst.msk [vmem:[%s1123_s3 + $0x84] sm:$0xf] %vm522_vm2, %v506_v38  ;;  %v493_v42 = vpack.c.bf16 %v444_v39, %v444_v39 }
  0xd5   :  { %v385_v43 = vpop.f32.mrf.mxu2  ;;  %v481_v44 = vpack.c.bf16 %v432_v40, %v432_v40  ;;  %570 = vst.msk [vmem:[%s1123_s3 + $0xbc] sm:$0xf] %vm522_vm2, %v520_v41 }
  0xd6   :  { %543 = vst.msk [vmem:[%s1123_s3 + $0x50] sm:$0xf] %vm522_vm2, %v493_v42  ;;  %v386_v45 = vadd.f32 %v873_v33, %v385_v43  ;;  %v420_v46 = vpop.f32.mrf.mxu3 }
  0xd7   :  { %v352_v47 = vpop.f32.mrf.mxu1  ;;  %531 = vst.msk [vmem:[%s1123_s3 + $0x20] sm:$0xf] %vm522_vm2, %v481_v44  ;;  %v421_v48 = vadd.f32 %v873_v33, %v420_v46 }
  0xd8   :  { %v458_v49 = vmax.f32 %v386_v45, 0.0  ;;  %v353_v50 = vadd.f32 %v873_v33, %v352_v47  ;;  %v322_v51 = vpop.f32.mrf.mxu0 }
  0xd9   :  { %v323_v52 = vadd.f32 %v873_v33, %v322_v51  ;;  %v472_v53 = vmax.f32 %v421_v48, 0.0 }
  0xda   :  { %v507_v54 = vpack.c.bf16 %v458_v49, %v458_v49  ;;  %v445_v55 = vmax.f32 %v353_v50, 0.0 }
  0xdb   :  { %v433_v56 = vmax.f32 %v323_v52, 0.0  ;;  %v521_v57 = vpack.c.bf16 %v472_v53, %v472_v53 }
  0xdc   :  { %557 = vst.msk [vmem:[%s1123_s3 + $0x88] sm:$0xf] %vm522_vm2, %v507_v54  ;;  %v494_v58 = vpack.c.bf16 %v445_v55, %v445_v55 }
  0xdd   :  { %v387_v59 = vpop.f32.mrf.mxu2  ;;  %v482_v60 = vpack.c.bf16 %v433_v56, %v433_v56  ;;  %571 = vst.msk [vmem:[%s1123_s3 + $0xc0] sm:$0xf] %vm522_vm2, %v521_v57 }
  0xde   :  { %544 = vst.msk [vmem:[%s1123_s3 + $0x54] sm:$0xf] %vm522_vm2, %v494_v58  ;;  %v388_v61 = vadd.f32 %v873_v33, %v387_v59  ;;  %v422_v62 = vpop.f32.mrf.mxu3 }
  0xdf   :  { %v355_v63 = vpop.f32.mrf.mxu1  ;;  %532 = vst.msk [vmem:[%s1123_s3 + $0x24] sm:$0xf] %vm522_vm2, %v482_v60 }
  0xe0   :  { %v459_v0 = vmax.f32 %v388_v61, 0.0  ;;  %v356_v1 = vadd.f32 %v873_v33, %v355_v63  ;;  %v325_v2 = vpop.f32.mrf.mxu0 }
  0xe1   :  { %v326_v3 = vadd.f32 %v873_v33, %v325_v2 }
  0xe2   :  { %v508_v4 = vpack.c.bf16 %v459_v0, %v459_v0  ;;  %v446_v5 = vmax.f32 %v356_v1, 0.0 }
  0xe3   :  { %v434_v6 = vmax.f32 %v326_v3, 0.0 }
  0xe4   :  { %558 = vst.msk [vmem:[%s1123_s3 + $0x8c] sm:$0xf] %vm522_vm2, %v508_v4  ;;  %v495_v7 = vpack.c.bf16 %v446_v5, %v446_v5 }
  0xe5   :  { %v390_v8 = vpop.f32.mrf.mxu2  ;;  %v483_v9 = vpack.c.bf16 %v434_v6, %v434_v6 }
  0xe6   :  { %545 = vst.msk [vmem:[%s1123_s3 + $0x58] sm:$0xf] %vm522_vm2, %v495_v7  ;;  %v391_v10 = vadd.f32 %v873_v33, %v390_v8 }
  0xe7   :  { %v357_v11 = vpop.f32.mrf.mxu1  ;;  %533 = vst.msk [vmem:[%s1123_s3 + $0x28] sm:$0xf] %vm522_vm2, %v483_v9 }
  0xe8   :  { %v460_v12 = vmax.f32 %v391_v10, 0.0  ;;  %v358_v13 = vadd.f32 %v873_v33, %v357_v11  ;;  %v327_v14 = vpop.f32.mrf.mxu0 }
  0xe9   :  { %v328_v15 = vadd.f32 %v873_v33, %v327_v14 }
  0xea   :  { %v509_v16 = vpack.c.bf16 %v460_v12, %v460_v12  ;;  %v447_v17 = vmax.f32 %v358_v13, 0.0 }
  0xeb   :  { %v435_v18 = vmax.f32 %v328_v15, 0.0 }
  0xec   :  { %559 = vst.msk [vmem:[%s1123_s3 + $0x90] sm:$0xf] %vm522_vm2, %v509_v16  ;;  %v496_v19 = vpack.c.bf16 %v447_v17, %v447_v17 }
  0xed   :  { %v392_v20 = vpop.f32.mrf.mxu2  ;;  %v484_v21 = vpack.c.bf16 %v435_v18, %v435_v18 }
  0xee   :  { %546 = vst.msk [vmem:[%s1123_s3 + $0x5c] sm:$0xf] %vm522_vm2, %v496_v19  ;;  %v393_v22 = vadd.f32 %v873_v33, %v392_v20 }
  0xef   :  { %v360_v23 = vpop.f32.mrf.mxu1  ;;  %534 = vst.msk [vmem:[%s1123_s3 + $0x2c] sm:$0xf] %vm522_vm2, %v484_v21 }
  0xf0   :  { %v461_v24 = vmax.f32 %v393_v22, 0.0  ;;  %v361_v25 = vadd.f32 %v873_v33, %v360_v23 }
  0xf2   :  { %v510_v26 = vpack.c.bf16 %v461_v24, %v461_v24  ;;  %v448_v27 = vmax.f32 %v361_v25, 0.0 }
  0xf4   :  { %560 = vst.msk [vmem:[%s1123_s3 + $0x94] sm:$0xf] %vm522_vm2, %v510_v26  ;;  %v497_v28 = vpack.c.bf16 %v448_v27, %v448_v27 }
  0xf5   :  { %v395_v29 = vpop.f32.mrf.mxu2 }
  0xf6   :  { %547 = vst.msk [vmem:[%s1123_s3 + $0x60] sm:$0xf] %vm522_vm2, %v497_v28  ;;  %v396_v30 = vadd.f32 %v873_v33, %v395_v29 }
  0xf7   :  { %v362_v31 = vpop.f32.mrf.mxu1 }
  0xf8   :  { %v462_v32 = vmax.f32 %v396_v30, 0.0  ;;  %v363_v34 = vadd.f32 %v873_v33, %v362_v31 }
  0xfa   :  { %v511_v35 = vpack.c.bf16 %v462_v32, %v462_v32  ;;  %v449_v36 = vmax.f32 %v363_v34, 0.0 }
  0xfc   :  { %561 = vst.msk [vmem:[%s1123_s3 + $0x98] sm:$0xf] %vm522_vm2, %v511_v35  ;;  %v498_v37 = vpack.c.bf16 %v449_v36, %v449_v36 }
  0xfd   :  { %v397_v38 = vpop.f32.mrf.mxu2 }
  0xfe   :  { %548 = vst.msk [vmem:[%s1123_s3 + $0x64] sm:$0xf] %vm522_vm2, %v498_v37  ;;  %v398_v39 = vadd.f32 %v873_v33, %v397_v38 }
 0x100   :  { %v463_v40 = vmax.f32 %v398_v39, 0.0 }
 0x102   :  { %v512_v41 = vpack.c.bf16 %v463_v40, %v463_v40 }
 0x104   :  { %562 = vst.msk [vmem:[%s1123_s3 + $0x9c] sm:$0xf] %vm522_vm2, %v512_v41 }

// kernel: inception_v4_stem.10
= control target key start
LH: loop header
LB: loop body
LE: loop exit
PB: predicated region body
PF: predicated region fallthrough
CT: control target
= control target key end

     0   :  { %vm505_vm0 = vcmask 261120   ;;  %vm929_vm1 = vcmask 257024   ;;  %s2021_s1 = inlined_call_operand.vmem [shape: bf16[288,32], index: 1, kind: input, shape index: {}]   ;;  %s2022_s0 = inlined_call_operand.vmem [shape: bf16[288,288], index: 0, kind: input, shape index: {}]   ;;  %s2023_s2 = inlined_call_operand.vmem [shape: f32[1,32], index: 2, kind: input, shape index: {}]   ;;  %s2024_s3 = inlined_call_operand.vmem [shape: bf16[288,32], index: 3, kind: output, shape index: {}]  }
   0x1   :  { %v1337_v0 = vld [vmem:[%s2021_s1 + $0x38] sm:$0xff]  ;;  %v1396_v2 = vld [vmem:[%s2021_s1 + $0x88] sm:$0xff]  ;;  %v1336_v3 = vld [vmem:[%s2021_s1 + $0x30] sm:$0xff] }
   0x2   :  { %v1345_v1 = vld [vmem:[%s2021_s1 + $0x78] sm:$0xff]  ;;  %560 = vmatpush.bf16.msra.mxu0 %v1337_v0  ;;  %1348 = vmatpush.bf16.msra.mxu3 %v1337_v0  ;;  %v1344_v4 = vld [vmem:[%s2021_s1 + $0x70] sm:$0xff]  ;;  %v1408_v5 = vld [vmem:[%s2021_s1 + $0x80] sm:$0xff] }
   0x3   :  { %659 = vmatpush.bf16.msra.mxu1 %v1345_v1  ;;  %764 = vmatpush.bf16.msra.mxu2 %v1396_v2  ;;  %v980_v6 = vld [vmem:[%s2022_s0 + $0x8] sm:$0xf]  ;;  %v1278_v7 = vld [vmem:[%s2022_s0 + $0x10] sm:$0xf0]  ;;  %v1334_v11 = vld [vmem:[%s2021_s1 + $0x20] sm:$0xff] }
   0x4   :  { %v981_v8 = vor.u32 %v1278_v7, %v980_v6  ;;  %v1335_v9 = vld [vmem:[%s2021_s1 + $0x28] sm:$0xff]  ;;  %v1342_v12 = vld [vmem:[%s2021_s1 + $0x60] sm:$0xff]  ;;  %v1333_v13 = vld [vmem:[%s2021_s1 + $0x18] sm:$0xff] }
   0x5   :  { %v1343_v10 = vld [vmem:[%s2021_s1 + $0x68] sm:$0xff]  ;;  %v1341_v14 = vld [vmem:[%s2021_s1 + $0x58] sm:$0xff]  ;;  %v1332_v15 = vld [vmem:[%s2021_s1 + $0x10] sm:$0xff] }
   0x6   :  { %561 = vmatpush.bf16.msra.mxu0 %v1336_v3  ;;  %1349 = vmatpush.bf16.msra.mxu3 %v1336_v3  ;;  %v1340_v16 = vld [vmem:[%s2021_s1 + $0x50] sm:$0xff]  ;;  %v992_v17 = vld [vmem:[%s2022_s0 + $0x20] sm:$0xf]  ;;  %v1281_v18 = vld [vmem:[%s2022_s0 + $0x28] sm:$0xf0] }
   0x7   :  { %660 = vmatpush.bf16.msra.mxu1 %v1344_v4  ;;  %765 = vmatpush.bf16.msra.mxu2 %v1408_v5  ;;  %v993_v19 = vor.u32 %v1281_v18, %v992_v17  ;;  %v1331_v20 = vld [vmem:[%s2021_s1 + $0x8] sm:$0xff]  ;;  %v1330_v22 = vld [vmem:[%s2021_s1] sm:$0xff]  ;;  %v1140_v26 = vld [vmem:[%s2022_s0 + $0x150] sm:$0xf] }
   0x8   :  { %v1339_v21 = vld [vmem:[%s2021_s1 + $0x48] sm:$0xff]  ;;  %v1338_v23 = vld [vmem:[%s2021_s1 + $0x40] sm:$0xff]  ;;  %v1319_v27 = vld [vmem:[%s2022_s0 + $0x158] sm:$0xf0] }
   0x9   :  { %v972_v24 = vld [vmem:[%s2022_s0] sm:$0xf]  ;;  %v1277_v25 = vld [vmem:[%s2022_s0 + $0x8] sm:$0xf0]  ;;  %v1276_v28 = vld [vmem:[%s2022_s0 + $0x4] sm:$0xf]  ;;  %v1141_v31 = vor.u32 %v1319_v27, %v1140_v26 }
   0xa   :  { %1258 = vmatmul.msk.bf16.vlgmr.msra.gmra.mxu2 %vm505_vm0, %v981_v8  ;;  %562 = vmatpush.bf16.msra.mxu0 %v1335_v9  ;;  %v974_v29 = vld [vmem:[%s2022_s0 + $0xc] sm:$0xf0]  ;;  %v973_v30 = vor.u32 %v1277_v25, %v972_v24  ;;  %v1004_v33 = vld [vmem:[%s2022_s0 + $0x38] sm:$0xf]  ;;  %v1284_v34 = vld [vmem:[%s2022_s0 + $0x40] sm:$0xf0] }
   0xb   :  { %1350 = vmatpush.bf16.msra.mxu3 %v1335_v9  ;;  %661 = vmatpush.bf16.msra.mxu1 %v1343_v10  ;;  %v977_v32 = vor.u32 %v1276_v28, %v974_v29  ;;  %v1005_v35 = vor.u32 %v1284_v34, %v1004_v33  ;;  %v984_v36 = vld [vmem:[%s2022_s0 + $0x18] sm:$0xf]  ;;  %v1280_v37 = vld [vmem:[%s2022_s0 + $0x20] sm:$0xf0]  ;;  %v1152_v38 = vld [vmem:[%s2022_s0 + $0x168] sm:$0xf] }
   0xc   :  { %v1322_v39 = vld [vmem:[%s2022_s0 + $0x170] sm:$0xf0]  ;;  %v1279_v40 = vld [vmem:[%s2022_s0 + $0x1c] sm:$0xf]  ;;  %v986_v41 = vld [vmem:[%s2022_s0 + $0x24] sm:$0xf0]  ;;  %v985_v42 = vor.u32 %v1280_v37, %v984_v36 }
   0xd   :  { %v1153_v43 = vor.u32 %v1322_v39, %v1152_v38  ;;  %v989_v44 = vor.u32 %v1279_v40, %v986_v41  ;;  %v1016_v45 = vld [vmem:[%s2022_s0 + $0x50] sm:$0xf]  ;;  %v1287_v46 = vld [vmem:[%s2022_s0 + $0x58] sm:$0xf0]  ;;  %v1164_v50 = vld [vmem:[%s2022_s0 + $0x180] sm:$0xf] }
   0xe   :  { %563 = vmatpush.bf16.msra.mxu0 %v1334_v11  ;;  %v1017_v47 = vor.u32 %v1287_v46, %v1016_v45  ;;  %v996_v48 = vld [vmem:[%s2022_s0 + $0x30] sm:$0xf]  ;;  %v1283_v49 = vld [vmem:[%s2022_s0 + $0x38] sm:$0xf0]  ;;  %v1325_v51 = vld [vmem:[%s2022_s0 + $0x188] sm:$0xf0] }
   0xf   :  { %1351 = vmatpush.bf16.msra.mxu3 %v1334_v11  ;;  %662 = vmatpush.bf16.msra.mxu1 %v1342_v12  ;;  %v1282_v52 = vld [vmem:[%s2022_s0 + $0x34] sm:$0xf]  ;;  %v998_v53 = vld [vmem:[%s2022_s0 + $0x3c] sm:$0xf0]  ;;  %v997_v54 = vor.u32 %v1283_v49, %v996_v48  ;;  %v1165_v55 = vor.u32 %v1325_v51, %v1164_v50  ;;  %v1028_v57 = vld [vmem:[%s2022_s0 + $0x68] sm:$0xf] }
  0x10   :  { %v1001_v56 = vor.u32 %v1282_v52, %v998_v53  ;;  %v1290_v58 = vld [vmem:[%s2022_s0 + $0x70] sm:$0xf0]  ;;  %v1008_v60 = vld [vmem:[%s2022_s0 + $0x48] sm:$0xf]  ;;  %v1176_v62 = vld [vmem:[%s2022_s0 + $0x198] sm:$0xf] }
  0x11   :  { %v1029_v59 = vor.u32 %v1290_v58, %v1028_v57  ;;  %v1286_v61 = vld [vmem:[%s2022_s0 + $0x50] sm:$0xf0]  ;;  %v1328_v63 = vld [vmem:[%s2022_s0 + $0x1a0] sm:$0xf0]  ;;  %v1285_v0 = vld [vmem:[%s2022_s0 + $0x4c] sm:$0xf] }
  0x12   :  { %564 = vmatpush.bf16.msra.mxu0 %v1333_v13  ;;  %v1177_v3 = vor.u32 %v1328_v63, %v1176_v62  ;;  %v1293_v6 = vld [vmem:[%s2022_s0 + $0x88] sm:$0xf0]  ;;  %v1020_v8 = vld [vmem:[%s2022_s0 + $0x60] sm:$0xf]  ;;  %v1022_v11 = vld [vmem:[%s2022_s0 + $0x6c] sm:$0xf0] }
  0x13   :  { %1352 = vmatpush.bf16.msra.mxu3 %v1333_v13  ;;  %663 = vmatpush.bf16.msra.mxu1 %v1341_v14  ;;  %v1289_v9 = vld [vmem:[%s2022_s0 + $0x68] sm:$0xf0]  ;;  %v1142_v13 = vld [vmem:[%s2022_s0 + $0x15c] sm:$0xf0]  ;;  %v1052_v17 = vld [vmem:[%s2022_s0 + $0x98] sm:$0xf] }
  0x14   :  { %v1296_v18 = vld [vmem:[%s2022_s0 + $0xa0] sm:$0xf0]  ;;  %v1321_v24 = vld [vmem:[%s2022_s0 + $0x16c] sm:$0xf]  ;;  %v1154_v25 = vld [vmem:[%s2022_s0 + $0x174] sm:$0xf0] }
  0x15   :  { %v1157_v28 = vor.u32 %v1321_v24, %v1154_v25  ;;  %v1064_v29 = vld [vmem:[%s2022_s0 + $0xb0] sm:$0xf]  ;;  %v1295_v33 = vld [vmem:[%s2022_s0 + $0x98] sm:$0xf0]  ;;  %v1294_v34 = vld [vmem:[%s2022_s0 + $0x94] sm:$0xf] }
  0x16   :  { %565 = vmatpush.bf16.msra.mxu0 %v1332_v15  ;;  %v1324_v36 = vld [vmem:[%s2022_s0 + $0x184] sm:$0xf]  ;;  %v1166_v37 = vld [vmem:[%s2022_s0 + $0x18c] sm:$0xf0]  ;;  %v1076_v41 = vld [vmem:[%s2022_s0 + $0xc8] sm:$0xf] }
  0x17   :  { %1353 = vmatpush.bf16.msra.mxu3 %v1332_v15  ;;  %664 = vmatpush.bf16.msra.mxu1 %v1340_v16  ;;  %v1169_v40 = vor.u32 %v1324_v36, %v1166_v37  ;;  %v1298_v45 = vld [vmem:[%s2022_s0 + $0xb0] sm:$0xf0]  ;;  %v1297_v46 = vld [vmem:[%s2022_s0 + $0xac] sm:$0xf]  ;;  %v1327_v48 = vld [vmem:[%s2022_s0 + $0x19c] sm:$0xf] }
  0x18   :  { %v1178_v49 = vld [vmem:[%s2022_s0 + $0x1a4] sm:$0xf0]  ;;  %v1665_v58 = vld [vmem:[%s2023_s2] ss:$0 sm:$0xff]  ;;  %v1070_v62 = vld [vmem:[%s2022_s0 + $0xcc] sm:$0xf0] }
  0x19   :  { %v1181_v53 = vor.u32 %v1327_v48, %v1178_v49  ;;  %v1160_v63 = vld [vmem:[%s2022_s0 + $0x170] sm:$0xf]  ;;  %v1082_v25 = vld [vmem:[%s2022_s0 + $0xe4] sm:$0xf0] }
  0x1a   :  { %1259 = vmatmul.msk.bf16.gmra.mxu2 %vm505_vm0, %v993_v19  ;;  %566 = vmatpush.bf16.msra.mxu0 %v1331_v20  ;;  %v1053_v19 = vor.u32 %v1296_v18, %v1052_v17 }
  0x1b   :  { %1354 = vmatpush.bf16.msra.mxu3 %v1331_v20  ;;  %665 = vmatpush.bf16.msra.mxu1 %v1339_v21  ;;  %v1032_v20 = vld [vmem:[%s2022_s0 + $0x78] sm:$0xf] }
  0x1e   :  { %567 = vmatpush.bf16.msra.mxu0 %v1330_v22 }
  0x1f   :  { %1355 = vmatpush.bf16.msra.mxu3 %v1330_v22  ;;  %666 = vmatpush.bf16.msra.mxu1 %v1338_v23  ;;  %v1291_v22 = vld [vmem:[%s2022_s0 + $0x7c] sm:$0xf] }
  0x21   :  { %568 = vmatmul.bf16.vlgmr.msra.gmra.mxu0 %v973_v30  ;;  %v1299_v30 = vld [vmem:[%s2022_s0 + $0xb8] sm:$0xf0] }
  0x22   :  { %638 = vmatmul.bf16.vlgmr.msra.gmra.mxu3 %v1141_v31  ;;  %667 = vmatmul.bf16.vlgmr.msra.gmra.mxu1 %v977_v32  ;;  %v1065_v31 = vor.u32 %v1299_v30, %v1064_v29  ;;  %v1044_v32 = vld [vmem:[%s2022_s0 + $0x90] sm:$0xf] }
  0x23   :  { %1356 = vmatpush.bf16.msrb.mxu3 %v1345_v1  ;;  %v1010_v1 = vld [vmem:[%s2022_s0 + $0x54] sm:$0xf0]  ;;  %v1045_v38 = vor.u32 %v1295_v33, %v1044_v32 }
  0x27   :  { %1357 = vmatpush.bf16.msrb.mxu3 %v1344_v4  ;;  %v1013_v4 = vor.u32 %v1285_v0, %v1010_v1  ;;  %v1323_v0 = vld [vmem:[%s2022_s0 + $0x178] sm:$0xf0] }
  0x2a   :  { %1260 = vmatmul.msk.bf16.gmra.mxu2 %vm505_vm0, %v1005_v35  ;;  %v1046_v35 = vld [vmem:[%s2022_s0 + $0x9c] sm:$0xf0] }
  0x2b   :  { %1358 = vmatpush.bf16.msrb.mxu3 %v1343_v10  ;;  %v1288_v10 = vld [vmem:[%s2022_s0 + $0x64] sm:$0xf]  ;;  %v1049_v39 = vor.u32 %v1294_v34, %v1046_v35 }
  0x2c   :  { %v1025_v15 = vor.u32 %v1288_v10, %v1022_v11  ;;  %v1100_v10 = vld [vmem:[%s2022_s0 + $0xf8] sm:$0xf]  ;;  %v1308_v11 = vld [vmem:[%s2022_s0 + $0x100] sm:$0xf0] }
  0x2f   :  { %1359 = vmatpush.bf16.msrb.mxu3 %v1342_v12  ;;  %v1318_v12 = vld [vmem:[%s2022_s0 + $0x154] sm:$0xf] }
  0x31   :  { %573 = vmatmul.bf16.gmra.mxu0 %v985_v42  ;;  %v1302_v42 = vld [vmem:[%s2022_s0 + $0xd0] sm:$0xf0] }
  0x32   :  { %643 = vmatmul.bf16.gmra.mxu3 %v1153_v43  ;;  %672 = vmatmul.bf16.gmra.mxu1 %v989_v44  ;;  %v1077_v43 = vor.u32 %v1302_v42, %v1076_v41  ;;  %v1056_v44 = vld [vmem:[%s2022_s0 + $0xa8] sm:$0xf]  ;;  %v1311_v41 = vld [vmem:[%s2022_s0 + $0x118] sm:$0xf0] }
  0x33   :  { %1360 = vmatpush.bf16.msrb.mxu3 %v1341_v14  ;;  %v1021_v14 = vor.u32 %v1289_v9, %v1020_v8  ;;  %v1057_v51 = vor.u32 %v1298_v45, %v1056_v44 }
  0x37   :  { %1361 = vmatpush.bf16.msrb.mxu3 %v1340_v16  ;;  %v1145_v16 = vor.u32 %v1318_v12, %v1142_v13 }
  0x3a   :  { %1261 = vmatmul.msk.bf16.gmra.mxu2 %vm505_vm0, %v1017_v47  ;;  %v1058_v47 = vld [vmem:[%s2022_s0 + $0xb4] sm:$0xf0] }
  0x3b   :  { %1362 = vmatpush.bf16.msrb.mxu3 %v1339_v21  ;;  %v1292_v21 = vld [vmem:[%s2022_s0 + $0x80] sm:$0xf0]  ;;  %v1061_v52 = vor.u32 %v1297_v46, %v1058_v47 }
  0x3c   :  { %v1033_v26 = vor.u32 %v1292_v21, %v1032_v20  ;;  %v1080_v21 = vld [vmem:[%s2022_s0 + $0xd8] sm:$0xf] }
  0x3f   :  { %1363 = vmatpush.bf16.msrb.mxu3 %v1338_v23  ;;  %v1034_v23 = vld [vmem:[%s2022_s0 + $0x84] sm:$0xf0] }
  0x40   :  { %v1037_v27 = vor.u32 %v1291_v22, %v1034_v23  ;;  %v1304_v22 = vld [vmem:[%s2022_s0 + $0xe0] sm:$0xf0]  ;;  %v1303_v23 = vld [vmem:[%s2022_s0 + $0xdc] sm:$0xf] }
  0x41   :  { %578 = vmatmul.bf16.gmra.mxu0 %v997_v54  ;;  %v1088_v54 = vld [vmem:[%s2022_s0 + $0xe0] sm:$0xf]  ;;  %v1085_v33 = vor.u32 %v1303_v23, %v1082_v25  ;;  %v1106_v23 = vld [vmem:[%s2022_s0 + $0x114] sm:$0xf0] }
  0x42   :  { %648 = vmatmul.bf16.gmra.mxu3 %v1165_v55  ;;  %677 = vmatmul.bf16.gmra.mxu1 %v1001_v56  ;;  %v1305_v55 = vld [vmem:[%s2022_s0 + $0xe8] sm:$0xf0] }
  0x43   :  { %1364 = vmatpush.bf16.msra.mxu3 %v1396_v2  ;;  %v1009_v2 = vor.u32 %v1286_v61, %v1008_v60  ;;  %v1089_v57 = vor.u32 %v1305_v55, %v1088_v54  ;;  %v1301_v60 = vld [vmem:[%s2022_s0 + $0xc8] sm:$0xf0]  ;;  %v1300_v61 = vld [vmem:[%s2022_s0 + $0xc4] sm:$0xf]  ;;  %v1094_v55 = vld [vmem:[%s2022_s0 + $0xfc] sm:$0xf0] }
  0x47   :  { %1365 = vmatpush.bf16.msra.mxu3 %v1408_v5  ;;  %v1040_v5 = vld [vmem:[%s2022_s0 + $0x80] sm:$0xf] }
  0x48   :  { %v1041_v7 = vor.u32 %v1293_v6, %v1040_v5  ;;  %v1161_v5 = vor.u32 %v1323_v0, %v1160_v63 }
  0x4a   :  { %1262 = vmatmul.msk.bf16.gmra.mxu2 %vm505_vm0, %v1029_v59  ;;  %v1068_v59 = vld [vmem:[%s2022_s0 + $0xc0] sm:$0xf] }
  0x51   :  { %583 = vmatmul.bf16.gmra.mxu0 %v1009_v2  ;;  %v1069_v2 = vor.u32 %v1301_v60, %v1068_v59 }
  0x52   :  { %653 = vmatmul.bf16.gmra.mxu3 %v1177_v3  ;;  %682 = vmatmul.bf16.gmra.mxu1 %v1013_v4  ;;  %v1073_v4 = vor.u32 %v1300_v61, %v1070_v62 }
  0x5a   :  { %1263 = vmatmul.msk.bf16.gmra.mxu2 %vm505_vm0, %v1041_v7 }
  0x61   :  { %588 = vmatmul.bf16.gmra.mxu0 %v1021_v14 }
  0x62   :  { %687 = vmatmul.bf16.gmra.mxu1 %v1025_v15  ;;  %737 = vmatmul.bf16.vlgmr.msrb.gmra.mxu3 %v1145_v16  ;;  %v1101_v16 = vor.u32 %v1308_v11, %v1100_v10 }
  0x6a   :  { %1264 = vmatmul.msk.bf16.gmra.mxu2 %vm505_vm0, %v1053_v19 }
  0x71   :  { %593 = vmatmul.bf16.gmra.mxu0 %v1033_v26  ;;  %v1172_v26 = vld [vmem:[%s2022_s0 + $0x188] sm:$0xf] }
  0x72   :  { %692 = vmatmul.bf16.gmra.mxu1 %v1037_v27  ;;  %742 = vmatmul.bf16.gmra.mxu3 %v1157_v28  ;;  %v1326_v27 = vld [vmem:[%s2022_s0 + $0x190] sm:$0xf0] }
  0x73   :  { %v1173_v34 = vor.u32 %v1326_v27, %v1172_v26 }
  0x7a   :  { %1265 = vmatmul.msk.bf16.gmra.mxu2 %vm505_vm0, %v1065_v31  ;;  %v1081_v31 = vor.u32 %v1304_v22, %v1080_v21  ;;  %v1309_v22 = vld [vmem:[%s2022_s0 + $0x10c] sm:$0xf] }
  0x81   :  { %598 = vmatmul.bf16.gmra.mxu0 %v1045_v38 }
  0x82   :  { %697 = vmatmul.bf16.gmra.mxu1 %v1049_v39  ;;  %747 = vmatmul.bf16.gmra.mxu3 %v1169_v40  ;;  %v1112_v40 = vld [vmem:[%s2022_s0 + $0x110] sm:$0xf] }
  0x83   :  { %v1113_v46 = vor.u32 %v1311_v41, %v1112_v40 }
  0x8a   :  { %1266 = vmatmul.msk.bf16.gmra.mxu2 %vm505_vm0, %v1077_v43 }
  0x8d   :  { %v767_v50 = vpop.f32.mrf.mxu2 }
  0x91   :  { %603 = vmatmul.bf16.gmra.mxu0 %v1057_v51  ;;  %v1092_v51 = vld [vmem:[%s2022_s0 + $0xf0] sm:$0xf] }
  0x92   :  { %702 = vmatmul.bf16.gmra.mxu1 %v1061_v52  ;;  %752 = vmatmul.bf16.gmra.mxu3 %v1181_v53  ;;  %v1307_v52 = vld [vmem:[%s2022_s0 + $0xf8] sm:$0xf0]  ;;  %v1306_v53 = vld [vmem:[%s2022_s0 + $0xf4] sm:$0xf] }
  0x93   :  { %v1093_v62 = vor.u32 %v1307_v52, %v1092_v51  ;;  %v1097_v0 = vor.u32 %v1306_v53, %v1094_v55  ;;  %v1312_v51 = vld [vmem:[%s2022_s0 + $0x124] sm:$0xf]  ;;  %v1118_v52 = vld [vmem:[%s2022_s0 + $0x12c] sm:$0xf0] }
  0x95   :  { %v769_v56 = vpop.f32.mrf.mxu2 }
  0x9a   :  { %1267 = vmatmul.msk.bf16.gmra.mxu2 %vm505_vm0, %v1089_v57  ;;  %v1329_v57 = vld [vmem:[%s2022_s0 + $0x1a8] sm:$0xf0] }
  0x9d   :  { %v772_v1 = vpop.f32.mrf.mxu2 }
  0x9e   :  { %v569_v3 = vpop.f32.mrf.mxu0 }
  0x9f   :  { %v570_v6 = vadd.f32 %v1665_v58, %v569_v3  ;;  %v668_v7 = vpop.f32.mrf.mxu1 }
  0xa1   :  { %v669_v8 = vadd.f32 %v668_v7, %v570_v6  ;;  %608 = vmatmul.bf16.gmra.mxu0 %v1069_v2  ;;  %v1124_v7 = vld [vmem:[%s2022_s0 + $0x128] sm:$0xf] }
  0xa2   :  { %707 = vmatmul.bf16.gmra.mxu1 %v1073_v4  ;;  %1273 = vmatmul.msk.bf16.vlgmr.msra.gmra.mxu3 %vm505_vm0, %v1161_v5 }
  0xa3   :  { %v768_v9 = vadd.f32 %v767_v50, %v669_v8  ;;  %v1314_v8 = vld [vmem:[%s2022_s0 + $0x130] sm:$0xf0] }
  0xa5   :  { %v857_v12 = vmax.f32 %v768_v9, 0.0  ;;  %v1694_v13 = vpop.f32.mrf.mxu3  ;;  %v774_v14 = vpop.f32.mrf.mxu2 }
  0xa6   :  { %v571_v15 = vpop.f32.mrf.mxu0 }
  0xa7   :  { %v893_v17 = vpack.c.bf16 %v857_v12, %v857_v12  ;;  %v572_v18 = vadd.f32 %v1665_v58, %v571_v15  ;;  %v670_v19 = vpop.f32.mrf.mxu1 }
  0xa9   :  { %930 = vst.msk [vmem:[%s2024_s3] sm:$0xf] %vm929_vm1, %v893_v17  ;;  %v671_v20 = vadd.f32 %v670_v19, %v572_v18  ;;  %v1104_v19 = vld [vmem:[%s2022_s0 + $0x108] sm:$0xf] }
  0xaa   :  { %1268 = vmatmul.msk.bf16.gmra.mxu2 %vm505_vm0, %v1101_v16 }
  0xab   :  { %v770_v24 = vadd.f32 %v769_v56, %v671_v20  ;;  %v1184_v56 = vld [vmem:[%s2022_s0 + $0x1a0] sm:$0xf]  ;;  %v1310_v20 = vld [vmem:[%s2022_s0 + $0x110] sm:$0xf0] }
  0xac   :  { %v1105_v27 = vor.u32 %v1310_v20, %v1104_v19  ;;  %v1315_v19 = vld [vmem:[%s2022_s0 + $0x13c] sm:$0xf]  ;;  %v1130_v20 = vld [vmem:[%s2022_s0 + $0x144] sm:$0xf0] }
  0xad   :  { %v858_v28 = vmax.f32 %v770_v24, 0.0  ;;  %v1720_v29 = vpop.f32.mrf.mxu3  ;;  %v777_v30 = vpop.f32.mrf.mxu2 }
  0xae   :  { %v574_v32 = vpop.f32.mrf.mxu0 }
  0xaf   :  { %v894_v35 = vpack.c.bf16 %v858_v28, %v858_v28  ;;  %v575_v36 = vadd.f32 %v1665_v58, %v574_v32  ;;  %v673_v37 = vpop.f32.mrf.mxu1 }
  0xb1   :  { %931 = vst.msk [vmem:[%s2024_s3 + $0x4] sm:$0xf] %vm929_vm1, %v894_v35  ;;  %v674_v38 = vadd.f32 %v673_v37, %v575_v36  ;;  %613 = vmatmul.bf16.gmra.mxu0 %v1081_v31  ;;  %v1136_v36 = vld [vmem:[%s2022_s0 + $0x140] sm:$0xf]  ;;  %v1317_v37 = vld [vmem:[%s2022_s0 + $0x148] sm:$0xf0] }
  0xb2   :  { %712 = vmatmul.bf16.gmra.mxu1 %v1085_v33  ;;  %1274 = vmatmul.msk.bf16.gmra.mxu3 %vm505_vm0, %v1173_v34 }
  0xb3   :  { %v773_v39 = vadd.f32 %v772_v1, %v674_v38  ;;  %v1185_v1 = vor.u32 %v1329_v57, %v1184_v56 }
  0xb5   :  { %v859_v42 = vmax.f32 %v773_v39, 0.0  ;;  %v1734_v43 = vpop.f32.mrf.mxu3  ;;  %v779_v44 = vpop.f32.mrf.mxu2 }
  0xb6   :  { %v576_v45 = vpop.f32.mrf.mxu0 }
  0xb7   :  { %v895_v47 = vpack.c.bf16 %v859_v42, %v859_v42  ;;  %v577_v48 = vadd.f32 %v1665_v58, %v576_v45  ;;  %v675_v49 = vpop.f32.mrf.mxu1  ;;  %v1137_v42 = vor.u32 %v1317_v37, %v1136_v36 }
  0xb9   :  { %932 = vst.msk [vmem:[%s2024_s3 + $0x8] sm:$0xf] %vm929_vm1, %v895_v47  ;;  %v676_v50 = vadd.f32 %v675_v49, %v577_v48  ;;  %v1116_v48 = vld [vmem:[%s2022_s0 + $0x120] sm:$0xf]  ;;  %v1313_v49 = vld [vmem:[%s2022_s0 + $0x128] sm:$0xf0] }
  0xba   :  { %1269 = vmatmul.msk.bf16.gmra.mxu2 %vm505_vm0, %v1113_v46  ;;  %v1117_v56 = vor.u32 %v1313_v49, %v1116_v48 }
  0xbb   :  { %v775_v54 = vadd.f32 %v774_v14, %v676_v50  ;;  %v1125_v14 = vor.u32 %v1314_v8, %v1124_v7 }
  0xbd   :  { %v860_v59 = vmax.f32 %v775_v54, 0.0  ;;  %v1760_v60 = vpop.f32.mrf.mxu3  ;;  %v782_v61 = vpop.f32.mrf.mxu2 }
  0xbe   :  { %v579_v63 = vpop.f32.mrf.mxu0 }
  0xbf   :  { %v896_v2 = vpack.c.bf16 %v860_v59, %v860_v59  ;;  %v580_v3 = vadd.f32 %v1665_v58, %v579_v63  ;;  %v678_v4 = vpop.f32.mrf.mxu1  ;;  %v1121_v59 = vor.u32 %v1312_v51, %v1118_v52 }
  0xc1   :  { %933 = vst.msk [vmem:[%s2024_s3 + $0xc] sm:$0xf] %vm929_vm1, %v896_v2  ;;  %v679_v5 = vadd.f32 %v678_v4, %v580_v3  ;;  %618 = vmatmul.bf16.gmra.mxu0 %v1093_v62  ;;  %v1148_v2 = vld [vmem:[%s2022_s0 + $0x158] sm:$0xf]  ;;  %v1320_v3 = vld [vmem:[%s2022_s0 + $0x160] sm:$0xf0]  ;;  %v640_v4 = vadd.f32 %v1665_v58, %v1694_v13 }
  0xc2   :  { %717 = vmatmul.bf16.gmra.mxu1 %v1097_v0  ;;  %1275 = vmatmul.msk.bf16.gmra.mxu3 %vm505_vm0, %v1185_v1  ;;  %v1128_v13 = vld [vmem:[%s2022_s0 + $0x138] sm:$0xf] }
  0xc3   :  { %v778_v6 = vadd.f32 %v777_v30, %v679_v5  ;;  %v1109_v30 = vor.u32 %v1309_v22, %v1106_v23 }
  0xc5   :  { %v861_v9 = vmax.f32 %v778_v6, 0.0  ;;  %v1774_v10 = vpop.f32.mrf.mxu3  ;;  %v784_v11 = vpop.f32.mrf.mxu2 }
  0xc6   :  { %v581_v12 = vpop.f32.mrf.mxu0 }
  0xc7   :  { %v897_v15 = vpack.c.bf16 %v861_v9, %v861_v9  ;;  %v582_v16 = vadd.f32 %v1665_v58, %v581_v12  ;;  %v680_v17 = vpop.f32.mrf.mxu1 }
  0xc9   :  { %934 = vst.msk [vmem:[%s2024_s3 + $0x10] sm:$0xf] %vm929_vm1, %v897_v15  ;;  %v681_v18 = vadd.f32 %v680_v17, %v582_v16  ;;  %v1316_v17 = vld [vmem:[%s2022_s0 + $0x140] sm:$0xf0] }
  0xca   :  { %1270 = vmatmul.msk.bf16.gmra.mxu2 %vm505_vm0, %v1125_v14 }
  0xcb   :  { %v780_v21 = vadd.f32 %v779_v44, %v681_v18 }
  0xcd   :  { %v862_v24 = vmax.f32 %v780_v21, 0.0  ;;  %v1794_v25 = vpop.f32.mrf.mxu3  ;;  %v787_v26 = vpop.f32.mrf.mxu2  ;;  %v642_v21 = vadd.f32 %v1665_v58, %v1720_v29 }
  0xce   :  { %v584_v28 = vpop.f32.mrf.mxu0 }
  0xcf   :  { %v898_v31 = vpack.c.bf16 %v862_v24, %v862_v24  ;;  %v585_v32 = vadd.f32 %v1665_v58, %v584_v28  ;;  %v683_v33 = vpop.f32.mrf.mxu1 }
  0xd1   :  { %935 = vst.msk [vmem:[%s2024_s3 + $0x14] sm:$0xf] %vm929_vm1, %v898_v31  ;;  %v684_v34 = vadd.f32 %v683_v33, %v585_v32  ;;  %623 = vmatmul.bf16.gmra.mxu0 %v1105_v27 }
  0xd2   :  { %722 = vmatmul.bf16.gmra.mxu1 %v1109_v30  ;;  %v1133_v30 = vor.u32 %v1315_v19, %v1130_v20 }
  0xd3   :  { %v783_v35 = vadd.f32 %v782_v61, %v684_v34 }
  0xd5   :  { %v863_v38 = vmax.f32 %v783_v35, 0.0  ;;  %v1807_v39 = vpop.f32.mrf.mxu3  ;;  %v789_v40 = vpop.f32.mrf.mxu2 }
  0xd6   :  { %v586_v41 = vpop.f32.mrf.mxu0 }
  0xd7   :  { %v899_v44 = vpack.c.bf16 %v863_v38, %v863_v38  ;;  %v587_v45 = vadd.f32 %v1665_v58, %v586_v41  ;;  %v685_v46 = vpop.f32.mrf.mxu1 }
  0xd9   :  { %936 = vst.msk [vmem:[%s2024_s3 + $0x18] sm:$0xf] %vm929_vm1, %v899_v44  ;;  %v686_v47 = vadd.f32 %v685_v46, %v587_v45 }
  0xda   :  { %1271 = vmatmul.msk.bf16.gmra.mxu2 %vm505_vm0, %v1137_v42 }
  0xdb   :  { %v785_v50 = vadd.f32 %v784_v11, %v686_v47  ;;  %v1149_v11 = vor.u32 %v1320_v3, %v1148_v2 }
  0xdd   :  { %v864_v53 = vmax.f32 %v785_v50, 0.0  ;;  %v1827_v54 = vpop.f32.mrf.mxu3  ;;  %v792_v55 = vpop.f32.mrf.mxu2 }
  0xde   :  { %v589_v57 = vpop.f32.mrf.mxu0 }
  0xdf   :  { %v900_v61 = vpack.c.bf16 %v864_v53, %v864_v53  ;;  %v590_v62 = vadd.f32 %v1665_v58, %v589_v57  ;;  %v688_v63 = vpop.f32.mrf.mxu1 }
  0xe1   :  { %937 = vst.msk [vmem:[%s2024_s3 + $0x1c] sm:$0xf] %vm929_vm1, %v900_v61  ;;  %v689_v0 = vadd.f32 %v688_v63, %v590_v62  ;;  %628 = vmatmul.bf16.gmra.mxu0 %v1117_v56 }
  0xe2   :  { %727 = vmatmul.bf16.gmra.mxu1 %v1121_v59 }
  0xe3   :  { %v788_v1 = vadd.f32 %v787_v26, %v689_v0  ;;  %v1129_v26 = vor.u32 %v1316_v17, %v1128_v13 }
  0xe5   :  { %v865_v5 = vmax.f32 %v788_v1, 0.0  ;;  %v738_v6 = vpop.f32.mrf.mxu3  ;;  %v794_v7 = vpop.f32.mrf.mxu2 }
  0xe6   :  { %v1842_v8 = vadd.f32 %v738_v6, %v640_v4  ;;  %v591_v9 = vpop.f32.mrf.mxu0 }
  0xe7   :  { %v901_v12 = vpack.c.bf16 %v865_v5, %v865_v5  ;;  %v592_v14 = vadd.f32 %v1665_v58, %v591_v9  ;;  %v690_v15 = vpop.f32.mrf.mxu1 }
  0xe9   :  { %938 = vst.msk [vmem:[%s2024_s3 + $0x20] sm:$0xf] %vm929_vm1, %v901_v12  ;;  %v691_v16 = vadd.f32 %v690_v15, %v592_v14 }
  0xea   :  { %1272 = vmatmul.msk.bf16.gmra.mxu2 %vm505_vm0, %v1149_v11 }
  0xeb   :  { %v790_v18 = vadd.f32 %v789_v40, %v691_v16 }
  0xed   :  { %v866_v22 = vmax.f32 %v790_v18, 0.0  ;;  %v740_v23 = vpop.f32.mrf.mxu3  ;;  %v797_v24 = vpop.f32.mrf.mxu2 }
  0xee   :  { %v1864_v27 = vadd.f32 %v740_v23, %v642_v21  ;;  %v594_v28 = vpop.f32.mrf.mxu0 }
  0xef   :  { %v902_v31 = vpack.c.bf16 %v866_v22, %v866_v22  ;;  %v595_v32 = vadd.f32 %v1665_v58, %v594_v28  ;;  %v693_v33 = vpop.f32.mrf.mxu1 }
  0xf1   :  { %939 = vst.msk [vmem:[%s2024_s3 + $0x24] sm:$0xf] %vm929_vm1, %v902_v31  ;;  %v694_v34 = vadd.f32 %v693_v33, %v595_v32  ;;  %633 = vmatmul.bf16.gmra.mxu0 %v1129_v26 }
  0xf2   :  { %732 = vmatmul.bf16.gmra.mxu1 %v1133_v30 }
  0xf3   :  { %v793_v29 = vadd.f32 %v792_v55, %v694_v34  ;;  %v645_v34 = vadd.f32 %v1665_v58, %v1734_v43  ;;  %v647_v43 = vadd.f32 %v1665_v58, %v1760_v60 }
  0xf5   :  { %v867_v35 = vmax.f32 %v793_v29, 0.0  ;;  %v743_v36 = vpop.f32.mrf.mxu3  ;;  %v799_v37 = vpop.f32.mrf.mxu2 }
  0xf6   :  { %v596_v38 = vpop.f32.mrf.mxu0 }
  0xf7   :  { %v903_v40 = vpack.c.bf16 %v867_v35, %v867_v35  ;;  %v597_v41 = vadd.f32 %v1665_v58, %v596_v38  ;;  %v695_v42 = vpop.f32.mrf.mxu1  ;;  %v744_v35 = vadd.f32 %v743_v36, %v645_v34 }
  0xf9   :  { %940 = vst.msk [vmem:[%s2024_s3 + $0x28] sm:$0xf] %vm929_vm1, %v903_v40  ;;  %v696_v44 = vadd.f32 %v695_v42, %v597_v41 }
  0xfb   :  { %v795_v45 = vadd.f32 %v794_v7, %v696_v44 }
  0xfd   :  { %v868_v46 = vmax.f32 %v795_v45, 0.0  ;;  %v1876_v47 = vpop.f32.mrf.mxu3  ;;  %v802_v48 = vpop.f32.mrf.mxu2 }
  0xfe   :  { %v599_v49 = vpop.f32.mrf.mxu0 }
  0xff   :  { %v904_v50 = vpack.c.bf16 %v868_v46, %v868_v46  ;;  %v600_v51 = vadd.f32 %v1665_v58, %v599_v49  ;;  %v698_v52 = vpop.f32.mrf.mxu1 }
 0x101   :  { %941 = vst.msk [vmem:[%s2024_s3 + $0x2c] sm:$0xf] %vm929_vm1, %v904_v50  ;;  %v699_v53 = vadd.f32 %v698_v52, %v600_v51  ;;  %v746_v51 = vadd.f32 %v1876_v47, %v647_v43  ;;  %v650_v47 = vadd.f32 %v1665_v58, %v1774_v10 }
 0x103   :  { %v798_v55 = vadd.f32 %v797_v24, %v699_v53 }
 0x105   :  { %v869_v56 = vmax.f32 %v798_v55, 0.0  ;;  %v1883_v57 = vpop.f32.mrf.mxu3  ;;  %v804_v59 = vpop.f32.mrf.mxu2 }
 0x106   :  { %v601_v61 = vpop.f32.mrf.mxu0 }
 0x107   :  { %v905_v62 = vpack.c.bf16 %v869_v56, %v869_v56  ;;  %v602_v63 = vadd.f32 %v1665_v58, %v601_v61  ;;  %v700_v0 = vpop.f32.mrf.mxu1 }
 0x109   :  { %942 = vst.msk [vmem:[%s2024_s3 + $0x30] sm:$0xf] %vm929_vm1, %v905_v62  ;;  %v701_v1 = vadd.f32 %v700_v0, %v602_v63 }
 0x10b   :  { %v800_v2 = vadd.f32 %v799_v37, %v701_v1 }
 0x10d   :  { %v870_v3 = vmax.f32 %v800_v2, 0.0  ;;  %v1890_v4 = vpop.f32.mrf.mxu3  ;;  %v807_v5 = vpop.f32.mrf.mxu2 }
 0x10e   :  { %v604_v6 = vpop.f32.mrf.mxu0 }
 0x10f   :  { %v906_v7 = vpack.c.bf16 %v870_v3, %v870_v3  ;;  %v605_v9 = vadd.f32 %v1665_v58, %v604_v6  ;;  %v703_v11 = vpop.f32.mrf.mxu1  ;;  %v749_v3 = vadd.f32 %v1883_v57, %v650_v47  ;;  %v652_v57 = vadd.f32 %v1665_v58, %v1794_v25 }
 0x111   :  { %943 = vst.msk [vmem:[%s2024_s3 + $0x34] sm:$0xf] %vm929_vm1, %v906_v7  ;;  %v704_v12 = vadd.f32 %v703_v11, %v605_v9 }
 0x113   :  { %v803_v14 = vadd.f32 %v802_v48, %v704_v12 }
 0x115   :  { %v871_v15 = vmax.f32 %v803_v14, 0.0  ;;  %v1897_v16 = vpop.f32.mrf.mxu3  ;;  %v809_v13 = vpop.f32.mrf.mxu2 }
 0x116   :  { %v606_v17 = vpop.f32.mrf.mxu0 }
 0x117   :  { %v907_v18 = vpack.c.bf16 %v871_v15, %v871_v15  ;;  %v607_v19 = vadd.f32 %v1665_v58, %v606_v17  ;;  %v705_v20 = vpop.f32.mrf.mxu1 }
 0x119   :  { %944 = vst.msk [vmem:[%s2024_s3 + $0x38] sm:$0xf] %vm929_vm1, %v907_v18  ;;  %v706_v21 = vadd.f32 %v705_v20, %v607_v19  ;;  %v751_v19 = vadd.f32 %v1890_v4, %v652_v57  ;;  %v655_v4 = vadd.f32 %v1665_v58, %v1807_v39 }
 0x11b   :  { %v805_v22 = vadd.f32 %v804_v59, %v706_v21 }
 0x11d   :  { %v872_v23 = vmax.f32 %v805_v22, 0.0  ;;  %v1904_v24 = vpop.f32.mrf.mxu3  ;;  %v812_v26 = vpop.f32.mrf.mxu2 }
 0x11e   :  { %v609_v28 = vpop.f32.mrf.mxu0 }
 0x11f   :  { %v908_v30 = vpack.c.bf16 %v872_v23, %v872_v23  ;;  %v610_v31 = vadd.f32 %v1665_v58, %v609_v28  ;;  %v708_v32 = vpop.f32.mrf.mxu1 }
 0x121   :  { %945 = vst.msk [vmem:[%s2024_s3 + $0x3c] sm:$0xf] %vm929_vm1, %v908_v30  ;;  %v709_v33 = vadd.f32 %v708_v32, %v610_v31 }
 0x123   :  { %v808_v29 = vadd.f32 %v807_v5, %v709_v33 }
 0x125   :  { %v873_v37 = vmax.f32 %v808_v29, 0.0  ;;  %v814_v38 = vpop.f32.mrf.mxu2  ;;  %v842_v40 = vpop.f32.mrf.mxu3  ;;  %v754_v29 = vadd.f32 %v1897_v16, %v655_v4  ;;  %v657_v16 = vadd.f32 %v1665_v58, %v1827_v54 }
 0x126   :  { %v843_v41 = vadd.f32 %v842_v40, %v744_v35  ;;  %v611_v42 = vpop.f32.mrf.mxu0 }
 0x127   :  { %v909_v44 = vpack.c.bf16 %v873_v37, %v873_v37  ;;  %v612_v45 = vadd.f32 %v1665_v58, %v611_v42  ;;  %v710_v46 = vpop.f32.mrf.mxu1  ;;  %v756_v43 = vadd.f32 %v1904_v24, %v657_v16 }
 0x128   :  { %v887_v48 = vmax.f32 %v843_v41, 0.0 }
 0x129   :  { %946 = vst.msk [vmem:[%s2024_s3 + $0x40] sm:$0xf] %vm929_vm1, %v909_v44  ;;  %v711_v49 = vadd.f32 %v710_v46, %v612_v45 }
 0x12a   :  { %v923_v36 = vpack.c.bf16 %v887_v48, %v887_v48 }
 0x12b   :  { %v810_v50 = vadd.f32 %v809_v13, %v711_v49 }
 0x12c   :  { %960 = vst.msk [vmem:[%s2024_s3 + $0x78] sm:$0xf] %vm929_vm1, %v923_v36 }
 0x12d   :  { %v874_v52 = vmax.f32 %v810_v50, 0.0  ;;  %v817_v53 = vpop.f32.mrf.mxu2  ;;  %v844_v55 = vpop.f32.mrf.mxu3 }
 0x12e   :  { %v845_v56 = vadd.f32 %v844_v55, %v746_v51  ;;  %v614_v59 = vpop.f32.mrf.mxu0 }
 0x12f   :  { %v910_v61 = vpack.c.bf16 %v874_v52, %v874_v52  ;;  %v615_v62 = vadd.f32 %v1665_v58, %v614_v59  ;;  %v713_v63 = vpop.f32.mrf.mxu1 }
 0x130   :  { %v888_v0 = vmax.f32 %v845_v56, 0.0 }
 0x131   :  { %947 = vst.msk [vmem:[%s2024_s3 + $0x44] sm:$0xf] %vm929_vm1, %v910_v61  ;;  %v714_v60 = vadd.f32 %v713_v63, %v615_v62 }
 0x132   :  { %v924_v1 = vpack.c.bf16 %v888_v0, %v888_v0 }
 0x133   :  { %v813_v2 = vadd.f32 %v812_v26, %v714_v60 }
 0x134   :  { %961 = vst.msk [vmem:[%s2024_s3 + $0x7c] sm:$0xf] %vm929_vm1, %v924_v1 }
 0x135   :  { %v875_v5 = vmax.f32 %v813_v2, 0.0  ;;  %v819_v6 = vpop.f32.mrf.mxu2  ;;  %v847_v7 = vpop.f32.mrf.mxu3 }
 0x136   :  { %v848_v9 = vadd.f32 %v847_v7, %v749_v3  ;;  %v616_v11 = vpop.f32.mrf.mxu0 }
 0x137   :  { %v911_v12 = vpack.c.bf16 %v875_v5, %v875_v5  ;;  %v617_v14 = vadd.f32 %v1665_v58, %v616_v11  ;;  %v715_v15 = vpop.f32.mrf.mxu1 }
 0x138   :  { %v889_v13 = vmax.f32 %v848_v9, 0.0 }
 0x139   :  { %948 = vst.msk [vmem:[%s2024_s3 + $0x48] sm:$0xf] %vm929_vm1, %v911_v12  ;;  %v716_v10 = vadd.f32 %v715_v15, %v617_v14 }
 0x13a   :  { %v925_v17 = vpack.c.bf16 %v889_v13, %v889_v13 }
 0x13b   :  { %v815_v18 = vadd.f32 %v814_v38, %v716_v10 }
 0x13c   :  { %962 = vst.msk [vmem:[%s2024_s3 + $0x80] sm:$0xf] %vm929_vm1, %v925_v17 }
 0x13d   :  { %v876_v20 = vmax.f32 %v815_v18, 0.0  ;;  %v822_v21 = vpop.f32.mrf.mxu2  ;;  %v849_v22 = vpop.f32.mrf.mxu3 }
 0x13e   :  { %v850_v23 = vadd.f32 %v849_v22, %v751_v19  ;;  %v619_v26 = vpop.f32.mrf.mxu0 }
 0x13f   :  { %v912_v28 = vpack.c.bf16 %v876_v20, %v876_v20  ;;  %v620_v30 = vadd.f32 %v1665_v58, %v619_v26  ;;  %v718_v31 = vpop.f32.mrf.mxu1 }
 0x140   :  { %v890_v32 = vmax.f32 %v850_v23, 0.0 }
 0x141   :  { %949 = vst.msk [vmem:[%s2024_s3 + $0x4c] sm:$0xf] %vm929_vm1, %v912_v28  ;;  %v719_v25 = vadd.f32 %v718_v31, %v620_v30 }
 0x142   :  { %v926_v33 = vpack.c.bf16 %v890_v32, %v890_v32 }
 0x143   :  { %v818_v34 = vadd.f32 %v817_v53, %v719_v25 }
 0x144   :  { %963 = vst.msk [vmem:[%s2024_s3 + $0x84] sm:$0xf] %vm929_vm1, %v926_v33 }
 0x145   :  { %v877_v35 = vmax.f32 %v818_v34, 0.0  ;;  %v824_v37 = vpop.f32.mrf.mxu2  ;;  %v852_v38 = vpop.f32.mrf.mxu3 }
 0x146   :  { %v853_v40 = vadd.f32 %v852_v38, %v754_v29  ;;  %v621_v41 = vpop.f32.mrf.mxu0 }
 0x147   :  { %v913_v42 = vpack.c.bf16 %v877_v35, %v877_v35  ;;  %v622_v44 = vadd.f32 %v1665_v58, %v621_v41  ;;  %v720_v45 = vpop.f32.mrf.mxu1 }
 0x148   :  { %v891_v46 = vmax.f32 %v853_v40, 0.0 }
 0x149   :  { %950 = vst.msk [vmem:[%s2024_s3 + $0x50] sm:$0xf] %vm929_vm1, %v913_v42  ;;  %v721_v39 = vadd.f32 %v720_v45, %v622_v44 }
 0x14a   :  { %v927_v48 = vpack.c.bf16 %v891_v46, %v891_v46 }
 0x14b   :  { %v820_v49 = vadd.f32 %v819_v6, %v721_v39 }
 0x14c   :  { %964 = vst.msk [vmem:[%s2024_s3 + $0x88] sm:$0xf] %vm929_vm1, %v927_v48 }
 0x14d   :  { %v878_v36 = vmax.f32 %v820_v49, 0.0  ;;  %v827_v50 = vpop.f32.mrf.mxu2  ;;  %v854_v51 = vpop.f32.mrf.mxu3 }
 0x14e   :  { %v855_v52 = vadd.f32 %v854_v51, %v756_v43  ;;  %v624_v53 = vpop.f32.mrf.mxu0 }
 0x14f   :  { %v914_v55 = vpack.c.bf16 %v878_v36, %v878_v36  ;;  %v625_v56 = vadd.f32 %v1665_v58, %v624_v53  ;;  %v723_v59 = vpop.f32.mrf.mxu1 }
 0x150   :  { %v892_v61 = vmax.f32 %v855_v52, 0.0 }
 0x151   :  { %951 = vst.msk [vmem:[%s2024_s3 + $0x54] sm:$0xf] %vm929_vm1, %v914_v55  ;;  %v724_v54 = vadd.f32 %v723_v59, %v625_v56 }
 0x152   :  { %v928_v24 = vpack.c.bf16 %v892_v61, %v892_v61 }
 0x153   :  { %v823_v62 = vadd.f32 %v822_v21, %v724_v54 }
 0x154   :  { %965 = vst.msk [vmem:[%s2024_s3 + $0x8c] sm:$0xf] %vm929_vm1, %v928_v24 }
 0x155   :  { %v879_v63 = vmax.f32 %v823_v62, 0.0  ;;  %v829_v0 = vpop.f32.mrf.mxu2 }
 0x156   :  { %v626_v60 = vpop.f32.mrf.mxu0 }
 0x157   :  { %v915_v47 = vpack.c.bf16 %v879_v63, %v879_v63  ;;  %v627_v1 = vadd.f32 %v1665_v58, %v626_v60  ;;  %v725_v2 = vpop.f32.mrf.mxu1 }
 0x159   :  { %952 = vst.msk [vmem:[%s2024_s3 + $0x58] sm:$0xf] %vm929_vm1, %v915_v47  ;;  %v726_v3 = vadd.f32 %v725_v2, %v627_v1 }
 0x15b   :  { %v825_v5 = vadd.f32 %v824_v37, %v726_v3 }
 0x15d   :  { %v880_v6 = vmax.f32 %v825_v5, 0.0  ;;  %v832_v7 = vpop.f32.mrf.mxu2 }
 0x15e   :  { %v629_v9 = vpop.f32.mrf.mxu0 }
 0x15f   :  { %v916_v11 = vpack.c.bf16 %v880_v6, %v880_v6  ;;  %v630_v12 = vadd.f32 %v1665_v58, %v629_v9  ;;  %v728_v14 = vpop.f32.mrf.mxu1 }
 0x161   :  { %953 = vst.msk [vmem:[%s2024_s3 + $0x5c] sm:$0xf] %vm929_vm1, %v916_v11  ;;  %v729_v15 = vadd.f32 %v728_v14, %v630_v12 }
 0x163   :  { %v828_v13 = vadd.f32 %v827_v50, %v729_v15 }
 0x165   :  { %v881_v10 = vmax.f32 %v828_v13, 0.0  ;;  %v834_v57 = vpop.f32.mrf.mxu2 }
 0x166   :  { %v631_v17 = vpop.f32.mrf.mxu0 }
 0x167   :  { %v917_v18 = vpack.c.bf16 %v881_v10, %v881_v10  ;;  %v632_v19 = vadd.f32 %v1665_v58, %v631_v17  ;;  %v730_v20 = vpop.f32.mrf.mxu1 }
 0x169   :  { %954 = vst.msk [vmem:[%s2024_s3 + $0x60] sm:$0xf] %vm929_vm1, %v917_v18  ;;  %v731_v21 = vadd.f32 %v730_v20, %v632_v19 }
 0x16b   :  { %v830_v22 = vadd.f32 %v829_v0, %v731_v21 }
 0x16d   :  { %v882_v23 = vmax.f32 %v830_v22, 0.0  ;;  %v837_v26 = vpop.f32.mrf.mxu2 }
 0x16e   :  { %v838_v28 = vadd.f32 %v837_v26, %v1842_v8  ;;  %v634_v30 = vpop.f32.mrf.mxu0 }
 0x16f   :  { %v918_v31 = vpack.c.bf16 %v882_v23, %v882_v23  ;;  %v635_v32 = vadd.f32 %v1665_v58, %v634_v30  ;;  %v733_v25 = vpop.f32.mrf.mxu1 }
 0x170   :  { %v885_v4 = vmax.f32 %v838_v28, 0.0 }
 0x171   :  { %955 = vst.msk [vmem:[%s2024_s3 + $0x64] sm:$0xf] %vm929_vm1, %v918_v31  ;;  %v734_v33 = vadd.f32 %v733_v25, %v635_v32 }
 0x172   :  { %v921_v34 = vpack.c.bf16 %v885_v4, %v885_v4 }
 0x173   :  { %v833_v29 = vadd.f32 %v832_v7, %v734_v33 }
 0x174   :  { %958 = vst.msk [vmem:[%s2024_s3 + $0x70] sm:$0xf] %vm929_vm1, %v921_v34 }
 0x175   :  { %v883_v8 = vmax.f32 %v833_v29, 0.0  ;;  %v839_v35 = vpop.f32.mrf.mxu2 }
 0x176   :  { %v840_v37 = vadd.f32 %v839_v35, %v1864_v27  ;;  %v636_v38 = vpop.f32.mrf.mxu0 }
 0x177   :  { %v919_v40 = vpack.c.bf16 %v883_v8, %v883_v8  ;;  %v637_v41 = vadd.f32 %v1665_v58, %v636_v38  ;;  %v735_v44 = vpop.f32.mrf.mxu1 }
 0x178   :  { %v886_v42 = vmax.f32 %v840_v37, 0.0 }
 0x179   :  { %956 = vst.msk [vmem:[%s2024_s3 + $0x68] sm:$0xf] %vm929_vm1, %v919_v40  ;;  %v736_v45 = vadd.f32 %v735_v44, %v637_v41 }
 0x17a   :  { %v922_v46 = vpack.c.bf16 %v886_v42, %v886_v42 }
 0x17b   :  { %v835_v39 = vadd.f32 %v834_v57, %v736_v45 }
 0x17c   :  { %959 = vst.msk [vmem:[%s2024_s3 + $0x74] sm:$0xf] %vm929_vm1, %v922_v46 }
 0x17d   :  { %v884_v27 = vmax.f32 %v835_v39, 0.0 }
 0x17f   :  { %v920_v16 = vpack.c.bf16 %v884_v27, %v884_v27 }
 0x181   :  { %957 = vst.msk [vmem:[%s2024_s3 + $0x6c] sm:$0xf] %vm929_vm1, %v920_v16 }

// kernel: inception_v4_stem.11
= control target key start
LH: loop header
LB: loop body
LE: loop exit
PB: predicated region body
PF: predicated region fallthrough
CT: control target
= control target key end

     0   :  { %vm505_vm0 = vcmask 261120   ;;  %vm929_vm1 = vcmask 519168   ;;  %s2021_s1 = inlined_call_operand.vmem [shape: bf16[288,64], index: 1, kind: input, shape index: {}]   ;;  %s2022_s0 = inlined_call_operand.vmem [shape: bf16[288,288], index: 0, kind: input, shape index: {}]   ;;  %s2023_s2 = inlined_call_operand.vmem [shape: f32[1,64], index: 2, kind: input, shape index: {}]   ;;  %s2024_s3 = inlined_call_operand.vmem [shape: bf16[288,64], index: 3, kind: output, shape index: {}]  }
   0x1   :  { %v1337_v0 = vld [vmem:[%s2021_s1 + $0x38] sm:$0xff]  ;;  %v1396_v2 = vld [vmem:[%s2021_s1 + $0x88] sm:$0xff]  ;;  %v1336_v3 = vld [vmem:[%s2021_s1 + $0x30] sm:$0xff] }
   0x2   :  { %v1345_v1 = vld [vmem:[%s2021_s1 + $0x78] sm:$0xff]  ;;  %560 = vmatpush.bf16.msra.mxu0 %v1337_v0  ;;  %1348 = vmatpush.bf16.msra.mxu3 %v1337_v0  ;;  %v1344_v4 = vld [vmem:[%s2021_s1 + $0x70] sm:$0xff]  ;;  %v1408_v5 = vld [vmem:[%s2021_s1 + $0x80] sm:$0xff] }
   0x3   :  { %659 = vmatpush.bf16.msra.mxu1 %v1345_v1  ;;  %764 = vmatpush.bf16.msra.mxu2 %v1396_v2  ;;  %v980_v6 = vld [vmem:[%s2022_s0 + $0x8] sm:$0xf]  ;;  %v1278_v7 = vld [vmem:[%s2022_s0 + $0x10] sm:$0xf0]  ;;  %v1334_v11 = vld [vmem:[%s2021_s1 + $0x20] sm:$0xff] }
   0x4   :  { %v981_v8 = vor.u32 %v1278_v7, %v980_v6  ;;  %v1335_v9 = vld [vmem:[%s2021_s1 + $0x28] sm:$0xff]  ;;  %v1342_v12 = vld [vmem:[%s2021_s1 + $0x60] sm:$0xff]  ;;  %v1333_v13 = vld [vmem:[%s2021_s1 + $0x18] sm:$0xff] }
   0x5   :  { %v1343_v10 = vld [vmem:[%s2021_s1 + $0x68] sm:$0xff]  ;;  %v1341_v14 = vld [vmem:[%s2021_s1 + $0x58] sm:$0xff]  ;;  %v1332_v15 = vld [vmem:[%s2021_s1 + $0x10] sm:$0xff] }
   0x6   :  { %561 = vmatpush.bf16.msra.mxu0 %v1336_v3  ;;  %1349 = vmatpush.bf16.msra.mxu3 %v1336_v3  ;;  %v1340_v16 = vld [vmem:[%s2021_s1 + $0x50] sm:$0xff]  ;;  %v992_v17 = vld [vmem:[%s2022_s0 + $0x20] sm:$0xf]  ;;  %v1281_v18 = vld [vmem:[%s2022_s0 + $0x28] sm:$0xf0] }
   0x7   :  { %660 = vmatpush.bf16.msra.mxu1 %v1344_v4  ;;  %765 = vmatpush.bf16.msra.mxu2 %v1408_v5  ;;  %v993_v19 = vor.u32 %v1281_v18, %v992_v17  ;;  %v1331_v20 = vld [vmem:[%s2021_s1 + $0x8] sm:$0xff]  ;;  %v1330_v22 = vld [vmem:[%s2021_s1] sm:$0xff]  ;;  %v1140_v26 = vld [vmem:[%s2022_s0 + $0x150] sm:$0xf] }
   0x8   :  { %v1339_v21 = vld [vmem:[%s2021_s1 + $0x48] sm:$0xff]  ;;  %v1338_v23 = vld [vmem:[%s2021_s1 + $0x40] sm:$0xff]  ;;  %v1319_v27 = vld [vmem:[%s2022_s0 + $0x158] sm:$0xf0] }
   0x9   :  { %v972_v24 = vld [vmem:[%s2022_s0] sm:$0xf]  ;;  %v1277_v25 = vld [vmem:[%s2022_s0 + $0x8] sm:$0xf0]  ;;  %v1276_v28 = vld [vmem:[%s2022_s0 + $0x4] sm:$0xf]  ;;  %v1141_v31 = vor.u32 %v1319_v27, %v1140_v26 }
   0xa   :  { %1258 = vmatmul.msk.bf16.vlgmr.msra.gmra.mxu2 %vm505_vm0, %v981_v8  ;;  %562 = vmatpush.bf16.msra.mxu0 %v1335_v9  ;;  %v974_v29 = vld [vmem:[%s2022_s0 + $0xc] sm:$0xf0]  ;;  %v973_v30 = vor.u32 %v1277_v25, %v972_v24  ;;  %v1004_v33 = vld [vmem:[%s2022_s0 + $0x38] sm:$0xf]  ;;  %v1284_v34 = vld [vmem:[%s2022_s0 + $0x40] sm:$0xf0] }
   0xb   :  { %1350 = vmatpush.bf16.msra.mxu3 %v1335_v9  ;;  %661 = vmatpush.bf16.msra.mxu1 %v1343_v10  ;;  %v977_v32 = vor.u32 %v1276_v28, %v974_v29  ;;  %v1005_v35 = vor.u32 %v1284_v34, %v1004_v33  ;;  %v984_v36 = vld [vmem:[%s2022_s0 + $0x18] sm:$0xf]  ;;  %v1280_v37 = vld [vmem:[%s2022_s0 + $0x20] sm:$0xf0]  ;;  %v1152_v38 = vld [vmem:[%s2022_s0 + $0x168] sm:$0xf] }
   0xc   :  { %v1322_v39 = vld [vmem:[%s2022_s0 + $0x170] sm:$0xf0]  ;;  %v1279_v40 = vld [vmem:[%s2022_s0 + $0x1c] sm:$0xf]  ;;  %v986_v41 = vld [vmem:[%s2022_s0 + $0x24] sm:$0xf0]  ;;  %v985_v42 = vor.u32 %v1280_v37, %v984_v36 }
   0xd   :  { %v1153_v43 = vor.u32 %v1322_v39, %v1152_v38  ;;  %v989_v44 = vor.u32 %v1279_v40, %v986_v41  ;;  %v1016_v45 = vld [vmem:[%s2022_s0 + $0x50] sm:$0xf]  ;;  %v1287_v46 = vld [vmem:[%s2022_s0 + $0x58] sm:$0xf0]  ;;  %v1164_v50 = vld [vmem:[%s2022_s0 + $0x180] sm:$0xf] }
   0xe   :  { %563 = vmatpush.bf16.msra.mxu0 %v1334_v11  ;;  %v1017_v47 = vor.u32 %v1287_v46, %v1016_v45  ;;  %v996_v48 = vld [vmem:[%s2022_s0 + $0x30] sm:$0xf]  ;;  %v1283_v49 = vld [vmem:[%s2022_s0 + $0x38] sm:$0xf0]  ;;  %v1325_v51 = vld [vmem:[%s2022_s0 + $0x188] sm:$0xf0] }
   0xf   :  { %1351 = vmatpush.bf16.msra.mxu3 %v1334_v11  ;;  %662 = vmatpush.bf16.msra.mxu1 %v1342_v12  ;;  %v1282_v52 = vld [vmem:[%s2022_s0 + $0x34] sm:$0xf]  ;;  %v998_v53 = vld [vmem:[%s2022_s0 + $0x3c] sm:$0xf0]  ;;  %v997_v54 = vor.u32 %v1283_v49, %v996_v48  ;;  %v1165_v55 = vor.u32 %v1325_v51, %v1164_v50  ;;  %v1028_v57 = vld [vmem:[%s2022_s0 + $0x68] sm:$0xf] }
  0x10   :  { %v1001_v56 = vor.u32 %v1282_v52, %v998_v53  ;;  %v1290_v58 = vld [vmem:[%s2022_s0 + $0x70] sm:$0xf0]  ;;  %v1008_v60 = vld [vmem:[%s2022_s0 + $0x48] sm:$0xf]  ;;  %v1176_v62 = vld [vmem:[%s2022_s0 + $0x198] sm:$0xf] }
  0x11   :  { %v1029_v59 = vor.u32 %v1290_v58, %v1028_v57  ;;  %v1286_v61 = vld [vmem:[%s2022_s0 + $0x50] sm:$0xf0]  ;;  %v1328_v63 = vld [vmem:[%s2022_s0 + $0x1a0] sm:$0xf0]  ;;  %v1285_v0 = vld [vmem:[%s2022_s0 + $0x4c] sm:$0xf] }
  0x12   :  { %564 = vmatpush.bf16.msra.mxu0 %v1333_v13  ;;  %v1177_v3 = vor.u32 %v1328_v63, %v1176_v62  ;;  %v1293_v6 = vld [vmem:[%s2022_s0 + $0x88] sm:$0xf0]  ;;  %v1020_v8 = vld [vmem:[%s2022_s0 + $0x60] sm:$0xf]  ;;  %v1022_v11 = vld [vmem:[%s2022_s0 + $0x6c] sm:$0xf0] }
  0x13   :  { %1352 = vmatpush.bf16.msra.mxu3 %v1333_v13  ;;  %663 = vmatpush.bf16.msra.mxu1 %v1341_v14  ;;  %v1289_v9 = vld [vmem:[%s2022_s0 + $0x68] sm:$0xf0]  ;;  %v1142_v13 = vld [vmem:[%s2022_s0 + $0x15c] sm:$0xf0]  ;;  %v1052_v17 = vld [vmem:[%s2022_s0 + $0x98] sm:$0xf] }
  0x14   :  { %v1296_v18 = vld [vmem:[%s2022_s0 + $0xa0] sm:$0xf0]  ;;  %v1321_v24 = vld [vmem:[%s2022_s0 + $0x16c] sm:$0xf]  ;;  %v1154_v25 = vld [vmem:[%s2022_s0 + $0x174] sm:$0xf0] }
  0x15   :  { %v1157_v28 = vor.u32 %v1321_v24, %v1154_v25  ;;  %v1064_v29 = vld [vmem:[%s2022_s0 + $0xb0] sm:$0xf]  ;;  %v1295_v33 = vld [vmem:[%s2022_s0 + $0x98] sm:$0xf0]  ;;  %v1294_v34 = vld [vmem:[%s2022_s0 + $0x94] sm:$0xf] }
  0x16   :  { %565 = vmatpush.bf16.msra.mxu0 %v1332_v15  ;;  %v1324_v36 = vld [vmem:[%s2022_s0 + $0x184] sm:$0xf]  ;;  %v1166_v37 = vld [vmem:[%s2022_s0 + $0x18c] sm:$0xf0]  ;;  %v1076_v41 = vld [vmem:[%s2022_s0 + $0xc8] sm:$0xf] }
  0x17   :  { %1353 = vmatpush.bf16.msra.mxu3 %v1332_v15  ;;  %664 = vmatpush.bf16.msra.mxu1 %v1340_v16  ;;  %v1169_v40 = vor.u32 %v1324_v36, %v1166_v37  ;;  %v1298_v45 = vld [vmem:[%s2022_s0 + $0xb0] sm:$0xf0]  ;;  %v1297_v46 = vld [vmem:[%s2022_s0 + $0xac] sm:$0xf]  ;;  %v1327_v48 = vld [vmem:[%s2022_s0 + $0x19c] sm:$0xf] }
  0x18   :  { %v1178_v49 = vld [vmem:[%s2022_s0 + $0x1a4] sm:$0xf0]  ;;  %v1665_v58 = vld [vmem:[%s2023_s2] ss:$0 sm:$0xff]  ;;  %v1070_v62 = vld [vmem:[%s2022_s0 + $0xcc] sm:$0xf0] }
  0x19   :  { %v1181_v53 = vor.u32 %v1327_v48, %v1178_v49  ;;  %v1160_v63 = vld [vmem:[%s2022_s0 + $0x170] sm:$0xf]  ;;  %v1082_v25 = vld [vmem:[%s2022_s0 + $0xe4] sm:$0xf0] }
  0x1a   :  { %1259 = vmatmul.msk.bf16.gmra.mxu2 %vm505_vm0, %v993_v19  ;;  %566 = vmatpush.bf16.msra.mxu0 %v1331_v20  ;;  %v1053_v19 = vor.u32 %v1296_v18, %v1052_v17 }
  0x1b   :  { %1354 = vmatpush.bf16.msra.mxu3 %v1331_v20  ;;  %665 = vmatpush.bf16.msra.mxu1 %v1339_v21  ;;  %v1032_v20 = vld [vmem:[%s2022_s0 + $0x78] sm:$0xf] }
  0x1e   :  { %567 = vmatpush.bf16.msra.mxu0 %v1330_v22 }
  0x1f   :  { %1355 = vmatpush.bf16.msra.mxu3 %v1330_v22  ;;  %666 = vmatpush.bf16.msra.mxu1 %v1338_v23  ;;  %v1291_v22 = vld [vmem:[%s2022_s0 + $0x7c] sm:$0xf] }
  0x21   :  { %568 = vmatmul.bf16.vlgmr.msra.gmra.mxu0 %v973_v30  ;;  %v1299_v30 = vld [vmem:[%s2022_s0 + $0xb8] sm:$0xf0] }
  0x22   :  { %638 = vmatmul.bf16.vlgmr.msra.gmra.mxu3 %v1141_v31  ;;  %667 = vmatmul.bf16.vlgmr.msra.gmra.mxu1 %v977_v32  ;;  %v1065_v31 = vor.u32 %v1299_v30, %v1064_v29  ;;  %v1044_v32 = vld [vmem:[%s2022_s0 + $0x90] sm:$0xf] }
  0x23   :  { %1356 = vmatpush.bf16.msrb.mxu3 %v1345_v1  ;;  %v1010_v1 = vld [vmem:[%s2022_s0 + $0x54] sm:$0xf0]  ;;  %v1045_v38 = vor.u32 %v1295_v33, %v1044_v32 }
  0x27   :  { %1357 = vmatpush.bf16.msrb.mxu3 %v1344_v4  ;;  %v1013_v4 = vor.u32 %v1285_v0, %v1010_v1  ;;  %v1323_v0 = vld [vmem:[%s2022_s0 + $0x178] sm:$0xf0] }
  0x2a   :  { %1260 = vmatmul.msk.bf16.gmra.mxu2 %vm505_vm0, %v1005_v35  ;;  %v1046_v35 = vld [vmem:[%s2022_s0 + $0x9c] sm:$0xf0] }
  0x2b   :  { %1358 = vmatpush.bf16.msrb.mxu3 %v1343_v10  ;;  %v1288_v10 = vld [vmem:[%s2022_s0 + $0x64] sm:$0xf]  ;;  %v1049_v39 = vor.u32 %v1294_v34, %v1046_v35 }
  0x2c   :  { %v1025_v15 = vor.u32 %v1288_v10, %v1022_v11  ;;  %v1100_v10 = vld [vmem:[%s2022_s0 + $0xf8] sm:$0xf]  ;;  %v1308_v11 = vld [vmem:[%s2022_s0 + $0x100] sm:$0xf0] }
  0x2f   :  { %1359 = vmatpush.bf16.msrb.mxu3 %v1342_v12  ;;  %v1318_v12 = vld [vmem:[%s2022_s0 + $0x154] sm:$0xf] }
  0x31   :  { %573 = vmatmul.bf16.gmra.mxu0 %v985_v42  ;;  %v1302_v42 = vld [vmem:[%s2022_s0 + $0xd0] sm:$0xf0] }
  0x32   :  { %643 = vmatmul.bf16.gmra.mxu3 %v1153_v43  ;;  %672 = vmatmul.bf16.gmra.mxu1 %v989_v44  ;;  %v1077_v43 = vor.u32 %v1302_v42, %v1076_v41  ;;  %v1056_v44 = vld [vmem:[%s2022_s0 + $0xa8] sm:$0xf]  ;;  %v1311_v41 = vld [vmem:[%s2022_s0 + $0x118] sm:$0xf0] }
  0x33   :  { %1360 = vmatpush.bf16.msrb.mxu3 %v1341_v14  ;;  %v1021_v14 = vor.u32 %v1289_v9, %v1020_v8  ;;  %v1057_v51 = vor.u32 %v1298_v45, %v1056_v44 }
  0x37   :  { %1361 = vmatpush.bf16.msrb.mxu3 %v1340_v16  ;;  %v1145_v16 = vor.u32 %v1318_v12, %v1142_v13 }
  0x3a   :  { %1261 = vmatmul.msk.bf16.gmra.mxu2 %vm505_vm0, %v1017_v47  ;;  %v1058_v47 = vld [vmem:[%s2022_s0 + $0xb4] sm:$0xf0] }
  0x3b   :  { %1362 = vmatpush.bf16.msrb.mxu3 %v1339_v21  ;;  %v1292_v21 = vld [vmem:[%s2022_s0 + $0x80] sm:$0xf0]  ;;  %v1061_v52 = vor.u32 %v1297_v46, %v1058_v47 }
  0x3c   :  { %v1033_v26 = vor.u32 %v1292_v21, %v1032_v20  ;;  %v1080_v21 = vld [vmem:[%s2022_s0 + $0xd8] sm:$0xf] }
  0x3f   :  { %1363 = vmatpush.bf16.msrb.mxu3 %v1338_v23  ;;  %v1034_v23 = vld [vmem:[%s2022_s0 + $0x84] sm:$0xf0] }
  0x40   :  { %v1037_v27 = vor.u32 %v1291_v22, %v1034_v23  ;;  %v1304_v22 = vld [vmem:[%s2022_s0 + $0xe0] sm:$0xf0]  ;;  %v1303_v23 = vld [vmem:[%s2022_s0 + $0xdc] sm:$0xf] }
  0x41   :  { %578 = vmatmul.bf16.gmra.mxu0 %v997_v54  ;;  %v1088_v54 = vld [vmem:[%s2022_s0 + $0xe0] sm:$0xf]  ;;  %v1085_v33 = vor.u32 %v1303_v23, %v1082_v25  ;;  %v1106_v23 = vld [vmem:[%s2022_s0 + $0x114] sm:$0xf0] }
  0x42   :  { %648 = vmatmul.bf16.gmra.mxu3 %v1165_v55  ;;  %677 = vmatmul.bf16.gmra.mxu1 %v1001_v56  ;;  %v1305_v55 = vld [vmem:[%s2022_s0 + $0xe8] sm:$0xf0] }
  0x43   :  { %1364 = vmatpush.bf16.msra.mxu3 %v1396_v2  ;;  %v1009_v2 = vor.u32 %v1286_v61, %v1008_v60  ;;  %v1089_v57 = vor.u32 %v1305_v55, %v1088_v54  ;;  %v1301_v60 = vld [vmem:[%s2022_s0 + $0xc8] sm:$0xf0]  ;;  %v1300_v61 = vld [vmem:[%s2022_s0 + $0xc4] sm:$0xf]  ;;  %v1094_v55 = vld [vmem:[%s2022_s0 + $0xfc] sm:$0xf0] }
  0x47   :  { %1365 = vmatpush.bf16.msra.mxu3 %v1408_v5  ;;  %v1040_v5 = vld [vmem:[%s2022_s0 + $0x80] sm:$0xf] }
  0x48   :  { %v1041_v7 = vor.u32 %v1293_v6, %v1040_v5  ;;  %v1161_v5 = vor.u32 %v1323_v0, %v1160_v63 }
  0x4a   :  { %1262 = vmatmul.msk.bf16.gmra.mxu2 %vm505_vm0, %v1029_v59  ;;  %v1068_v59 = vld [vmem:[%s2022_s0 + $0xc0] sm:$0xf] }
  0x51   :  { %583 = vmatmul.bf16.gmra.mxu0 %v1009_v2  ;;  %v1069_v2 = vor.u32 %v1301_v60, %v1068_v59 }
  0x52   :  { %653 = vmatmul.bf16.gmra.mxu3 %v1177_v3  ;;  %682 = vmatmul.bf16.gmra.mxu1 %v1013_v4  ;;  %v1073_v4 = vor.u32 %v1300_v61, %v1070_v62 }
  0x5a   :  { %1263 = vmatmul.msk.bf16.gmra.mxu2 %vm505_vm0, %v1041_v7 }
  0x61   :  { %588 = vmatmul.bf16.gmra.mxu0 %v1021_v14 }
  0x62   :  { %687 = vmatmul.bf16.gmra.mxu1 %v1025_v15  ;;  %737 = vmatmul.bf16.vlgmr.msrb.gmra.mxu3 %v1145_v16  ;;  %v1101_v16 = vor.u32 %v1308_v11, %v1100_v10 }
  0x6a   :  { %1264 = vmatmul.msk.bf16.gmra.mxu2 %vm505_vm0, %v1053_v19 }
  0x71   :  { %593 = vmatmul.bf16.gmra.mxu0 %v1033_v26  ;;  %v1172_v26 = vld [vmem:[%s2022_s0 + $0x188] sm:$0xf] }
  0x72   :  { %692 = vmatmul.bf16.gmra.mxu1 %v1037_v27  ;;  %742 = vmatmul.bf16.gmra.mxu3 %v1157_v28  ;;  %v1326_v27 = vld [vmem:[%s2022_s0 + $0x190] sm:$0xf0] }
  0x73   :  { %v1173_v34 = vor.u32 %v1326_v27, %v1172_v26 }
  0x7a   :  { %1265 = vmatmul.msk.bf16.gmra.mxu2 %vm505_vm0, %v1065_v31  ;;  %v1081_v31 = vor.u32 %v1304_v22, %v1080_v21  ;;  %v1309_v22 = vld [vmem:[%s2022_s0 + $0x10c] sm:$0xf] }
  0x81   :  { %598 = vmatmul.bf16.gmra.mxu0 %v1045_v38 }
  0x82   :  { %697 = vmatmul.bf16.gmra.mxu1 %v1049_v39  ;;  %747 = vmatmul.bf16.gmra.mxu3 %v1169_v40  ;;  %v1112_v40 = vld [vmem:[%s2022_s0 + $0x110] sm:$0xf] }
  0x83   :  { %v1113_v46 = vor.u32 %v1311_v41, %v1112_v40 }
  0x8a   :  { %1266 = vmatmul.msk.bf16.gmra.mxu2 %vm505_vm0, %v1077_v43 }
  0x8d   :  { %v767_v50 = vpop.f32.mrf.mxu2 }
  0x91   :  { %603 = vmatmul.bf16.gmra.mxu0 %v1057_v51  ;;  %v1092_v51 = vld [vmem:[%s2022_s0 + $0xf0] sm:$0xf] }
  0x92   :  { %702 = vmatmul.bf16.gmra.mxu1 %v1061_v52  ;;  %752 = vmatmul.bf16.gmra.mxu3 %v1181_v53  ;;  %v1307_v52 = vld [vmem:[%s2022_s0 + $0xf8] sm:$0xf0]  ;;  %v1306_v53 = vld [vmem:[%s2022_s0 + $0xf4] sm:$0xf] }
  0x93   :  { %v1093_v62 = vor.u32 %v1307_v52, %v1092_v51  ;;  %v1097_v0 = vor.u32 %v1306_v53, %v1094_v55  ;;  %v1312_v51 = vld [vmem:[%s2022_s0 + $0x124] sm:$0xf]  ;;  %v1118_v52 = vld [vmem:[%s2022_s0 + $0x12c] sm:$0xf0] }
  0x95   :  { %v769_v56 = vpop.f32.mrf.mxu2 }
  0x9a   :  { %1267 = vmatmul.msk.bf16.gmra.mxu2 %vm505_vm0, %v1089_v57  ;;  %v1329_v57 = vld [vmem:[%s2022_s0 + $0x1a8] sm:$0xf0] }
  0x9d   :  { %v772_v1 = vpop.f32.mrf.mxu2 }
  0x9e   :  { %v569_v3 = vpop.f32.mrf.mxu0 }
  0x9f   :  { %v570_v6 = vadd.f32 %v1665_v58, %v569_v3  ;;  %v668_v7 = vpop.f32.mrf.mxu1 }
  0xa1   :  { %v669_v8 = vadd.f32 %v668_v7, %v570_v6  ;;  %608 = vmatmul.bf16.gmra.mxu0 %v1069_v2  ;;  %v1124_v7 = vld [vmem:[%s2022_s0 + $0x128] sm:$0xf] }
  0xa2   :  { %707 = vmatmul.bf16.gmra.mxu1 %v1073_v4  ;;  %1273 = vmatmul.msk.bf16.vlgmr.msra.gmra.mxu3 %vm505_vm0, %v1161_v5 }
  0xa3   :  { %v768_v9 = vadd.f32 %v767_v50, %v669_v8  ;;  %v1314_v8 = vld [vmem:[%s2022_s0 + $0x130] sm:$0xf0] }
  0xa5   :  { %v857_v12 = vmax.f32 %v768_v9, 0.0  ;;  %v1694_v13 = vpop.f32.mrf.mxu3  ;;  %v774_v14 = vpop.f32.mrf.mxu2 }
  0xa6   :  { %v571_v15 = vpop.f32.mrf.mxu0 }
  0xa7   :  { %v893_v17 = vpack.c.bf16 %v857_v12, %v857_v12  ;;  %v572_v18 = vadd.f32 %v1665_v58, %v571_v15  ;;  %v670_v19 = vpop.f32.mrf.mxu1 }
  0xa9   :  { %930 = vst.msk [vmem:[%s2024_s3] sm:$0xf] %vm929_vm1, %v893_v17  ;;  %v671_v20 = vadd.f32 %v670_v19, %v572_v18  ;;  %v1104_v19 = vld [vmem:[%s2022_s0 + $0x108] sm:$0xf] }
  0xaa   :  { %1268 = vmatmul.msk.bf16.gmra.mxu2 %vm505_vm0, %v1101_v16 }
  0xab   :  { %v770_v24 = vadd.f32 %v769_v56, %v671_v20  ;;  %v1184_v56 = vld [vmem:[%s2022_s0 + $0x1a0] sm:$0xf]  ;;  %v1310_v20 = vld [vmem:[%s2022_s0 + $0x110] sm:$0xf0] }
  0xac   :  { %v1105_v27 = vor.u32 %v1310_v20, %v1104_v19  ;;  %v1315_v19 = vld [vmem:[%s2022_s0 + $0x13c] sm:$0xf]  ;;  %v1130_v20 = vld [vmem:[%s2022_s0 + $0x144] sm:$0xf0] }
  0xad   :  { %v858_v28 = vmax.f32 %v770_v24, 0.0  ;;  %v1720_v29 = vpop.f32.mrf.mxu3  ;;  %v777_v30 = vpop.f32.mrf.mxu2 }
  0xae   :  { %v574_v32 = vpop.f32.mrf.mxu0 }
  0xaf   :  { %v894_v35 = vpack.c.bf16 %v858_v28, %v858_v28  ;;  %v575_v36 = vadd.f32 %v1665_v58, %v574_v32  ;;  %v673_v37 = vpop.f32.mrf.mxu1 }
  0xb1   :  { %931 = vst.msk [vmem:[%s2024_s3 + $0x4] sm:$0xf] %vm929_vm1, %v894_v35  ;;  %v674_v38 = vadd.f32 %v673_v37, %v575_v36  ;;  %613 = vmatmul.bf16.gmra.mxu0 %v1081_v31  ;;  %v1136_v36 = vld [vmem:[%s2022_s0 + $0x140] sm:$0xf]  ;;  %v1317_v37 = vld [vmem:[%s2022_s0 + $0x148] sm:$0xf0] }
  0xb2   :  { %712 = vmatmul.bf16.gmra.mxu1 %v1085_v33  ;;  %1274 = vmatmul.msk.bf16.gmra.mxu3 %vm505_vm0, %v1173_v34 }
  0xb3   :  { %v773_v39 = vadd.f32 %v772_v1, %v674_v38  ;;  %v1185_v1 = vor.u32 %v1329_v57, %v1184_v56 }
  0xb5   :  { %v859_v42 = vmax.f32 %v773_v39, 0.0  ;;  %v1734_v43 = vpop.f32.mrf.mxu3  ;;  %v779_v44 = vpop.f32.mrf.mxu2 }
  0xb6   :  { %v576_v45 = vpop.f32.mrf.mxu0 }
  0xb7   :  { %v895_v47 = vpack.c.bf16 %v859_v42, %v859_v42  ;;  %v577_v48 = vadd.f32 %v1665_v58, %v576_v45  ;;  %v675_v49 = vpop.f32.mrf.mxu1  ;;  %v1137_v42 = vor.u32 %v1317_v37, %v1136_v36 }
  0xb9   :  { %932 = vst.msk [vmem:[%s2024_s3 + $0x8] sm:$0xf] %vm929_vm1, %v895_v47  ;;  %v676_v50 = vadd.f32 %v675_v49, %v577_v48  ;;  %v1116_v48 = vld [vmem:[%s2022_s0 + $0x120] sm:$0xf]  ;;  %v1313_v49 = vld [vmem:[%s2022_s0 + $0x128] sm:$0xf0] }
  0xba   :  { %1269 = vmatmul.msk.bf16.gmra.mxu2 %vm505_vm0, %v1113_v46  ;;  %v1117_v56 = vor.u32 %v1313_v49, %v1116_v48 }
  0xbb   :  { %v775_v54 = vadd.f32 %v774_v14, %v676_v50  ;;  %v1125_v14 = vor.u32 %v1314_v8, %v1124_v7 }
  0xbd   :  { %v860_v59 = vmax.f32 %v775_v54, 0.0  ;;  %v1760_v60 = vpop.f32.mrf.mxu3  ;;  %v782_v61 = vpop.f32.mrf.mxu2 }
  0xbe   :  { %v579_v63 = vpop.f32.mrf.mxu0 }
  0xbf   :  { %v896_v2 = vpack.c.bf16 %v860_v59, %v860_v59  ;;  %v580_v3 = vadd.f32 %v1665_v58, %v579_v63  ;;  %v678_v4 = vpop.f32.mrf.mxu1  ;;  %v1121_v59 = vor.u32 %v1312_v51, %v1118_v52 }
  0xc1   :  { %933 = vst.msk [vmem:[%s2024_s3 + $0xc] sm:$0xf] %vm929_vm1, %v896_v2  ;;  %v679_v5 = vadd.f32 %v678_v4, %v580_v3  ;;  %618 = vmatmul.bf16.gmra.mxu0 %v1093_v62  ;;  %v1148_v2 = vld [vmem:[%s2022_s0 + $0x158] sm:$0xf]  ;;  %v1320_v3 = vld [vmem:[%s2022_s0 + $0x160] sm:$0xf0]  ;;  %v640_v4 = vadd.f32 %v1665_v58, %v1694_v13 }
  0xc2   :  { %717 = vmatmul.bf16.gmra.mxu1 %v1097_v0  ;;  %1275 = vmatmul.msk.bf16.gmra.mxu3 %vm505_vm0, %v1185_v1  ;;  %v1128_v13 = vld [vmem:[%s2022_s0 + $0x138] sm:$0xf] }
  0xc3   :  { %v778_v6 = vadd.f32 %v777_v30, %v679_v5  ;;  %v1109_v30 = vor.u32 %v1309_v22, %v1106_v23 }
  0xc5   :  { %v861_v9 = vmax.f32 %v778_v6, 0.0  ;;  %v1774_v10 = vpop.f32.mrf.mxu3  ;;  %v784_v11 = vpop.f32.mrf.mxu2 }
  0xc6   :  { %v581_v12 = vpop.f32.mrf.mxu0 }
  0xc7   :  { %v897_v15 = vpack.c.bf16 %v861_v9, %v861_v9  ;;  %v582_v16 = vadd.f32 %v1665_v58, %v581_v12  ;;  %v680_v17 = vpop.f32.mrf.mxu1 }
  0xc9   :  { %934 = vst.msk [vmem:[%s2024_s3 + $0x10] sm:$0xf] %vm929_vm1, %v897_v15  ;;  %v681_v18 = vadd.f32 %v680_v17, %v582_v16  ;;  %v1316_v17 = vld [vmem:[%s2022_s0 + $0x140] sm:$0xf0] }
  0xca   :  { %1270 = vmatmul.msk.bf16.gmra.mxu2 %vm505_vm0, %v1125_v14 }
  0xcb   :  { %v780_v21 = vadd.f32 %v779_v44, %v681_v18 }
  0xcd   :  { %v862_v24 = vmax.f32 %v780_v21, 0.0  ;;  %v1794_v25 = vpop.f32.mrf.mxu3  ;;  %v787_v26 = vpop.f32.mrf.mxu2  ;;  %v642_v21 = vadd.f32 %v1665_v58, %v1720_v29 }
  0xce   :  { %v584_v28 = vpop.f32.mrf.mxu0 }
  0xcf   :  { %v898_v31 = vpack.c.bf16 %v862_v24, %v862_v24  ;;  %v585_v32 = vadd.f32 %v1665_v58, %v584_v28  ;;  %v683_v33 = vpop.f32.mrf.mxu1 }
  0xd1   :  { %935 = vst.msk [vmem:[%s2024_s3 + $0x14] sm:$0xf] %vm929_vm1, %v898_v31  ;;  %v684_v34 = vadd.f32 %v683_v33, %v585_v32  ;;  %623 = vmatmul.bf16.gmra.mxu0 %v1105_v27 }
  0xd2   :  { %722 = vmatmul.bf16.gmra.mxu1 %v1109_v30  ;;  %v1133_v30 = vor.u32 %v1315_v19, %v1130_v20 }
  0xd3   :  { %v783_v35 = vadd.f32 %v782_v61, %v684_v34 }
  0xd5   :  { %v863_v38 = vmax.f32 %v783_v35, 0.0  ;;  %v1807_v39 = vpop.f32.mrf.mxu3  ;;  %v789_v40 = vpop.f32.mrf.mxu2 }
  0xd6   :  { %v586_v41 = vpop.f32.mrf.mxu0 }
  0xd7   :  { %v899_v44 = vpack.c.bf16 %v863_v38, %v863_v38  ;;  %v587_v45 = vadd.f32 %v1665_v58, %v586_v41  ;;  %v685_v46 = vpop.f32.mrf.mxu1 }
  0xd9   :  { %936 = vst.msk [vmem:[%s2024_s3 + $0x18] sm:$0xf] %vm929_vm1, %v899_v44  ;;  %v686_v47 = vadd.f32 %v685_v46, %v587_v45 }
  0xda   :  { %1271 = vmatmul.msk.bf16.gmra.mxu2 %vm505_vm0, %v1137_v42 }
  0xdb   :  { %v785_v50 = vadd.f32 %v784_v11, %v686_v47  ;;  %v1149_v11 = vor.u32 %v1320_v3, %v1148_v2 }
  0xdd   :  { %v864_v53 = vmax.f32 %v785_v50, 0.0  ;;  %v1827_v54 = vpop.f32.mrf.mxu3  ;;  %v792_v55 = vpop.f32.mrf.mxu2 }
  0xde   :  { %v589_v57 = vpop.f32.mrf.mxu0 }
  0xdf   :  { %v900_v61 = vpack.c.bf16 %v864_v53, %v864_v53  ;;  %v590_v62 = vadd.f32 %v1665_v58, %v589_v57  ;;  %v688_v63 = vpop.f32.mrf.mxu1 }
  0xe1   :  { %937 = vst.msk [vmem:[%s2024_s3 + $0x1c] sm:$0xf] %vm929_vm1, %v900_v61  ;;  %v689_v0 = vadd.f32 %v688_v63, %v590_v62  ;;  %628 = vmatmul.bf16.gmra.mxu0 %v1117_v56 }
  0xe2   :  { %727 = vmatmul.bf16.gmra.mxu1 %v1121_v59 }
  0xe3   :  { %v788_v1 = vadd.f32 %v787_v26, %v689_v0  ;;  %v1129_v26 = vor.u32 %v1316_v17, %v1128_v13 }
  0xe5   :  { %v865_v5 = vmax.f32 %v788_v1, 0.0  ;;  %v738_v6 = vpop.f32.mrf.mxu3  ;;  %v794_v7 = vpop.f32.mrf.mxu2 }
  0xe6   :  { %v1842_v8 = vadd.f32 %v738_v6, %v640_v4  ;;  %v591_v9 = vpop.f32.mrf.mxu0 }
  0xe7   :  { %v901_v12 = vpack.c.bf16 %v865_v5, %v865_v5  ;;  %v592_v14 = vadd.f32 %v1665_v58, %v591_v9  ;;  %v690_v15 = vpop.f32.mrf.mxu1 }
  0xe9   :  { %938 = vst.msk [vmem:[%s2024_s3 + $0x20] sm:$0xf] %vm929_vm1, %v901_v12  ;;  %v691_v16 = vadd.f32 %v690_v15, %v592_v14 }
  0xea   :  { %1272 = vmatmul.msk.bf16.gmra.mxu2 %vm505_vm0, %v1149_v11 }
  0xeb   :  { %v790_v18 = vadd.f32 %v789_v40, %v691_v16 }
  0xed   :  { %v866_v22 = vmax.f32 %v790_v18, 0.0  ;;  %v740_v23 = vpop.f32.mrf.mxu3  ;;  %v797_v24 = vpop.f32.mrf.mxu2 }
  0xee   :  { %v1864_v27 = vadd.f32 %v740_v23, %v642_v21  ;;  %v594_v28 = vpop.f32.mrf.mxu0 }
  0xef   :  { %v902_v31 = vpack.c.bf16 %v866_v22, %v866_v22  ;;  %v595_v32 = vadd.f32 %v1665_v58, %v594_v28  ;;  %v693_v33 = vpop.f32.mrf.mxu1 }
  0xf1   :  { %939 = vst.msk [vmem:[%s2024_s3 + $0x24] sm:$0xf] %vm929_vm1, %v902_v31  ;;  %v694_v34 = vadd.f32 %v693_v33, %v595_v32  ;;  %633 = vmatmul.bf16.gmra.mxu0 %v1129_v26 }
  0xf2   :  { %732 = vmatmul.bf16.gmra.mxu1 %v1133_v30 }
  0xf3   :  { %v793_v29 = vadd.f32 %v792_v55, %v694_v34  ;;  %v645_v34 = vadd.f32 %v1665_v58, %v1734_v43  ;;  %v647_v43 = vadd.f32 %v1665_v58, %v1760_v60 }
  0xf5   :  { %v867_v35 = vmax.f32 %v793_v29, 0.0  ;;  %v743_v36 = vpop.f32.mrf.mxu3  ;;  %v799_v37 = vpop.f32.mrf.mxu2 }
  0xf6   :  { %v596_v38 = vpop.f32.mrf.mxu0 }
  0xf7   :  { %v903_v40 = vpack.c.bf16 %v867_v35, %v867_v35  ;;  %v597_v41 = vadd.f32 %v1665_v58, %v596_v38  ;;  %v695_v42 = vpop.f32.mrf.mxu1  ;;  %v744_v35 = vadd.f32 %v743_v36, %v645_v34 }
  0xf9   :  { %940 = vst.msk [vmem:[%s2024_s3 + $0x28] sm:$0xf] %vm929_vm1, %v903_v40  ;;  %v696_v44 = vadd.f32 %v695_v42, %v597_v41 }
  0xfb   :  { %v795_v45 = vadd.f32 %v794_v7, %v696_v44 }
  0xfd   :  { %v868_v46 = vmax.f32 %v795_v45, 0.0  ;;  %v1876_v47 = vpop.f32.mrf.mxu3  ;;  %v802_v48 = vpop.f32.mrf.mxu2 }
  0xfe   :  { %v599_v49 = vpop.f32.mrf.mxu0 }
  0xff   :  { %v904_v50 = vpack.c.bf16 %v868_v46, %v868_v46  ;;  %v600_v51 = vadd.f32 %v1665_v58, %v599_v49  ;;  %v698_v52 = vpop.f32.mrf.mxu1 }
 0x101   :  { %941 = vst.msk [vmem:[%s2024_s3 + $0x2c] sm:$0xf] %vm929_vm1, %v904_v50  ;;  %v699_v53 = vadd.f32 %v698_v52, %v600_v51  ;;  %v746_v51 = vadd.f32 %v1876_v47, %v647_v43  ;;  %v650_v47 = vadd.f32 %v1665_v58, %v1774_v10 }
 0x103   :  { %v798_v55 = vadd.f32 %v797_v24, %v699_v53 }
 0x105   :  { %v869_v56 = vmax.f32 %v798_v55, 0.0  ;;  %v1883_v57 = vpop.f32.mrf.mxu3  ;;  %v804_v59 = vpop.f32.mrf.mxu2 }
 0x106   :  { %v601_v61 = vpop.f32.mrf.mxu0 }
 0x107   :  { %v905_v62 = vpack.c.bf16 %v869_v56, %v869_v56  ;;  %v602_v63 = vadd.f32 %v1665_v58, %v601_v61  ;;  %v700_v0 = vpop.f32.mrf.mxu1 }
 0x109   :  { %942 = vst.msk [vmem:[%s2024_s3 + $0x30] sm:$0xf] %vm929_vm1, %v905_v62  ;;  %v701_v1 = vadd.f32 %v700_v0, %v602_v63 }
 0x10b   :  { %v800_v2 = vadd.f32 %v799_v37, %v701_v1 }
 0x10d   :  { %v870_v3 = vmax.f32 %v800_v2, 0.0  ;;  %v1890_v4 = vpop.f32.mrf.mxu3  ;;  %v807_v5 = vpop.f32.mrf.mxu2 }
 0x10e   :  { %v604_v6 = vpop.f32.mrf.mxu0 }
 0x10f   :  { %v906_v7 = vpack.c.bf16 %v870_v3, %v870_v3  ;;  %v605_v9 = vadd.f32 %v1665_v58, %v604_v6  ;;  %v703_v11 = vpop.f32.mrf.mxu1  ;;  %v749_v3 = vadd.f32 %v1883_v57, %v650_v47  ;;  %v652_v57 = vadd.f32 %v1665_v58, %v1794_v25 }
 0x111   :  { %943 = vst.msk [vmem:[%s2024_s3 + $0x34] sm:$0xf] %vm929_vm1, %v906_v7  ;;  %v704_v12 = vadd.f32 %v703_v11, %v605_v9 }
 0x113   :  { %v803_v14 = vadd.f32 %v802_v48, %v704_v12 }
 0x115   :  { %v871_v15 = vmax.f32 %v803_v14, 0.0  ;;  %v1897_v16 = vpop.f32.mrf.mxu3  ;;  %v809_v13 = vpop.f32.mrf.mxu2 }
 0x116   :  { %v606_v17 = vpop.f32.mrf.mxu0 }
 0x117   :  { %v907_v18 = vpack.c.bf16 %v871_v15, %v871_v15  ;;  %v607_v19 = vadd.f32 %v1665_v58, %v606_v17  ;;  %v705_v20 = vpop.f32.mrf.mxu1 }
 0x119   :  { %944 = vst.msk [vmem:[%s2024_s3 + $0x38] sm:$0xf] %vm929_vm1, %v907_v18  ;;  %v706_v21 = vadd.f32 %v705_v20, %v607_v19  ;;  %v751_v19 = vadd.f32 %v1890_v4, %v652_v57  ;;  %v655_v4 = vadd.f32 %v1665_v58, %v1807_v39 }
 0x11b   :  { %v805_v22 = vadd.f32 %v804_v59, %v706_v21 }
 0x11d   :  { %v872_v23 = vmax.f32 %v805_v22, 0.0  ;;  %v1904_v24 = vpop.f32.mrf.mxu3  ;;  %v812_v26 = vpop.f32.mrf.mxu2 }
 0x11e   :  { %v609_v28 = vpop.f32.mrf.mxu0 }
 0x11f   :  { %v908_v30 = vpack.c.bf16 %v872_v23, %v872_v23  ;;  %v610_v31 = vadd.f32 %v1665_v58, %v609_v28  ;;  %v708_v32 = vpop.f32.mrf.mxu1 }
 0x121   :  { %945 = vst.msk [vmem:[%s2024_s3 + $0x3c] sm:$0xf] %vm929_vm1, %v908_v30  ;;  %v709_v33 = vadd.f32 %v708_v32, %v610_v31 }
 0x123   :  { %v808_v29 = vadd.f32 %v807_v5, %v709_v33 }
 0x125   :  { %v873_v37 = vmax.f32 %v808_v29, 0.0  ;;  %v814_v38 = vpop.f32.mrf.mxu2  ;;  %v842_v40 = vpop.f32.mrf.mxu3  ;;  %v754_v29 = vadd.f32 %v1897_v16, %v655_v4  ;;  %v657_v16 = vadd.f32 %v1665_v58, %v1827_v54 }
 0x126   :  { %v843_v41 = vadd.f32 %v842_v40, %v744_v35  ;;  %v611_v42 = vpop.f32.mrf.mxu0 }
 0x127   :  { %v909_v44 = vpack.c.bf16 %v873_v37, %v873_v37  ;;  %v612_v45 = vadd.f32 %v1665_v58, %v611_v42  ;;  %v710_v46 = vpop.f32.mrf.mxu1  ;;  %v756_v43 = vadd.f32 %v1904_v24, %v657_v16 }
 0x128   :  { %v887_v48 = vmax.f32 %v843_v41, 0.0 }
 0x129   :  { %946 = vst.msk [vmem:[%s2024_s3 + $0x40] sm:$0xf] %vm929_vm1, %v909_v44  ;;  %v711_v49 = vadd.f32 %v710_v46, %v612_v45 }
 0x12a   :  { %v923_v36 = vpack.c.bf16 %v887_v48, %v887_v48 }
 0x12b   :  { %v810_v50 = vadd.f32 %v809_v13, %v711_v49 }
 0x12c   :  { %960 = vst.msk [vmem:[%s2024_s3 + $0x78] sm:$0xf] %vm929_vm1, %v923_v36 }
 0x12d   :  { %v874_v52 = vmax.f32 %v810_v50, 0.0  ;;  %v817_v53 = vpop.f32.mrf.mxu2  ;;  %v844_v55 = vpop.f32.mrf.mxu3 }
 0x12e   :  { %v845_v56 = vadd.f32 %v844_v55, %v746_v51  ;;  %v614_v59 = vpop.f32.mrf.mxu0 }
 0x12f   :  { %v910_v61 = vpack.c.bf16 %v874_v52, %v874_v52  ;;  %v615_v62 = vadd.f32 %v1665_v58, %v614_v59  ;;  %v713_v63 = vpop.f32.mrf.mxu1 }
 0x130   :  { %v888_v0 = vmax.f32 %v845_v56, 0.0 }
 0x131   :  { %947 = vst.msk [vmem:[%s2024_s3 + $0x44] sm:$0xf] %vm929_vm1, %v910_v61  ;;  %v714_v60 = vadd.f32 %v713_v63, %v615_v62 }
 0x132   :  { %v924_v1 = vpack.c.bf16 %v888_v0, %v888_v0 }
 0x133   :  { %v813_v2 = vadd.f32 %v812_v26, %v714_v60 }
 0x134   :  { %961 = vst.msk [vmem:[%s2024_s3 + $0x7c] sm:$0xf] %vm929_vm1, %v924_v1 }
 0x135   :  { %v875_v5 = vmax.f32 %v813_v2, 0.0  ;;  %v819_v6 = vpop.f32.mrf.mxu2  ;;  %v847_v7 = vpop.f32.mrf.mxu3 }
 0x136   :  { %v848_v9 = vadd.f32 %v847_v7, %v749_v3  ;;  %v616_v11 = vpop.f32.mrf.mxu0 }
 0x137   :  { %v911_v12 = vpack.c.bf16 %v875_v5, %v875_v5  ;;  %v617_v14 = vadd.f32 %v1665_v58, %v616_v11  ;;  %v715_v15 = vpop.f32.mrf.mxu1 }
 0x138   :  { %v889_v13 = vmax.f32 %v848_v9, 0.0 }
 0x139   :  { %948 = vst.msk [vmem:[%s2024_s3 + $0x48] sm:$0xf] %vm929_vm1, %v911_v12  ;;  %v716_v10 = vadd.f32 %v715_v15, %v617_v14 }
 0x13a   :  { %v925_v17 = vpack.c.bf16 %v889_v13, %v889_v13 }
 0x13b   :  { %v815_v18 = vadd.f32 %v814_v38, %v716_v10 }
 0x13c   :  { %962 = vst.msk [vmem:[%s2024_s3 + $0x80] sm:$0xf] %vm929_vm1, %v925_v17 }
 0x13d   :  { %v876_v20 = vmax.f32 %v815_v18, 0.0  ;;  %v822_v21 = vpop.f32.mrf.mxu2  ;;  %v849_v22 = vpop.f32.mrf.mxu3 }
 0x13e   :  { %v850_v23 = vadd.f32 %v849_v22, %v751_v19  ;;  %v619_v26 = vpop.f32.mrf.mxu0 }
 0x13f   :  { %v912_v28 = vpack.c.bf16 %v876_v20, %v876_v20  ;;  %v620_v30 = vadd.f32 %v1665_v58, %v619_v26  ;;  %v718_v31 = vpop.f32.mrf.mxu1 }
 0x140   :  { %v890_v32 = vmax.f32 %v850_v23, 0.0 }
 0x141   :  { %949 = vst.msk [vmem:[%s2024_s3 + $0x4c] sm:$0xf] %vm929_vm1, %v912_v28  ;;  %v719_v25 = vadd.f32 %v718_v31, %v620_v30 }
 0x142   :  { %v926_v33 = vpack.c.bf16 %v890_v32, %v890_v32 }
 0x143   :  { %v818_v34 = vadd.f32 %v817_v53, %v719_v25 }
 0x144   :  { %963 = vst.msk [vmem:[%s2024_s3 + $0x84] sm:$0xf] %vm929_vm1, %v926_v33 }
 0x145   :  { %v877_v35 = vmax.f32 %v818_v34, 0.0  ;;  %v824_v37 = vpop.f32.mrf.mxu2  ;;  %v852_v38 = vpop.f32.mrf.mxu3 }
 0x146   :  { %v853_v40 = vadd.f32 %v852_v38, %v754_v29  ;;  %v621_v41 = vpop.f32.mrf.mxu0 }
 0x147   :  { %v913_v42 = vpack.c.bf16 %v877_v35, %v877_v35  ;;  %v622_v44 = vadd.f32 %v1665_v58, %v621_v41  ;;  %v720_v45 = vpop.f32.mrf.mxu1 }
 0x148   :  { %v891_v46 = vmax.f32 %v853_v40, 0.0 }
 0x149   :  { %950 = vst.msk [vmem:[%s2024_s3 + $0x50] sm:$0xf] %vm929_vm1, %v913_v42  ;;  %v721_v39 = vadd.f32 %v720_v45, %v622_v44 }
 0x14a   :  { %v927_v48 = vpack.c.bf16 %v891_v46, %v891_v46 }
 0x14b   :  { %v820_v49 = vadd.f32 %v819_v6, %v721_v39 }
 0x14c   :  { %964 = vst.msk [vmem:[%s2024_s3 + $0x88] sm:$0xf] %vm929_vm1, %v927_v48 }
 0x14d   :  { %v878_v36 = vmax.f32 %v820_v49, 0.0  ;;  %v827_v50 = vpop.f32.mrf.mxu2  ;;  %v854_v51 = vpop.f32.mrf.mxu3 }
 0x14e   :  { %v855_v52 = vadd.f32 %v854_v51, %v756_v43  ;;  %v624_v53 = vpop.f32.mrf.mxu0 }
 0x14f   :  { %v914_v55 = vpack.c.bf16 %v878_v36, %v878_v36  ;;  %v625_v56 = vadd.f32 %v1665_v58, %v624_v53  ;;  %v723_v59 = vpop.f32.mrf.mxu1 }
 0x150   :  { %v892_v61 = vmax.f32 %v855_v52, 0.0 }
 0x151   :  { %951 = vst.msk [vmem:[%s2024_s3 + $0x54] sm:$0xf] %vm929_vm1, %v914_v55  ;;  %v724_v54 = vadd.f32 %v723_v59, %v625_v56 }
 0x152   :  { %v928_v24 = vpack.c.bf16 %v892_v61, %v892_v61 }
 0x153   :  { %v823_v62 = vadd.f32 %v822_v21, %v724_v54 }
 0x154   :  { %965 = vst.msk [vmem:[%s2024_s3 + $0x8c] sm:$0xf] %vm929_vm1, %v928_v24 }
 0x155   :  { %v879_v63 = vmax.f32 %v823_v62, 0.0  ;;  %v829_v0 = vpop.f32.mrf.mxu2 }
 0x156   :  { %v626_v60 = vpop.f32.mrf.mxu0 }
 0x157   :  { %v915_v47 = vpack.c.bf16 %v879_v63, %v879_v63  ;;  %v627_v1 = vadd.f32 %v1665_v58, %v626_v60  ;;  %v725_v2 = vpop.f32.mrf.mxu1 }
 0x159   :  { %952 = vst.msk [vmem:[%s2024_s3 + $0x58] sm:$0xf] %vm929_vm1, %v915_v47  ;;  %v726_v3 = vadd.f32 %v725_v2, %v627_v1 }
 0x15b   :  { %v825_v5 = vadd.f32 %v824_v37, %v726_v3 }
 0x15d   :  { %v880_v6 = vmax.f32 %v825_v5, 0.0  ;;  %v832_v7 = vpop.f32.mrf.mxu2 }
 0x15e   :  { %v629_v9 = vpop.f32.mrf.mxu0 }
 0x15f   :  { %v916_v11 = vpack.c.bf16 %v880_v6, %v880_v6  ;;  %v630_v12 = vadd.f32 %v1665_v58, %v629_v9  ;;  %v728_v14 = vpop.f32.mrf.mxu1 }
 0x161   :  { %953 = vst.msk [vmem:[%s2024_s3 + $0x5c] sm:$0xf] %vm929_vm1, %v916_v11  ;;  %v729_v15 = vadd.f32 %v728_v14, %v630_v12 }
 0x163   :  { %v828_v13 = vadd.f32 %v827_v50, %v729_v15 }
 0x165   :  { %v881_v10 = vmax.f32 %v828_v13, 0.0  ;;  %v834_v57 = vpop.f32.mrf.mxu2 }
 0x166   :  { %v631_v17 = vpop.f32.mrf.mxu0 }
 0x167   :  { %v917_v18 = vpack.c.bf16 %v881_v10, %v881_v10  ;;  %v632_v19 = vadd.f32 %v1665_v58, %v631_v17  ;;  %v730_v20 = vpop.f32.mrf.mxu1 }
 0x169   :  { %954 = vst.msk [vmem:[%s2024_s3 + $0x60] sm:$0xf] %vm929_vm1, %v917_v18  ;;  %v731_v21 = vadd.f32 %v730_v20, %v632_v19 }
 0x16b   :  { %v830_v22 = vadd.f32 %v829_v0, %v731_v21 }
 0x16d   :  { %v882_v23 = vmax.f32 %v830_v22, 0.0  ;;  %v837_v26 = vpop.f32.mrf.mxu2 }
 0x16e   :  { %v838_v28 = vadd.f32 %v837_v26, %v1842_v8  ;;  %v634_v30 = vpop.f32.mrf.mxu0 }
 0x16f   :  { %v918_v31 = vpack.c.bf16 %v882_v23, %v882_v23  ;;  %v635_v32 = vadd.f32 %v1665_v58, %v634_v30  ;;  %v733_v25 = vpop.f32.mrf.mxu1 }
 0x170   :  { %v885_v4 = vmax.f32 %v838_v28, 0.0 }
 0x171   :  { %955 = vst.msk [vmem:[%s2024_s3 + $0x64] sm:$0xf] %vm929_vm1, %v918_v31  ;;  %v734_v33 = vadd.f32 %v733_v25, %v635_v32 }
 0x172   :  { %v921_v34 = vpack.c.bf16 %v885_v4, %v885_v4 }
 0x173   :  { %v833_v29 = vadd.f32 %v832_v7, %v734_v33 }
 0x174   :  { %958 = vst.msk [vmem:[%s2024_s3 + $0x70] sm:$0xf] %vm929_vm1, %v921_v34 }
 0x175   :  { %v883_v8 = vmax.f32 %v833_v29, 0.0  ;;  %v839_v35 = vpop.f32.mrf.mxu2 }
 0x176   :  { %v840_v37 = vadd.f32 %v839_v35, %v1864_v27  ;;  %v636_v38 = vpop.f32.mrf.mxu0 }
 0x177   :  { %v919_v40 = vpack.c.bf16 %v883_v8, %v883_v8  ;;  %v637_v41 = vadd.f32 %v1665_v58, %v636_v38  ;;  %v735_v44 = vpop.f32.mrf.mxu1 }
 0x178   :  { %v886_v42 = vmax.f32 %v840_v37, 0.0 }
 0x179   :  { %956 = vst.msk [vmem:[%s2024_s3 + $0x68] sm:$0xf] %vm929_vm1, %v919_v40  ;;  %v736_v45 = vadd.f32 %v735_v44, %v637_v41 }
 0x17a   :  { %v922_v46 = vpack.c.bf16 %v886_v42, %v886_v42 }
 0x17b   :  { %v835_v39 = vadd.f32 %v834_v57, %v736_v45 }
 0x17c   :  { %959 = vst.msk [vmem:[%s2024_s3 + $0x74] sm:$0xf] %vm929_vm1, %v922_v46 }
 0x17d   :  { %v884_v27 = vmax.f32 %v835_v39, 0.0 }
 0x17f   :  { %v920_v16 = vpack.c.bf16 %v884_v27, %v884_v27 }
 0x181   :  { %957 = vst.msk [vmem:[%s2024_s3 + $0x6c] sm:$0xf] %vm929_vm1, %v920_v16 }

// kernel: inception_v4_stem.12
= control target key start
LH: loop header
LB: loop body
LE: loop exit
PB: predicated region body
PF: predicated region fallthrough
CT: control target
= control target key end

     0   :  { %vm420_vm0 = vcmask 523264   ;;  %s1339_s11 = smov 64   ;;  %vm916_vm1 = vcmask 519168   ;;  %vm975_vm2 = vcmask 1043968   ;;  %vm976_vm3 = vcmask 261124   ;;  %s1970_s1 = inlined_call_operand.vmem [shape: bf16[576,96], index: 1, kind: input, shape index: {}]   ;;  %s1971_s2 = inlined_call_operand.vmem [shape: f32[1,96], index: 2, kind: input, shape index: {}]   ;;  %s1972_s0 = inlined_call_operand.vmem [shape: bf16[50,576], index: 0, kind: input, shape index: {}]   ;;  %s1973_s3 = inlined_call_operand.vmem [shape: bf16[50,160], index: 3, kind: output, shape index: {}]  }
   0x1   :  { %v1222_v0 = vld [vmem:[%s1970_s1 + $0x38] sm:$0xff]  ;;  %v1221_v1 = vld [vmem:[%s1970_s1 + $0x30] sm:$0xff]  ;;  %v1220_v4 = vld [vmem:[%s1970_s1 + $0x28] sm:$0xff]  ;;  %vm923_vm5 = vcmask 516096   ;;  %vm984_vm6 = vcmask 1040896   ;;  %vm985_vm7 = vcmask 258052  }
   0x2   :  { %1251 = vmatpush.bf16.msra.mxu1 %v1222_v0  ;;  %1252 = vmatpush.bf16.msra.mxu2 %v1222_v0  ;;  %v1246_v2 = vld [vmem:[%s1970_s1 + $0xf8] sm:$0xff]  ;;  %v1245_v3 = vld [vmem:[%s1970_s1 + $0xf0] sm:$0xff]  ;;  %v1244_v5 = vld [vmem:[%s1970_s1 + $0xe8] sm:$0xff] }
   0x3   :  { %433 = vmatpush.bf16.msra.mxu0 %v1222_v0  ;;  %517 = vmatpush.bf16.msra.mxu3 %v1246_v2  ;;  %v1219_v6 = vld [vmem:[%s1970_s1 + $0x20] sm:$0xff]  ;;  %v1218_v8 = vld [vmem:[%s1970_s1 + $0x18] sm:$0xff]  ;;  %v1217_v10 = vld [vmem:[%s1970_s1 + $0x10] sm:$0xff] }
   0x4   :  { %v1243_v7 = vld [vmem:[%s1970_s1 + $0xe0] sm:$0xff]  ;;  %v1242_v9 = vld [vmem:[%s1970_s1 + $0xd8] sm:$0xff]  ;;  %v1241_v11 = vld [vmem:[%s1970_s1 + $0xd0] sm:$0xff] }
   0x5   :  { %v1216_v12 = vld [vmem:[%s1970_s1 + $0x8] sm:$0xff]  ;;  %v1402_v13 = vld [vmem:[%s1972_s0 + $0x78] sm:$0x11]  ;;  %v1215_v16 = vld [vmem:[%s1970_s1] sm:$0xff] }
   0x6   :  { %1253 = vmatpush.bf16.msra.mxu1 %v1221_v1  ;;  %1254 = vmatpush.bf16.msra.mxu2 %v1221_v1  ;;  %v1240_v14 = vld [vmem:[%s1970_s1 + $0xc8] sm:$0xff]  ;;  %v163_v15 = vunpack.c.l.b16 %v1402_v13  ;;  %v1207_v18 = vld [vmem:[%s1972_s0 + $0x38] sm:$0xf0]  ;;  %v994_v21 = vld [vmem:[%s1972_s0] sm:$0xf] }
   0x7   :  { %434 = vmatpush.bf16.msra.mxu0 %v1221_v1  ;;  %518 = vmatpush.bf16.msra.mxu3 %v1245_v3  ;;  %v1014_v17 = vld [vmem:[%s1972_s0 + $0x28] sm:$0xf]  ;;  %v1238_v19 = vld [vmem:[%s1970_s1 + $0xb8] sm:$0xff]  ;;  %v1239_v22 = vld [vmem:[%s1970_s1 + $0xc0] sm:$0xff] }
   0x8   :  { %v1230_v20 = vld [vmem:[%s1970_s1 + $0x78] sm:$0xff]  ;;  %v1015_v23 = vor.u32 %v1207_v18, %v1014_v17  ;;  %v183_v24 = vpack.c.b16 %v163_v15, %v163_v15  ;;  %v1202_v25 = vld [vmem:[%s1972_s0 + $0x10] sm:$0xf0]  ;;  %v1201_v26 = vld [vmem:[%s1972_s0 + $0xc] sm:$0xf] }
   0x9   :  { %v1004_v27 = vld [vmem:[%s1972_s0 + $0x1c] sm:$0xf0]  ;;  %v1250_v28 = vld [vmem:[%s1970_s1 + $0x118] sm:$0xff]  ;;  %v1237_v29 = vld [vmem:[%s1970_s1 + $0xb0] sm:$0xff]  ;;  %v995_v31 = vor.u32 %v1202_v25, %v994_v21 }
   0xa   :  { %1255 = vmatpush.bf16.msra.mxu1 %v1220_v4  ;;  %1256 = vmatpush.bf16.msra.mxu2 %v1220_v4  ;;  %v1229_v30 = vld [vmem:[%s1970_s1 + $0x70] sm:$0xff]  ;;  %v1007_v32 = vor.u32 %v1201_v26, %v1004_v27  ;;  %v1236_v34 = vld [vmem:[%s1970_s1 + $0xa8] sm:$0xff]  ;;  %v1235_v37 = vld [vmem:[%s1970_s1 + $0xa0] sm:$0xff] }
   0xb   :  { %435 = vmatpush.bf16.msra.mxu0 %v1220_v4  ;;  %519 = vmatpush.bf16.msra.mxu3 %v1244_v5  ;;  %v1249_v33 = vld [vmem:[%s1970_s1 + $0x110] sm:$0xff]  ;;  %v1228_v35 = vld [vmem:[%s1970_s1 + $0x68] sm:$0xff]  ;;  %v1227_v38 = vld [vmem:[%s1970_s1 + $0x60] sm:$0xff] }
   0xc   :  { %v1248_v36 = vld [vmem:[%s1970_s1 + $0x108] sm:$0xff]  ;;  %v1034_v39 = vld [vmem:[%s1972_s0 + $0x50] sm:$0xf]  ;;  %v1212_v40 = vld [vmem:[%s1972_s0 + $0x60] sm:$0xf0] }
   0xd   :  { %v1247_v41 = vld [vmem:[%s1970_s1 + $0x100] sm:$0xff]  ;;  %v1234_v42 = vld [vmem:[%s1970_s1 + $0x98] sm:$0xff]  ;;  %v1010_v44 = vld [vmem:[%s1972_s0 + $0x10] sm:$0xf]  ;;  %v1035_v45 = vor.u32 %v1212_v40, %v1034_v39 }
   0xe   :  { %1257 = vmatpush.bf16.msra.mxu1 %v1219_v6  ;;  %1258 = vmatpush.bf16.msra.mxu2 %v1219_v6  ;;  %v1226_v43 = vld [vmem:[%s1970_s1 + $0x58] sm:$0xff]  ;;  %v1204_v46 = vld [vmem:[%s1972_s0 + $0x20] sm:$0xf0]  ;;  %v1206_v47 = vld [vmem:[%s1972_s0 + $0x34] sm:$0xf] }
   0xf   :  { %436 = vmatpush.bf16.msra.mxu0 %v1219_v6  ;;  %520 = vmatpush.bf16.msra.mxu3 %v1243_v7  ;;  %v1024_v48 = vld [vmem:[%s1972_s0 + $0x44] sm:$0xf0]  ;;  %v1233_v49 = vld [vmem:[%s1970_s1 + $0x90] sm:$0xff]  ;;  %v1011_v51 = vor.u32 %v1204_v46, %v1010_v44  ;;  %v1231_v55 = vld [vmem:[%s1970_s1 + $0x80] sm:$0xff] }
  0x10   :  { %v1225_v50 = vld [vmem:[%s1970_s1 + $0x50] sm:$0xff]  ;;  %v1027_v52 = vor.u32 %v1206_v47, %v1024_v48  ;;  %v1232_v53 = vld [vmem:[%s1970_s1 + $0x88] sm:$0xff]  ;;  %v1223_v56 = vld [vmem:[%s1970_s1 + $0x40] sm:$0xff] }
  0x11   :  { %v1224_v54 = vld [vmem:[%s1970_s1 + $0x48] sm:$0xff]  ;;  %v1203_v58 = vld [vmem:[%s1972_s0 + $0x18] sm:$0xf0]  ;;  %v1200_v60 = vld [vmem:[%s1972_s0 + $0x4] sm:$0xf] }
  0x12   :  { %1259 = vmatpush.bf16.msra.mxu1 %v1218_v8  ;;  %1260 = vmatpush.bf16.msra.mxu2 %v1218_v8  ;;  %v1002_v57 = vld [vmem:[%s1972_s0 + $0x8] sm:$0xf]  ;;  %v996_v61 = vld [vmem:[%s1972_s0 + $0x14] sm:$0xf0]  ;;  %v1209_v0 = vld [vmem:[%s1972_s0 + $0x48] sm:$0xf0] }
  0x13   :  { %437 = vmatpush.bf16.msra.mxu0 %v1218_v8  ;;  %521 = vmatpush.bf16.msra.mxu3 %v1242_v9  ;;  %v1003_v59 = vor.u32 %v1203_v58, %v1002_v57  ;;  %v1030_v62 = vld [vmem:[%s1972_s0 + $0x38] sm:$0xf]  ;;  %v999_v63 = vor.u32 %v1200_v60, %v996_v61  ;;  %v1211_v1 = vld [vmem:[%s1972_s0 + $0x5c] sm:$0xf]  ;;  %v1044_v2 = vld [vmem:[%s1972_s0 + $0x6c] sm:$0xf0] }
  0x14   :  { %v1031_v3 = vor.u32 %v1209_v0, %v1030_v62  ;;  %v1047_v4 = vor.u32 %v1211_v1, %v1044_v2  ;;  %v1022_v5 = vld [vmem:[%s1972_s0 + $0x30] sm:$0xf]  ;;  %v1208_v6 = vld [vmem:[%s1972_s0 + $0x40] sm:$0xf0]  ;;  %v1205_v8 = vld [vmem:[%s1972_s0 + $0x2c] sm:$0xf] }
  0x15   :  { %v1023_v7 = vor.u32 %v1208_v6, %v1022_v5  ;;  %v1016_v9 = vld [vmem:[%s1972_s0 + $0x3c] sm:$0xf0]  ;;  %v1214_v15 = vld [vmem:[%s1972_s0 + $0x70] sm:$0xf0]  ;;  %v1560_v18 = vld [vmem:[%s1972_s0 + $0x50] sm:$0xf] }
  0x16   :  { %1261 = vmatpush.bf16.msra.mxu1 %v1217_v10  ;;  %1262 = vmatpush.bf16.msra.mxu2 %v1217_v10  ;;  %v1042_v27 = vld [vmem:[%s1972_s0 + $0x58] sm:$0xf]  ;;  %v1668_v57 = vld [vmem:[%s1972_s0 + $0x3c] sm:$0xff]   ;;  %v1696_v1 = vld [vmem:[%s1972_s0 + $0x68] sm:$0xff]  }
  0x17   :  { %438 = vmatpush.bf16.msra.mxu0 %v1217_v10  ;;  %522 = vmatpush.bf16.msra.mxu3 %v1241_v11  ;;  %v34_v10 = vld [vmem:[%s1972_s0 + $0x80] sm:$0x11]  ;;  %v1990_v0 = vunpack.c.h.bf16 %v1668_v57  ;;  %v1701_v2 = vld [vmem:[%s1972_s0 + $0x7c] sm:$0x1]  ;;  %vm1915_vm4 = vmor %vm976_vm3, %vm975_vm2 }
  0x18   :  { %v166_v11 = vunpack.c.h.b16 %v34_v10  ;;  %v1981_v5 = vunpack.c.l.bf16 %v1701_v2  ;;  %vm986_vm8 = vmor %vm985_vm7, %vm984_vm6 }
  0x1a   :  { %1263 = vmatpush.bf16.msra.mxu1 %v1216_v12  ;;  %1264 = vmatpush.bf16.msra.mxu2 %v1216_v12  ;;  %v186_v17 = vpack.c.b16 %v166_v11, %v166_v11  ;;  %v1976_v11 = vunpack.c.h.bf16 %v1696_v1 }
  0x1b   :  { %439 = vmatpush.bf16.msra.mxu0 %v1216_v12  ;;  %523 = vmatpush.bf16.msra.mxu3 %v1240_v14  ;;  %v1019_v12 = vor.u32 %v1205_v8, %v1016_v9  ;;  %v1050_v14 = vld [vmem:[%s1972_s0 + $0x60] sm:$0xf]  ;;  %v1719_v8 = vld [vmem:[%s1972_s0 + $0x44] sm:$0xff]  }
  0x1e   :  { %1265 = vmatpush.bf16.msra.mxu1 %v1215_v16  ;;  %1266 = vmatpush.bf16.msra.mxu2 %v1215_v16 }
  0x1f   :  { %440 = vmatpush.bf16.msra.mxu0 %v1215_v16  ;;  %524 = vmatpush.bf16.msra.mxu3 %v1239_v22  ;;  %v1051_v16 = vor.u32 %v1214_v15, %v1050_v14  ;;  %v1572_v22 = vld [vmem:[%s1972_s0 + $0x78] sm:$0x1] }
  0x20   :  { %v1984_v25 = vunpack.c.l.bf16 %v1572_v22 }
  0x21   :  { %446 = vmatmul.bf16.vlgmr.msra.gmra.mxu1 %v1015_v23  ;;  %456 = vmatmul.bf16.vlgmr.msra.gmra.mxu2 %v183_v24  ;;  %v1577_v23 = vld [vmem:[%s1972_s0 + $0x4] sm:$0xf] }
  0x22   :  { %489 = vmatpush.bf16.msrb.mxu2 %v1238_v19  ;;  %461 = vmatpush.bf16.msrb.mxu1 %v1230_v20  ;;  %v1565_v19 = vld [vmem:[%s1972_s0 + $0x64] sm:$0xf]  ;;  %v591_v20 = vunpack.c.l.bf16 %v1560_v18  ;;  %v650_v26 = vunpack.c.l.bf16 %v1577_v23  ;;  %v17_v23 = vld [vmem:[%s1972_s0 + $0x10] sm:$0xf]  ;;  %v1991_v18 = vunpack.c.h.bf16 %v1668_v57 }
  0x23   :  { %549 = vmatpush.bf16.msrb.mxu0 %v1250_v28  ;;  %525 = vmatmul.bf16.vlgmr.msra.gmra.mxu3 %v1007_v32  ;;  %v1987_v21 = vunpack.c.l.bf16 %v1565_v19  ;;  %v1213_v28 = vld [vmem:[%s1972_s0 + $0x68] sm:$0xf0]  ;;  %v1036_v32 = vld [vmem:[%s1972_s0 + $0x64] sm:$0xf0] }
  0x24   :  { %441 = vmatmul.bf16.vlgmr.msra.gmra.mxu0 %v995_v31  ;;  %v1210_v31 = vld [vmem:[%s1972_s0 + $0x54] sm:$0xf] }
  0x25   :  { %v1278_v24 = vpack.i.bf16 %v1987_v21, %v591_v20 }
  0x26   :  { %490 = vmatpush.bf16.msrb.mxu2 %v1237_v29  ;;  %462 = vmatpush.bf16.msrb.mxu1 %v1229_v30  ;;  %v1596_v29 = vld [vmem:[%s1972_s0 + $0x88] sm:$0x1]  ;;  %v1043_v30 = vor.u32 %v1213_v28, %v1042_v27 }
  0x27   :  { %550 = vmatpush.bf16.msrb.mxu0 %v1249_v33  ;;  %1279 = vrot.lane.b32.xlu1 %v1278_v24, %s1339_s11  ;;  %v1283_v33 = vpack.i.bf16 %v650_v26, %v1984_v25 }
  0x2a   :  { %491 = vmatpush.bf16.msrb.mxu2 %v1236_v34  ;;  %463 = vmatpush.bf16.msrb.mxu1 %v1228_v35  ;;  %v167_v34 = vunpack.c.l.b16 %v1596_v29  ;;  %v1039_v35 = vor.u32 %v1210_v31, %v1036_v32  ;;  %v1978_v32 = vunpack.c.h.bf16 %v1719_v8 }
  0x2b   :  { %551 = vmatpush.bf16.msrb.mxu0 %v1248_v36 }
  0x2c   :  { %v187_v36 = vpack.c.b16 %v167_v34, %v167_v34 }
  0x2e   :  { %492 = vmatpush.bf16.msrb.mxu2 %v1235_v37  ;;  %464 = vmatpush.bf16.msrb.mxu1 %v1227_v38  ;;  %v165_v37 = vunpack.c.l.b16 %v34_v10  ;;  %v164_v38 = vunpack.c.h.b16 %v1402_v13  ;;  %v1627_v13 = vld [vmem:[%s1972_s0 + $0x8] sm:$0xff]  }
  0x2f   :  { %552 = vmatpush.bf16.msrb.mxu0 %v1247_v41  ;;  %1284 = vrot.lane.b32.xlu1 %v1283_v33, %s1339_s11  ;;  %v1615_v41 = vld [vmem:[%s1972_s0] sm:$0xf]  ;;  %v734_v47 = vunpack.c.l.bf16 %v1627_v13 }
  0x30   :  { %v185_v39 = vpack.c.b16 %v165_v37, %v165_v37  ;;  %v184_v40 = vpack.c.b16 %v164_v38, %v164_v38 }
  0x31   :  { %451 = vmatmul.bf16.gmra.mxu1 %v1035_v45  ;;  %v1632_v45 = vld [vmem:[%s1972_s0 + $0x1c] sm:$0xff]  }
  0x32   :  { %493 = vmatpush.bf16.msrb.mxu2 %v1234_v42  ;;  %465 = vmatpush.bf16.msrb.mxu1 %v1226_v43  ;;  %v1620_v42 = vld [vmem:[%s1972_s0 + $0x14] sm:$0xff]   ;;  %v587_v43 = vunpack.c.l.bf16 %v1615_v41  ;;  %v735_v48 = vunpack.c.l.bf16 %v1632_v45  ;;  %v819_v24 = vunpack.c.h.bf16 %v1632_v45 }
  0x33   :  { %530 = vmatmul.bf16.gmra.mxu3 %v1027_v52  ;;  %v588_v44 = vunpack.c.l.bf16 %v1620_v42  ;;  %v1655_v52 = vld [vmem:[%s1972_s0 + $0x80] sm:$0x1] }
  0x34   :  { %1196 = vmatmul.msk.bf16.vlgmr.msrb.gmra.mxu0 %vm420_vm0, %v1011_v51  ;;  %v651_v51 = vunpack.c.h.bf16 %v1620_v42 }
  0x35   :  { %v1268_v46 = vpack.i.bf16 %v588_v44, %v587_v43 }
  0x36   :  { %494 = vmatpush.bf16.msrb.mxu2 %v1233_v49  ;;  %466 = vmatpush.bf16.msrb.mxu1 %v1225_v50  ;;  %v1303_v49 = vpack.i.bf16 %v735_v48, %v734_v47  ;;  %v1649_v50 = vld [vmem:[%s1972_s0 + $0x2c] sm:$0xff]  }
  0x37   :  { %1269 = vrot.lane.b32.xlu0 %v1268_v46, %s1339_s11  ;;  %v1982_v9 = vunpack.c.h.bf16 %v1649_v50 }
  0x38   :  { %1304 = vrot.lane.b32.xlu1 %v1303_v49, %s1339_s11 }
  0x3a   :  { %495 = vmatpush.bf16.msrb.mxu2 %v1232_v53  ;;  %467 = vmatpush.bf16.msrb.mxu1 %v1224_v54  ;;  %v818_v53 = vunpack.c.h.bf16 %v1627_v13  ;;  %v1661_v54 = vld [vmem:[%s1972_s0 + $0x24] sm:$0xff]  }
  0x3b   :  { %v1989_v58 = vunpack.c.h.bf16 %v1661_v54 }
  0x3e   :  { %496 = vmatpush.bf16.msrb.mxu2 %v1231_v55  ;;  %468 = vmatpush.bf16.msrb.mxu1 %v1223_v56  ;;  %v1988_v55 = vunpack.c.l.bf16 %v1649_v50  ;;  %v1974_v56 = vunpack.c.l.bf16 %v1655_v52 }
  0x40   :  { %v1288_v60 = vpack.i.bf16 %v1988_v55, %v651_v51  ;;  %v1318_v61 = vpack.i.bf16 %v818_v53, %v1974_v56 }
  0x41   :  { %497 = vmatmul.bf16.vlgmr.msrb.gmra.mxu2 %v1003_v59  ;;  %469 = vmatmul.bf16.vlgmr.msrb.gmra.mxu1 %v999_v63  ;;  %v590_v59 = vunpack.c.l.bf16 %v1668_v57  ;;  %v1690_v63 = vld [vmem:[%s1972_s0 + $0x54] sm:$0xff]  }
  0x42   :  { %1289 = vrot.lane.b32.xlu2 %v1288_v60, %s1339_s11  ;;  %1319 = vrot.lane.b32.xlu1 %v1318_v61, %s1339_s11  ;;  %v1986_v10 = vunpack.c.h.bf16 %v1690_v63 }
  0x43   :  { %535 = vmatmul.bf16.gmra.mxu3 %v1047_v4  ;;  %v1273_v62 = vpack.i.bf16 %v590_v59, %v1989_v58  ;;  %v1983_v4 = vunpack.c.l.bf16 %v1696_v1 }
  0x44   :  { %1197 = vmatmul.msk.bf16.gmra.mxu0 %vm420_vm0, %v1031_v3  ;;  %v654_v3 = vunpack.c.l.bf16 %v1690_v63  ;;  %v1313_v14 = vpack.i.bf16 %v1976_v11, %v1986_v10 }
  0x45   :  { %1274 = vrot.lane.b32.xlu0 %v1273_v62, %s1339_s11 }
  0x46   :  { %v1293_v6 = vpack.i.bf16 %v654_v3, %v1990_v0 }
  0x4a   :  { %1294 = vrot.lane.b32.xlu2 %v1293_v6, %s1339_s11 }
  0x51   :  { %502 = vmatmul.bf16.gmra.mxu2 %v1023_v7  ;;  %474 = vmatmul.bf16.gmra.mxu1 %v1019_v12  ;;  %v1298_v7 = vpack.i.bf16 %v1981_v5, %v1983_v4  ;;  %v1985_v12 = vunpack.c.l.bf16 %v1719_v8 }
  0x53   :  { %540 = vmatmul.bf16.gmra.mxu3 %v186_v17  ;;  %1299 = vrot.lane.b32.xlu0 %v1298_v7, %s1339_s11  ;;  %v1308_v15 = vpack.i.bf16 %v1985_v12, %v1982_v9  ;;  %v1738_v17 = vld [vmem:[%s1972_s0 + $0x34] sm:$0xf] }
  0x54   :  { %1198 = vmatmul.msk.bf16.gmra.mxu0 %vm420_vm0, %v1051_v16  ;;  %v1975_v27 = vunpack.c.l.bf16 %v1738_v17 }
  0x55   :  { %1309 = vrot.lane.b32.xlu2 %v1308_v15, %s1339_s11 }
  0x56   :  { %v1323_v31 = vpack.i.bf16 %v1975_v27, %v819_v24 }
  0x5b   :  { %1314 = vrot.lane.b32.xlu0 %v1313_v14, %s1339_s11 }
  0x5d   :  { %1324 = vrot.lane.b32.xlu2 %v1323_v31, %s1339_s11 }
  0x61   :  { %507 = vmatmul.bf16.gmra.mxu2 %v1043_v30  ;;  %479 = vmatmul.bf16.gmra.mxu1 %v1039_v35  ;;  %v1745_v30 = vld [vmem:[%s1972_s0 + $0x5c] sm:$0xf] }
  0x62   :  { %v1977_v33 = vunpack.c.l.bf16 %v1745_v30 }
  0x64   :  { %1199 = vmatmul.msk.bf16.gmra.mxu0 %vm420_vm0, %v187_v36  ;;  %v1328_v35 = vpack.i.bf16 %v1977_v33, %v1978_v32 }
  0x66   :  { %1329 = vrot.lane.b32.xlu0 %v1328_v35, %s1339_s11  ;;  %v1781_v35 = vld [vmem:[%s1971_s2] ss:$0 sm:$0xff] }
  0x71   :  { %512 = vmatmul.bf16.gmra.mxu2 %v185_v39  ;;  %484 = vmatmul.bf16.gmra.mxu1 %v184_v40  ;;  %v1764_v39 = vld [vmem:[%s1972_s0 + $0x70] sm:$0xf]  ;;  %v1769_v40 = vld [vmem:[%s1972_s0 + $0x84] sm:$0x1] }
  0x72   :  { %v1980_v49 = vunpack.c.l.bf16 %v1764_v39  ;;  %v1979_v60 = vunpack.c.l.bf16 %v1769_v40 }
  0x74   :  { %v1333_v62 = vpack.i.bf16 %v1979_v60, %v1980_v49 }
  0x76   :  { %1334 = vrot.lane.b32.xlu1 %v1333_v62, %s1339_s11 }
  0x9e   :  { %v447_v16 = vpop.f32.mrf.mxu1 }
  0xa1   :  { %v442_v28 = vpop.f32.mrf.mxu0 }
  0xa4   :  { %v1753_v34 = vpop.f32.mrf.mxu2 }
  0xa6   :  { %v449_v36 = vpop.f32.mrf.mxu1  ;;  %v526_v37 = vpop.f32.mrf.mxu3 }
  0xa9   :  { %v444_v38 = vpop.f32.mrf.mxu0 }
  0xaa   :  { %v445_v62 = vadd.f32 %v1781_v35, %v444_v38 }
  0xac   :  { %v459_v46 = vpop.f32.mrf.mxu2 }
  0xad   :  { %v443_v46 = vadd.f32 %v1781_v35, %v442_v28 }
  0xae   :  { %v452_v61 = vpop.f32.mrf.mxu1  ;;  %v528_v6 = vpop.f32.mrf.mxu3 }
  0xb1   :  { %v554_v7 = vpop.f32.mrf.mxu0 }
  0xb6   :  { %v454_v14 = vpop.f32.mrf.mxu1  ;;  %v531_v15 = vpop.f32.mrf.mxu3 }
  0xb9   :  { %v556_v31 = vpop.f32.mrf.mxu0 }
  0xbe   :  { %v470_v56 = vpop.f32.mrf.mxu1  ;;  %v533_v11 = vpop.f32.mrf.mxu3 }
  0xbf   :  { %v471_v27 = vadd.f32 %v470_v56, %v443_v46  ;;  %v448_v56 = vadd.f32 %v1781_v35, %v447_v16 }
  0xc1   :  { %v559_v32 = vpop.f32.mrf.mxu0 }
  0xc4   :  { %v498_v33 = vpop.f32.mrf.mxu2 }
  0xc5   :  { %v499_v60 = vadd.f32 %v498_v33, %v471_v27 }
  0xc6   :  { %v472_v9 = vpop.f32.mrf.mxu1  ;;  %v536_v25 = vpop.f32.mrf.mxu3 }
  0xc7   :  { %v527_v49 = vadd.f32 %v526_v37, %v499_v60  ;;  %v473_v4 = vadd.f32 %v472_v9, %v445_v62 }
  0xc9   :  { %v555_v5 = vadd.f32 %v554_v7, %v527_v49  ;;  %v561_v21 = vpop.f32.mrf.mxu0 }
  0xcb   :  { %v573_v12 = vmax.f32 %v555_v5, 0.0 }
  0xcc   :  { %v500_v10 = vpop.f32.mrf.mxu2 }
  0xcd   :  { %v501_v55 = vadd.f32 %v500_v10, %v473_v4  ;;  %v925_v58 = vpack.c.bf16 %v573_v12, %v573_v12  ;;  %v450_v4 = vadd.f32 %v1781_v35, %v449_v36 }
  0xce   :  { %v475_v46 = vpop.f32.mrf.mxu1  ;;  %v538_v33 = vpop.f32.mrf.mxu3 }
  0xcf   :  { %v529_v0 = vadd.f32 %v528_v6, %v501_v55  ;;  %939 = vrot.lane.b32.xlu2 %v925_v58, %s1339_s11  ;;  %v476_v27 = vadd.f32 %v475_v46, %v448_v56  ;;  %v453_v56 = vadd.f32 %v1781_v35, %v452_v61 }
  0xd1   :  { %v557_v28 = vadd.f32 %v556_v31, %v529_v0  ;;  %v564_v49 = vpop.f32.mrf.mxu0 }
  0xd3   :  { %v574_v37 = vmax.f32 %v557_v28, 0.0 }
  0xd4   :  { %v503_v38 = vpop.f32.mrf.mxu2 }
  0xd5   :  { %v504_v60 = vadd.f32 %v503_v38, %v476_v27  ;;  %v926_v9 = vpack.c.bf16 %v574_v37, %v574_v37 }
  0xd6   :  { %v477_v55 = vpop.f32.mrf.mxu1  ;;  %v541_v58 = vpop.f32.mrf.mxu3 }
  0xd7   :  { %v532_v7 = vadd.f32 %v531_v15, %v504_v60  ;;  %941 = vrot.lane.b32.xlu0 %v926_v9, %s1339_s11  ;;  %v478_v10 = vadd.f32 %v477_v55, %v450_v4  ;;  %v1791_v9 = vpop.permute.xlu1 %1279  ;;  %v1795_v55 = vpop.permute.xlu2 %1289 }
  0xd9   :  { %v560_v5 = vadd.f32 %v559_v32, %v532_v7  ;;  %v566_v0 = vpop.f32.mrf.mxu0 }
  0xdb   :  { %v575_v12 = vmax.f32 %v560_v5, 0.0 }
  0xdc   :  { %v505_v16 = vpop.f32.mrf.mxu2 }
  0xdd   :  { %v506_v6 = vadd.f32 %v505_v16, %v478_v10  ;;  %v927_v31 = vpack.c.bf16 %v575_v12, %v575_v12 }
  0xde   :  { %v480_v15 = vpop.f32.mrf.mxu1  ;;  %v543_v27 = vpop.f32.mrf.mxu3 }
  0xdf   :  { %v534_v62 = vadd.f32 %v533_v11, %v506_v6  ;;  %943 = vrot.lane.b32.xlu1 %v927_v31, %s1339_s11  ;;  %v481_v46 = vadd.f32 %v480_v15, %v453_v56  ;;  %v455_v11 = vadd.f32 %v1781_v35, %v454_v14 }
  0xe1   :  { %v562_v28 = vadd.f32 %v561_v21, %v534_v62  ;;  %v569_v32 = vpop.f32.mrf.mxu0  ;;  %v1800_v62 = vpop.permute.xlu1 %1284 }
  0xe3   :  { %v576_v37 = vmax.f32 %v562_v28, 0.0 }
  0xe4   :  { %v508_v36 = vpop.f32.mrf.mxu2 }
  0xe5   :  { %v509_v38 = vadd.f32 %v508_v36, %v481_v46  ;;  %v928_v60 = vpack.c.bf16 %v576_v37, %v576_v37 }
  0xe6   :  { %v482_v5 = vpop.f32.mrf.mxu1 }
  0xe7   :  { %v537_v7 = vadd.f32 %v536_v25, %v509_v38  ;;  %945 = vrot.lane.b32.xlu2 %v928_v60, %s1339_s11  ;;  %v483_v21 = vadd.f32 %v482_v5, %v455_v11  ;;  %v458_v25 = vadd.f32 %v1781_v35, %v1753_v34  ;;  %v1291_v35 = vunpack.i.l.bf16 %v1795_v55 }
  0xe9   :  { %v565_v4 = vadd.f32 %v564_v49, %v537_v7  ;;  %v571_v12 = vpop.f32.mrf.mxu0  ;;  %v1802_v49 = vpop.permute.xlu2 %1294 }
  0xea   :  { %v1297_v45 = vunpack.i.h.bf16 %v1802_v49 }
  0xeb   :  { %v577_v61 = vmax.f32 %v565_v4, 0.0 }
  0xec   :  { %v510_v10 = vpop.f32.mrf.mxu2 }
  0xed   :  { %v511_v16 = vadd.f32 %v510_v10, %v483_v21  ;;  %v929_v6 = vpack.c.bf16 %v577_v61, %v577_v61 }
  0xee   :  { %v485_v14 = vpop.f32.mrf.mxu1 }
  0xef   :  { %v539_v31 = vadd.f32 %v538_v33, %v511_v16  ;;  %947 = vrot.lane.b32.xlu0 %v929_v6, %s1339_s11  ;;  %v486_v28 = vadd.f32 %v485_v14, %v458_v25  ;;  %v1270_v33 = vpop.permute.xlu0 %1269 }
  0xf0   :  { %v1272_v38 = vunpack.i.h.bf16 %v1270_v33  ;;  %v1271_v60 = vunpack.i.l.bf16 %v1270_v33 }
  0xf1   :  { %v567_v56 = vadd.f32 %v566_v0, %v539_v31  ;;  %v1805_v34 = vpop.permute.xlu2 %1309  ;;  %v1287_v0 = vunpack.i.h.bf16 %v1800_v62 }
  0xf2   :  { %v623_v4 = vmax.f32 %v588_v44, %v1272_v38  ;;  %v622_v5 = vmax.f32 %v587_v43, %v1271_v60  ;;  %v1281_v44 = vunpack.i.l.bf16 %v1791_v9 }
  0xf3   :  { %v578_v15 = vmax.f32 %v567_v56, 0.0 }
  0xf4   :  { %v513_v46 = vpop.f32.mrf.mxu2  ;;  %v658_v10 = vmax.f32 %v623_v4, %v651_v51  ;;  %v1992_v4 = vunpack.c.h.bf16 %v1661_v54 }
  0xf5   :  { %v514_v27 = vadd.f32 %v513_v46, %v486_v28  ;;  %v930_v37 = vpack.c.bf16 %v578_v15, %v578_v15  ;;  %v896_v46 = vunpack.c.l.bf16 %v1661_v54  ;;  %v1993_v54 = vunpack.c.l.bf16 %v1649_v50 }
  0xf6   :  { %v487_v11 = vpop.f32.mrf.mxu1  ;;  %v707_v25 = vmax.f32 %v658_v10, %v1291_v35 }
  0xf7   :  { %v542_v36 = vadd.f32 %v541_v58, %v514_v27  ;;  %949 = vrot.lane.b32.xlu1 %v930_v37, %s1339_s11  ;;  %v1305_v58 = vpop.permute.xlu1 %1304  ;;  %v1275_v28 = vpop.permute.xlu0 %1274  ;;  %v895_v37 = vunpack.c.l.bf16 %v17_v23  ;;  %v1998_v23 = vunpack.c.l.bf16 %v1696_v1 }
  0xf8   :  { %v1307_v16 = vunpack.i.h.bf16 %v1305_v58  ;;  %v1306_v6 = vunpack.i.l.bf16 %v1305_v58  ;;  %v742_v43 = vmax.f32 %v707_v25, %v735_v48  ;;  %v1277_v15 = vunpack.i.h.bf16 %v1275_v28 }
  0xf9   :  { %v570_v7 = vadd.f32 %v569_v32, %v542_v36  ;;  %v657_v32 = vmax.f32 %v622_v5, %v650_v26  ;;  %v1823_v42 = vpop.permute.xlu2 %1324  ;;  %v626_v36 = vmax.f32 %v591_v20, %v1281_v44 }
  0xfa   :  { %v791_v51 = vmax.f32 %v742_v43, %v1307_v16  ;;  %v1326_v56 = vunpack.i.l.bf16 %v1823_v42  ;;  %v625_v60 = vmax.f32 %v590_v59, %v1277_v15  ;;  %v1995_v16 = vunpack.c.h.bf16 %v1690_v63 }
  0xfb   :  { %v579_v21 = vmax.f32 %v570_v7, 0.0  ;;  %v706_v31 = vmax.f32 %v657_v32, %v1287_v0  ;;  %v1276_v7 = vunpack.i.l.bf16 %v1275_v28  ;;  %v661_v13 = vmax.f32 %v626_v36, %v654_v3 }
  0xfc   :  { %v515_v61 = vpop.f32.mrf.mxu2  ;;  %v826_v48 = vmax.f32 %v791_v51, %v819_v24  ;;  %v1296_v24 = vunpack.i.l.bf16 %v1802_v49  ;;  %v660_v20 = vmax.f32 %v625_v60, %v1991_v18  ;;  %v1282_v49 = vunpack.i.h.bf16 %v1791_v9 }
  0xfd   :  { %v931_v12 = vpack.c.bf16 %v579_v21, %v579_v21  ;;  %v741_v41 = vmax.f32 %v706_v31, %v734_v47  ;;  %v624_v5 = vmax.f32 %v1992_v4, %v1276_v7  ;;  %v1292_v3 = vunpack.i.h.bf16 %v1795_v55 }
  0xfe   :  { %v875_v33 = vmax.f32 %v826_v48, %v1326_v56  ;;  %v710_v57 = vmax.f32 %v661_v13, %v1297_v45  ;;  %v709_v58 = vmax.f32 %v660_v20, %v1296_v24  ;;  %v1994_v61 = vunpack.c.l.bf16 %v1565_v19 }
  0xff   :  { %951 = vrot.lane.b32.xlu2 %v931_v12, %s1339_s11  ;;  %v790_v26 = vmax.f32 %v741_v41, %v1306_v6  ;;  %v1829_v14 = vpop.permute.xlu1 %1319  ;;  %v1300_v59 = vpop.permute.xlu0 %1299  ;;  %v659_v21 = vmax.f32 %v624_v5, %v1993_v54  ;;  %v1286_v32 = vunpack.i.l.bf16 %v1800_v62  ;;  %v1312_v12 = vunpack.i.h.bf16 %v1805_v34 }
 0x100   :  { %v1322_v47 = vunpack.i.h.bf16 %v1829_v14  ;;  %v903_v11 = vmax.f32 %v875_v33, %v896_v46  ;;  %v627_v10 = vmax.f32 %v1994_v61, %v1282_v49  ;;  %v745_v6 = vmax.f32 %v710_v57, %v1995_v16 }
 0x101   :  { %v825_v27 = vmax.f32 %v790_v26, %v818_v53  ;;  %v708_v9 = vmax.f32 %v659_v21, %v1292_v3  ;;  %v1996_v31 = vunpack.c.l.bf16 %v1719_v8  ;;  %v1997_v43 = vunpack.c.l.bf16 %v1572_v22  ;;  %v26_v22 = vld [vmem:[%s1972_s0 + $0x4c] sm:$0xf] }
 0x102   :  { %v910_v53 = vpack.c.bf16 %v903_v11, %v903_v11  ;;  %v662_v19 = vmax.f32 %v627_v10, %v1998_v23  ;;  %v1301_v26 = vunpack.i.l.bf16 %v1300_v59  ;;  %v1311_v62 = vunpack.i.l.bf16 %v1805_v34 }
 0x103   :  { %v874_v38 = vmax.f32 %v825_v27, %v1322_v47  ;;  %v744_v25 = vmax.f32 %v709_v58, %v1996_v31  ;;  %v628_v44 = vmax.f32 %v1997_v43, %v1286_v32  ;;  %v1999_v51 = vunpack.c.h.bf16 %v1649_v50  ;;  %v29_v27 = vld [vmem:[%s1972_s0 + $0x60] sm:$0xf] }
 0x104   :  { %918 = vst.msk [vmem:[%s1973_s3 + $0x8] sm:$0xf] %vm916_vm1, %v910_v53  ;;  %v2000_v47 = vunpack.c.l.bf16 %v1701_v2  ;;  %v1302_v48 = vunpack.i.h.bf16 %v1300_v59  ;;  %v711_v46 = vmax.f32 %v662_v19, %v1301_v26  ;;  %v2001_v34 = vunpack.c.h.bf16 %v1719_v8 }
 0x105   :  { %v902_v35 = vmax.f32 %v874_v38, %v895_v37  ;;  %v743_v56 = vmax.f32 %v708_v9, %v1999_v51  ;;  %v793_v63 = vmax.f32 %v744_v25, %v1312_v12  ;;  %v2002_v36 = vunpack.c.l.bf16 %v1745_v30 }
 0x106   :  { %v663_v15 = vmax.f32 %v628_v44, %v2000_v47  ;;  %v898_v7 = vunpack.c.l.bf16 %v26_v22  ;;  %v899_v11 = vunpack.c.l.bf16 %v29_v27  ;;  %v2003_v24 = vunpack.c.h.bf16 %v1696_v1  ;;  %v23_v1 = vld [vmem:[%s1972_s0 + $0x38] sm:$0xf] }
 0x107   :  { %v909_v0 = vpack.c.bf16 %v902_v35, %v902_v35  ;;  %v1315_v55 = vpop.permute.xlu0 %1314  ;;  %v792_v37 = vmax.f32 %v743_v56, %v1311_v62  ;;  %v828_v50 = vmax.f32 %v793_v63, %v2001_v34  ;;  %v1327_v53 = vunpack.i.h.bf16 %v1823_v42  ;;  %v32_v42 = vld [vmem:[%s1972_s0 + $0x74] sm:$0xf] }
 0x108   :  { %v1316_v41 = vunpack.i.l.bf16 %v1315_v55  ;;  %v712_v35 = vmax.f32 %v663_v15, %v1302_v48  ;;  %v1317_v45 = vunpack.i.h.bf16 %v1315_v55  ;;  %v746_v13 = vmax.f32 %v711_v46, %v2003_v24 }
 0x109   :  { %917 = vst.msk [vmem:[%s1973_s3] sm:$0xf] %vm916_vm1, %v909_v0  ;;  %v2004_v0 = vunpack.c.l.bf16 %v1738_v17  ;;  %v1321_v5 = vunpack.i.l.bf16 %v1829_v14  ;;  %v2005_v59 = vunpack.c.l.bf16 %v1655_v52  ;;  %v897_v17 = vunpack.c.l.bf16 %v23_v1  ;;  %v1335_v52 = vpop.permute.xlu1 %1334 }
 0x10a   :  { %v794_v28 = vmax.f32 %v745_v6, %v1316_v41  ;;  %v795_v3 = vmax.f32 %v746_v13, %v1317_v45  ;;  %v2006_v21 = vunpack.c.l.bf16 %v1764_v39  ;;  %v1337_v10 = vunpack.i.h.bf16 %v1335_v52 }
 0x10b   :  { %v827_v18 = vmax.f32 %v792_v37, %v2004_v0  ;;  %v747_v49 = vmax.f32 %v712_v35, %v2005_v59  ;;  %v1336_v32 = vunpack.i.l.bf16 %v1335_v52  ;;  %v900_v12 = vunpack.c.l.bf16 %v32_v42 }
 0x10c   :  { %v829_v33 = vmax.f32 %v794_v28, %v2002_v36  ;;  %v830_v61 = vmax.f32 %v795_v3, %v2006_v21  ;;  %v2007_v16 = vunpack.c.l.bf16 %v1769_v40  ;;  %v901_v41 = vunpack.c.l.bf16 %v1596_v29 }
 0x10d   :  { %v876_v57 = vmax.f32 %v827_v18, %v1327_v53  ;;  %v796_v14 = vmax.f32 %v747_v49, %v1321_v5 }
 0x10e   :  { %v879_v31 = vmax.f32 %v830_v61, %v1336_v32 }
 0x10f   :  { %v1330_v38 = vpop.permute.xlu0 %1329  ;;  %v904_v9 = vmax.f32 %v876_v57, %v897_v17  ;;  %v831_v6 = vmax.f32 %v796_v14, %v2007_v16 }
 0x110   :  { %v1332_v2 = vunpack.i.h.bf16 %v1330_v38  ;;  %v1331_v60 = vunpack.i.l.bf16 %v1330_v38  ;;  %v907_v23 = vmax.f32 %v879_v31, %v900_v12 }
 0x111   :  { %v911_v25 = vpack.c.bf16 %v904_v9, %v904_v9  ;;  %v880_v44 = vmax.f32 %v831_v6, %v1337_v10 }
 0x112   :  { %v877_v8 = vmax.f32 %v828_v50, %v1331_v60  ;;  %v878_v20 = vmax.f32 %v829_v33, %v1332_v2  ;;  %v914_v19 = vpack.c.bf16 %v907_v23, %v907_v23 }
 0x113   :  { %919 = vst.msk [vmem:[%s1973_s3 + $0x10] sm:$0xf] %vm916_vm1, %v911_v25  ;;  %v908_v29 = vmax.f32 %v880_v44, %v901_v41 }
 0x114   :  { %v905_v4 = vmax.f32 %v877_v8, %v898_v7  ;;  %v906_v30 = vmax.f32 %v878_v20, %v899_v11  ;;  %922 = vst.msk [vmem:[%s1973_s3 + $0x28] sm:$0xf] %vm916_vm1, %v914_v19 }
 0x115   :  { %v915_v26 = vpack.c.bf16 %v908_v29, %v908_v29 }
 0x116   :  { %v912_v58 = vpack.c.bf16 %v905_v4, %v905_v4  ;;  %v913_v54 = vpack.c.bf16 %v906_v30, %v906_v30 }
 0x117   :  { %924 = vst.msk [vmem:[%s1973_s3 + $0x30] sm:$0x1] %vm923_vm5, %v915_v26 }
 0x118   :  { %920 = vst.msk [vmem:[%s1973_s3 + $0x18] sm:$0xf] %vm916_vm1, %v912_v58 }
 0x119   :  { %921 = vst.msk [vmem:[%s1973_s3 + $0x20] sm:$0xf] %vm916_vm1, %v913_v54 }
 0x129   :  { %v940_v55 = vpop.permute.xlu2 %939 }
 0x12a   :  { %v953_v39 = vrot.slane %v940_v55, 4 }
 0x12c   :  { %v961_v40 = vsel %vm420_vm0, %v953_v39, %v940_v55 }
 0x12d   :  { %978 = vst.msk [vmem:[%s1973_s3] sm:$0xff] %vm1915_vm4, %v961_v40 }
 0x141   :  { %v946_v62 = vpop.permute.xlu2 %945 }
 0x142   :  { %v956_v51 = vrot.slane %v946_v62, 4 }
 0x144   :  { %v964_v56 = vsel %vm420_vm0, %v956_v51, %v946_v62 }
 0x145   :  { %981 = vst.msk [vmem:[%s1973_s3 + $0x18] sm:$0xff] %vm1915_vm4, %v964_v56 }
 0x149   :  { %v942_v28 = vpop.permute.xlu0 %941 }
 0x14a   :  { %v954_v63 = vrot.slane %v942_v28, 4 }
 0x14c   :  { %v962_v47 = vsel %vm420_vm0, %v954_v63, %v942_v28 }
 0x14d   :  { %979 = vst.msk [vmem:[%s1973_s3 + $0x8] sm:$0xff] %vm1915_vm4, %v962_v47 }
 0x151   :  { %v944_v15 = vpop.permute.xlu1 %943 }
 0x152   :  { %v955_v48 = vrot.slane %v944_v15, 4 }
 0x154   :  { %v963_v46 = vsel %vm420_vm0, %v955_v48, %v944_v15 }
 0x155   :  { %980 = vst.msk [vmem:[%s1973_s3 + $0x10] sm:$0xff] %vm1915_vm4, %v963_v46 }
 0x159   :  { %v952_v22 = vpop.permute.xlu2 %951 }
 0x15a   :  { %v959_v27 = vrot.slane %v952_v22, 4 }
 0x15c   :  { %v967_v37 = vsel %vm420_vm0, %v959_v27, %v952_v22 }
 0x15d   :  { %987 = vst.msk [vmem:[%s1973_s3 + $0x30] sm:$0x11] %vm986_vm8, %v967_v37 }
 0x161   :  { %v948_v34 = vpop.permute.xlu0 %947 }
 0x162   :  { %v957_v50 = vrot.slane %v948_v34, 4 }
 0x164   :  { %v965_v36 = vsel %vm420_vm0, %v957_v50, %v948_v34 }
 0x165   :  { %982 = vst.msk [vmem:[%s1973_s3 + $0x20] sm:$0xff] %vm1915_vm4, %v965_v36 }
 0x169   :  { %v950_v33 = vpop.permute.xlu1 %949 }
 0x16a   :  { %v958_v38 = vrot.slane %v950_v33, 4 }
 0x16c   :  { %v966_v2 = vsel %vm420_vm0, %v958_v38, %v950_v33 }
 0x16d   :  { %983 = vst.msk [vmem:[%s1973_s3 + $0x28] sm:$0xff] %vm1915_vm4, %v966_v2 }

// kernel: inception_v4_stem.14
= control target key start
LH: loop header
LB: loop body
LE: loop exit
PB: predicated region body
PF: predicated region fallthrough
CT: control target
= control target key end

     0   :  { %vm327_vm0 = vcmask 523264   ;;  %vm466_vm1 = vcmask 519168   ;;  %vm473_vm2 = vcmask 516096   ;;  %s909_s1 = inlined_call_operand.vmem [shape: bf16[448,64], index: 1, kind: input, shape index: {}]   ;;  %s910_s0 = inlined_call_operand.vmem [shape: bf16[50,448], index: 0, kind: input, shape index: {}]   ;;  %s911_s2 = inlined_call_operand.vmem [shape: f32[1,64], index: 2, kind: input, shape index: {}]   ;;  %s912_s3 = inlined_call_operand.vmem [shape: bf16[50,64], index: 3, kind: output, shape index: {}]  }
   0x1   :  { %v662_v0 = vld [vmem:[%s909_s1 + $0x38] sm:$0xff]  ;;  %v661_v3 = vld [vmem:[%s909_s1 + $0x30] sm:$0xff]  ;;  %v660_v8 = vld [vmem:[%s909_s1 + $0x28] sm:$0xff] }
   0x2   :  { %v670_v1 = vld [vmem:[%s909_s1 + $0x78] sm:$0xff]  ;;  %340 = vmatpush.bf16.msra.mxu0 %v662_v0  ;;  %v669_v4 = vld [vmem:[%s909_s1 + $0x70] sm:$0xff]  ;;  %v668_v9 = vld [vmem:[%s909_s1 + $0x68] sm:$0xff] }
   0x3   :  { %v678_v2 = vld [vmem:[%s909_s1 + $0xb8] sm:$0xff]  ;;  %368 = vmatpush.bf16.msra.mxu1 %v670_v1  ;;  %v677_v5 = vld [vmem:[%s909_s1 + $0xb0] sm:$0xff]  ;;  %v676_v10 = vld [vmem:[%s909_s1 + $0xa8] sm:$0xff] }
   0x4   :  { %396 = vmatpush.bf16.msra.mxu2 %v678_v2  ;;  %v682_v6 = vld [vmem:[%s909_s1 + $0xd8] sm:$0xff]  ;;  %v681_v7 = vld [vmem:[%s909_s1 + $0xd0] sm:$0xff]  ;;  %v680_v11 = vld [vmem:[%s909_s1 + $0xc8] sm:$0xff] }
   0x5   :  { %428 = vmatpush.bf16.msra.mxu3 %v682_v6  ;;  %v659_v12 = vld [vmem:[%s909_s1 + $0x20] sm:$0xff]  ;;  %v644_v16 = vld [vmem:[%s910_s0 + $0xc] sm:$0xf]  ;;  %v491_v17 = vld [vmem:[%s910_s0 + $0x18] sm:$0xf0] }
   0x6   :  { %341 = vmatpush.bf16.msra.mxu0 %v661_v3  ;;  %v667_v13 = vld [vmem:[%s909_s1 + $0x60] sm:$0xff]  ;;  %v658_v18 = vld [vmem:[%s909_s1 + $0x18] sm:$0xff]  ;;  %v494_v21 = vor.u32 %v644_v16, %v491_v17  ;;  %v657_v22 = vld [vmem:[%s909_s1 + $0x10] sm:$0xff] }
   0x7   :  { %369 = vmatpush.bf16.msra.mxu1 %v669_v4  ;;  %v675_v14 = vld [vmem:[%s909_s1 + $0xa0] sm:$0xff]  ;;  %v666_v19 = vld [vmem:[%s909_s1 + $0x58] sm:$0xff]  ;;  %v665_v23 = vld [vmem:[%s909_s1 + $0x50] sm:$0xff] }
   0x8   :  { %397 = vmatpush.bf16.msra.mxu2 %v677_v5  ;;  %v679_v15 = vld [vmem:[%s909_s1 + $0xc0] sm:$0xff]  ;;  %v674_v20 = vld [vmem:[%s909_s1 + $0x98] sm:$0xff]  ;;  %v673_v24 = vld [vmem:[%s909_s1 + $0x90] sm:$0xff] }
   0x9   :  { %429 = vmatpush.bf16.msra.mxu3 %v681_v7  ;;  %v656_v25 = vld [vmem:[%s909_s1 + $0x8] sm:$0xff]  ;;  %v655_v28 = vld [vmem:[%s909_s1] sm:$0xff]  ;;  %v645_v31 = vld [vmem:[%s910_s0 + $0xc] sm:$0xf0] }
   0xa   :  { %342 = vmatpush.bf16.msra.mxu0 %v660_v8  ;;  %v664_v26 = vld [vmem:[%s909_s1 + $0x48] sm:$0xff]  ;;  %v663_v29 = vld [vmem:[%s909_s1 + $0x40] sm:$0xff]  ;;  %v483_v33 = vld [vmem:[%s910_s0 + $0x10] sm:$0xf0] }
   0xb   :  { %370 = vmatpush.bf16.msra.mxu1 %v668_v9  ;;  %v672_v27 = vld [vmem:[%s909_s1 + $0x88] sm:$0xff]  ;;  %v481_v30 = vld [vmem:[%s910_s0] sm:$0xf]  ;;  %v643_v32 = vld [vmem:[%s910_s0 + $0x4] sm:$0xf] }
   0xc   :  { %398 = vmatpush.bf16.msra.mxu2 %v676_v10  ;;  %v671_v34 = vld [vmem:[%s909_s1 + $0x80] sm:$0xff]  ;;  %v489_v35 = vld [vmem:[%s910_s0 + $0x8] sm:$0xf]  ;;  %v646_v36 = vld [vmem:[%s910_s0 + $0x14] sm:$0xf0]  ;;  %v482_v37 = vor.u32 %v645_v31, %v481_v30  ;;  %v486_v38 = vor.u32 %v643_v32, %v483_v33 }
   0xd   :  { %430 = vmatpush.bf16.msra.mxu3 %v680_v11  ;;  %v648_v39 = vld [vmem:[%s910_s0 + $0x2c] sm:$0xf]  ;;  %v507_v40 = vld [vmem:[%s910_s0 + $0x38] sm:$0xf0]  ;;  %v490_v41 = vor.u32 %v646_v36, %v489_v35  ;;  %v497_v43 = vld [vmem:[%s910_s0 + $0x20] sm:$0xf] }
   0xe   :  { %343 = vmatpush.bf16.msra.mxu0 %v659_v12  ;;  %v510_v42 = vor.u32 %v648_v39, %v507_v40  ;;  %v649_v44 = vld [vmem:[%s910_s0 + $0x2c] sm:$0xf0]  ;;  %v647_v45 = vld [vmem:[%s910_s0 + $0x24] sm:$0xf]  ;;  %v499_v46 = vld [vmem:[%s910_s0 + $0x30] sm:$0xf0] }
   0xf   :  { %371 = vmatpush.bf16.msra.mxu1 %v667_v13  ;;  %v505_v47 = vld [vmem:[%s910_s0 + $0x28] sm:$0xf]  ;;  %v650_v48 = vld [vmem:[%s910_s0 + $0x34] sm:$0xf0]  ;;  %v498_v49 = vor.u32 %v649_v44, %v497_v43  ;;  %v502_v50 = vor.u32 %v647_v45, %v499_v46  ;;  %v652_v51 = vld [vmem:[%s910_s0 + $0x4c] sm:$0xf] }
  0x10   :  { %399 = vmatpush.bf16.msra.mxu2 %v675_v14  ;;  %v523_v52 = vld [vmem:[%s910_s0 + $0x58] sm:$0xf0]  ;;  %v506_v53 = vor.u32 %v650_v48, %v505_v47  ;;  %v513_v55 = vld [vmem:[%s910_s0 + $0x40] sm:$0xf]  ;;  %v28_v56 = vld [vmem:[%s910_s0 + $0x68] sm:$0x11] }
  0x11   :  { %431 = vmatpush.bf16.msra.mxu3 %v679_v15  ;;  %v526_v54 = vor.u32 %v652_v51, %v523_v52  ;;  %v653_v57 = vld [vmem:[%s910_s0 + $0x4c] sm:$0xf0]  ;;  %v651_v58 = vld [vmem:[%s910_s0 + $0x44] sm:$0xf]  ;;  %v515_v59 = vld [vmem:[%s910_s0 + $0x50] sm:$0xf0]  ;;  %v130_v62 = vunpack.c.h.b16 %v28_v56  ;;  %v129_v6 = vunpack.c.l.b16 %v28_v56 }
  0x12   :  { %344 = vmatpush.bf16.msra.mxu0 %v658_v18  ;;  %v521_v60 = vld [vmem:[%s910_s0 + $0x48] sm:$0xf]  ;;  %v654_v61 = vld [vmem:[%s910_s0 + $0x54] sm:$0xf0]  ;;  %v514_v63 = vor.u32 %v653_v57, %v513_v55  ;;  %v518_v0 = vor.u32 %v651_v58, %v515_v59  ;;  %v27_v3 = vld [vmem:[%s910_s0 + $0x60] sm:$0x11] }
  0x13   :  { %372 = vmatpush.bf16.msra.mxu1 %v666_v19  ;;  %v522_v1 = vor.u32 %v654_v61, %v521_v60  ;;  %v146_v2 = vpack.c.b16 %v130_v62, %v130_v62  ;;  %v127_v4 = vunpack.c.l.b16 %v27_v3  ;;  %v128_v5 = vunpack.c.h.b16 %v27_v3  ;;  %v873_v11 = vld [vmem:[%s911_s2] ss:$0 sm:$0xff] }
  0x14   :  { %400 = vmatpush.bf16.msra.mxu2 %v674_v20  ;;  %639 = vmatmul.msk.bf16.vlgmr.msra.gmra.mxu3 %vm327_vm0, %v494_v21  ;;  %v145_v9 = vpack.c.b16 %v129_v6, %v129_v6 }
  0x15   :  { %v143_v7 = vpack.c.b16 %v127_v4, %v127_v4  ;;  %v144_v8 = vpack.c.b16 %v128_v5, %v128_v5 }
  0x16   :  { %345 = vmatpush.bf16.msra.mxu0 %v657_v22 }
  0x17   :  { %373 = vmatpush.bf16.msra.mxu1 %v665_v23 }
  0x18   :  { %401 = vmatpush.bf16.msra.mxu2 %v673_v24 }
  0x1a   :  { %346 = vmatpush.bf16.msra.mxu0 %v656_v25 }
  0x1b   :  { %374 = vmatpush.bf16.msra.mxu1 %v664_v26 }
  0x1c   :  { %402 = vmatpush.bf16.msra.mxu2 %v672_v27 }
  0x1e   :  { %347 = vmatpush.bf16.msra.mxu0 %v655_v28 }
  0x1f   :  { %375 = vmatpush.bf16.msra.mxu1 %v663_v29 }
  0x20   :  { %403 = vmatpush.bf16.msra.mxu2 %v671_v34 }
  0x21   :  { %348 = vmatmul.bf16.vlgmr.msra.gmra.mxu0 %v482_v37 }
  0x22   :  { %376 = vmatmul.bf16.vlgmr.msra.gmra.mxu1 %v486_v38 }
  0x23   :  { %404 = vmatmul.bf16.vlgmr.msra.gmra.mxu2 %v490_v41 }
  0x24   :  { %640 = vmatmul.msk.bf16.gmra.mxu3 %vm327_vm0, %v510_v42 }
  0x31   :  { %353 = vmatmul.bf16.gmra.mxu0 %v498_v49 }
  0x32   :  { %381 = vmatmul.bf16.gmra.mxu1 %v502_v50 }
  0x33   :  { %409 = vmatmul.bf16.gmra.mxu2 %v506_v53 }
  0x34   :  { %641 = vmatmul.msk.bf16.gmra.mxu3 %vm327_vm0, %v526_v54 }
  0x41   :  { %358 = vmatmul.bf16.gmra.mxu0 %v514_v63 }
  0x42   :  { %386 = vmatmul.bf16.gmra.mxu1 %v518_v0 }
  0x43   :  { %414 = vmatmul.bf16.gmra.mxu2 %v522_v1 }
  0x44   :  { %642 = vmatmul.msk.bf16.gmra.mxu3 %vm327_vm0, %v146_v2 }
  0x51   :  { %363 = vmatmul.bf16.gmra.mxu0 %v143_v7 }
  0x52   :  { %391 = vmatmul.bf16.gmra.mxu1 %v144_v8 }
  0x53   :  { %419 = vmatmul.bf16.gmra.mxu2 %v145_v9 }
  0x97   :  { %v433_v10 = vpop.f32.mrf.mxu3 }
  0x9e   :  { %v349_v12 = vpop.f32.mrf.mxu0 }
  0x9f   :  { %v377_v13 = vpop.f32.mrf.mxu1  ;;  %v350_v14 = vadd.f32 %v873_v11, %v349_v12  ;;  %v435_v15 = vpop.f32.mrf.mxu3 }
  0xa1   :  { %v378_v16 = vadd.f32 %v377_v13, %v350_v14 }
  0xa6   :  { %v405_v17 = vpop.f32.mrf.mxu2  ;;  %v351_v19 = vpop.f32.mrf.mxu0 }
  0xa7   :  { %v406_v18 = vadd.f32 %v405_v17, %v378_v16  ;;  %v379_v20 = vpop.f32.mrf.mxu1  ;;  %v438_v21 = vpop.f32.mrf.mxu3  ;;  %v352_v23 = vadd.f32 %v873_v11, %v351_v19 }
  0xa9   :  { %v434_v22 = vadd.f32 %v433_v10, %v406_v18  ;;  %v380_v26 = vadd.f32 %v379_v20, %v352_v23 }
  0xab   :  { %v452_v24 = vmax.f32 %v434_v22, 0.0 }
  0xad   :  { %v459_v25 = vpack.c.bf16 %v452_v24, %v452_v24 }
  0xae   :  { %v407_v27 = vpop.f32.mrf.mxu2  ;;  %v354_v29 = vpop.f32.mrf.mxu0 }
  0xaf   :  { %467 = vst.msk [vmem:[%s912_s3] sm:$0xf] %vm466_vm1, %v459_v25  ;;  %v408_v28 = vadd.f32 %v407_v27, %v380_v26  ;;  %v382_v30 = vpop.f32.mrf.mxu1  ;;  %v355_v31 = vadd.f32 %v873_v11, %v354_v29  ;;  %v440_v32 = vpop.f32.mrf.mxu3 }
  0xb1   :  { %v436_v33 = vadd.f32 %v435_v15, %v408_v28  ;;  %v383_v35 = vadd.f32 %v382_v30, %v355_v31 }
  0xb3   :  { %v453_v34 = vmax.f32 %v436_v33, 0.0 }
  0xb5   :  { %v460_v36 = vpack.c.bf16 %v453_v34, %v453_v34 }
  0xb6   :  { %v410_v37 = vpop.f32.mrf.mxu2  ;;  %v356_v39 = vpop.f32.mrf.mxu0 }
  0xb7   :  { %468 = vst.msk [vmem:[%s912_s3 + $0x4] sm:$0xf] %vm466_vm1, %v460_v36  ;;  %v411_v38 = vadd.f32 %v410_v37, %v383_v35  ;;  %v384_v40 = vpop.f32.mrf.mxu1  ;;  %v443_v41 = vpop.f32.mrf.mxu3  ;;  %v357_v43 = vadd.f32 %v873_v11, %v356_v39 }
  0xb9   :  { %v439_v42 = vadd.f32 %v438_v21, %v411_v38  ;;  %v385_v46 = vadd.f32 %v384_v40, %v357_v43 }
  0xbb   :  { %v454_v44 = vmax.f32 %v439_v42, 0.0 }
  0xbd   :  { %v461_v45 = vpack.c.bf16 %v454_v44, %v454_v44 }
  0xbe   :  { %v412_v47 = vpop.f32.mrf.mxu2  ;;  %v359_v49 = vpop.f32.mrf.mxu0 }
  0xbf   :  { %469 = vst.msk [vmem:[%s912_s3 + $0x8] sm:$0xf] %vm466_vm1, %v461_v45  ;;  %v413_v48 = vadd.f32 %v412_v47, %v385_v46  ;;  %v387_v50 = vpop.f32.mrf.mxu1  ;;  %v360_v51 = vadd.f32 %v873_v11, %v359_v49  ;;  %v445_v52 = vpop.f32.mrf.mxu3 }
  0xc1   :  { %v441_v53 = vadd.f32 %v440_v32, %v413_v48  ;;  %v388_v55 = vadd.f32 %v387_v50, %v360_v51 }
  0xc3   :  { %v455_v54 = vmax.f32 %v441_v53, 0.0 }
  0xc5   :  { %v462_v56 = vpack.c.bf16 %v455_v54, %v455_v54 }
  0xc6   :  { %v415_v57 = vpop.f32.mrf.mxu2  ;;  %v361_v59 = vpop.f32.mrf.mxu0 }
  0xc7   :  { %470 = vst.msk [vmem:[%s912_s3 + $0xc] sm:$0xf] %vm466_vm1, %v462_v56  ;;  %v416_v58 = vadd.f32 %v415_v57, %v388_v55  ;;  %v389_v60 = vpop.f32.mrf.mxu1  ;;  %v448_v61 = vpop.f32.mrf.mxu3  ;;  %v362_v63 = vadd.f32 %v873_v11, %v361_v59 }
  0xc9   :  { %v444_v62 = vadd.f32 %v443_v41, %v416_v58  ;;  %v390_v2 = vadd.f32 %v389_v60, %v362_v63 }
  0xcb   :  { %v456_v0 = vmax.f32 %v444_v62, 0.0 }
  0xcd   :  { %v463_v1 = vpack.c.bf16 %v456_v0, %v456_v0 }
  0xce   :  { %v417_v3 = vpop.f32.mrf.mxu2  ;;  %v364_v5 = vpop.f32.mrf.mxu0 }
  0xcf   :  { %471 = vst.msk [vmem:[%s912_s3 + $0x10] sm:$0xf] %vm466_vm1, %v463_v1  ;;  %v418_v4 = vadd.f32 %v417_v3, %v390_v2  ;;  %v392_v6 = vpop.f32.mrf.mxu1  ;;  %v365_v7 = vadd.f32 %v873_v11, %v364_v5  ;;  %v450_v8 = vpop.f32.mrf.mxu3 }
  0xd1   :  { %v446_v9 = vadd.f32 %v445_v52, %v418_v4  ;;  %v393_v12 = vadd.f32 %v392_v6, %v365_v7 }
  0xd3   :  { %v457_v10 = vmax.f32 %v446_v9, 0.0 }
  0xd5   :  { %v464_v13 = vpack.c.bf16 %v457_v10, %v457_v10 }
  0xd6   :  { %v420_v14 = vpop.f32.mrf.mxu2  ;;  %v366_v16 = vpop.f32.mrf.mxu0 }
  0xd7   :  { %472 = vst.msk [vmem:[%s912_s3 + $0x14] sm:$0xf] %vm466_vm1, %v464_v13  ;;  %v421_v15 = vadd.f32 %v420_v14, %v393_v12  ;;  %v394_v17 = vpop.f32.mrf.mxu1 }
  0xd9   :  { %v449_v18 = vadd.f32 %v448_v61, %v421_v15 }
  0xdb   :  { %v458_v19 = vmax.f32 %v449_v18, 0.0 }
  0xdd   :  { %v465_v20 = vpack.c.bf16 %v458_v19, %v458_v19 }
  0xde   :  { %v422_v21 = vpop.f32.mrf.mxu2 }
  0xdf   :  { %474 = vst.msk [vmem:[%s912_s3 + $0x18] sm:$0x1] %vm473_vm2, %v465_v20 }

// kernel: inception_v4_stem.13
= control target key start
LH: loop header
LB: loop body
LE: loop exit
PB: predicated region body
PF: predicated region fallthrough
CT: control target
= control target key end

     0   :  { %vm141_vm0 = vcmask 261120   ;;  %vm224_vm1 = vcmask 519168   ;;  %vm231_vm2 = vcmask 516096   ;;  %s537_s1 = inlined_call_operand.vmem [shape: bf16[160,128], index: 1, kind: input, shape index: {}]   ;;  %s538_s0 = inlined_call_operand.vmem [shape: bf16[50,160], index: 0, kind: input, shape index: {}]   ;;  %s539_s2 = inlined_call_operand.vmem [shape: f32[1,128], index: 2, kind: input, shape index: {}]   ;;  %s540_s3 = inlined_call_operand.vmem [shape: bf16[50,64], index: 3, kind: output, shape index: {0}]   ;;  %s541_s4 = inlined_call_operand.vmem [shape: bf16[50,64], index: 4, kind: output, shape index: {1}]  }
   0x1   :  { %v357_v0 = vld [vmem:[%s537_s1 + $0x38] sm:$0xff]  ;;  %v359_v1 = vld [vmem:[%s537_s1 + $0x48] sm:$0xff]  ;;  %v356_v2 = vld [vmem:[%s537_s1 + $0x30] sm:$0xff] }
   0x2   :  { %154 = vmatpush.bf16.msra.mxu0 %v357_v0  ;;  %360 = vmatpush.bf16.msra.mxu2 %v357_v0  ;;  %v358_v3 = vld [vmem:[%s537_s1 + $0x40] sm:$0xff]  ;;  %v346_v4 = vld [vmem:[%s538_s0 + $0x14] sm:$0xf]  ;;  %v288_v5 = vld [vmem:[%s538_s0 + $0x18] sm:$0xf0] }
   0x3   :  { %368 = vmatpush.bf16.msra.mxu3 %v359_v1  ;;  %188 = vmatpush.bf16.msra.mxu1 %v359_v1  ;;  %v355_v6 = vld [vmem:[%s537_s1 + $0x28] sm:$0xff]  ;;  %v344_v7 = vld [vmem:[%s538_s0 + $0x4] sm:$0xf]  ;;  %v291_v9 = vor.u32 %v346_v4, %v288_v5  ;;  %v353_v12 = vld [vmem:[%s537_s1 + $0x18] sm:$0xff] }
   0x4   :  { %v280_v8 = vld [vmem:[%s538_s0 + $0x8] sm:$0xf0]  ;;  %v354_v11 = vld [vmem:[%s537_s1 + $0x20] sm:$0xff]  ;;  %v352_v13 = vld [vmem:[%s537_s1 + $0x10] sm:$0xff] }
   0x5   :  { %v283_v10 = vor.u32 %v344_v7, %v280_v8  ;;  %v348_v14 = vld [vmem:[%s538_s0 + $0x24] sm:$0xf]  ;;  %v296_v15 = vld [vmem:[%s538_s0 + $0x28] sm:$0xf0]  ;;  %v278_v19 = vld [vmem:[%s538_s0] sm:$0xf] }
   0x6   :  { %155 = vmatpush.bf16.msra.mxu0 %v356_v2  ;;  %361 = vmatpush.bf16.msra.mxu2 %v356_v2  ;;  %v351_v16 = vld [vmem:[%s537_s1 + $0x8] sm:$0xff]  ;;  %v299_v17 = vor.u32 %v348_v14, %v296_v15  ;;  %v350_v18 = vld [vmem:[%s537_s1] sm:$0xff]  ;;  %v23_v25 = vld [vmem:[%s538_s0 + $0x30] sm:$0x11] }
   0x7   :  { %369 = vmatpush.bf16.msra.mxu3 %v358_v3  ;;  %189 = vmatpush.bf16.msra.mxu1 %v358_v3  ;;  %v345_v20 = vld [vmem:[%s538_s0 + $0x4] sm:$0xf0]  ;;  %v294_v21 = vld [vmem:[%s538_s0 + $0x20] sm:$0xf]  ;;  %v68_v26 = vunpack.c.h.b16 %v23_v25  ;;  %v67_v28 = vunpack.c.l.b16 %v23_v25  ;;  %v286_v29 = vld [vmem:[%s538_s0 + $0x10] sm:$0xf] }
   0x8   :  { %v349_v22 = vld [vmem:[%s538_s0 + $0x24] sm:$0xf0]  ;;  %v279_v23 = vor.u32 %v345_v20, %v278_v19  ;;  %v347_v30 = vld [vmem:[%s538_s0 + $0x14] sm:$0xf0]  ;;  %v371_v35 = vld [vmem:[%s539_s2] ss:$0 sm:$0xff] }
   0x9   :  { %v295_v24 = vor.u32 %v349_v22, %v294_v21  ;;  %v76_v27 = vpack.c.b16 %v68_v26, %v68_v26  ;;  %v287_v31 = vor.u32 %v347_v30, %v286_v29  ;;  %v75_v32 = vpack.c.b16 %v67_v28, %v67_v28  ;;  %s372_s0 = smov 64  }
   0xa   :  { %156 = vmatpush.bf16.msra.mxu0 %v355_v6  ;;  %362 = vmatpush.bf16.msra.mxu2 %v355_v6 }
   0xb   :  { %341 = vmatmul.msk.bf16.vlgmr.msra.gmra.mxu3 %vm141_vm0, %v291_v9  ;;  %340 = vmatmul.msk.bf16.vlgmr.msra.gmra.mxu1 %vm141_vm0, %v283_v10 }
   0xe   :  { %157 = vmatpush.bf16.msra.mxu0 %v354_v11  ;;  %363 = vmatpush.bf16.msra.mxu2 %v354_v11 }
  0x12   :  { %158 = vmatpush.bf16.msra.mxu0 %v353_v12  ;;  %364 = vmatpush.bf16.msra.mxu2 %v353_v12 }
  0x16   :  { %159 = vmatpush.bf16.msra.mxu0 %v352_v13  ;;  %365 = vmatpush.bf16.msra.mxu2 %v352_v13 }
  0x1a   :  { %160 = vmatpush.bf16.msra.mxu0 %v351_v16  ;;  %366 = vmatpush.bf16.msra.mxu2 %v351_v16 }
  0x1b   :  { %342 = vmatmul.msk.bf16.gmra.mxu3 %vm141_vm0, %v299_v17 }
  0x1e   :  { %161 = vmatpush.bf16.msra.mxu0 %v350_v18  ;;  %367 = vmatpush.bf16.msra.mxu2 %v350_v18 }
  0x21   :  { %162 = vmatmul.bf16.vlgmr.msra.gmra.mxu0 %v279_v23  ;;  %172 = vmatmul.bf16.vlgmr.msra.gmra.mxu2 %v295_v24 }
  0x2b   :  { %343 = vmatmul.msk.bf16.gmra.mxu3 %vm141_vm0, %v76_v27 }
  0x31   :  { %167 = vmatmul.bf16.gmra.mxu0 %v287_v31  ;;  %177 = vmatmul.bf16.gmra.mxu2 %v75_v32 }
  0x88   :  { %v191_v36 = vpop.f32.mrf.mxu1 }
  0x8e   :  { %v196_v33 = vpop.f32.mrf.mxu3 }
  0x90   :  { %v193_v45 = vpop.f32.mrf.mxu1 }
  0x96   :  { %v198_v34 = vpop.f32.mrf.mxu3 }
  0x9e   :  { %v163_v37 = vpop.f32.mrf.mxu0  ;;  %v201_v38 = vpop.f32.mrf.mxu3 }
  0x9f   :  { %v164_v39 = vadd.f32 %v371_v35, %v163_v37 }
  0xa1   :  { %v192_v40 = vadd.f32 %v191_v36, %v164_v39 }
  0xa3   :  { %v210_v41 = vmax.f32 %v192_v40, 0.0 }
  0xa4   :  { %v173_v42 = vpop.f32.mrf.mxu2 }
  0xa5   :  { %v174_v43 = vadd.f32 %v371_v35, %v173_v42  ;;  %v217_v44 = vpack.c.bf16 %v210_v41, %v210_v41 }
  0xa6   :  { %v165_v46 = vpop.f32.mrf.mxu0  ;;  %v203_v47 = vpop.f32.mrf.mxu3 }
  0xa7   :  { %v166_v48 = vadd.f32 %v371_v35, %v165_v46  ;;  %240 = vrot.lane.b32.xlu0 %v217_v44, %s372_s0  ;;  %225 = vst.msk [vmem:[%s540_s3] sm:$0xf] %vm224_vm1, %v217_v44  ;;  %v202_v49 = vadd.f32 %v201_v38, %v174_v43 }
  0xa9   :  { %v194_v50 = vadd.f32 %v193_v45, %v166_v48  ;;  %v214_v51 = vmax.f32 %v202_v49, 0.0 }
  0xab   :  { %v211_v52 = vmax.f32 %v194_v50, 0.0  ;;  %v221_v53 = vpack.c.bf16 %v214_v51, %v214_v51 }
  0xac   :  { %v175_v54 = vpop.f32.mrf.mxu2 }
  0xad   :  { %v218_v55 = vpack.c.bf16 %v211_v52, %v211_v52  ;;  %v176_v56 = vadd.f32 %v371_v35, %v175_v54  ;;  %248 = vrot.lane.b32.xlu2 %v221_v53, %s372_s0  ;;  %229 = vst.msk [vmem:[%s540_s3 + $0x10] sm:$0xf] %vm224_vm1, %v221_v53 }
  0xae   :  { %v168_v57 = vpop.f32.mrf.mxu0  ;;  %v206_v58 = vpop.f32.mrf.mxu3 }
  0xaf   :  { %226 = vst.msk [vmem:[%s540_s3 + $0x4] sm:$0xf] %vm224_vm1, %v218_v55  ;;  %v204_v59 = vadd.f32 %v203_v47, %v176_v56  ;;  %v169_v60 = vadd.f32 %v371_v35, %v168_v57  ;;  %242 = vrot.lane.b32.xlu0 %v218_v55, %s372_s0 }
  0xb1   :  { %v215_v61 = vmax.f32 %v204_v59, 0.0  ;;  %v197_v62 = vadd.f32 %v196_v33, %v169_v60 }
  0xb3   :  { %v222_v63 = vpack.c.bf16 %v215_v61, %v215_v61  ;;  %v212_v0 = vmax.f32 %v197_v62, 0.0 }
  0xb4   :  { %v178_v1 = vpop.f32.mrf.mxu2 }
  0xb5   :  { %230 = vst.msk [vmem:[%s540_s3 + $0x14] sm:$0xf] %vm224_vm1, %v222_v63  ;;  %v179_v2 = vadd.f32 %v371_v35, %v178_v1  ;;  %250 = vrot.lane.b32.xlu2 %v222_v63, %s372_s0  ;;  %v219_v3 = vpack.c.bf16 %v212_v0, %v212_v0 }
  0xb6   :  { %v170_v4 = vpop.f32.mrf.mxu0  ;;  %v208_v5 = vpop.f32.mrf.mxu3 }
  0xb7   :  { %v207_v6 = vadd.f32 %v206_v58, %v179_v2  ;;  %v171_v7 = vadd.f32 %v371_v35, %v170_v4  ;;  %244 = vrot.lane.b32.xlu1 %v219_v3, %s372_s0  ;;  %227 = vst.msk [vmem:[%s540_s3 + $0x8] sm:$0xf] %vm224_vm1, %v219_v3 }
  0xb9   :  { %v216_v8 = vmax.f32 %v207_v6, 0.0  ;;  %v199_v9 = vadd.f32 %v198_v34, %v171_v7 }
  0xbb   :  { %v223_v10 = vpack.c.bf16 %v216_v8, %v216_v8  ;;  %v213_v11 = vmax.f32 %v199_v9, 0.0 }
  0xbc   :  { %v180_v12 = vpop.f32.mrf.mxu2 }
  0xbd   :  { %v220_v13 = vpack.c.bf16 %v213_v11, %v213_v11  ;;  %252 = vrot.lane.b32.xlu0 %v223_v10, %s372_s0  ;;  %232 = vst.msk [vmem:[%s540_s3 + $0x18] sm:$0x1] %vm231_vm2, %v223_v10 }
  0xbf   :  { %228 = vst.msk [vmem:[%s540_s3 + $0xc] sm:$0xf] %vm224_vm1, %v220_v13  ;;  %246 = vrot.lane.b32.xlu1 %v220_v13, %s372_s0 }
 0x107   :  { %v249_v14 = vpop.permute.xlu2 %248 }
 0x108   :  { %265 = vst.msk [vmem:[%s541_s4 + $0x10] sm:$0xf] %vm224_vm1, %v249_v14 }
 0x10f   :  { %v251_v15 = vpop.permute.xlu2 %250 }
 0x110   :  { %266 = vst.msk [vmem:[%s541_s4 + $0x14] sm:$0xf] %vm224_vm1, %v251_v15 }
 0x119   :  { %v241_v16 = vpop.permute.xlu0 %240 }
 0x11a   :  { %261 = vst.msk [vmem:[%s541_s4] sm:$0xf] %vm224_vm1, %v241_v16 }
 0x121   :  { %v243_v17 = vpop.permute.xlu0 %242 }
 0x122   :  { %262 = vst.msk [vmem:[%s541_s4 + $0x4] sm:$0xf] %vm224_vm1, %v243_v17 }
 0x129   :  { %v245_v18 = vpop.permute.xlu1 %244 }
 0x12a   :  { %263 = vst.msk [vmem:[%s541_s4 + $0x8] sm:$0xf] %vm224_vm1, %v245_v18 }
 0x12f   :  { %v253_v19 = vpop.permute.xlu0 %252 }
 0x130   :  { %267 = vst.msk [vmem:[%s541_s4 + $0x18] sm:$0x1] %vm231_vm2, %v253_v19 }
 0x131   :  { %v247_v20 = vpop.permute.xlu1 %246 }
 0x132   :  { %264 = vst.msk [vmem:[%s541_s4 + $0xc] sm:$0xf] %vm224_vm1, %v247_v20 }

// kernel: inception_v4_stem.16
= control target key start
LH: loop header
LB: loop body
LE: loop exit
PB: predicated region body
PF: predicated region fallthrough
CT: control target
= control target key end

     0   :  { %vm367_vm0 = vcmask 523264   ;;  %vm470_vm1 = vcmask 781312   ;;  %vm473_vm2 = vcmask 778240   ;;  %vm939_vm3 = vcmask 1044224   ;;  %s1743_s1 = inlined_call_operand.vmem [shape: bf16[576,96], index: 1, kind: input, shape index: {}]   ;;  %s1744_s2 = inlined_call_operand.vmem [shape: f32[1,96], index: 2, kind: input, shape index: {}, may-alias: {2,5}]   ;;  %s1745_s0 = inlined_call_operand.vmem [shape: bf16[18,576], index: 0, kind: input, shape index: {}]   ;;  %s1746_s4 = inlined_call_operand.vmem [shape: bf16[576,96], index: 4, kind: input, shape index: {}]   ;;  %s1747_s3 = inlined_call_operand.vmem [shape: bf16[18,576], index: 3, kind: input, shape index: {}]   ;;  %s1748_s5 = inlined_call_operand.vmem [shape: f32[1,96], index: 5, kind: input, shape index: {}, may-alias: {2,5}]   ;;  %s1749_s6 = inlined_call_operand.vmem [shape: bf16[18,192], index: 6, kind: output, shape index: {}]  }
   0x1   :  { %v1296_v0 = vld [vmem:[%s1743_s1 + $0x38] sm:$0xff]  ;;  %v1295_v4 = vld [vmem:[%s1743_s1 + $0x30] sm:$0xff]  ;;  %v1294_v8 = vld [vmem:[%s1743_s1 + $0x28] sm:$0xff]  ;;  %vm940_vm4 = vcmask 523268   ;;  %vm932_vm5 = vcmask 785408   ;;  %vm944_vm7 = vcmask 1041152  }
   0x2   :  { %v1304_v1 = vld [vmem:[%s1743_s1 + $0x78] sm:$0xff]  ;;  %374 = vmatpush.bf16.msra.mxu0 %v1296_v0  ;;  %v1303_v5 = vld [vmem:[%s1743_s1 + $0x70] sm:$0xff]  ;;  %v1302_v9 = vld [vmem:[%s1743_s1 + $0x68] sm:$0xff]  ;;  %vm945_vm8 = vcmask 520196  }
   0x3   :  { %v1312_v2 = vld [vmem:[%s1743_s1 + $0xb8] sm:$0xff]  ;;  %392 = vmatpush.bf16.msra.mxu1 %v1304_v1  ;;  %v1311_v6 = vld [vmem:[%s1743_s1 + $0xb0] sm:$0xff]  ;;  %v1310_v10 = vld [vmem:[%s1743_s1 + $0xa8] sm:$0xff] }
   0x4   :  { %v1320_v3 = vld [vmem:[%s1743_s1 + $0xf8] sm:$0xff]  ;;  %410 = vmatpush.bf16.msra.mxu2 %v1312_v2  ;;  %v1319_v7 = vld [vmem:[%s1743_s1 + $0xf0] sm:$0xff]  ;;  %v1318_v11 = vld [vmem:[%s1743_s1 + $0xe8] sm:$0xff] }
   0x5   :  { %428 = vmatpush.bf16.msra.mxu3 %v1320_v3  ;;  %v1293_v12 = vld [vmem:[%s1743_s1 + $0x20] sm:$0xff]  ;;  %v1292_v16 = vld [vmem:[%s1743_s1 + $0x18] sm:$0xff]  ;;  %v1291_v20 = vld [vmem:[%s1743_s1 + $0x10] sm:$0xff] }
   0x6   :  { %375 = vmatpush.bf16.msra.mxu0 %v1295_v4  ;;  %v1301_v13 = vld [vmem:[%s1743_s1 + $0x60] sm:$0xff]  ;;  %v1300_v17 = vld [vmem:[%s1743_s1 + $0x58] sm:$0xff]  ;;  %v1299_v21 = vld [vmem:[%s1743_s1 + $0x50] sm:$0xff] }
   0x7   :  { %393 = vmatpush.bf16.msra.mxu1 %v1303_v5  ;;  %v1309_v14 = vld [vmem:[%s1743_s1 + $0xa0] sm:$0xff]  ;;  %v1308_v18 = vld [vmem:[%s1743_s1 + $0x98] sm:$0xff]  ;;  %v1307_v22 = vld [vmem:[%s1743_s1 + $0x90] sm:$0xff] }
   0x8   :  { %411 = vmatpush.bf16.msra.mxu2 %v1311_v6  ;;  %v1317_v15 = vld [vmem:[%s1743_s1 + $0xe0] sm:$0xff]  ;;  %v1316_v19 = vld [vmem:[%s1743_s1 + $0xd8] sm:$0xff]  ;;  %v1315_v23 = vld [vmem:[%s1743_s1 + $0xd0] sm:$0xff] }
   0x9   :  { %429 = vmatpush.bf16.msra.mxu3 %v1319_v7  ;;  %v1290_v24 = vld [vmem:[%s1743_s1 + $0x8] sm:$0xff]  ;;  %v1289_v28 = vld [vmem:[%s1743_s1] sm:$0xff]  ;;  %v1286_v33 = vld [vmem:[%s1745_s0 + $0x10] sm:$0xf0] }
   0xa   :  { %376 = vmatpush.bf16.msra.mxu0 %v1294_v8  ;;  %v1298_v25 = vld [vmem:[%s1743_s1 + $0x48] sm:$0xff]  ;;  %v1297_v29 = vld [vmem:[%s1743_s1 + $0x40] sm:$0xff]  ;;  %v956_v35 = vld [vmem:[%s1745_s0 + $0x14] sm:$0xf0] }
   0xb   :  { %394 = vmatpush.bf16.msra.mxu1 %v1302_v9  ;;  %v1306_v26 = vld [vmem:[%s1743_s1 + $0x88] sm:$0xff]  ;;  %v1305_v30 = vld [vmem:[%s1743_s1 + $0x80] sm:$0xff]  ;;  %v1287_v37 = vld [vmem:[%s1745_s0 + $0x18] sm:$0xf0] }
   0xc   :  { %412 = vmatpush.bf16.msra.mxu2 %v1310_v10  ;;  %v1314_v27 = vld [vmem:[%s1743_s1 + $0xc8] sm:$0xff]  ;;  %v1313_v31 = vld [vmem:[%s1743_s1 + $0xc0] sm:$0xff]  ;;  %v1324_v40 = vld [vmem:[%s1743_s1 + $0x118] sm:$0xff] }
   0xd   :  { %430 = vmatpush.bf16.msra.mxu3 %v1318_v11  ;;  %v954_v32 = vld [vmem:[%s1745_s0] sm:$0xf]  ;;  %v1284_v34 = vld [vmem:[%s1745_s0 + $0x4] sm:$0xf]  ;;  %v962_v36 = vld [vmem:[%s1745_s0 + $0x8] sm:$0xf] }
   0xe   :  { %377 = vmatpush.bf16.msra.mxu0 %v1293_v12  ;;  %v1285_v38 = vld [vmem:[%s1745_s0 + $0xc] sm:$0xf]  ;;  %v964_v39 = vld [vmem:[%s1745_s0 + $0x1c] sm:$0xf0]  ;;  %v1337_v41 = vld [vmem:[%s1746_s4 + $0x38] sm:$0xff]  ;;  %v955_v42 = vor.u32 %v1286_v33, %v954_v32  ;;  %v959_v43 = vor.u32 %v1284_v34, %v956_v35  ;;  %v963_v44 = vor.u32 %v1287_v37, %v962_v36 }
   0xf   :  { %395 = vmatpush.bf16.msra.mxu1 %v1301_v13  ;;  %v967_v45 = vor.u32 %v1285_v38, %v964_v39  ;;  %v1345_v46 = vld [vmem:[%s1746_s4 + $0x78] sm:$0xff]  ;;  %v1336_v48 = vld [vmem:[%s1746_s4 + $0x30] sm:$0xff]  ;;  %v1335_v52 = vld [vmem:[%s1746_s4 + $0x28] sm:$0xff] }
  0x10   :  { %413 = vmatpush.bf16.msra.mxu2 %v1309_v14  ;;  %v1353_v47 = vld [vmem:[%s1746_s4 + $0xb8] sm:$0xff]  ;;  %v1323_v49 = vld [vmem:[%s1743_s1 + $0x110] sm:$0xff]  ;;  %v1322_v53 = vld [vmem:[%s1743_s1 + $0x108] sm:$0xff] }
  0x11   :  { %431 = vmatpush.bf16.msra.mxu3 %v1317_v15  ;;  %v1344_v50 = vld [vmem:[%s1746_s4 + $0x70] sm:$0xff]  ;;  %v30_v54 = vld [vmem:[%s1745_s0 + $0x28] sm:$0x11]  ;;  %v1334_v58 = vld [vmem:[%s1746_s4 + $0x20] sm:$0xff] }
  0x12   :  { %378 = vmatpush.bf16.msra.mxu0 %v1292_v16  ;;  %v1352_v51 = vld [vmem:[%s1746_s4 + $0xb0] sm:$0xff]  ;;  %v1343_v55 = vld [vmem:[%s1746_s4 + $0x68] sm:$0xff]  ;;  %v1321_v59 = vld [vmem:[%s1743_s1 + $0x100] sm:$0xff]  ;;  %v128_v60 = vunpack.c.l.b16 %v30_v54  ;;  %v129_v61 = vunpack.c.h.b16 %v30_v54 }
  0x13   :  { %396 = vmatpush.bf16.msra.mxu1 %v1300_v17  ;;  %v1351_v56 = vld [vmem:[%s1746_s4 + $0xa8] sm:$0xff]  ;;  %v31_v57 = vld [vmem:[%s1745_s0 + $0x30] sm:$0x11]  ;;  %v1588_v62 = vld [vmem:[%s1746_s4 + $0xf8] sm:$0xff] }
  0x14   :  { %414 = vmatpush.bf16.msra.mxu2 %v1308_v18  ;;  %v130_v63 = vunpack.c.l.b16 %v31_v57  ;;  %v131_v0 = vunpack.c.h.b16 %v31_v57  ;;  %v1342_v1 = vld [vmem:[%s1746_s4 + $0x60] sm:$0xff]  ;;  %v1333_v3 = vld [vmem:[%s1746_s4 + $0x18] sm:$0xff]  ;;  %v138_v4 = vpack.c.b16 %v128_v60, %v128_v60  ;;  %v139_v5 = vpack.c.b16 %v129_v61, %v129_v61  ;;  %v1332_v10 = vld [vmem:[%s1746_s4 + $0x10] sm:$0xff] }
  0x15   :  { %432 = vmatpush.bf16.msra.mxu3 %v1316_v19  ;;  %v1350_v2 = vld [vmem:[%s1746_s4 + $0xa0] sm:$0xff]  ;;  %v1341_v8 = vld [vmem:[%s1746_s4 + $0x58] sm:$0xff]  ;;  %v1360_v11 = vld [vmem:[%s1746_s4 + $0xf0] sm:$0xff] }
  0x16   :  { %379 = vmatpush.bf16.msra.mxu0 %v1291_v20  ;;  %v140_v6 = vpack.c.b16 %v130_v63, %v130_v63  ;;  %v141_v7 = vpack.c.b16 %v131_v0, %v131_v0  ;;  %v1349_v9 = vld [vmem:[%s1746_s4 + $0x98] sm:$0xff]  ;;  %v1340_v12 = vld [vmem:[%s1746_s4 + $0x50] sm:$0xff]  ;;  %v1331_v14 = vld [vmem:[%s1746_s4 + $0x8] sm:$0xff] }
  0x17   :  { %397 = vmatpush.bf16.msra.mxu1 %v1299_v21  ;;  %v1348_v13 = vld [vmem:[%s1746_s4 + $0x90] sm:$0xff]  ;;  %v1359_v15 = vld [vmem:[%s1746_s4 + $0xe8] sm:$0xff]  ;;  %v1330_v18 = vld [vmem:[%s1746_s4] sm:$0xff] }
  0x18   :  { %415 = vmatpush.bf16.msra.mxu2 %v1307_v22  ;;  %v1339_v16 = vld [vmem:[%s1746_s4 + $0x48] sm:$0xff]  ;;  %v1358_v19 = vld [vmem:[%s1746_s4 + $0xe0] sm:$0xff]  ;;  %v970_v22 = vld [vmem:[%s1745_s0 + $0x10] sm:$0xf] }
  0x19   :  { %433 = vmatpush.bf16.msra.mxu3 %v1315_v23  ;;  %v1347_v17 = vld [vmem:[%s1746_s4 + $0x88] sm:$0xff]  ;;  %v1338_v20 = vld [vmem:[%s1746_s4 + $0x40] sm:$0xff]  ;;  %v1364_v35 = vld [vmem:[%s1746_s4 + $0x110] sm:$0xff] }
  0x1a   :  { %380 = vmatpush.bf16.msra.mxu0 %v1290_v24  ;;  %v1346_v21 = vld [vmem:[%s1746_s4 + $0x80] sm:$0xff]  ;;  %v1365_v24 = vld [vmem:[%s1746_s4 + $0x118] sm:$0xff]  ;;  %v1363_v37 = vld [vmem:[%s1746_s4 + $0x108] sm:$0xff] }
  0x1b   :  { %398 = vmatpush.bf16.msra.mxu1 %v1298_v25  ;;  %v1288_v23 = vld [vmem:[%s1745_s0 + $0x20] sm:$0xf0]  ;;  %v1120_v25 = vld [vmem:[%s1747_s3] sm:$0xf]  ;;  %v1357_v36 = vld [vmem:[%s1746_s4 + $0xd8] sm:$0xff] }
  0x1c   :  { %416 = vmatpush.bf16.msra.mxu2 %v1306_v26  ;;  %v1327_v26 = vld [vmem:[%s1747_s3 + $0x10] sm:$0xf0]  ;;  %v32_v39 = vld [vmem:[%s1745_s0 + $0x38] sm:$0x1]  ;;  %v1326_v54 = vld [vmem:[%s1747_s3 + $0xc] sm:$0xf] }
  0x1d   :  { %434 = vmatpush.bf16.msra.mxu3 %v1314_v27  ;;  %v1325_v27 = vld [vmem:[%s1747_s3 + $0x4] sm:$0xf]  ;;  %v1121_v32 = vor.u32 %v1327_v26, %v1120_v25  ;;  %v1356_v38 = vld [vmem:[%s1746_s4 + $0xd0] sm:$0xff]  ;;  %vm941_vm6 = vmor %vm940_vm4, %vm939_vm3 }
  0x1e   :  { %381 = vmatpush.bf16.msra.mxu0 %v1289_v28  ;;  %v1122_v28 = vld [vmem:[%s1747_s3 + $0x14] sm:$0xf0]  ;;  %v1136_v57 = vld [vmem:[%s1747_s3 + $0x10] sm:$0xf]  ;;  %vm946_vm9 = vmor %vm945_vm8, %vm944_vm7 }
  0x1f   :  { %399 = vmatpush.bf16.msra.mxu1 %v1297_v29  ;;  %v1128_v29 = vld [vmem:[%s1747_s3 + $0x8] sm:$0xf]  ;;  %v1125_v33 = vor.u32 %v1325_v27, %v1122_v28 }
  0x20   :  { %417 = vmatpush.bf16.msra.mxu2 %v1305_v30  ;;  %v1328_v30 = vld [vmem:[%s1747_s3 + $0x18] sm:$0xf0] }
  0x21   :  { %435 = vmatpush.bf16.msra.mxu3 %v1313_v31  ;;  %382 = vmatmul.bf16.vlgmr.msra.gmra.mxu0 %v955_v42  ;;  %v971_v31 = vor.u32 %v1288_v23, %v970_v22  ;;  %v1129_v34 = vor.u32 %v1328_v30, %v1128_v29  ;;  %v1355_v42 = vld [vmem:[%s1746_s4 + $0xc8] sm:$0xff] }
  0x22   :  { %450 = vmatpush.bf16.msrb.mxu0 %v1324_v40  ;;  %400 = vmatmul.bf16.vlgmr.msra.gmra.mxu1 %v959_v43  ;;  %v481_v40 = vld [vmem:[%s1747_s3 + $0x28] sm:$0x11]  ;;  %v1362_v43 = vld [vmem:[%s1746_s4 + $0x100] sm:$0xff] }
  0x23   :  { %824 = vmatpush.bf16.msrb.mxu1 %v1337_v41  ;;  %418 = vmatmul.bf16.vlgmr.msra.gmra.mxu2 %v963_v44  ;;  %v482_v41 = vld [vmem:[%s1747_s3 + $0x30] sm:$0x11]  ;;  %v132_v44 = vunpack.c.l.b16 %v32_v39 }
  0x24   :  { %436 = vmatmul.bf16.vlgmr.msra.gmra.mxu3 %v967_v45  ;;  %842 = vmatpush.bf16.msrb.mxu2 %v1345_v46  ;;  %v579_v45 = vunpack.c.l.b16 %v481_v40  ;;  %v580_v46 = vunpack.c.h.b16 %v481_v40 }
  0x25   :  { %860 = vmatpush.bf16.msrb.mxu3 %v1353_v47  ;;  %v581_v47 = vunpack.c.l.b16 %v482_v41 }
  0x26   :  { %451 = vmatpush.bf16.msrb.mxu0 %v1323_v49  ;;  %v142_v49 = vpack.c.b16 %v132_v44, %v132_v44 }
  0x27   :  { %825 = vmatpush.bf16.msrb.mxu1 %v1336_v48  ;;  %v1354_v48 = vld [vmem:[%s1746_s4 + $0xc0] sm:$0xff] }
  0x28   :  { %843 = vmatpush.bf16.msrb.mxu2 %v1344_v50  ;;  %v589_v50 = vpack.c.b16 %v579_v45, %v579_v45 }
  0x29   :  { %861 = vmatpush.bf16.msrb.mxu3 %v1352_v51  ;;  %v590_v51 = vpack.c.b16 %v580_v46, %v580_v46 }
  0x2a   :  { %452 = vmatpush.bf16.msrb.mxu0 %v1322_v53  ;;  %v483_v53 = vld [vmem:[%s1747_s3 + $0x38] sm:$0x1] }
  0x2b   :  { %826 = vmatpush.bf16.msrb.mxu1 %v1335_v52  ;;  %v591_v52 = vpack.c.b16 %v581_v47, %v581_v47  ;;  %v1380_v47 = vld [vmem:[%s1748_s5] ss:$0 sm:$0xff]  ;;  %s1381_s5 = smov 96  }
  0x2c   :  { %844 = vmatpush.bf16.msrb.mxu2 %v1343_v55  ;;  %v582_v55 = vunpack.c.h.b16 %v482_v41 }
  0x2d   :  { %862 = vmatpush.bf16.msrb.mxu3 %v1351_v56  ;;  %v1130_v56 = vld [vmem:[%s1747_s3 + $0x1c] sm:$0xf0] }
  0x2e   :  { %453 = vmatpush.bf16.msrb.mxu0 %v1321_v59  ;;  %v583_v59 = vunpack.c.l.b16 %v483_v53  ;;  %v1133_v60 = vor.u32 %v1326_v54, %v1130_v56 }
  0x2f   :  { %827 = vmatpush.bf16.msrb.mxu1 %v1334_v58  ;;  %v1329_v58 = vld [vmem:[%s1747_s3 + $0x20] sm:$0xf0] }
  0x30   :  { %845 = vmatpush.bf16.msrb.mxu2 %v1342_v1  ;;  %v1137_v61 = vor.u32 %v1329_v58, %v1136_v57  ;;  %v593_v63 = vpack.c.b16 %v583_v59, %v583_v59 }
  0x31   :  { %863 = vmatpush.bf16.msrb.mxu3 %v1350_v2  ;;  %387 = vmatmul.bf16.gmra.mxu0 %v138_v4 }
  0x32   :  { %878 = vmatpush.bf16.msra.mxu0 %v1588_v62  ;;  %405 = vmatmul.bf16.gmra.mxu1 %v139_v5 }
  0x33   :  { %828 = vmatpush.bf16.msrb.mxu1 %v1333_v3  ;;  %423 = vmatmul.bf16.gmra.mxu2 %v140_v6 }
  0x34   :  { %441 = vmatmul.bf16.gmra.mxu3 %v141_v7  ;;  %846 = vmatpush.bf16.msrb.mxu2 %v1341_v8 }
  0x35   :  { %864 = vmatpush.bf16.msrb.mxu3 %v1349_v9 }
  0x36   :  { %879 = vmatpush.bf16.msra.mxu0 %v1360_v11 }
  0x37   :  { %829 = vmatpush.bf16.msrb.mxu1 %v1332_v10  ;;  %v1379_v10 = vld [vmem:[%s1744_s2] ss:$0 sm:$0xff] }
  0x38   :  { %847 = vmatpush.bf16.msrb.mxu2 %v1340_v12 }
  0x39   :  { %865 = vmatpush.bf16.msrb.mxu3 %v1348_v13 }
  0x3a   :  { %880 = vmatpush.bf16.msra.mxu0 %v1359_v15 }
  0x3b   :  { %830 = vmatpush.bf16.msrb.mxu1 %v1331_v14 }
  0x3c   :  { %848 = vmatpush.bf16.msrb.mxu2 %v1339_v16 }
  0x3d   :  { %866 = vmatpush.bf16.msrb.mxu3 %v1347_v17 }
  0x3e   :  { %881 = vmatpush.bf16.msra.mxu0 %v1358_v19 }
  0x3f   :  { %831 = vmatpush.bf16.msrb.mxu1 %v1330_v18 }
  0x40   :  { %849 = vmatpush.bf16.msrb.mxu2 %v1338_v20 }
  0x41   :  { %867 = vmatpush.bf16.msrb.mxu3 %v1346_v21  ;;  %1116 = vmatmul.msk.bf16.vlgmr.msrb.gmra.mxu0 %vm367_vm0, %v971_v31 }
  0x42   :  { %832 = vmatmul.bf16.vlgmr.msrb.gmra.mxu1 %v1121_v32  ;;  %882 = vmatpush.bf16.msra.mxu0 %v1357_v36 }
  0x43   :  { %900 = vmatpush.bf16.msra.mxu1 %v1365_v24  ;;  %850 = vmatmul.bf16.vlgmr.msrb.gmra.mxu2 %v1125_v33 }
  0x44   :  { %1366 = vmatpush.bf16.msra.mxu2 %v1588_v62  ;;  %868 = vmatmul.bf16.vlgmr.msrb.gmra.mxu3 %v1129_v34  ;;  %v592_v62 = vpack.c.b16 %v582_v55, %v582_v55 }
  0x45   :  { %1374 = vmatpush.bf16.msra.mxu3 %v1365_v24 }
  0x46   :  { %883 = vmatpush.bf16.msra.mxu0 %v1356_v38 }
  0x47   :  { %901 = vmatpush.bf16.msra.mxu1 %v1364_v35 }
  0x48   :  { %1367 = vmatpush.bf16.msra.mxu2 %v1360_v11 }
  0x49   :  { %1375 = vmatpush.bf16.msra.mxu3 %v1364_v35 }
  0x4a   :  { %884 = vmatpush.bf16.msra.mxu0 %v1355_v42 }
  0x4b   :  { %902 = vmatpush.bf16.msra.mxu1 %v1363_v37 }
  0x4c   :  { %1368 = vmatpush.bf16.msra.mxu2 %v1359_v15 }
  0x4d   :  { %1376 = vmatpush.bf16.msra.mxu3 %v1363_v37 }
  0x4e   :  { %885 = vmatpush.bf16.msra.mxu0 %v1354_v48 }
  0x4f   :  { %903 = vmatpush.bf16.msra.mxu1 %v1362_v43 }
  0x50   :  { %1369 = vmatpush.bf16.msra.mxu2 %v1358_v19 }
  0x51   :  { %1377 = vmatpush.bf16.msra.mxu3 %v1362_v43  ;;  %1117 = vmatmul.msk.bf16.gmra.mxu0 %vm367_vm0, %v142_v49 }
  0x52   :  { %837 = vmatmul.bf16.gmra.mxu1 %v589_v50 }
  0x53   :  { %855 = vmatmul.bf16.gmra.mxu2 %v590_v51 }
  0x54   :  { %1370 = vmatpush.bf16.msra.mxu2 %v1357_v36  ;;  %873 = vmatmul.bf16.gmra.mxu3 %v591_v52 }
  0x58   :  { %1371 = vmatpush.bf16.msra.mxu2 %v1356_v38 }
  0x5c   :  { %1372 = vmatpush.bf16.msra.mxu2 %v1355_v42 }
  0x60   :  { %1373 = vmatpush.bf16.msra.mxu2 %v1354_v48 }
  0x61   :  { %886 = vmatmul.bf16.vlgmr.msra.gmra.mxu0 %v1133_v60 }
  0x62   :  { %1282 = vmatmul.msk.bf16.vlgmr.msra.gmra.mxu1 %vm367_vm0, %v1137_v61 }
  0x63   :  { %891 = vmatmul.bf16.vlgmr.msra.gmra.mxu2 %v592_v62 }
  0x64   :  { %1283 = vmatmul.msk.bf16.vlgmr.msra.gmra.mxu3 %vm367_vm0, %v593_v63 }
  0x9e   :  { %v383_v0 = vpop.f32.mrf.mxu0 }
  0x9f   :  { %v401_v1 = vpop.f32.mrf.mxu1  ;;  %v384_v11 = vadd.f32 %v1379_v10, %v383_v0 }
  0xa1   :  { %v402_v16 = vadd.f32 %v401_v1, %v384_v11 }
  0xa6   :  { %v419_v2 = vpop.f32.mrf.mxu2  ;;  %v385_v4 = vpop.f32.mrf.mxu0 }
  0xa7   :  { %v437_v3 = vpop.f32.mrf.mxu3  ;;  %v403_v5 = vpop.f32.mrf.mxu1  ;;  %v420_v17 = vadd.f32 %v419_v2, %v402_v16  ;;  %v386_v18 = vadd.f32 %v1379_v10, %v385_v4 }
  0xa9   :  { %v438_v19 = vadd.f32 %v437_v3, %v420_v17  ;;  %v404_v24 = vadd.f32 %v403_v5, %v386_v18 }
  0xae   :  { %v421_v6 = vpop.f32.mrf.mxu2  ;;  %v388_v8 = vpop.f32.mrf.mxu0 }
  0xaf   :  { %v439_v7 = vpop.f32.mrf.mxu3  ;;  %v406_v9 = vpop.f32.mrf.mxu1  ;;  %v422_v26 = vadd.f32 %v421_v6, %v404_v24  ;;  %v389_v28 = vadd.f32 %v1379_v10, %v388_v8 }
  0xb1   :  { %v440_v30 = vadd.f32 %v439_v7, %v422_v26  ;;  %v407_v35 = vadd.f32 %v406_v9, %v389_v28 }
  0xb6   :  { %v424_v12 = vpop.f32.mrf.mxu2  ;;  %v390_v14 = vpop.f32.mrf.mxu0 }
  0xb7   :  { %v442_v13 = vpop.f32.mrf.mxu3  ;;  %v408_v15 = vpop.f32.mrf.mxu1  ;;  %v425_v37 = vadd.f32 %v424_v12, %v407_v35 }
  0xb9   :  { %v443_v40 = vadd.f32 %v442_v13, %v425_v37 }
  0xbe   :  { %v426_v20 = vpop.f32.mrf.mxu2  ;;  %v455_v22 = vpop.f32.mrf.mxu0 }
  0xbf   :  { %v444_v21 = vpop.f32.mrf.mxu3  ;;  %v833_v23 = vpop.f32.mrf.mxu1  ;;  %v456_v25 = vadd.f32 %v455_v22, %v438_v19 }
  0xc0   :  { %v834_v53 = vadd.f32 %v1380_v47, %v833_v23 }
  0xc1   :  { %v464_v27 = vmax.f32 %v456_v25, 0.0 }
  0xc3   :  { %v467_v29 = vpack.c.bf16 %v464_v27, %v464_v27 }
  0xc5   :  { %471 = vst.msk [vmem:[%s1749_s6] sm:$0xf] %vm470_vm1, %v467_v29 }
  0xc6   :  { %v851_v31 = vpop.f32.mrf.mxu2  ;;  %v457_v33 = vpop.f32.mrf.mxu0 }
  0xc7   :  { %v869_v32 = vpop.f32.mrf.mxu3  ;;  %v835_v34 = vpop.f32.mrf.mxu1  ;;  %v458_v36 = vadd.f32 %v457_v33, %v440_v30  ;;  %v852_v54 = vadd.f32 %v851_v31, %v834_v53 }
  0xc8   :  { %v836_v61 = vadd.f32 %v1380_v47, %v835_v34 }
  0xc9   :  { %v465_v38 = vmax.f32 %v458_v36, 0.0  ;;  %v870_v55 = vadd.f32 %v869_v32, %v852_v54 }
  0xcb   :  { %v468_v39 = vpack.c.bf16 %v465_v38, %v465_v38 }
  0xcd   :  { %472 = vst.msk [vmem:[%s1749_s6 + $0x8] sm:$0xf] %vm470_vm1, %v468_v39 }
  0xce   :  { %v853_v41 = vpop.f32.mrf.mxu2  ;;  %v460_v43 = vpop.f32.mrf.mxu0 }
  0xcf   :  { %v871_v42 = vpop.f32.mrf.mxu3  ;;  %v838_v44 = vpop.f32.mrf.mxu1  ;;  %v461_v45 = vadd.f32 %v460_v43, %v443_v40  ;;  %v854_v0 = vadd.f32 %v853_v41, %v836_v61 }
  0xd0   :  { %v839_v58 = vadd.f32 %v1380_v47, %v838_v44 }
  0xd1   :  { %v466_v46 = vmax.f32 %v461_v45, 0.0  ;;  %v872_v4 = vadd.f32 %v871_v42, %v854_v0 }
  0xd3   :  { %v469_v48 = vpack.c.bf16 %v466_v46, %v466_v46 }
  0xd5   :  { %474 = vst.msk [vmem:[%s1749_s6 + $0x10] sm:$0x1] %vm473_vm2, %v469_v48 }
  0xd6   :  { %v856_v49 = vpop.f32.mrf.mxu2  ;;  %v462_v51 = vpop.f32.mrf.mxu0 }
  0xd7   :  { %v874_v50 = vpop.f32.mrf.mxu3  ;;  %v840_v52 = vpop.f32.mrf.mxu1  ;;  %v857_v63 = vadd.f32 %v856_v49, %v839_v58 }
  0xd9   :  { %v875_v3 = vadd.f32 %v874_v50, %v857_v63 }
  0xde   :  { %v858_v56 = vpop.f32.mrf.mxu2  ;;  %v887_v59 = vpop.f32.mrf.mxu0 }
  0xdf   :  { %v876_v57 = vpop.f32.mrf.mxu3  ;;  %v905_v60 = vpop.f32.mrf.mxu1  ;;  %v888_v62 = vadd.f32 %v887_v59, %v870_v55 }
  0xe1   :  { %v906_v1 = vadd.f32 %v905_v60, %v888_v62 }
  0xe3   :  { %v914_v2 = vmax.f32 %v906_v1, 0.0 }
  0xe5   :  { %v917_v7 = vpack.c.bf16 %v914_v2, %v914_v2 }
  0xe6   :  { %v892_v5 = vpop.f32.mrf.mxu2  ;;  %v889_v9 = vpop.f32.mrf.mxu0 }
  0xe7   :  { %v910_v6 = vpop.f32.mrf.mxu3  ;;  %v893_v8 = vadd.f32 %v892_v5, %v875_v3  ;;  %v890_v10 = vadd.f32 %v889_v9, %v872_v4  ;;  %923 = vrot.lane.b32.xlu0 %v917_v7, %s1381_s5  ;;  %v907_v12 = vpop.f32.mrf.mxu1 }
  0xe9   :  { %v911_v11 = vadd.f32 %v910_v6, %v893_v8  ;;  %v908_v13 = vadd.f32 %v907_v12, %v890_v10 }
  0xeb   :  { %v916_v14 = vmax.f32 %v911_v11, 0.0  ;;  %v915_v15 = vmax.f32 %v908_v13, 0.0 }
  0xed   :  { %v919_v16 = vpack.c.bf16 %v916_v14, %v916_v14  ;;  %v918_v17 = vpack.c.bf16 %v915_v15, %v915_v15 }
  0xee   :  { %v894_v18 = vpop.f32.mrf.mxu2 }
  0xef   :  { %v912_v19 = vpop.f32.mrf.mxu3  ;;  %927 = vrot.lane.b32.xlu1 %v919_v16, %s1381_s5  ;;  %925 = vrot.lane.b32.xlu0 %v918_v17, %s1381_s5 }
 0x159   :  { %v924_v20 = vpop.permute.xlu0 %923 }
 0x15a   :  { %v929_v21 = vrot.slane %v924_v20, 4 }
 0x15c   :  { %v933_v22 = vsel %vm932_vm5, %v929_v21, %v924_v20 }
 0x15d   :  { %942 = vst.msk [vmem:[%s1749_s6] sm:$0xff] %vm941_vm6, %v933_v22 }
 0x161   :  { %v928_v23 = vpop.permute.xlu1 %927  ;;  %v926_v25 = vpop.permute.xlu0 %925 }
 0x162   :  { %v931_v24 = vrot.slane %v928_v23, 4  ;;  %v930_v26 = vrot.slane %v926_v25, 4 }
 0x164   :  { %v935_v27 = vsel %vm932_vm5, %v931_v24, %v928_v23  ;;  %v934_v28 = vsel %vm932_vm5, %v930_v26, %v926_v25 }
 0x165   :  { %947 = vst.msk [vmem:[%s1749_s6 + $0x10] sm:$0x11] %vm946_vm9, %v935_v27 }
 0x166   :  { %943 = vst.msk [vmem:[%s1749_s6 + $0x8] sm:$0xff] %vm941_vm6, %v934_v28 }

// kernel: inception_v4_stem.17
= control target key start
LH: loop header
LB: loop body
LE: loop exit
PB: predicated region body
PF: predicated region fallthrough
CT: control target
= control target key end

     0   :  { %s2969_s18 = smov 64   ;;  %vm1350_vm0 = vcmask 523264   ;;  %vm1846_vm1 = vcmask 1041408   ;;  %vm1849_vm2 = vcmask 519170   ;;  %vm1863_vm4 = vcmask 1041920   ;;  %s4436_s1 = inlined_call_operand.vmem [shape: bf16[1728,192], index: 1, kind: input, shape index: {}]   ;;  %s4437_s0 = inlined_call_operand.vmem [shape: bf16[2,1728], index: 0, kind: input, shape index: {}]   ;;  %s4438_s2 = inlined_call_operand.vmem [shape: f32[1,192], index: 2, kind: input, shape index: {}]   ;;  %s4439_s3 = inlined_call_operand.vmem [shape: f32[2,384], index: 3, kind: output, shape index: {}]  }
   0x1   :  { %v2057_v0 = vld [vmem:[%s4436_s1 + $0x170] sm:$0xf]  ;;  %v2784_v1 = vld [vmem:[%s4436_s1 + $0x174] sm:$0xf0]  ;;  %v1720_v2 = vld [vmem:[%s4437_s0 + $0x1] sm:$0x3] }
   0x2   :  { %v2058_v3 = vor.u32 %v2784_v1, %v2057_v0  ;;  %v1722_v4 = vunpack.c.l.bf16 %v1720_v2  ;;  %v1929_v5 = vld [vmem:[%s4436_s1 + $0x70] sm:$0xf]  ;;  %v2752_v6 = vld [vmem:[%s4436_s1 + $0x74] sm:$0xf0]  ;;  %v2049_v8 = vld [vmem:[%s4436_s1 + $0x160] sm:$0xf] }
   0x3   :  { %v1930_v7 = vor.u32 %v2752_v6, %v1929_v5  ;;  %v2782_v9 = vld [vmem:[%s4436_s1 + $0x164] sm:$0xf0]  ;;  %v1921_v10 = vld [vmem:[%s4436_s1 + $0x60] sm:$0xf]  ;;  %v2041_v13 = vld [vmem:[%s4436_s1 + $0x150] sm:$0xf] }
   0x4   :  { %1379 = vmatpush.bf16.msra.mxu2 %v2058_v3  ;;  %1724 = vrot.lane.b32.xlu0 %v1722_v4, %s2969_s18  ;;  %v2050_v11 = vor.u32 %v2782_v9, %v2049_v8  ;;  %v2750_v12 = vld [vmem:[%s4436_s1 + $0x64] sm:$0xf0]  ;;  %v2780_v14 = vld [vmem:[%s4436_s1 + $0x154] sm:$0xf0]  ;;  %v1913_v16 = vld [vmem:[%s4436_s1 + $0x50] sm:$0xf] }
   0x5   :  { %1353 = vmatpush.bf16.msra.mxu0 %v1930_v7  ;;  %v1922_v15 = vor.u32 %v2750_v12, %v1921_v10  ;;  %v2042_v17 = vor.u32 %v2780_v14, %v2041_v13  ;;  %v2748_v18 = vld [vmem:[%s4436_s1 + $0x54] sm:$0xf0]  ;;  %v2121_v19 = vld [vmem:[%s4436_s1 + $0x1f0] sm:$0xf]  ;;  %v2033_v21 = vld [vmem:[%s4436_s1 + $0x140] sm:$0xf] }
   0x6   :  { %v2800_v20 = vld [vmem:[%s4436_s1 + $0x1f4] sm:$0xf0]  ;;  %v2778_v22 = vld [vmem:[%s4436_s1 + $0x144] sm:$0xf0]  ;;  %v1993_v24 = vld [vmem:[%s4436_s1 + $0xf0] sm:$0xf]  ;;  %v1914_v26 = vor.u32 %v2748_v18, %v1913_v16 }
   0x7   :  { %v2122_v23 = vor.u32 %v2800_v20, %v2121_v19  ;;  %v2768_v25 = vld [vmem:[%s4436_s1 + $0xf4] sm:$0xf0]  ;;  %v1905_v27 = vld [vmem:[%s4436_s1 + $0x40] sm:$0xf]  ;;  %v2798_v30 = vld [vmem:[%s4436_s1 + $0x1e4] sm:$0xf0]  ;;  %v2034_v31 = vor.u32 %v2778_v22, %v2033_v21 }
   0x8   :  { %1380 = vmatpush.bf16.msra.mxu2 %v2050_v11  ;;  %v1994_v28 = vor.u32 %v2768_v25, %v1993_v24  ;;  %v2113_v29 = vld [vmem:[%s4436_s1 + $0x1e0] sm:$0xf]  ;;  %v2746_v32 = vld [vmem:[%s4436_s1 + $0x44] sm:$0xf0]  ;;  %v2025_v33 = vld [vmem:[%s4436_s1 + $0x130] sm:$0xf] }
   0x9   :  { %1354 = vmatpush.bf16.msra.mxu0 %v1922_v15  ;;  %1392 = vmatpush.bf16.msra.mxu3 %v2122_v23  ;;  %v2776_v34 = vld [vmem:[%s4436_s1 + $0x134] sm:$0xf0]  ;;  %v2114_v35 = vor.u32 %v2798_v30, %v2113_v29  ;;  %v1985_v36 = vld [vmem:[%s4436_s1 + $0xe0] sm:$0xf]  ;;  %v2766_v37 = vld [vmem:[%s4436_s1 + $0xe4] sm:$0xf0]  ;;  %v1906_v41 = vor.u32 %v2746_v32, %v1905_v27 }
   0xa   :  { %1366 = vmatpush.bf16.msra.mxu1 %v1994_v28  ;;  %v2105_v38 = vld [vmem:[%s4436_s1 + $0x1d0] sm:$0xf]  ;;  %v1986_v39 = vor.u32 %v2766_v37, %v1985_v36  ;;  %v2796_v40 = vld [vmem:[%s4436_s1 + $0x1d4] sm:$0xf0]  ;;  %v2026_v46 = vor.u32 %v2776_v34, %v2025_v33  ;;  %v2097_v48 = vld [vmem:[%s4436_s1 + $0x1c0] sm:$0xf] }
   0xb   :  { %v1897_v42 = vld [vmem:[%s4436_s1 + $0x30] sm:$0xf]  ;;  %v2744_v43 = vld [vmem:[%s4436_s1 + $0x34] sm:$0xf0]  ;;  %v2106_v44 = vor.u32 %v2796_v40, %v2105_v38  ;;  %v2794_v49 = vld [vmem:[%s4436_s1 + $0x1c4] sm:$0xf0] }
   0xc   :  { %1381 = vmatpush.bf16.msra.mxu2 %v2042_v17  ;;  %v1977_v45 = vld [vmem:[%s4436_s1 + $0xd0] sm:$0xf]  ;;  %v2764_v47 = vld [vmem:[%s4436_s1 + $0xd4] sm:$0xf0]  ;;  %v2017_v50 = vld [vmem:[%s4436_s1 + $0x120] sm:$0xf]  ;;  %v1898_v53 = vor.u32 %v2744_v43, %v1897_v42  ;;  %v2098_v55 = vor.u32 %v2794_v49, %v2097_v48 }
   0xd   :  { %1355 = vmatpush.bf16.msra.mxu0 %v1914_v26  ;;  %1393 = vmatpush.bf16.msra.mxu3 %v2114_v35  ;;  %v2774_v51 = vld [vmem:[%s4436_s1 + $0x124] sm:$0xf0]  ;;  %v1978_v52 = vor.u32 %v2764_v47, %v1977_v45  ;;  %v1889_v54 = vld [vmem:[%s4436_s1 + $0x20] sm:$0xf]  ;;  %v2089_v60 = vld [vmem:[%s4436_s1 + $0x1b0] sm:$0xf] }
   0xe   :  { %1367 = vmatpush.bf16.msra.mxu1 %v1986_v39  ;;  %v1969_v56 = vld [vmem:[%s4436_s1 + $0xc0] sm:$0xf]  ;;  %v2762_v57 = vld [vmem:[%s4436_s1 + $0xc4] sm:$0xf0]  ;;  %v2018_v58 = vor.u32 %v2774_v51, %v2017_v50  ;;  %v2792_v61 = vld [vmem:[%s4436_s1 + $0x1b4] sm:$0xf0] }
   0xf   :  { %v2742_v59 = vld [vmem:[%s4436_s1 + $0x24] sm:$0xf0]  ;;  %v2009_v62 = vld [vmem:[%s4436_s1 + $0x110] sm:$0xf]  ;;  %v2772_v63 = vld [vmem:[%s4436_s1 + $0x114] sm:$0xf0]  ;;  %v1970_v0 = vor.u32 %v2762_v57, %v1969_v56  ;;  %v2090_v5 = vor.u32 %v2792_v61, %v2089_v60 }
  0x10   :  { %1382 = vmatpush.bf16.msra.mxu2 %v2034_v31  ;;  %v1961_v1 = vld [vmem:[%s4436_s1 + $0xb0] sm:$0xf]  ;;  %v2760_v2 = vld [vmem:[%s4436_s1 + $0xb4] sm:$0xf0]  ;;  %v1890_v3 = vor.u32 %v2742_v59, %v1889_v54  ;;  %v2010_v6 = vor.u32 %v2772_v63, %v2009_v62  ;;  %v2081_v8 = vld [vmem:[%s4436_s1 + $0x1a0] sm:$0xf] }
  0x11   :  { %1356 = vmatpush.bf16.msra.mxu0 %v1906_v41  ;;  %1394 = vmatpush.bf16.msra.mxu3 %v2106_v44  ;;  %v1881_v4 = vld [vmem:[%s4436_s1 + $0x10] sm:$0xf]  ;;  %v2740_v7 = vld [vmem:[%s4436_s1 + $0x14] sm:$0xf0]  ;;  %v2790_v9 = vld [vmem:[%s4436_s1 + $0x1a4] sm:$0xf0]  ;;  %v1962_v13 = vor.u32 %v2760_v2, %v1961_v1 }
  0x12   :  { %1368 = vmatpush.bf16.msra.mxu1 %v1978_v52  ;;  %v2001_v10 = vld [vmem:[%s4436_s1 + $0x100] sm:$0xf]  ;;  %v2770_v11 = vld [vmem:[%s4436_s1 + $0x104] sm:$0xf0]  ;;  %v2313_v12 = vld [vmem:[%s4436_s1 + $0x370] sm:$0xf]  ;;  %v1882_v17 = vor.u32 %v2740_v7, %v1881_v4  ;;  %v2082_v19 = vor.u32 %v2790_v9, %v2081_v8 }
  0x13   :  { %v2848_v14 = vld [vmem:[%s4436_s1 + $0x374] sm:$0xf0]  ;;  %v1953_v15 = vld [vmem:[%s4436_s1 + $0xa0] sm:$0xf]  ;;  %v2758_v16 = vld [vmem:[%s4436_s1 + $0xa4] sm:$0xf0]  ;;  %v2002_v20 = vor.u32 %v2770_v11, %v2001_v10 }
  0x14   :  { %1383 = vmatpush.bf16.msra.mxu2 %v2026_v46  ;;  %v1873_v18 = vld [vmem:[%s4436_s1] sm:$0xf]  ;;  %v2738_v21 = vld [vmem:[%s4436_s1 + $0x4] sm:$0xf0]  ;;  %v2073_v22 = vld [vmem:[%s4436_s1 + $0x190] sm:$0xf]  ;;  %v2314_v24 = vor.u32 %v2848_v14, %v2313_v12  ;;  %v1954_v28 = vor.u32 %v2758_v16, %v1953_v15 }
  0x15   :  { %1357 = vmatpush.bf16.msra.mxu0 %v1898_v53  ;;  %1395 = vmatpush.bf16.msra.mxu3 %v2098_v55  ;;  %v2788_v23 = vld [vmem:[%s4436_s1 + $0x194] sm:$0xf0]  ;;  %v2185_v25 = vld [vmem:[%s4436_s1 + $0x270] sm:$0xf]  ;;  %v2305_v27 = vld [vmem:[%s4436_s1 + $0x360] sm:$0xf]  ;;  %v1874_v32 = vor.u32 %v2738_v21, %v1873_v18 }
  0x16   :  { %1369 = vmatpush.bf16.msra.mxu1 %v1970_v0  ;;  %v2816_v26 = vld [vmem:[%s4436_s1 + $0x274] sm:$0xf0]  ;;  %v2846_v29 = vld [vmem:[%s4436_s1 + $0x364] sm:$0xf0]  ;;  %v1945_v30 = vld [vmem:[%s4436_s1 + $0x90] sm:$0xf]  ;;  %v2074_v34 = vor.u32 %v2788_v23, %v2073_v22 }
  0x17   :  { %v2756_v31 = vld [vmem:[%s4436_s1 + $0x94] sm:$0xf0]  ;;  %v2177_v33 = vld [vmem:[%s4436_s1 + $0x260] sm:$0xf]  ;;  %v2186_v35 = vor.u32 %v2816_v26, %v2185_v25  ;;  %v2814_v36 = vld [vmem:[%s4436_s1 + $0x264] sm:$0xf0]  ;;  %v2306_v39 = vor.u32 %v2846_v29, %v2305_v27 }
  0x18   :  { %1384 = vmatpush.bf16.msra.mxu2 %v2018_v58  ;;  %v2065_v37 = vld [vmem:[%s4436_s1 + $0x180] sm:$0xf]  ;;  %v2786_v38 = vld [vmem:[%s4436_s1 + $0x184] sm:$0xf0]  ;;  %v2297_v40 = vld [vmem:[%s4436_s1 + $0x350] sm:$0xf]  ;;  %v1946_v41 = vor.u32 %v2756_v31, %v1945_v30  ;;  %v2178_v50 = vor.u32 %v2814_v36, %v2177_v33 }
  0x19   :  { %1358 = vmatpush.bf16.msra.mxu0 %v1890_v3  ;;  %1396 = vmatpush.bf16.msra.mxu3 %v2090_v5  ;;  %v2377_v42 = vld [vmem:[%s4436_s1 + $0x3f0] sm:$0xf]  ;;  %v2864_v43 = vld [vmem:[%s4436_s1 + $0x3f4] sm:$0xf0]  ;;  %v1937_v45 = vld [vmem:[%s4436_s1 + $0x80] sm:$0xf]  ;;  %v2066_v47 = vor.u32 %v2786_v38, %v2065_v37 }
  0x1a   :  { %1370 = vmatpush.bf16.msra.mxu1 %v1962_v13  ;;  %v2844_v44 = vld [vmem:[%s4436_s1 + $0x354] sm:$0xf0]  ;;  %v2754_v46 = vld [vmem:[%s4436_s1 + $0x84] sm:$0xf0]  ;;  %v2249_v48 = vld [vmem:[%s4436_s1 + $0x2f0] sm:$0xf]  ;;  %v2378_v52 = vor.u32 %v2864_v43, %v2377_v42 }
  0x1b   :  { %v2832_v49 = vld [vmem:[%s4436_s1 + $0x2f4] sm:$0xf0]  ;;  %v2169_v51 = vld [vmem:[%s4436_s1 + $0x250] sm:$0xf]  ;;  %v2298_v53 = vor.u32 %v2844_v44, %v2297_v40  ;;  %v1938_v55 = vor.u32 %v2754_v46, %v1937_v45  ;;  %v2369_v56 = vld [vmem:[%s4436_s1 + $0x3e0] sm:$0xf] }
  0x1c   :  { %1385 = vmatpush.bf16.msra.mxu2 %v2010_v6  ;;  %v2812_v54 = vld [vmem:[%s4436_s1 + $0x254] sm:$0xf0]  ;;  %v2862_v57 = vld [vmem:[%s4436_s1 + $0x3e4] sm:$0xf0]  ;;  %v2289_v58 = vld [vmem:[%s4436_s1 + $0x340] sm:$0xf]  ;;  %v2250_v60 = vor.u32 %v2832_v49, %v2249_v48 }
  0x1d   :  { %1359 = vmatpush.bf16.msra.mxu0 %v1882_v17  ;;  %1397 = vmatpush.bf16.msra.mxu3 %v2082_v19  ;;  %v2842_v59 = vld [vmem:[%s4436_s1 + $0x344] sm:$0xf0]  ;;  %v2241_v61 = vld [vmem:[%s4436_s1 + $0x2e0] sm:$0xf]  ;;  %v2170_v0 = vor.u32 %v2812_v54, %v2169_v51  ;;  %v2370_v2 = vor.u32 %v2862_v57, %v2369_v56  ;;  %v2361_v5 = vld [vmem:[%s4436_s1 + $0x3d0] sm:$0xf] }
  0x1e   :  { %1371 = vmatpush.bf16.msra.mxu1 %v1954_v28  ;;  %v2830_v62 = vld [vmem:[%s4436_s1 + $0x2e4] sm:$0xf0]  ;;  %v15_v63 = vld [vmem:[%s4437_s0] sm:$0xff]  ;;  %v2290_v3 = vor.u32 %v2842_v59, %v2289_v58  ;;  %v2860_v6 = vld [vmem:[%s4436_s1 + $0x3d4] sm:$0xf0]  ;;  %vm1864_vm5 = vcmask 1043458  }
  0x1f   :  { %v2161_v1 = vld [vmem:[%s4436_s1 + $0x240] sm:$0xf]  ;;  %240 = vst [vmem:[#allocation1] ss:$9 sm:$0xff] %v15_v63  ;;  %v2810_v4 = vld [vmem:[%s4436_s1 + $0x244] sm:$0xf0]  ;;  %v2242_v9 = vor.u32 %v2830_v62, %v2241_v61  ;;  %v2362_v14 = vor.u32 %v2860_v6, %v2361_v5  ;;  %vm1850_vm3 = vmor %vm1849_vm2, %vm1846_vm1 }
  0x20   :  { %1386 = vmatpush.bf16.msra.mxu2 %v2002_v20  ;;  %v2281_v7 = vld [vmem:[%s4436_s1 + $0x330] sm:$0xf]  ;;  %v2840_v8 = vld [vmem:[%s4436_s1 + $0x334] sm:$0xf0]  ;;  %v2162_v12 = vor.u32 %v2810_v4, %v2161_v1  ;;  %v2353_v17 = vld [vmem:[%s4436_s1 + $0x3c0] sm:$0xf] }
  0x21   :  { %1360 = vmatpush.bf16.msra.mxu0 %v1874_v32  ;;  %1398 = vmatpush.bf16.msra.mxu3 %v2074_v34  ;;  %v2233_v10 = vld [vmem:[%s4436_s1 + $0x2d0] sm:$0xf]  ;;  %v2828_v11 = vld [vmem:[%s4436_s1 + $0x2d4] sm:$0xf0]  ;;  %v2282_v15 = vor.u32 %v2840_v8, %v2281_v7  ;;  %v2858_v18 = vld [vmem:[%s4436_s1 + $0x3c4] sm:$0xf0] }
  0x22   :  { %1372 = vmatpush.bf16.msra.mxu1 %v1946_v41  ;;  %v2153_v13 = vld [vmem:[%s4436_s1 + $0x230] sm:$0xf]  ;;  %v2808_v16 = vld [vmem:[%s4436_s1 + $0x234] sm:$0xf0]  ;;  %v2273_v19 = vld [vmem:[%s4436_s1 + $0x320] sm:$0xf]  ;;  %v2234_v21 = vor.u32 %v2828_v11, %v2233_v10  ;;  %v2354_v28 = vor.u32 %v2858_v18, %v2353_v17 }
  0x23   :  { %v2838_v20 = vld [vmem:[%s4436_s1 + $0x324] sm:$0xf0]  ;;  %v2225_v22 = vld [vmem:[%s4436_s1 + $0x2c0] sm:$0xf]  ;;  %v2154_v26 = vor.u32 %v2808_v16, %v2153_v13  ;;  %v2345_v31 = vld [vmem:[%s4436_s1 + $0x3b0] sm:$0xf] }
  0x24   :  { %1431 = vmatpush.bf16.msrb.mxu2 %v2314_v24  ;;  %v2826_v24 = vld [vmem:[%s4436_s1 + $0x2c4] sm:$0xf0]  ;;  %v2145_v27 = vld [vmem:[%s4436_s1 + $0x220] sm:$0xf]  ;;  %v2274_v29 = vor.u32 %v2838_v20, %v2273_v19  ;;  %v2856_v32 = vld [vmem:[%s4436_s1 + $0x3b4] sm:$0xf0] }
  0x25   :  { %1405 = vmatpush.bf16.msrb.mxu0 %v2186_v35  ;;  %1399 = vmatpush.bf16.msra.mxu3 %v2066_v47  ;;  %v2806_v30 = vld [vmem:[%s4436_s1 + $0x224] sm:$0xf0]  ;;  %v2265_v33 = vld [vmem:[%s4436_s1 + $0x310] sm:$0xf]  ;;  %v2836_v34 = vld [vmem:[%s4436_s1 + $0x314] sm:$0xf0]  ;;  %v2226_v35 = vor.u32 %v2826_v24, %v2225_v22  ;;  %v2346_v42 = vor.u32 %v2856_v32, %v2345_v31 }
  0x26   :  { %1373 = vmatpush.bf16.msra.mxu1 %v1938_v55  ;;  %v3300_v23 = vld [vmem:[#allocation1 + $0x12] sm:$0xff]  ;;  %v3305_v25 = vld [vmem:[#allocation1] sm:$0xff]  ;;  %v2266_v43 = vor.u32 %v2836_v34, %v2265_v33  ;;  %v2854_v46 = vld [vmem:[%s4436_s1 + $0x3a4] sm:$0xf0] }
  0x27   :  { %1361 = vmatmul.bf16.vlgmr.msra.gmra.mxu0 %v3305_v25  ;;  %1387 = vmatmul.bf16.vlgmr.msra.gmra.mxu2 %v3300_v23  ;;  %v2217_v36 = vld [vmem:[%s4436_s1 + $0x2b0] sm:$0xf]  ;;  %v2824_v37 = vld [vmem:[%s4436_s1 + $0x2b4] sm:$0xf0]  ;;  %v2257_v44 = vld [vmem:[%s4436_s1 + $0x300] sm:$0xf] }
  0x28   :  { %1432 = vmatpush.bf16.msrb.mxu2 %v2306_v39  ;;  %v3333_v38 = vld [vmem:[#allocation1 + $0x1b] sm:$0xff]  ;;  %v2146_v39 = vor.u32 %v2806_v30, %v2145_v27  ;;  %v2137_v40 = vld [vmem:[%s4436_s1 + $0x210] sm:$0xf]  ;;  %v2834_v47 = vld [vmem:[%s4436_s1 + $0x304] sm:$0xf0]  ;;  %v2218_v49 = vor.u32 %v2824_v37, %v2217_v36 }
  0x29   :  { %1406 = vmatpush.bf16.msrb.mxu0 %v2178_v50  ;;  %1444 = vmatpush.bf16.msrb.mxu3 %v2378_v52  ;;  %v2804_v41 = vld [vmem:[%s4436_s1 + $0x214] sm:$0xf0]  ;;  %v2337_v45 = vld [vmem:[%s4436_s1 + $0x3a0] sm:$0xf]  ;;  %v2569_v48 = vld [vmem:[%s4436_s1 + $0x570] sm:$0xf]  ;;  %v2258_v57 = vor.u32 %v2834_v47, %v2257_v44 }
  0x2a   :  { %1418 = vmatpush.bf16.msrb.mxu1 %v2250_v60  ;;  %1400 = vmatmul.bf16.vlgmr.msra.gmra.mxu3 %v3333_v38  ;;  %v3357_v50 = vld [vmem:[#allocation1 + $0x9] sm:$0xff]  ;;  %v2912_v51 = vld [vmem:[%s4436_s1 + $0x574] sm:$0xf0]  ;;  %v2209_v52 = vld [vmem:[%s4436_s1 + $0x2a0] sm:$0xf]  ;;  %v2138_v54 = vor.u32 %v2804_v41, %v2137_v40  ;;  %v2338_v56 = vor.u32 %v2854_v46, %v2337_v45 }
  0x2b   :  { %1374 = vmatmul.bf16.vlgmr.msra.gmra.mxu1 %v3357_v50  ;;  %v2129_v55 = vld [vmem:[%s4436_s1 + $0x200] sm:$0xf]  ;;  %v2802_v58 = vld [vmem:[%s4436_s1 + $0x204] sm:$0xf0]  ;;  %v2329_v59 = vld [vmem:[%s4436_s1 + $0x390] sm:$0xf]  ;;  %v2570_v61 = vor.u32 %v2912_v51, %v2569_v48 }
  0x2c   :  { %1433 = vmatpush.bf16.msrb.mxu2 %v2298_v53  ;;  %v2822_v53 = vld [vmem:[%s4436_s1 + $0x2a4] sm:$0xf0]  ;;  %v2852_v60 = vld [vmem:[%s4436_s1 + $0x394] sm:$0xf0]  ;;  %v2441_v62 = vld [vmem:[%s4436_s1 + $0x470] sm:$0xf]  ;;  %v2130_v5 = vor.u32 %v2802_v58, %v2129_v55 }
  0x2d   :  { %1407 = vmatpush.bf16.msrb.mxu0 %v2170_v0  ;;  %1445 = vmatpush.bf16.msrb.mxu3 %v2370_v2  ;;  %v2880_v63 = vld [vmem:[%s4436_s1 + $0x474] sm:$0xf0]  ;;  %v2561_v0 = vld [vmem:[%s4436_s1 + $0x560] sm:$0xf]  ;;  %v2210_v1 = vor.u32 %v2822_v53, %v2209_v52  ;;  %v2910_v2 = vld [vmem:[%s4436_s1 + $0x564] sm:$0xf0]  ;;  %v2330_v7 = vor.u32 %v2852_v60, %v2329_v59 }
  0x2e   :  { %1419 = vmatpush.bf16.msrb.mxu1 %v2242_v9  ;;  %v2820_v4 = vld [vmem:[%s4436_s1 + $0x294] sm:$0xf0]  ;;  %v2433_v6 = vld [vmem:[%s4436_s1 + $0x460] sm:$0xf]  ;;  %v2442_v8 = vor.u32 %v2880_v63, %v2441_v62  ;;  %v2878_v9 = vld [vmem:[%s4436_s1 + $0x464] sm:$0xf0] }
  0x2f   :  { %v2321_v10 = vld [vmem:[%s4436_s1 + $0x380] sm:$0xf]  ;;  %v2850_v11 = vld [vmem:[%s4436_s1 + $0x384] sm:$0xf0]  ;;  %v2553_v13 = vld [vmem:[%s4436_s1 + $0x550] sm:$0xf] }
  0x30   :  { %1434 = vmatpush.bf16.msrb.mxu2 %v2290_v3  ;;  %v2201_v3 = vld [vmem:[%s4436_s1 + $0x290] sm:$0xf]  ;;  %v2928_v16 = vld [vmem:[%s4436_s1 + $0x5f4] sm:$0xf0]  ;;  %v2193_v18 = vld [vmem:[%s4436_s1 + $0x280] sm:$0xf]  ;;  %v2322_v20 = vor.u32 %v2850_v11, %v2321_v10 }
  0x31   :  { %1408 = vmatpush.bf16.msrb.mxu0 %v2162_v12  ;;  %1446 = vmatpush.bf16.msrb.mxu3 %v2362_v14  ;;  %v2562_v12 = vor.u32 %v2910_v2, %v2561_v0  ;;  %v2202_v14 = vor.u32 %v2820_v4, %v2201_v3  ;;  %v2908_v17 = vld [vmem:[%s4436_s1 + $0x554] sm:$0xf0]  ;;  %v2818_v19 = vld [vmem:[%s4436_s1 + $0x284] sm:$0xf0]  ;;  %v2425_v27 = vld [vmem:[%s4436_s1 + $0x450] sm:$0xf] }
  0x32   :  { %1420 = vmatpush.bf16.msrb.mxu1 %v2234_v21  ;;  %v2505_v21 = vld [vmem:[%s4436_s1 + $0x4f0] sm:$0xf]  ;;  %v2896_v22 = vld [vmem:[%s4436_s1 + $0x4f4] sm:$0xf0]  ;;  %v2554_v30 = vor.u32 %v2908_v17, %v2553_v13  ;;  %v2194_v31 = vor.u32 %v2818_v19, %v2193_v18  ;;  %v2625_v32 = vld [vmem:[%s4436_s1 + $0x5e0] sm:$0xf] }
  0x33   :  { %v3435_v24 = vld [vmem:[#allocation1 + $0x36] sm:$0xff]  ;;  %v2926_v33 = vld [vmem:[%s4436_s1 + $0x5e4] sm:$0xf0]  ;;  %v2506_v37 = vor.u32 %v2896_v22, %v2505_v21  ;;  %v2617_v46 = vld [vmem:[%s4436_s1 + $0x5d0] sm:$0xf] }
  0x34   :  { %1435 = vmatpush.bf16.msrb.mxu2 %v2282_v15  ;;  %v2633_v15 = vld [vmem:[%s4436_s1 + $0x5f0] sm:$0xf]  ;;  %v3449_v34 = vld [vmem:[#allocation1 + $0x24] sm:$0xff]  ;;  %v2924_v47 = vld [vmem:[%s4436_s1 + $0x5d4] sm:$0xf0] }
  0x35   :  { %1409 = vmatpush.bf16.msrb.mxu0 %v2154_v26  ;;  %1447 = vmatpush.bf16.msrb.mxu3 %v2354_v28  ;;  %v2434_v26 = vor.u32 %v2878_v9, %v2433_v6  ;;  %v2876_v28 = vld [vmem:[%s4436_s1 + $0x454] sm:$0xf0]  ;;  %v2906_v36 = vld [vmem:[%s4436_s1 + $0x544] sm:$0xf0]  ;;  %v2537_v48 = vld [vmem:[%s4436_s1 + $0x530] sm:$0xf] }
  0x36   :  { %1421 = vmatpush.bf16.msrb.mxu1 %v2226_v35  ;;  %v2545_v35 = vld [vmem:[%s4436_s1 + $0x540] sm:$0xf]  ;;  %v2894_v40 = vld [vmem:[%s4436_s1 + $0x4e4] sm:$0xf0]  ;;  %v2426_v41 = vor.u32 %v2876_v28, %v2425_v27  ;;  %v2489_v52 = vld [vmem:[%s4436_s1 + $0x4d0] sm:$0xf] }
  0x37   :  { %v2546_v44 = vor.u32 %v2906_v36, %v2545_v35  ;;  %v2874_v45 = vld [vmem:[%s4436_s1 + $0x444] sm:$0xf0]  ;;  %v2892_v53 = vld [vmem:[%s4436_s1 + $0x4d4] sm:$0xf0]  ;;  %v2409_v55 = vld [vmem:[%s4436_s1 + $0x430] sm:$0xf] }
  0x38   :  { %1436 = vmatpush.bf16.msrb.mxu2 %v2274_v29  ;;  %v2634_v29 = vor.u32 %v2928_v16, %v2633_v15  ;;  %v2609_v58 = vld [vmem:[%s4436_s1 + $0x5c0] sm:$0xf]  ;;  %v2922_v60 = vld [vmem:[%s4436_s1 + $0x5c4] sm:$0xf0]  ;;  %v2601_v10 = vld [vmem:[%s4436_s1 + $0x5b0] sm:$0xf] }
  0x39   :  { %1410 = vmatpush.bf16.msrb.mxu0 %v2146_v39  ;;  %1448 = vmatpush.bf16.msrb.mxu3 %v2346_v42  ;;  %v2497_v39 = vld [vmem:[%s4436_s1 + $0x4e0] sm:$0xf]  ;;  %v16_v62 = vld [vmem:[%s4437_s0 + $0x8] sm:$0x3f]  ;;  %v2920_v11 = vld [vmem:[%s4436_s1 + $0x5b4] sm:$0xf0] }
  0x3a   :  { %1422 = vmatpush.bf16.msrb.mxu1 %v2218_v49  ;;  %v2417_v42 = vld [vmem:[%s4436_s1 + $0x440] sm:$0xf]  ;;  %v2904_v49 = vld [vmem:[%s4436_s1 + $0x534] sm:$0xf0]  ;;  %v2498_v51 = vor.u32 %v2894_v40, %v2497_v39  ;;  %v2902_v0 = vld [vmem:[%s4436_s1 + $0x524] sm:$0xf0]  ;;  %v2602_v19 = vor.u32 %v2920_v11, %v2601_v10 }
  0x3b   :  { %v2538_v59 = vor.u32 %v2904_v49, %v2537_v48  ;;  %v2529_v63 = vld [vmem:[%s4436_s1 + $0x520] sm:$0xf]  ;;  %v2890_v4 = vld [vmem:[%s4436_s1 + $0x4c4] sm:$0xf0]  ;;  %v2900_v13 = vld [vmem:[%s4436_s1 + $0x514] sm:$0xf0] }
  0x3c   :  { %1437 = vmatpush.bf16.msrb.mxu2 %v2266_v43  ;;  %v2626_v43 = vor.u32 %v2926_v33, %v2625_v32  ;;  %v3512_v2 = vld [vmem:[#allocation1 + $0x3f] sm:$0xff]  ;;  %v2870_v9 = vld [vmem:[%s4436_s1 + $0x424] sm:$0xf0]  ;;  %v2473_v15 = vld [vmem:[%s4436_s1 + $0x4b0] sm:$0xf] }
  0x3d   :  { %1411 = vmatpush.bf16.msrb.mxu0 %v2138_v54  ;;  %1449 = vmatpush.bf16.msrb.mxu3 %v2338_v56  ;;  %v2418_v54 = vor.u32 %v2874_v45, %v2417_v42  ;;  %v2872_v56 = vld [vmem:[%s4436_s1 + $0x434] sm:$0xf0]  ;;  %v2481_v3 = vld [vmem:[%s4436_s1 + $0x4c0] sm:$0xf]  ;;  %v2393_v18 = vld [vmem:[%s4436_s1 + $0x410] sm:$0xf] }
  0x3e   :  { %1423 = vmatpush.bf16.msrb.mxu1 %v2210_v1  ;;  %v2490_v1 = vor.u32 %v2892_v53, %v2489_v52  ;;  %v2401_v6 = vld [vmem:[%s4436_s1 + $0x420] sm:$0xf]  ;;  %v2888_v16 = vld [vmem:[%s4436_s1 + $0x4b4] sm:$0xf0]  ;;  %v2898_v28 = vld [vmem:[%s4436_s1 + $0x504] sm:$0xf0] }
  0x3f   :  { %v2402_v17 = vor.u32 %v2870_v9, %v2401_v6  ;;  %v2868_v21 = vld [vmem:[%s4436_s1 + $0x414] sm:$0xf0]  ;;  %v2593_v22 = vld [vmem:[%s4436_s1 + $0x5a0] sm:$0xf]  ;;  %v2886_v33 = vld [vmem:[%s4436_s1 + $0x4a4] sm:$0xf0] }
  0x40   :  { %1438 = vmatpush.bf16.msrb.mxu2 %v2258_v57  ;;  %v2618_v57 = vor.u32 %v2924_v47, %v2617_v46  ;;  %v2513_v27 = vld [vmem:[%s4436_s1 + $0x500] sm:$0xf]  ;;  %v2394_v35 = vor.u32 %v2868_v21, %v2393_v18  ;;  %v2866_v40 = vld [vmem:[%s4436_s1 + $0x404] sm:$0xf0]  ;;  %v2916_v42 = vld [vmem:[%s4436_s1 + $0x594] sm:$0xf0] }
  0x41   :  { %1412 = vmatpush.bf16.msrb.mxu0 %v2130_v5  ;;  %1450 = vmatpush.bf16.msrb.mxu3 %v2330_v7  ;;  %v2410_v5 = vor.u32 %v2872_v56, %v2409_v55  ;;  %v2610_v7 = vor.u32 %v2922_v60, %v2609_v58  ;;  %v2465_v32 = vld [vmem:[%s4436_s1 + $0x4a0] sm:$0xf]  ;;  %v2514_v39 = vor.u32 %v2898_v28, %v2513_v27  ;;  %v2944_v45 = vld [vmem:[%s4436_s1 + $0x674] sm:$0xf0]  ;;  %v2749_v46 = vld [vmem:[%s4436_s1 + $0x64] sm:$0xf] }
  0x42   :  { %1424 = vmatpush.bf16.msrb.mxu1 %v2202_v14  ;;  %v2482_v14 = vor.u32 %v2890_v4, %v2481_v3  ;;  %v2385_v36 = vld [vmem:[%s4436_s1 + $0x400] sm:$0xf]  ;;  %v2466_v47 = vor.u32 %v2886_v33, %v2465_v32  ;;  %v1923_v48 = vld [vmem:[%s4436_s1 + $0x68] sm:$0xf0]  ;;  %v2457_v49 = vld [vmem:[%s4436_s1 + $0x490] sm:$0xf] }
  0x43   :  { %1439 = vmatmul.bf16.vlgmr.msrb.gmra.mxu2 %v3435_v24  ;;  %v2386_v52 = vor.u32 %v2866_v40, %v2385_v36  ;;  %v2689_v53 = vld [vmem:[%s4436_s1 + $0x660] sm:$0xf]  ;;  %v1926_v60 = vor.u32 %v2749_v46, %v1923_v48  ;;  %v1915_v3 = vld [vmem:[%s4436_s1 + $0x58] sm:$0xf0]  ;;  %v2681_v11 = vld [vmem:[%s4436_s1 + $0x650] sm:$0xf] }
  0x44   :  { %1483 = vmatpush.bf16.msra.mxu2 %v2570_v61  ;;  %1413 = vmatmul.bf16.vlgmr.msrb.gmra.mxu0 %v3449_v34  ;;  %v3501_v61 = vld [vmem:[#allocation1 + $0x2d] sm:$0xff]  ;;  %v2577_v58 = vld [vmem:[%s4436_s1 + $0x580] sm:$0xf]  ;;  %v2745_v18 = vld [vmem:[%s4436_s1 + $0x44] sm:$0xf] }
  0x45   :  { %1457 = vmatpush.bf16.msra.mxu0 %v2442_v8  ;;  %1451 = vmatpush.bf16.msrb.mxu3 %v2322_v20  ;;  %250 = vst [vmem:[#allocation1] ss:$9 sm:$0xff] %v16_v62  ;;  %v2530_v8 = vor.u32 %v2902_v0, %v2529_v63  ;;  %v2767_v63 = vld [vmem:[%s4436_s1 + $0xf4] sm:$0xf]  ;;  %v1995_v0 = vld [vmem:[%s4436_s1 + $0xf8] sm:$0xf0]  ;;  %vm1865_vm6 = vmor %vm1864_vm5, %vm1863_vm4 }
  0x46   :  { %1425 = vmatpush.bf16.msrb.mxu1 %v2194_v31  ;;  %v1931_v31 = vld [vmem:[%s4436_s1 + $0x78] sm:$0xf0]  ;;  %v2449_v4 = vld [vmem:[%s4436_s1 + $0x480] sm:$0xf]  ;;  %v2938_v28 = vld [vmem:[%s4436_s1 + $0x644] sm:$0xf0] }
  0x47   :  { %v2721_v21 = vld [vmem:[%s4436_s1 + $0x6a0] sm:$0xf]  ;;  %v1979_v32 = vld [vmem:[%s4436_s1 + $0xd8] sm:$0xf0]  ;;  %v2713_v40 = vld [vmem:[%s4436_s1 + $0x690] sm:$0xf] }
  0x48   :  { %1484 = vmatpush.bf16.msra.mxu2 %v2562_v12  ;;  %1452 = vmatmul.bf16.vlgmr.msrb.gmra.mxu3 %v3512_v2  ;;  %v2521_v12 = vld [vmem:[%s4436_s1 + $0x510] sm:$0xf]  ;;  %v2673_v27 = vld [vmem:[%s4436_s1 + $0x640] sm:$0xf]  ;;  %v1899_v36 = vld [vmem:[%s4436_s1 + $0x38] sm:$0xf0] }
  0x49   :  { %1458 = vmatpush.bf16.msra.mxu0 %v2434_v26  ;;  %1496 = vmatpush.bf16.msra.mxu3 %v2634_v29  ;;  %v2522_v20 = vor.u32 %v2900_v13, %v2521_v12  ;;  %v2918_v26 = vld [vmem:[%s4436_s1 + $0x5a4] sm:$0xf0]  ;;  %v2751_v29 = vld [vmem:[%s4436_s1 + $0x74] sm:$0xf]  ;;  %v1998_v12 = vor.u32 %v2767_v63, %v1995_v0  ;;  %v2936_v46 = vld [vmem:[%s4436_s1 + $0x634] sm:$0xf0] }
  0x4a   :  { %1470 = vmatpush.bf16.msra.mxu1 %v2506_v37  ;;  %v2594_v37 = vor.u32 %v2918_v26, %v2593_v22  ;;  %v2950_v22 = vld [vmem:[%s4436_s1 + $0x6a4] sm:$0xf0]  ;;  %v1971_v48 = vld [vmem:[%s4436_s1 + $0xc8] sm:$0xf0]  ;;  %v2759_v63 = vld [vmem:[%s4436_s1 + $0xb4] sm:$0xf] }
  0x4b   :  { %1426 = vmatmul.bf16.vlgmr.msrb.gmra.mxu1 %v3501_v61  ;;  %v1963_v0 = vld [vmem:[%s4436_s1 + $0xb8] sm:$0xf0] }
  0x4c   :  { %1485 = vmatpush.bf16.msra.mxu2 %v2554_v30  ;;  %v2474_v30 = vor.u32 %v2888_v16, %v2473_v15  ;;  %v3644_v9 = vld [vmem:[#allocation1] sm:$0xff] }
  0x4d   :  { %1459 = vmatpush.bf16.msra.mxu0 %v2426_v41  ;;  %1497 = vmatpush.bf16.msra.mxu3 %v2626_v43  ;;  %v2585_v41 = vld [vmem:[%s4436_s1 + $0x590] sm:$0xf]  ;;  %v1934_v43 = vor.u32 %v2751_v29, %v1931_v31  ;;  %v2765_v16 = vld [vmem:[%s4436_s1 + $0xe4] sm:$0xf]  ;;  %v2763_v31 = vld [vmem:[%s4436_s1 + $0xd4] sm:$0xf] }
  0x4e   :  { %1471 = vmatpush.bf16.msra.mxu1 %v2498_v51  ;;  %v2884_v51 = vld [vmem:[%s4436_s1 + $0x494] sm:$0xf0]  ;;  %v2586_v55 = vor.u32 %v2916_v42, %v2585_v41  ;;  %v2674_v42 = vor.u32 %v2938_v28, %v2673_v27  ;;  %v2641_v27 = vld [vmem:[%s4436_s1 + $0x600] sm:$0xf] }
  0x4f   :  { %v2458_v62 = vor.u32 %v2884_v51, %v2457_v49  ;;  %v3684_v33 = vld [vmem:[#allocation1 + $0x1b] sm:$0xff]  ;;  %v2741_v49 = vld [vmem:[%s4436_s1 + $0x24] sm:$0xf]  ;;  %v1891_v51 = vld [vmem:[%s4436_s1 + $0x28] sm:$0xf0] }
  0x50   :  { %1486 = vmatpush.bf16.msra.mxu2 %v2546_v44  ;;  %v2697_v44 = vld [vmem:[%s4436_s1 + $0x670] sm:$0xf]  ;;  %v2948_v41 = vld [vmem:[%s4436_s1 + $0x694] sm:$0xf0] }
  0x51   :  { %1460 = vmatpush.bf16.msra.mxu0 %v2418_v54  ;;  %1498 = vmatpush.bf16.msra.mxu3 %v2618_v57  ;;  %v2942_v54 = vld [vmem:[%s4436_s1 + $0x664] sm:$0xf0]  ;;  %v2698_v56 = vor.u32 %v2944_v45, %v2697_v44  ;;  %v2747_v57 = vld [vmem:[%s4436_s1 + $0x54] sm:$0xf]  ;;  %v1982_v44 = vor.u32 %v2763_v31, %v1979_v32 }
  0x52   :  { %1472 = vmatpush.bf16.msra.mxu1 %v2490_v1  ;;  %v3627_v1 = vld [vmem:[#allocation1 + $0x12] sm:$0xff]  ;;  %v2690_v10 = vor.u32 %v2942_v54, %v2689_v53  ;;  %v1918_v13 = vor.u32 %v2747_v57, %v1915_v3  ;;  %v2705_v53 = vld [vmem:[%s4436_s1 + $0x680] sm:$0xf]  ;;  %v2946_v54 = vld [vmem:[%s4436_s1 + $0x684] sm:$0xf0] }
  0x53   :  { %v2739_v3 = vld [vmem:[%s4436_s1 + $0x14] sm:$0xf]  ;;  %v2930_v32 = vld [vmem:[%s4436_s1 + $0x604] sm:$0xf0] }
  0x54   :  { %1487 = vmatpush.bf16.msra.mxu2 %v2538_v59  ;;  %v2914_v59 = vld [vmem:[%s4436_s1 + $0x584] sm:$0xf0] }
  0x55   :  { %1461 = vmatpush.bf16.msra.mxu0 %v2410_v5  ;;  %1499 = vmatpush.bf16.msra.mxu3 %v2610_v7  ;;  %v2882_v5 = vld [vmem:[%s4436_s1 + $0x484] sm:$0xf0]  ;;  %v2578_v6 = vor.u32 %v2914_v59, %v2577_v58  ;;  %v2729_v7 = vld [vmem:[%s4436_s1 + $0x6b0] sm:$0xf]  ;;  %v2783_v58 = vld [vmem:[%s4436_s1 + $0x174] sm:$0xf] }
  0x56   :  { %1473 = vmatpush.bf16.msra.mxu1 %v2482_v14  ;;  %v2940_v14 = vld [vmem:[%s4436_s1 + $0x654] sm:$0xf0]  ;;  %v2450_v15 = vor.u32 %v2882_v5, %v2449_v4  ;;  %v2059_v59 = vld [vmem:[%s4436_s1 + $0x178] sm:$0xf0]  ;;  %v2706_v5 = vor.u32 %v2946_v54, %v2705_v53  ;;  %v2035_v53 = vld [vmem:[%s4436_s1 + $0x148] sm:$0xf0] }
  0x57   :  { %v2682_v26 = vor.u32 %v2940_v14, %v2681_v11  ;;  %v1883_v4 = vld [vmem:[%s4436_s1 + $0x18] sm:$0xf0]  ;;  %v2781_v11 = vld [vmem:[%s4436_s1 + $0x164] sm:$0xf]  ;;  %v2932_v14 = vld [vmem:[%s4436_s1 + $0x614] sm:$0xf0] }
  0x58   :  { %1488 = vmatpush.bf16.msra.mxu2 %v2530_v8  ;;  %v2952_v8 = vld [vmem:[%s4436_s1 + $0x6b4] sm:$0xf0] }
  0x59   :  { %1462 = vmatpush.bf16.msra.mxu0 %v2402_v17  ;;  %1500 = vmatpush.bf16.msra.mxu3 %v2602_v19  ;;  %v1987_v17 = vld [vmem:[%s4436_s1 + $0xe8] sm:$0xf0] }
  0x5a   :  { %1474 = vmatpush.bf16.msra.mxu1 %v2474_v30  ;;  %v1907_v19 = vld [vmem:[%s4436_s1 + $0x48] sm:$0xf0]  ;;  %v1990_v29 = vor.u32 %v2765_v16, %v1987_v17  ;;  %v2737_v17 = vld [vmem:[%s4436_s1 + $0x4] sm:$0xf] }
  0x5b   :  { %v1910_v30 = vor.u32 %v2745_v18, %v1907_v19  ;;  %v1955_v16 = vld [vmem:[%s4436_s1 + $0xa8] sm:$0xf0]  ;;  %v1719_v19 = vld [vmem:[%s4437_s0] sm:$0x3] }
  0x5c   :  { %1489 = vmatpush.bf16.msra.mxu2 %v2522_v20  ;;  %v2730_v20 = vor.u32 %v2952_v8, %v2729_v7  ;;  %v2649_v8 = vld [vmem:[%s4436_s1 + $0x610] sm:$0xf]  ;;  %v1875_v18 = vld [vmem:[%s4436_s1 + $0x8] sm:$0xf0] }
  0x5d   :  { %1463 = vmatpush.bf16.msra.mxu0 %v2394_v35  ;;  %1501 = vmatpush.bf16.msra.mxu3 %v2594_v37  ;;  %v2743_v35 = vld [vmem:[%s4436_s1 + $0x34] sm:$0xf]  ;;  %v2722_v37 = vor.u32 %v2950_v22, %v2721_v21  ;;  %v2187_v21 = vld [vmem:[%s4436_s1 + $0x278] sm:$0xf0]  ;;  %v1878_v31 = vor.u32 %v2737_v17, %v1875_v18  ;;  %v2243_v17 = vld [vmem:[%s4436_s1 + $0x2e8] sm:$0xf0] }
  0x5e   :  { %1475 = vmatpush.bf16.msra.mxu1 %v2466_v47  ;;  %v1902_v45 = vor.u32 %v2743_v35, %v1899_v36  ;;  %v2761_v47 = vld [vmem:[%s4436_s1 + $0xc4] sm:$0xf]  ;;  %v2755_v35 = vld [vmem:[%s4436_s1 + $0x94] sm:$0xf]  ;;  %v1947_v36 = vld [vmem:[%s4436_s1 + $0x98] sm:$0xf0] }
  0x5f   :  { %v1974_v57 = vor.u32 %v2761_v47, %v1971_v48  ;;  %v1721_v47 = vunpack.c.l.bf16 %v1719_v19  ;;  %v2642_v48 = vor.u32 %v2930_v32, %v2641_v27  ;;  %v1737_v18 = vld [vmem:[%s4437_s0 + $0x3] sm:$0x3]  ;;  %v2827_v32 = vld [vmem:[%s4436_s1 + $0x2d4] sm:$0xf] }
  0x60   :  { %1490 = vmatpush.bf16.msra.mxu2 %v2514_v39  ;;  %v3692_v39 = vld [vmem:[#allocation1 + $0x9] sm:$0xff]  ;;  %v2809_v19 = vld [vmem:[%s4436_s1 + $0x244] sm:$0xf] }
  0x61   :  { %1464 = vmatpush.bf16.msra.mxu0 %v2386_v52  ;;  %1502 = vmatpush.bf16.msra.mxu3 %v2586_v55  ;;  %v2714_v52 = vor.u32 %v2948_v41, %v2713_v40  ;;  %v2799_v40 = vld [vmem:[%s4436_s1 + $0x1f4] sm:$0xf]  ;;  %v2123_v41 = vld [vmem:[%s4436_s1 + $0x1f8] sm:$0xf0]  ;;  %v2793_v27 = vld [vmem:[%s4436_s1 + $0x1c4] sm:$0xf] }
  0x62   :  { %1476 = vmatpush.bf16.msra.mxu1 %v2458_v62  ;;  %v2934_v62 = vld [vmem:[%s4436_s1 + $0x624] sm:$0xf0] }
  0x63   :  { %1491 = vmatmul.bf16.vlgmr.msra.gmra.mxu2 %v3627_v1 }
  0x64   :  { %1535 = vmatpush.bf16.msrb.mxu2 %v1934_v43  ;;  %1465 = vmatmul.bf16.vlgmr.msra.gmra.mxu0 %v3644_v9  ;;  %v2665_v43 = vld [vmem:[%s4436_s1 + $0x630] sm:$0xf] }
  0x65   :  { %1509 = vmatpush.bf16.msrb.mxu0 %v2698_v56  ;;  %1503 = vmatpush.bf16.msra.mxu3 %v2578_v6  ;;  %v2666_v55 = vor.u32 %v2936_v46, %v2665_v43  ;;  %v2657_v56 = vld [vmem:[%s4436_s1 + $0x620] sm:$0xf]  ;;  %v2062_v6 = vor.u32 %v2783_v58, %v2059_v59  ;;  %v2813_v43 = vld [vmem:[%s4436_s1 + $0x264] sm:$0xf]  ;;  %v2115_v59 = vld [vmem:[%s4436_s1 + $0x1e8] sm:$0xf0] }
  0x66   :  { %1477 = vmatpush.bf16.msra.mxu1 %v2450_v15  ;;  %v2658_v7 = vor.u32 %v2934_v62, %v2657_v56  ;;  %v2757_v15 = vld [vmem:[%s4436_s1 + $0xa4] sm:$0xf]  ;;  %v2251_v62 = vld [vmem:[%s4436_s1 + $0x2f8] sm:$0xf0] }
  0x67   :  { %v1958_v28 = vor.u32 %v2757_v15, %v1955_v16  ;;  %v2753_v56 = vld [vmem:[%s4436_s1 + $0x84] sm:$0xf] }
  0x68   :  { %1536 = vmatpush.bf16.msrb.mxu2 %v1926_v60  ;;  %1504 = vmatmul.bf16.vlgmr.msra.gmra.mxu3 %v3684_v33  ;;  %v1894_v60 = vor.u32 %v2741_v49, %v1891_v51  ;;  %v2797_v49 = vld [vmem:[%s4436_s1 + $0x1e4] sm:$0xf]  ;;  %v1950_v51 = vor.u32 %v2755_v35, %v1947_v36  ;;  %v2235_v35 = vld [vmem:[%s4436_s1 + $0x2d8] sm:$0xf0]  ;;  %v2807_v36 = vld [vmem:[%s4436_s1 + $0x234] sm:$0xf] }
  0x69   :  { %1510 = vmatpush.bf16.msrb.mxu0 %v2690_v10  ;;  %1548 = vmatpush.bf16.msrb.mxu3 %v1998_v12  ;;  %v1966_v10 = vor.u32 %v2759_v63, %v1963_v0  ;;  %v2051_v12 = vld [vmem:[%s4436_s1 + $0x168] sm:$0xf0]  ;;  %v2811_v0 = vld [vmem:[%s4436_s1 + $0x254] sm:$0xf]  ;;  %v2829_v16 = vld [vmem:[%s4436_s1 + $0x2e4] sm:$0xf] }
  0x6a   :  { %1526 = vmatpush.bf16.msrb.mxu1 %v2730_v20  ;;  %v2815_v20 = vld [vmem:[%s4436_s1 + $0x274] sm:$0xf]  ;;  %v2054_v22 = vor.u32 %v2781_v11, %v2051_v12  ;;  %v2118_v11 = vor.u32 %v2797_v49, %v2115_v59 }
  0x6b   :  { %1478 = vmatmul.bf16.vlgmr.msra.gmra.mxu1 %v3692_v39  ;;  %v2795_v12 = vld [vmem:[%s4436_s1 + $0x1d4] sm:$0xf] }
  0x6c   :  { %1537 = vmatpush.bf16.msrb.mxu2 %v1918_v13  ;;  %v1886_v13 = vor.u32 %v2739_v3, %v1883_v4  ;;  %v2171_v3 = vld [vmem:[%s4436_s1 + $0x258] sm:$0xf0] }
  0x6d   :  { %1511 = vmatpush.bf16.msrb.mxu0 %v2682_v26  ;;  %1549 = vmatpush.bf16.msrb.mxu3 %v1990_v29  ;;  %v2650_v26 = vor.u32 %v2932_v14, %v2649_v8  ;;  %v2779_v29 = vld [vmem:[%s4436_s1 + $0x154] sm:$0xf]  ;;  %v2027_v8 = vld [vmem:[%s4436_s1 + $0x138] sm:$0xf0]  ;;  %v2174_v15 = vor.u32 %v2811_v0, %v2171_v3 }
  0x6e   :  { %1527 = vmatpush.bf16.msrb.mxu1 %v2722_v37  ;;  %v2190_v37 = vor.u32 %v2815_v20, %v2187_v21  ;;  %v2773_v21 = vld [vmem:[%s4436_s1 + $0x124] sm:$0xf]  ;;  %v2315_v0 = vld [vmem:[%s4436_s1 + $0x378] sm:$0xf0] }
  0x70   :  { %1538 = vmatpush.bf16.msrb.mxu2 %v1910_v30  ;;  %v2043_v30 = vld [vmem:[%s4436_s1 + $0x158] sm:$0xf0] }
  0x71   :  { %1512 = vmatpush.bf16.msrb.mxu0 %v2674_v42  ;;  %1550 = vmatpush.bf16.msrb.mxu3 %v1982_v44  ;;  %v3807_v42 = vld [vmem:[#allocation1 + $0x2d] sm:$0xff] }
  0x72   :  { %1528 = vmatpush.bf16.msrb.mxu1 %v2714_v52  ;;  %v2179_v44 = vld [vmem:[%s4436_s1 + $0x268] sm:$0xf0]  ;;  %v2777_v52 = vld [vmem:[%s4436_s1 + $0x144] sm:$0xf] }
  0x73   :  { %v2182_v58 = vor.u32 %v2813_v43, %v2179_v44  ;;  %v2038_v4 = vor.u32 %v2777_v52, %v2035_v53  ;;  %v2091_v43 = vld [vmem:[%s4436_s1 + $0x1b8] sm:$0xf0]  ;;  %v2771_v44 = vld [vmem:[%s4436_s1 + $0x114] sm:$0xf]  ;;  %v2227_v52 = vld [vmem:[%s4436_s1 + $0x2c8] sm:$0xf0] }
  0x74   :  { %1539 = vmatpush.bf16.msrb.mxu2 %v1902_v45  ;;  %v2046_v45 = vor.u32 %v2779_v29, %v2043_v30  ;;  %v1740_v29 = vunpack.c.l.bf16 %v1737_v18  ;;  %v1750_v53 = vld [vmem:[%s4437_s0 + $0x4] sm:$0x3] }
  0x75   :  { %1513 = vmatpush.bf16.msrb.mxu0 %v2666_v55  ;;  %1551 = vmatpush.bf16.msrb.mxu3 %v1974_v57  ;;  %v2126_v55 = vor.u32 %v2799_v40, %v2123_v41  ;;  %v1939_v57 = vld [vmem:[%s4436_s1 + $0x88] sm:$0xf0]  ;;  %v2791_v41 = vld [vmem:[%s4436_s1 + $0x1b4] sm:$0xf]  ;;  %v1753_v3 = vunpack.c.l.bf16 %v1750_v53 }
  0x76   :  { %1529 = vmatpush.bf16.msrb.mxu1 %v2706_v5  ;;  %v1725_v46 = vpop.permute.xlu0 %1724  ;;  %v2094_v59 = vor.u32 %v2791_v41, %v2091_v43  ;;  %v2843_v43 = vld [vmem:[%s4436_s1 + $0x354] sm:$0xf] }
  0x77   :  { %v1726_v54 = vrot.slane %v1725_v46, 2  ;;  %v2863_v53 = vld [vmem:[%s4436_s1 + $0x3f4] sm:$0xf] }
  0x78   :  { %1540 = vmatpush.bf16.msrb.mxu2 %v1894_v60  ;;  %v2831_v60 = vld [vmem:[%s4436_s1 + $0x2f4] sm:$0xf] }
  0x79   :  { %1514 = vmatpush.bf16.msrb.mxu0 %v2658_v7  ;;  %1552 = vmatpush.bf16.msrb.mxu3 %v1966_v10  ;;  %v1727_v63 = vsel %vm1350_vm0, %v1725_v46, %v1726_v54  ;;  %v2775_v7 = vld [vmem:[%s4436_s1 + $0x134] sm:$0xf]  ;;  %v3854_v10 = vld [vmem:[#allocation1 + $0x24] sm:$0xff]  ;;  %v2254_v14 = vor.u32 %v2831_v60, %v2251_v62 }
  0x7a   :  { %1561 = vmatpush.bf16.msra.mxu1 %v2062_v6  ;;  %v1729_v5 = vmax.f32 %v1721_v47, %v1727_v63  ;;  %v1942_v6 = vor.u32 %v2753_v56, %v1939_v57  ;;  %v2030_v20 = vor.u32 %v2775_v7, %v2027_v8  ;;  %v2805_v54 = vld [vmem:[%s4436_s1 + $0x224] sm:$0xf]  ;;  %v2847_v63 = vld [vmem:[%s4436_s1 + $0x374] sm:$0xf]  ;;  %v2219_v7 = vld [vmem:[%s4436_s1 + $0x2b8] sm:$0xf0] }
  0x7b   :  { %2735 = vmatmul.msk.bf16.vlgmr.msrb.gmra.mxu1 %vm1350_vm0, %v3807_v42  ;;  %v2769_v57 = vld [vmem:[%s4436_s1 + $0x104] sm:$0xf]  ;;  %v2803_v8 = vld [vmem:[%s4436_s1 + $0x214] sm:$0xf] }
  0x7c   :  { %1541 = vmatpush.bf16.msrb.mxu2 %v1886_v13  ;;  %v2107_v13 = vld [vmem:[%s4436_s1 + $0x1d8] sm:$0xf0]  ;;  %1731 = vst [vmem:[#allocation1] ss:$4 sm:$0xff] %v1729_v5  ;;  %v2789_v60 = vld [vmem:[%s4436_s1 + $0x1a4] sm:$0xf] }
  0x7d   :  { %1515 = vmatpush.bf16.msrb.mxu0 %v2650_v26  ;;  %1553 = vmatpush.bf16.msrb.mxu3 %v1958_v28  ;;  %v2110_v26 = vor.u32 %v2795_v12, %v2107_v13  ;;  %v2246_v28 = vor.u32 %v2829_v16, %v2243_v17  ;;  %v2083_v5 = vld [vmem:[%s4436_s1 + $0x1a8] sm:$0xf0]  ;;  %v2787_v13 = vld [vmem:[%s4436_s1 + $0x194] sm:$0xf]  ;;  %v2845_v16 = vld [vmem:[%s4436_s1 + $0x364] sm:$0xf] }
  0x7e   :  { %1562 = vmatpush.bf16.msra.mxu1 %v2054_v22  ;;  %v2019_v22 = vld [vmem:[%s4436_s1 + $0x128] sm:$0xf0] }
  0x7f   :  { %v2022_v40 = vor.u32 %v2773_v21, %v2019_v22  ;;  %v2307_v17 = vld [vmem:[%s4436_s1 + $0x368] sm:$0xf0]  ;;  %v2821_v22 = vld [vmem:[%s4436_s1 + $0x2a4] sm:$0xf] }
  0x80   :  { %1542 = vmatpush.bf16.msrb.mxu2 %v1878_v31  ;;  %v2099_v31 = vld [vmem:[%s4436_s1 + $0x1c8] sm:$0xf0] }
  0x81   :  { %1516 = vmatpush.bf16.msrb.mxu0 %v2642_v48  ;;  %1554 = vmatpush.bf16.msrb.mxu3 %v1950_v51  ;;  %v2102_v47 = vor.u32 %v2793_v27, %v2099_v31  ;;  %v2238_v48 = vor.u32 %v2827_v32, %v2235_v35  ;;  %v2825_v51 = vld [vmem:[%s4436_s1 + $0x2c4] sm:$0xf]  ;;  %v2131_v31 = vld [vmem:[%s4436_s1 + $0x208] sm:$0xf0]  ;;  %v2879_v32 = vld [vmem:[%s4436_s1 + $0x474] sm:$0xf] }
  0x82   :  { %1563 = vmatpush.bf16.msra.mxu1 %v2046_v45  ;;  %v2011_v45 = vld [vmem:[%s4436_s1 + $0x118] sm:$0xf0]  ;;  %v2230_v62 = vor.u32 %v2825_v51, %v2227_v52 }
  0x83   :  { %1543 = vmatmul.bf16.vlgmr.msrb.gmra.mxu2 %v3305_v25  ;;  %v2163_v25 = vld [vmem:[%s4436_s1 + $0x248] sm:$0xf0]  ;;  %v3916_v46 = vld.sshfl [vmem:[#allocation1] sm:$0xff pattern:$0x73625140]  ;;  %v2014_v56 = vor.u32 %v2771_v44, %v2011_v45 }
  0x84   :  { %1587 = vmatpush.bf16.msra.mxu2 %v2190_v37  ;;  %1517 = vmatmul.bf16.vlgmr.msrb.gmra.mxu0 %v3854_v10  ;;  %v2166_v30 = vor.u32 %v2809_v19, %v2163_v25  ;;  %v2155_v37 = vld [vmem:[%s4436_s1 + $0x238] sm:$0xf0]  ;;  %v2086_v25 = vor.u32 %v2789_v60, %v2083_v5 }
  0x85   :  { %1574 = vmatpush.bf16.msra.mxu0 %v2126_v55  ;;  %1555 = vmatpush.bf16.msrb.mxu3 %v1942_v6  ;;  %v2158_v49 = vor.u32 %v2807_v36, %v2155_v37  ;;  %v2147_v55 = vld [vmem:[%s4436_s1 + $0x228] sm:$0xf0]  ;;  %v2823_v6 = vld [vmem:[%s4436_s1 + $0x2b4] sm:$0xf]  ;;  %v2443_v35 = vld [vmem:[%s4436_s1 + $0x478] sm:$0xf0]  ;;  %v2310_v36 = vor.u32 %v2845_v16, %v2307_v17 }
  0x86   :  { %1564 = vmatpush.bf16.msra.mxu1 %v2038_v4  ;;  %v2150_v4 = vor.u32 %v2805_v54, %v2147_v55  ;;  %v2299_v44 = vld [vmem:[%s4436_s1 + $0x358] sm:$0xf0]  ;;  %v2446_v52 = vor.u32 %v2879_v32, %v2443_v35  ;;  %v2877_v55 = vld [vmem:[%s4436_s1 + $0x464] sm:$0xf] }
  0x87   :  { %v2203_v51 = vld [vmem:[%s4436_s1 + $0x298] sm:$0xf0]  ;;  %v2873_v32 = vld [vmem:[%s4436_s1 + $0x444] sm:$0xf] }
  0x88   :  { %1588 = vmatpush.bf16.msra.mxu2 %v2182_v58  ;;  %1556 = vmatmul.bf16.vlgmr.msrb.gmra.mxu3 %v3357_v50  ;;  %v3918_v50 = vld.sshfl [vmem:[#allocation1 + $0x8] sm:$0xff pattern:$0x73625140]  ;;  %v2379_v54 = vld [vmem:[%s4436_s1 + $0x3f8] sm:$0xf0] }
  0x89   :  { %1575 = vmatpush.bf16.msra.mxu0 %v2118_v11  ;;  %1600 = vmatpush.bf16.msra.mxu3 %v2254_v14  ;;  %1742 = vst [vmem:[#allocation1] ss:$4 sm:$0xff] %v1740_v29  ;;  %v2003_v58 = vld [vmem:[%s4436_s1 + $0x108] sm:$0xf0]  ;;  %v2139_v11 = vld [vmem:[%s4436_s1 + $0x218] sm:$0xf0]  ;;  %v2382_v5 = vor.u32 %v2863_v53, %v2379_v54 }
  0x8a   :  { %1565 = vmatpush.bf16.msra.mxu1 %v2030_v20  ;;  %v2006_v12 = vor.u32 %v2769_v57, %v2003_v58  ;;  %v2075_v14 = vld [vmem:[%s4436_s1 + $0x198] sm:$0xf0]  ;;  %v2222_v20 = vor.u32 %v2823_v6, %v2219_v7  ;;  %v2142_v21 = vor.u32 %v2803_v8, %v2139_v11  ;;  %v1768_v29 = vld [vmem:[%s4437_s0 + $0x6] sm:$0x3]  ;;  %v2302_v57 = vor.u32 %v2843_v43, %v2299_v44  ;;  %v2291_v58 = vld [vmem:[%s4436_s1 + $0x348] sm:$0xf0] }
  0x8b   :  { %v2078_v37 = vor.u32 %v2787_v13, %v2075_v14  ;;  %v1771_v45 = vunpack.c.l.bf16 %v1768_v29  ;;  %v2817_v6 = vld [vmem:[%s4436_s1 + $0x284] sm:$0xf]  ;;  %v2195_v7 = vld [vmem:[%s4436_s1 + $0x288] sm:$0xf0]  ;;  %v2507_v13 = vld [vmem:[%s4436_s1 + $0x4f8] sm:$0xf0] }
  0x8c   :  { %1589 = vmatpush.bf16.msra.mxu2 %v2174_v15  ;;  %v2318_v15 = vor.u32 %v2847_v63, %v2315_v0  ;;  %v2861_v0 = vld [vmem:[%s4436_s1 + $0x3e4] sm:$0xf]  ;;  %v2371_v11 = vld [vmem:[%s4436_s1 + $0x3e8] sm:$0xf0]  ;;  %v2875_v14 = vld [vmem:[%s4436_s1 + $0x454] sm:$0xf]  ;;  %v2198_v17 = vor.u32 %v2817_v6, %v2195_v7 }
  0x8d   :  { %1576 = vmatpush.bf16.msra.mxu0 %v2110_v26  ;;  %1601 = vmatpush.bf16.msra.mxu3 %v2246_v28  ;;  %v2211_v26 = vld [vmem:[%s4436_s1 + $0x2a8] sm:$0xf0]  ;;  %v2363_v29 = vld [vmem:[%s4436_s1 + $0x3d8] sm:$0xf0]  ;;  %v2893_v35 = vld [vmem:[%s4436_s1 + $0x4e4] sm:$0xf] }
  0x8e   :  { %1566 = vmatpush.bf16.msra.mxu1 %v2022_v40  ;;  %v2785_v40 = vld [vmem:[%s4436_s1 + $0x184] sm:$0xf]  ;;  %v2214_v41 = vor.u32 %v2821_v22, %v2211_v26  ;;  %v2374_v22 = vor.u32 %v2861_v0, %v2371_v11  ;;  %v2859_v26 = vld [vmem:[%s4436_s1 + $0x3d4] sm:$0xf]  ;;  %v2491_v53 = vld [vmem:[%s4436_s1 + $0x4d8] sm:$0xf0] }
  0x8f   :  { %v2871_v54 = vld [vmem:[%s4436_s1 + $0x434] sm:$0xf]  ;;  %v2869_v0 = vld [vmem:[%s4436_s1 + $0x424] sm:$0xf]  ;;  %v1812_v11 = vld [vmem:[%s4437_s0 + $0xa] sm:$0x3] }
  0x90   :  { %1590 = vmatpush.bf16.msra.mxu2 %v2166_v30  ;;  %v3977_v18 = vld.sshfl [vmem:[#allocation1] sm:$0xff pattern:$0x73625140]  ;;  %v3979_v19 = vld.sshfl [vmem:[#allocation1 + $0x8] sm:$0xff pattern:$0x73625140] }
  0x91   :  { %1577 = vmatpush.bf16.msra.mxu0 %v2102_v47  ;;  %1602 = vmatpush.bf16.msra.mxu3 %v2238_v48  ;;  %1755 = vst [vmem:[#allocation1] ss:$4 sm:$0xff] %v1753_v3  ;;  %v1748_v27 = vmax.f32 %v3918_v50, %v3979_v19  ;;  %v1747_v28 = vmax.f32 %v3916_v46, %v3977_v18  ;;  %v2801_v30 = vld [vmem:[%s4436_s1 + $0x204] sm:$0xf]  ;;  %v2067_v48 = vld [vmem:[%s4436_s1 + $0x188] sm:$0xf0] }
  0x92   :  { %1567 = vmatpush.bf16.msra.mxu1 %v2014_v56  ;;  %v2134_v47 = vor.u32 %v2801_v30, %v2131_v31  ;;  %v2435_v56 = vld [vmem:[%s4436_s1 + $0x468] sm:$0xf0]  ;;  %v2070_v63 = vor.u32 %v2785_v40, %v2067_v48  ;;  %v2837_v40 = vld [vmem:[%s4436_s1 + $0x324] sm:$0xf] }
  0x93   :  { %v2438_v8 = vor.u32 %v2877_v55, %v2435_v56  ;;  %v2857_v48 = vld [vmem:[%s4436_s1 + $0x3c4] sm:$0xf]  ;;  %v2411_v55 = vld [vmem:[%s4436_s1 + $0x438] sm:$0xf0] }
  0x94   :  { %1591 = vmatpush.bf16.msra.mxu2 %v2158_v49  ;;  %v2819_v49 = vld [vmem:[%s4436_s1 + $0x294] sm:$0xf]  ;;  %v2833_v7 = vld [vmem:[%s4436_s1 + $0x304] sm:$0xf] }
  0x95   :  { %1578 = vmatpush.bf16.msra.mxu0 %v2094_v59  ;;  %1603 = vmatpush.bf16.msra.mxu3 %v2230_v62  ;;  %v1781_v59 = vld [vmem:[%s4437_s0 + $0x7] sm:$0x3]  ;;  %v2206_v3 = vor.u32 %v2819_v49, %v2203_v51  ;;  %v2355_v51 = vld [vmem:[%s4436_s1 + $0x3c8] sm:$0xf0] }
  0x96   :  { %1568 = vmatpush.bf16.msra.mxu1 %v2006_v12  ;;  %v2895_v12 = vld [vmem:[%s4436_s1 + $0x4f4] sm:$0xf] }
  0x97   :  { %v2510_v30 = vor.u32 %v2895_v12, %v2507_v13 }
  0x98   :  { %1592 = vmatpush.bf16.msra.mxu2 %v2150_v4  ;;  %v1756_v60 = vld.sshfl [vmem:[#allocation1] sm:$0xff pattern:$0x73625140]  ;;  %v1757_v62 = vld.sshfl [vmem:[#allocation1 + $0x8] sm:$0xff pattern:$0x73625140] }
  0x99   :  { %1579 = vmatpush.bf16.msra.mxu0 %v2086_v25  ;;  %1604 = vmatpush.bf16.msra.mxu3 %v2222_v20  ;;  %v2954_v4 = vpack.i.bf16 %v1757_v62, %v1756_v60  ;;  %1773 = vst [vmem:[#allocation1] ss:$4 sm:$0xff] %v1771_v45  ;;  %v2839_v25 = vld [vmem:[%s4436_s1 + $0x334] sm:$0xf]  ;;  %v2283_v20 = vld [vmem:[%s4436_s1 + $0x338] sm:$0xf0] }
  0x9a   :  { %1613 = vmatpush.bf16.msrb.mxu1 %v2318_v15  ;;  %v2427_v15 = vld [vmem:[%s4436_s1 + $0x458] sm:$0xf0]  ;;  %v1799_v45 = vld [vmem:[%s4437_s0 + $0x9] sm:$0x3]  ;;  %v2855_v60 = vld [vmem:[%s4436_s1 + $0x3b4] sm:$0xf] }
  0x9b   :  { %1569 = vmatmul.bf16.vlgmr.msra.gmra.mxu1 %v3300_v23  ;;  %v2841_v23 = vld [vmem:[%s4436_s1 + $0x344] sm:$0xf]  ;;  %2955 = vrot.lane.b32.xlu0 %v2954_v4, %s2969_s18  ;;  %v2430_v31 = vor.u32 %v2875_v14, %v2427_v15  ;;  %v2483_v4 = vld [vmem:[%s4436_s1 + $0x4c8] sm:$0xf0] }
  0x9c   :  { %1593 = vmatpush.bf16.msra.mxu2 %v2142_v21  ;;  %v2294_v16 = vor.u32 %v2841_v23, %v2291_v58  ;;  %v1784_v21 = vunpack.c.l.bf16 %v1781_v59  ;;  %v2267_v23 = vld [vmem:[%s4436_s1 + $0x318] sm:$0xf0]  ;;  %v1802_v58 = vunpack.c.l.bf16 %v1799_v45  ;;  %v2358_v59 = vor.u32 %v2857_v48, %v2355_v51  ;;  %v2853_v14 = vld [vmem:[%s4436_s1 + $0x3a4] sm:$0xf]  ;;  %v2467_v51 = vld [vmem:[%s4436_s1 + $0x4a8] sm:$0xf0] }
  0x9d   :  { %1580 = vmatpush.bf16.msra.mxu0 %v2078_v37  ;;  %1605 = vmatpush.bf16.msra.mxu3 %v2214_v41  ;;  %v2419_v37 = vld [vmem:[%s4436_s1 + $0x448] sm:$0xf0]  ;;  %v2909_v45 = vld [vmem:[%s4436_s1 + $0x564] sm:$0xf] }
  0x9e   :  { %1614 = vmatpush.bf16.msrb.mxu1 %v2310_v36  ;;  %v2499_v36 = vld [vmem:[%s4436_s1 + $0x4e8] sm:$0xf0] }
  0x9f   :  { %v2275_v41 = vld [vmem:[%s4436_s1 + $0x328] sm:$0xf0]  ;;  %v2502_v49 = vor.u32 %v2893_v35, %v2499_v36  ;;  %v2851_v35 = vld [vmem:[%s4436_s1 + $0x394] sm:$0xf] }
  0xa0   :  { %1594 = vmatpush.bf16.msra.mxu2 %v2134_v47  ;;  %v4103_v43 = vld.sshfl [vmem:[#allocation1] sm:$0xff pattern:$0x73625140]  ;;  %v4105_v44 = vld.sshfl [vmem:[#allocation1 + $0x8] sm:$0xff pattern:$0x73625140]  ;;  %v2366_v47 = vor.u32 %v2859_v26, %v2363_v29  ;;  %v2278_v56 = vor.u32 %v2837_v40, %v2275_v41 }
  0xa1   :  { %1581 = vmatpush.bf16.msra.mxu0 %v2070_v63  ;;  %1606 = vmatpush.bf16.msra.mxu3 %v2206_v3  ;;  %1786 = vst [vmem:[#allocation1] ss:$4 sm:$0xff] %v1784_v21  ;;  %v2414_v63 = vor.u32 %v2871_v54, %v2411_v55  ;;  %v2889_v3 = vld [vmem:[%s4436_s1 + $0x4c4] sm:$0xf]  ;;  %v2887_v26 = vld [vmem:[%s4436_s1 + $0x4b4] sm:$0xf] }
  0xa2   :  { %1615 = vmatpush.bf16.msrb.mxu1 %v2302_v57  ;;  %v2835_v57 = vld [vmem:[%s4436_s1 + $0x314] sm:$0xf]  ;;  %v2475_v29 = vld [vmem:[%s4436_s1 + $0x4b8] sm:$0xf0]  ;;  %v1830_v55 = vld [vmem:[%s4437_s0 + $0xc] sm:$0x3] }
  0xa3   :  { %1595 = vmatmul.bf16.vlgmr.msra.gmra.mxu2 %v3449_v34  ;;  %v2286_v34 = vor.u32 %v2839_v25, %v2283_v20  ;;  %v2270_v6 = vor.u32 %v2835_v57, %v2267_v23  ;;  %v2911_v25 = vld [vmem:[%s4436_s1 + $0x574] sm:$0xf]  ;;  %v2571_v20 = vld [vmem:[%s4436_s1 + $0x578] sm:$0xf0]  ;;  %v2478_v41 = vor.u32 %v2887_v26, %v2475_v29  ;;  %v2849_v23 = vld [vmem:[%s4436_s1 + $0x384] sm:$0xf] }
  0xa4   :  { %1639 = vmatpush.bf16.msrb.mxu2 %v2446_v52  ;;  %1582 = vmatmul.bf16.vlgmr.msra.gmra.mxu0 %v3333_v38  ;;  %v2422_v38 = vor.u32 %v2873_v32, %v2419_v37  ;;  %v2891_v52 = vld [vmem:[%s4436_s1 + $0x4d4] sm:$0xf]  ;;  %v2574_v36 = vor.u32 %v2911_v25, %v2571_v20  ;;  %v1815_v37 = vunpack.c.l.bf16 %v1812_v11  ;;  %v2331_v40 = vld [vmem:[%s4436_s1 + $0x398] sm:$0xf0]  ;;  %v2691_v11 = vld [vmem:[%s4436_s1 + $0x668] sm:$0xf0] }
  0xa5   :  { %1626 = vmatpush.bf16.msrb.mxu0 %v2382_v5  ;;  %1607 = vmatpush.bf16.msra.mxu3 %v2198_v17  ;;  %v2494_v62 = vor.u32 %v2891_v52, %v2491_v53  ;;  %v2403_v5 = vld [vmem:[%s4436_s1 + $0x428] sm:$0xf0]  ;;  %v2486_v17 = vor.u32 %v2889_v3, %v2483_v4  ;;  %v2943_v53 = vld [vmem:[%s4436_s1 + $0x674] sm:$0xf]  ;;  %v2699_v54 = vld [vmem:[%s4436_s1 + $0x678] sm:$0xf0] }
  0xa6   :  { %1616 = vmatpush.bf16.msrb.mxu1 %v2294_v16  ;;  %v2406_v21 = vor.u32 %v2869_v0, %v2403_v5  ;;  %v2387_v52 = vld [vmem:[%s4436_s1 + $0x408] sm:$0xf0]  ;;  %v2883_v3 = vld [vmem:[%s4436_s1 + $0x494] sm:$0xf]  ;;  %v2459_v4 = vld [vmem:[%s4436_s1 + $0x498] sm:$0xf0]  ;;  %v2702_v5 = vor.u32 %v2943_v53, %v2699_v54 }
  0xa7   :  { %v2323_v0 = vld [vmem:[%s4436_s1 + $0x388] sm:$0xf0]  ;;  %v2881_v26 = vld [vmem:[%s4436_s1 + $0x484] sm:$0xf] }
  0xa8   :  { %1640 = vmatpush.bf16.msrb.mxu2 %v2438_v8  ;;  %1608 = vmatmul.bf16.vlgmr.msra.gmra.mxu3 %v3501_v61  ;;  %v2347_v61 = vld [vmem:[%s4436_s1 + $0x3b8] sm:$0xf0]  ;;  %v2259_v8 = vld [vmem:[%s4436_s1 + $0x308] sm:$0xf0] }
  0xa9   :  { %1627 = vmatpush.bf16.msrb.mxu0 %v2374_v22  ;;  %1652 = vmatpush.bf16.msrb.mxu3 %v2510_v30  ;;  %v1787_v12 = vld.sshfl [vmem:[#allocation1] sm:$0xff pattern:$0x73625140]  ;;  %v1788_v13 = vld.sshfl [vmem:[#allocation1 + $0x8] sm:$0xff pattern:$0x73625140]  ;;  %v2350_v16 = vor.u32 %v2855_v60, %v2347_v61  ;;  %v2262_v32 = vor.u32 %v2833_v7, %v2259_v8 }
  0xaa   :  { %1617 = vmatpush.bf16.msrb.mxu1 %v2286_v34  ;;  %v2959_v15 = vpack.i.bf16 %v1788_v13, %v1787_v12  ;;  %1804 = vst [vmem:[#allocation1] ss:$4 sm:$0xff] %v1802_v58  ;;  %v2339_v22 = vld [vmem:[%s4436_s1 + $0x3a8] sm:$0xf0]  ;;  %v2867_v30 = vld [vmem:[%s4436_s1 + $0x414] sm:$0xf]  ;;  %v2326_v13 = vor.u32 %v2849_v23, %v2323_v0  ;;  %v1388_v54 = vpop.f32.mrf.mxu2 }
  0xab   :  { %v2342_v34 = vor.u32 %v2853_v14, %v2339_v22  ;;  %v2907_v61 = vld [vmem:[%s4436_s1 + $0x554] sm:$0xf]  ;;  %v2635_v7 = vld [vmem:[%s4436_s1 + $0x5f8] sm:$0xf0]  ;;  %v2941_v8 = vld [vmem:[%s4436_s1 + $0x664] sm:$0xf] }
  0xac   :  { %1641 = vmatpush.bf16.msrb.mxu2 %v2430_v31  ;;  %2960 = vrot.lane.b32.xlu1 %v2959_v15, %s2969_s18  ;;  %v2395_v31 = vld [vmem:[%s4436_s1 + $0x418] sm:$0xf0]  ;;  %v2925_v14 = vld [vmem:[%s4436_s1 + $0x5e4] sm:$0xf]  ;;  %v2627_v15 = vld [vmem:[%s4436_s1 + $0x5e8] sm:$0xf0] }
  0xad   :  { %1628 = vmatpush.bf16.msrb.mxu0 %v2366_v47  ;;  %1653 = vmatpush.bf16.msrb.mxu3 %v2502_v49  ;;  %v2563_v47 = vld [vmem:[%s4436_s1 + $0x568] sm:$0xf0]  ;;  %v2398_v48 = vor.u32 %v2867_v30, %v2395_v31  ;;  %v2865_v49 = vld [vmem:[%s4436_s1 + $0x404] sm:$0xf]  ;;  %v2683_v22 = vld [vmem:[%s4436_s1 + $0x658] sm:$0xf0]  ;;  %v2694_v30 = vor.u32 %v2941_v8, %v2691_v11 }
  0xae   :  { %1618 = vmatpush.bf16.msrb.mxu1 %v2278_v56  ;;  %v2566_v58 = vor.u32 %v2909_v45, %v2563_v47  ;;  %v2547_v25 = vld [vmem:[%s4436_s1 + $0x548] sm:$0xf0]  ;;  %v2903_v31 = vld [vmem:[%s4436_s1 + $0x534] sm:$0xf]  ;;  %v2539_v45 = vld [vmem:[%s4436_s1 + $0x538] sm:$0xf0] }
  0xaf   :  { %v2451_v29 = vld [vmem:[%s4436_s1 + $0x488] sm:$0xf0]  ;;  %v4294_v47 = vld [vmem:[%s4438_s2] sm:$0x3]  ;;  %v2619_v23 = vld [vmem:[%s4436_s1 + $0x5d8] sm:$0xf0] }
  0xb0   :  { %1642 = vmatpush.bf16.msrb.mxu2 %v2422_v38  ;;  %v2885_v38 = vld [vmem:[%s4436_s1 + $0x4a4] sm:$0xf]  ;;  %v235_v53 = vperm.slane %v4294_v47, 0  ;;  %v2531_v0 = vld [vmem:[%s4436_s1 + $0x528] sm:$0xf0] }
  0xb1   :  { %1629 = vmatpush.bf16.msrb.mxu0 %v2358_v59  ;;  %1654 = vmatpush.bf16.msrb.mxu3 %v2494_v62  ;;  %v4220_v56 = vld.sshfl [vmem:[#allocation1] sm:$0xff pattern:$0x73625140]  ;;  %v4222_v57 = vld.sshfl [vmem:[#allocation1 + $0x8] sm:$0xff pattern:$0x73625140]  ;;  %v2334_v59 = vor.u32 %v2851_v35, %v2331_v40  ;;  %v2470_v60 = vor.u32 %v2885_v38, %v2467_v51  ;;  %v2630_v38 = vor.u32 %v2925_v14, %v2627_v15 }
  0xb2   :  { %1619 = vmatpush.bf16.msrb.mxu1 %v2270_v6  ;;  %1817 = vst [vmem:[#allocation1] ss:$4 sm:$0xff] %v1815_v37  ;;  %v2555_v62 = vld [vmem:[%s4436_s1 + $0x558] sm:$0xf0]  ;;  %v2927_v6 = vld [vmem:[%s4436_s1 + $0x5f4] sm:$0xf] }
  0xb3   :  { %v2558_v12 = vor.u32 %v2907_v61, %v2555_v62  ;;  %v2638_v20 = vor.u32 %v2927_v6, %v2635_v7  ;;  %v2731_v35 = vld [vmem:[%s4436_s1 + $0x6b8] sm:$0xf0]  ;;  %v2923_v51 = vld [vmem:[%s4436_s1 + $0x5d4] sm:$0xf]  ;;  %v2542_v61 = vor.u32 %v2903_v31, %v2539_v45  ;;  %v2611_v8 = vld [vmem:[%s4436_s1 + $0x5c8] sm:$0xf0] }
  0xb4   :  { %1643 = vmatpush.bf16.msrb.mxu2 %v2414_v63  ;;  %v2390_v63 = vor.u32 %v2865_v49, %v2387_v52  ;;  %v1375_v49 = vpop.f32.mrf.mxu1  ;;  %v2947_v11 = vld [vmem:[%s4436_s1 + $0x694] sm:$0xf]  ;;  %v2603_v31 = vld [vmem:[%s4436_s1 + $0x5b8] sm:$0xf0] }
  0xb5   :  { %1630 = vmatpush.bf16.msrb.mxu0 %v2350_v16  ;;  %1655 = vmatpush.bf16.msrb.mxu3 %v2486_v17  ;;  %v2462_v16 = vor.u32 %v2883_v3, %v2459_v4  ;;  %v2905_v17 = vld [vmem:[%s4436_s1 + $0x544] sm:$0xf]  ;;  %v1401_v3 = vpop.f32.mrf.mxu3  ;;  %v2622_v4 = vor.u32 %v2923_v51, %v2619_v23 }
  0xb6   :  { %1620 = vmatpush.bf16.msrb.mxu1 %v2262_v32  ;;  %v2951_v32 = vld [vmem:[%s4436_s1 + $0x6b4] sm:$0xf]  ;;  %v2917_v51 = vld [vmem:[%s4436_s1 + $0x5a4] sm:$0xf] }
  0xb7   :  { %v2734_v52 = vor.u32 %v2951_v32, %v2731_v35  ;;  %v2945_v32 = vld [vmem:[%s4436_s1 + $0x684] sm:$0xf]  ;;  %v2707_v35 = vld [vmem:[%s4436_s1 + $0x688] sm:$0xf0] }
  0xb8   :  { %1644 = vmatpush.bf16.msrb.mxu2 %v2406_v21  ;;  %v2939_v21 = vld [vmem:[%s4436_s1 + $0x654] sm:$0xf] }
  0xb9   :  { %1631 = vmatpush.bf16.msrb.mxu0 %v2342_v34  ;;  %1656 = vmatpush.bf16.msrb.mxu3 %v2478_v41  ;;  %v1819_v37 = vld.sshfl [vmem:[#allocation1 + $0x8] sm:$0xff pattern:$0x73625140]  ;;  %v2550_v34 = vor.u32 %v2905_v17, %v2547_v25  ;;  %v2454_v41 = vor.u32 %v2881_v26, %v2451_v29  ;;  %v2523_v17 = vld [vmem:[%s4436_s1 + $0x518] sm:$0xf0]  ;;  %v1390_v29 = vpop.f32.mrf.mxu2 }
  0xba   :  { %1665 = vmatpush.bf16.msra.mxu1 %v2574_v36  ;;  %v1818_v36 = vld.sshfl [vmem:[#allocation1] sm:$0xff pattern:$0x73625140] }
  0xbb   :  { %1621 = vmatmul.bf16.vlgmr.msrb.gmra.mxu1 %v3435_v24  ;;  %v1833_v24 = vunpack.c.l.bf16 %v1830_v55  ;;  %v2964_v40 = vpack.i.bf16 %v1819_v37, %v1818_v36  ;;  %v2686_v55 = vor.u32 %v2939_v21, %v2683_v22  ;;  %v2919_v22 = vld [vmem:[%s4436_s1 + $0x5b4] sm:$0xf]  ;;  %v2933_v36 = vld [vmem:[%s4436_s1 + $0x624] sm:$0xf]  ;;  %v2659_v37 = vld [vmem:[%s4436_s1 + $0x628] sm:$0xf0] }
  0xbc   :  { %1645 = vmatpush.bf16.msrb.mxu2 %v2398_v48  ;;  %v1362_v48 = vpop.f32.mrf.mxu0 }
  0xbd   :  { %1632 = vmatpush.bf16.msrb.mxu0 %v2334_v59  ;;  %1657 = vmatpush.bf16.msrb.mxu3 %v2470_v60  ;;  %1835 = vst [vmem:[#allocation1] ss:$4 sm:$0xff] %v1833_v24  ;;  %v2937_v59 = vld [vmem:[%s4436_s1 + $0x644] sm:$0xf]  ;;  %v2675_v60 = vld [vmem:[%s4436_s1 + $0x648] sm:$0xf0]  ;;  %v1363_v62 = vadd.f32 %v1362_v48, %v235_v53  ;;  %v1403_v45 = vpop.f32.mrf.mxu3  ;;  %v2606_v48 = vor.u32 %v2919_v22, %v2603_v31 }
  0xbe   :  { %1666 = vmatpush.bf16.msra.mxu1 %v2566_v58  ;;  %2965 = vrot.lane.b32.xlu1 %v2964_v40, %s2969_s18  ;;  %v2949_v58 = vld [vmem:[%s4436_s1 + $0x6a4] sm:$0xf]  ;;  %v2678_v7 = vor.u32 %v2937_v59, %v2675_v60  ;;  %v2935_v24 = vld [vmem:[%s4436_s1 + $0x634] sm:$0xf] }
  0xbf   :  { %v2897_v40 = vld [vmem:[%s4436_s1 + $0x504] sm:$0xf]  ;;  %v2931_v53 = vld [vmem:[%s4436_s1 + $0x614] sm:$0xf] }
  0xc0   :  { %1646 = vmatpush.bf16.msrb.mxu2 %v2390_v63  ;;  %v2901_v63 = vld [vmem:[%s4436_s1 + $0x524] sm:$0xf]  ;;  %v2915_v60 = vld [vmem:[%s4436_s1 + $0x594] sm:$0xf] }
  0xc1   :  { %1633 = vmatpush.bf16.msrb.mxu0 %v2326_v13  ;;  %1658 = vmatpush.bf16.msrb.mxu3 %v2462_v16  ;;  %v2667_v13 = vld [vmem:[%s4436_s1 + $0x638] sm:$0xf0]  ;;  %v2534_v14 = vor.u32 %v2901_v63, %v2531_v0  ;;  %v2899_v16 = vld [vmem:[%s4436_s1 + $0x514] sm:$0xf]  ;;  %v2929_v63 = vld [vmem:[%s4436_s1 + $0x604] sm:$0xf] }
  0xc2   :  { %1667 = vmatpush.bf16.msra.mxu1 %v2558_v12  ;;  %v2715_v12 = vld [vmem:[%s4436_s1 + $0x698] sm:$0xf0]  ;;  %v2643_v0 = vld [vmem:[%s4436_s1 + $0x608] sm:$0xf0] }
  0xc3   :  { %1647 = vmatmul.bf16.vlgmr.msrb.gmra.mxu2 %v3644_v9  ;;  %v2723_v9 = vld [vmem:[%s4436_s1 + $0x6a8] sm:$0xf0] }
  0xc4   :  { %1691 = vmatpush.bf16.msra.mxu2 %v2702_v5  ;;  %1634 = vmatmul.bf16.vlgmr.msrb.gmra.mxu0 %v3512_v2  ;;  %v2921_v5 = vld [vmem:[%s4436_s1 + $0x5c4] sm:$0xf]  ;;  %v2726_v6 = vor.u32 %v2949_v58, %v2723_v9  ;;  %v1376_v2 = vadd.f32 %v1375_v49, %v1363_v62  ;;  %v1364_v25 = vpop.f32.mrf.mxu0  ;;  %v2710_v49 = vor.u32 %v2945_v32, %v2707_v35 }
  0xc5   :  { %1678 = vmatpush.bf16.msra.mxu0 %v2638_v20  ;;  %1659 = vmatpush.bf16.msrb.mxu3 %v2454_v41  ;;  %v1377_v20 = vpop.f32.mrf.mxu1  ;;  %v2614_v21 = vor.u32 %v2921_v5, %v2611_v8  ;;  %v2515_v41 = vld [vmem:[%s4436_s1 + $0x508] sm:$0xf0]  ;;  %v2646_v5 = vor.u32 %v2929_v63, %v2643_v0  ;;  %v236_v63 = vperm.slane %v4294_v47, 1 }
  0xc6   :  { %1668 = vmatpush.bf16.msra.mxu1 %v2550_v34  ;;  %v1389_v15 = vadd.f32 %v1388_v54, %v1376_v2  ;;  %v2526_v34 = vor.u32 %v2899_v16, %v2523_v17  ;;  %v2651_v54 = vld [vmem:[%s4436_s1 + $0x618] sm:$0xf0]  ;;  %v1440_v62 = vpop.f32.mrf.mxu2  ;;  %v2579_v2 = vld [vmem:[%s4436_s1 + $0x588] sm:$0xf0] }
  0xc7   :  { %v2654_v59 = vor.u32 %v2931_v53, %v2651_v54  ;;  %v1837_v47 = vld.sshfl [vmem:[#allocation1 + $0x8] sm:$0xff pattern:$0x73625140] }
  0xc8   :  { %1692 = vmatpush.bf16.msra.mxu2 %v2694_v30  ;;  %1660 = vmatmul.bf16.vlgmr.msrb.gmra.mxu3 %v3692_v39  ;;  %v2718_v39 = vor.u32 %v2947_v11, %v2715_v12  ;;  %v1402_v26 = vadd.f32 %v1401_v3, %v1389_v15  ;;  %v2670_v30 = vor.u32 %v2935_v24, %v2667_v13 }
  0xc9   :  { %1679 = vmatpush.bf16.msra.mxu0 %v2630_v38  ;;  %1708 = vmatpush.bf16.msra.mxu3 %v2734_v52  ;;  %v2662_v38 = vor.u32 %v2933_v36, %v2659_v37  ;;  %v2595_v52 = vld [vmem:[%s4436_s1 + $0x5a8] sm:$0xf0] }
  0xca   :  { %1669 = vmatpush.bf16.msra.mxu1 %v2542_v61  ;;  %v2598_v58 = vor.u32 %v2917_v51, %v2595_v52  ;;  %v2587_v61 = vld [vmem:[%s4436_s1 + $0x598] sm:$0xf0] }
  0xcb   :  { %v2590_v3 = vor.u32 %v2915_v60, %v2587_v61  ;;  %v1453_v13 = vpop.f32.mrf.mxu3 }
  0xcc   :  { %1693 = vmatpush.bf16.msra.mxu2 %v2686_v55  ;;  %v2518_v55 = vor.u32 %v2897_v40, %v2515_v41  ;;  %v1414_v23 = vpop.f32.mrf.mxu0 }
  0xcd   :  { %1680 = vmatpush.bf16.msra.mxu0 %v2622_v4  ;;  %1709 = vmatpush.bf16.msra.mxu3 %v2726_v6  ;;  %v1415_v9 = vadd.f32 %v1414_v23, %v1402_v26  ;;  %v1427_v4 = vpop.f32.mrf.mxu1  ;;  %v2913_v6 = vld [vmem:[%s4436_s1 + $0x584] sm:$0xf] }
  0xce   :  { %1670 = vmatpush.bf16.msra.mxu1 %v2534_v14  ;;  %v2582_v12 = vor.u32 %v2913_v6, %v2579_v2  ;;  %v1442_v24 = vpop.f32.mrf.mxu2 }
  0xcf   :  { %v1836_v24 = vld.sshfl [vmem:[#allocation1] sm:$0xff pattern:$0x73625140] }
  0xd0   :  { %1694 = vmatpush.bf16.msra.mxu2 %v2678_v7  ;;  %v1428_v7 = vadd.f32 %v1427_v4, %v1415_v9 }
  0xd1   :  { %1681 = vmatpush.bf16.msra.mxu0 %v2614_v21  ;;  %1710 = vmatpush.bf16.msra.mxu3 %v2718_v39 }
  0xd2   :  { %1671 = vmatpush.bf16.msra.mxu1 %v2526_v34  ;;  %v1441_v11 = vadd.f32 %v1440_v62, %v1428_v7 }
  0xd3   :  { %v1455_v16 = vpop.f32.mrf.mxu3 }
  0xd4   :  { %1695 = vmatpush.bf16.msra.mxu2 %v2670_v30  ;;  %v1416_v8 = vpop.f32.mrf.mxu0  ;;  %v1454_v14 = vadd.f32 %v1453_v13, %v1441_v11 }
  0xd5   :  { %1682 = vmatpush.bf16.msra.mxu0 %v2606_v48  ;;  %1711 = vmatpush.bf16.msra.mxu3 %v2710_v49  ;;  %v1429_v15 = vpop.f32.mrf.mxu1 }
  0xd6   :  { %1672 = vmatpush.bf16.msra.mxu1 %v2518_v55 }
  0xd8   :  { %1696 = vmatpush.bf16.msra.mxu2 %v2662_v38  ;;  %2736 = vmatmul.msk.bf16.vlgmr.msra.gmra.mxu3 %vm1350_vm0, %v3807_v42 }
  0xd9   :  { %1683 = vmatpush.bf16.msra.mxu0 %v2598_v58  ;;  %1673 = vmatmul.bf16.vlgmr.msra.gmra.mxu1 %v3627_v1 }
  0xdc   :  { %1697 = vmatpush.bf16.msra.mxu2 %v2654_v59 }
  0xdd   :  { %1684 = vmatpush.bf16.msra.mxu0 %v2590_v3 }
  0xe0   :  { %1698 = vmatpush.bf16.msra.mxu2 %v2646_v5 }
  0xe1   :  { %1685 = vmatpush.bf16.msra.mxu0 %v2582_v12  ;;  %v1466_v1 = vpop.f32.mrf.mxu0 }
  0xe2   :  { %v1467_v17 = vadd.f32 %v1466_v1, %v1454_v14 }
  0xe3   :  { %1699 = vmatmul.bf16.vlgmr.msra.gmra.mxu2 %v3854_v10 }
  0xe4   :  { %1686 = vmatmul.bf16.vlgmr.msra.gmra.mxu0 %v3684_v33 }
  0xe6   :  { %v1492_v25 = vpop.f32.mrf.mxu2 }
  0xe8   :  { %v1479_v20 = vpop.f32.mrf.mxu1 }
  0xe9   :  { %v1480_v42 = vadd.f32 %v1479_v20, %v1467_v17  ;;  %v1468_v21 = vpop.f32.mrf.mxu0 }
  0xeb   :  { %v1493_v22 = vadd.f32 %v1492_v25, %v1480_v42  ;;  %v1505_v39 = vpop.f32.mrf.mxu3 }
  0xed   :  { %v1506_v29 = vadd.f32 %v1505_v39, %v1493_v22 }
  0xee   :  { %v1494_v26 = vpop.f32.mrf.mxu2 }
  0xf0   :  { %v1481_v30 = vpop.f32.mrf.mxu1 }
  0xf3   :  { %v1507_v31 = vpop.f32.mrf.mxu3 }
  0xf8   :  { %v1531_v32 = vpop.f32.mrf.mxu1 }
 0x100   :  { %v1533_v36 = vpop.f32.mrf.mxu1 }
 0x101   :  { %v1518_v35 = vpop.f32.mrf.mxu0 }
 0x102   :  { %v1519_v10 = vadd.f32 %v1518_v35, %v1506_v29 }
 0x104   :  { %v4408_v37 = vadd.f32 %v1531_v32, %v1519_v10 }
 0x106   :  { %v1544_v33 = vpop.f32.mrf.mxu2 }
 0x107   :  { %v1545_v19 = vadd.f32 %v1544_v33, %v236_v63 }
 0x109   :  { %v1520_v34 = vpop.f32.mrf.mxu0 }
 0x10b   :  { %v1557_v40 = vpop.f32.mrf.mxu3 }
 0x10c   :  { %v1558_v18 = vadd.f32 %v1557_v40, %v1545_v19 }
 0x10d   :  { %v2956_v49 = vpop.permute.xlu0 %2955 }
 0x10e   :  { %v1546_v41 = vpop.f32.mrf.mxu2  ;;  %v2958_v52 = vunpack.i.h.bf16 %v2956_v49  ;;  %v2957_v53 = vunpack.i.l.bf16 %v2956_v49 }
 0x110   :  { %v1762_v23 = vsel %vm1350_vm0, %v2957_v53, %v2958_v52  ;;  %v1766_v58 = vmax.f32 %v1748_v27, %v2958_v52 }
 0x111   :  { %v1765_v61 = vmax.f32 %v1747_v28, %v1762_v23 }
 0x112   :  { %v1779_v0 = vmax.f32 %v1766_v58, %v4105_v44 }
 0x113   :  { %v1559_v45 = vpop.f32.mrf.mxu3  ;;  %v1778_v5 = vmax.f32 %v1765_v61, %v4103_v43 }
 0x118   :  { %v1570_v48 = vpop.f32.mrf.mxu1 }
 0x119   :  { %v1571_v15 = vadd.f32 %v1570_v48, %v1558_v18 }
 0x11e   :  { %v2961_v55 = vpop.permute.xlu1 %2960 }
 0x11f   :  { %v2963_v9 = vunpack.i.h.bf16 %v2961_v55  ;;  %v2962_v59 = vunpack.i.l.bf16 %v2961_v55  ;;  %v1717_v55 = vmax.f32 %v4408_v37, 0.0 }
 0x120   :  { %v1572_v51 = vpop.f32.mrf.mxu1 }
 0x121   :  { %v1583_v38 = vpop.f32.mrf.mxu0  ;;  %v1793_v3 = vsel %vm1350_vm0, %v2962_v59, %v2963_v9  ;;  %v1797_v6 = vmax.f32 %v1779_v0, %v2963_v9 }
 0x122   :  { %v1796_v50 = vmax.f32 %v1778_v5, %v1793_v3  ;;  %v1584_v1 = vadd.f32 %v1583_v38, %v1571_v15 }
 0x123   :  { %v1810_v2 = vmax.f32 %v1797_v6, %v4222_v57 }
 0x124   :  { %v1809_v28 = vmax.f32 %v1796_v50, %v4220_v56 }
 0x126   :  { %v1596_v54 = vpop.f32.mrf.mxu2 }
 0x127   :  { %v1597_v21 = vadd.f32 %v1596_v54, %v1584_v1 }
 0x129   :  { %v1585_v60 = vpop.f32.mrf.mxu0 }
 0x12b   :  { %v1609_v62 = vpop.f32.mrf.mxu3 }
 0x12c   :  { %v1610_v39 = vadd.f32 %v1609_v62, %v1597_v21 }
 0x12e   :  { %v1598_v4 = vpop.f32.mrf.mxu2 }
 0x130   :  { %v2966_v27 = vpop.permute.xlu1 %2965 }
 0x131   :  { %v2968_v7 = vunpack.i.h.bf16 %v2966_v27  ;;  %v2967_v8 = vunpack.i.l.bf16 %v2966_v27 }
 0x133   :  { %v1611_v46 = vpop.f32.mrf.mxu3  ;;  %v1828_v44 = vmax.f32 %v1810_v2, %v2968_v7  ;;  %v1824_v12 = vsel %vm1350_vm0, %v2967_v8, %v2968_v7 }
 0x134   :  { %v1827_v13 = vmax.f32 %v1809_v28, %v1824_v12 }
 0x135   :  { %v1841_v43 = vmax.f32 %v1828_v44, %v1837_v47 }
 0x136   :  { %v1840_v14 = vmax.f32 %v1827_v13, %v1836_v24 }
 0x138   :  { %v1622_v11 = vpop.f32.mrf.mxu1  ;;  %v1842_v16 = vpack.c.bf16 %v1841_v43, %v1840_v14 }
 0x139   :  { %v1623_v29 = vadd.f32 %v1622_v11, %v1610_v39 }
 0x13a   :  { %v1853_v17 = vunpack.c.h.bf16 %v1842_v16  ;;  %v1852_v25 = vunpack.c.l.bf16 %v1842_v16 }
 0x13c   :  { %v1856_v20 = vrot.slane %v1853_v17, 6 }
 0x13e   :  { %v1857_v56 = vsel %vm1846_vm1, %v1852_v25, %v1856_v20 }
 0x13f   :  { %1858 = vrot.lane.b32.xlu2 %v1857_v56, %s2969_s18 }
 0x140   :  { %v1624_v57 = vpop.f32.mrf.mxu1 }
 0x141   :  { %v1635_v42 = vpop.f32.mrf.mxu0 }
 0x142   :  { %v1636_v32 = vadd.f32 %v1635_v42, %v1623_v29 }
 0x146   :  { %v1648_v22 = vpop.f32.mrf.mxu2 }
 0x147   :  { %v1649_v35 = vadd.f32 %v1648_v22, %v1636_v32 }
 0x149   :  { %v1637_v26 = vpop.f32.mrf.mxu0 }
 0x14b   :  { %v1661_v30 = vpop.f32.mrf.mxu3 }
 0x14c   :  { %v1662_v33 = vadd.f32 %v1661_v30, %v1649_v35 }
 0x14e   :  { %v1650_v31 = vpop.f32.mrf.mxu2 }
 0x153   :  { %v1663_v10 = vpop.f32.mrf.mxu3 }
 0x156   :  { %v1674_v36 = vpop.f32.mrf.mxu1 }
 0x157   :  { %v1675_v34 = vadd.f32 %v1674_v36, %v1662_v33 }
 0x15b   :  { %v1713_v40 = vpop.f32.mrf.mxu3 }
 0x15e   :  { %v1676_v41 = vpop.f32.mrf.mxu1 }
 0x161   :  { %v1687_v45 = vpop.f32.mrf.mxu0 }
 0x162   :  { %v1688_v48 = vadd.f32 %v1687_v45, %v1675_v34 }
 0x163   :  { %v1715_v51 = vpop.f32.mrf.mxu3 }
 0x166   :  { %v1700_v49 = vpop.f32.mrf.mxu2 }
 0x167   :  { %v1701_v38 = vadd.f32 %v1700_v49, %v1688_v48 }
 0x169   :  { %v1714_v52 = vadd.f32 %v1713_v40, %v1701_v38  ;;  %v1689_v54 = vpop.f32.mrf.mxu0 }
 0x16b   :  { %v1718_v53 = vmax.f32 %v1714_v52, 0.0 }
 0x16d   :  { %v1845_v23 = vrot.slane %v1718_v53, 6 }
 0x16e   :  { %v1702_v58 = vpop.f32.mrf.mxu2 }
 0x16f   :  { %v1847_v9 = vsel %vm1846_vm1, %v1717_v55, %v1845_v23 }
 0x170   :  { %1851 = vst.msk [vmem:[%s4439_s3] sm:$0xf] %vm1850_vm3, %v1847_v9 }
 0x199   :  { %v1859_v59 = vpop.permute.xlu2 %1858 }
 0x19a   :  { %v1860_v60 = vrot.slane %v1859_v59, 6 }
 0x19c   :  { %v1861_v61 = vsel %vm1350_vm0, %v1860_v60, %v1859_v59 }
 0x19d   :  { %1866 = vst.msk [vmem:[%s4439_s3 + $0x2] sm:$0xf] %vm1865_vm6, %v1861_v61 }

</bundles_post_ra>
